<compile_context>
chip_gen: v7x
topology: tpu7x:2x2x1
jax: 0.10.0
libtpu: 0.0.40
codegen_flags: <defaults>
</compile_context>

<pallas_src>
import functools

import jax
import jax.numpy as jnp
from jax import lax
from jax.experimental import pallas as pl
from jax.experimental.pallas import tpu as pltpu


# ------------------------------ small helpers -------------------------------

def _round_up(x, m):
    return ((x + m - 1) // m) * m


def _pick_tile_rows(m_total, row_bytes, target_bytes=2 << 20):
    """Rows per block: ~target_bytes of lhs per block, multiple of 8 (128 when
    possible), capped at ~M/2 so the parallel axis keeps >= 2 blocks."""
    if m_total <= 8:
        return int(m_total)
    tm = max(1, target_bytes // max(1, row_bytes))
    tm = (tm // 128) * 128 if tm >= 128 else _round_up(tm, 8)
    tm = max(8, min(tm, 2048))
    half = _round_up(-(-m_total // 2), 8)
    tm = min(tm, half, _round_up(m_total, 8))
    return int(max(8, tm))


def _mosaic_params(block_bytes, semantics):
    # real footprint (x2 for double buffering) + modest headroom
    need = int(2 * block_bytes) + (4 << 20)
    need = min(max(need, 12 << 20), 40 << 20)
    return pltpu.CompilerParams(dimension_semantics=semantics,
                                vmem_limit_bytes=need)


def _fold_bn(params):
    """Fold BN (eval, eps already folded into scale) into the conv weights."""
    w, scale, bias = params
    return w * scale[:, None, None, None, None], bias.astype(jnp.float32)


# ------------------------------ Pallas kernels -------------------------------

def _matmul_bias_relu_kernel(x_ref, w_ref, b_ref, o_ref):
    # x_ref: (tm, K) f32/bf16, w_ref: (K, Co) bf16 resident,
    # b_ref: (1, Co) f32 resident, o_ref: (tm, Co) f32/bf16
    acc = jnp.dot(x_ref[...].astype(jnp.bfloat16), w_ref[...],
                  preferred_element_type=jnp.float32)
    o_ref[...] = jnp.maximum(acc + b_ref[...], 0.0).astype(o_ref.dtype)


def _sep_conv_kernel(x_ref, w_ref, b_ref, o_ref, *, taps):
    # 1-D conv (7 taps, stride 1) along the leading axis.
    # x_ref: (A + taps - 1, tm, Ci) bf16, resident across the `a` grid axis.
    # w_ref: (taps, Ci, Co) bf16 resident, b_ref: (1, Co) f32 resident.
    # o_ref: (1, tm, Co) output slab for conv-axis position `a`.
    a = pl.program_id(1)
    acc = jnp.dot(x_ref[a], w_ref[0], preferred_element_type=jnp.float32)
    for t in range(1, taps):
        acc = acc + jnp.dot(x_ref[a + t], w_ref[t],
                            preferred_element_type=jnp.float32)
    o_ref[0] = jnp.maximum(acc + b_ref[...], 0.0).astype(o_ref.dtype)


def _maxpool_kernel(x_ref, o_ref, *, d_out, h_out, h_in, w_in):
    # 3x3x3 / stride-2 max-pool.  x_ref: (1, D*H, W, ct) f32 (whole volume
    # resident), o_ref: (1, Do*Ho, W-2, ct) f32.  The D/H windows use static
    # indices; the W window is three shifted maxes (the stride-2 decimation
    # along W is a tiny XLA slice done by the caller).
    for do in range(d_out):
        for ho in range(h_out):
            m = x_ref[0, (2 * do) * h_in + (2 * ho)]
            for dd in range(3):
                for hh in range(3):
                    if dd == 0 and hh == 0:
                        continue
                    m = jnp.maximum(
                        m, x_ref[0, (2 * do + dd) * h_in + (2 * ho + hh)])
            mw = jnp.maximum(jnp.maximum(m[0:w_in - 2], m[1:w_in - 1]),
                             m[2:w_in])
            o_ref[0, do * h_out + ho] = mw


# ------------------------------ kernel wrappers ------------------------------

def _matmul_bias_relu(lhs, w, b, out_dtype):
    """lhs (M, K), w (K, Co) bf16, b (1, Co) f32 -> (M, Co) out_dtype."""
    M, K = (int(s) for s in lhs.shape)
    Co = int(w.shape[1])
    tm = _pick_tile_rows(M, K * lhs.dtype.itemsize)
    blk = (tm * K * lhs.dtype.itemsize + K * Co * 2 + Co * 4
           + tm * Co * jnp.dtype(out_dtype).itemsize)
    return pl.pallas_call(
        _matmul_bias_relu_kernel,
        out_shape=jax.ShapeDtypeStruct((M, Co), out_dtype),
        grid=(pl.cdiv(M, tm),),
        in_specs=[
            pl.BlockSpec((tm, K), lambda i: (i, 0)),
            pl.BlockSpec((K, Co), lambda i: (0, 0)),    # VMEM-resident weights
            pl.BlockSpec((1, Co), lambda i: (0, 0)),    # VMEM-resident bias
        ],
        out_specs=pl.BlockSpec((tm, Co), lambda i: (i, 0)),
        compiler_params=_mosaic_params(blk, ("parallel",)),
    )(lhs, w, b)


def fused_pointwise_pair(x, params_a, params_b):
    """Both 1x1x1 Conv+BN+ReLU stems in one matmul (input read from HBM once).

    x: (N, D, H, W, Cin) f32.  Returns two bf16 activations (N,D,H,W,Co)."""
    wa, ba = _fold_bn(params_a)
    wb, bb = _fold_bn(params_b)
    ca, cb, cin = int(wa.shape[0]), int(wb.shape[0]), int(wa.shape[1])
    w = jnp.concatenate([wa.reshape(ca, cin), wb.reshape(cb, cin)], axis=0)
    w = jnp.transpose(w, (1, 0)).astype(jnp.bfloat16)          # (Cin, Ca+Cb)
    b = jnp.concatenate([ba, bb]).reshape(1, ca + cb)
    n, d, h, wsp, _ = (int(s) for s in x.shape)
    out = _matmul_bias_relu(x.reshape(n * d * h * wsp, cin), w, b,
                            jnp.bfloat16)
    out = out.reshape(n, d, h, wsp, ca + cb)
    return out[..., :ca], out[..., ca:]


def sep_conv_bn_relu(x, params, axis):
    """Conv+BN+ReLU with a size-7 kernel along a single spatial `axis`
    (stride 1, 'same' padding).  x bf16 (N, D, H, W, Ci) -> bf16 (..., Co)."""
    w, bias = _fold_bn(params)
    co, ci = int(w.shape[0]), int(w.shape[1])
    taps = int(w.shape[2] * w.shape[3] * w.shape[4])
    pad = (taps - 1) // 2
    wt = jnp.transpose(w.reshape(co, ci, taps), (2, 1, 0)).astype(jnp.bfloat16)
    b = bias.reshape(1, co)

    # move the conv axis to the front, flatten the rest
    perm = (axis,) + tuple(i for i in range(4) if i != axis) + (4,)
    inv = [0] * 5
    for i, p in enumerate(perm):
        inv[p] = i
    xt = jnp.transpose(x, perm)
    a_len = int(xt.shape[0])
    rest = tuple(int(s) for s in xt.shape[1:4])
    m2 = rest[0] * rest[1] * rest[2]
    xt = jnp.pad(xt.reshape(a_len, m2, ci), ((pad, pad), (0, 0), (0, 0)))
    ap = a_len + 2 * pad

    tm = _pick_tile_rows(m2, ap * ci * 2)
    blk = ap * tm * ci * 2 + taps * ci * co * 2 + co * 4 + tm * co * 2
    out = pl.pallas_call(
        functools.partial(_sep_conv_kernel, taps=taps),
        out_shape=jax.ShapeDtypeStruct((a_len, m2, co), jnp.bfloat16),
        grid=(pl.cdiv(m2, tm), a_len),
        in_specs=[
            pl.BlockSpec((ap, tm, ci), lambda m, a: (0, m, 0)),    # halo slab,
            pl.BlockSpec((taps, ci, co), lambda m, a: (0, 0, 0)),  # resident
            pl.BlockSpec((1, co), lambda m, a: (0, 0)),            # resident
        ],
        out_specs=pl.BlockSpec((1, tm, co), lambda m, a: (a, m, 0)),
        compiler_params=_mosaic_params(blk, ("parallel", "arbitrary")),
    )(xt, wt, b)
    out = out.reshape((a_len,) + rest + (co,))
    return jnp.transpose(out, inv)


def conv3x3x3_s2_bn_relu(x, params):
    """3x3x3 / stride-2 Conv+BN+ReLU: taps folded into the contraction dim
    (K = 27*Ci -> full MXU depth).  The stride-2 window gather stays at the
    XLA level (only ~2-3x the small activation because of the decimation).
    # TODO(synk): move this gather in-kernel for a single-read activation.
    """
    w, bias = _fold_bn(params)
    co, ci, kd, kh, kw = (int(s) for s in w.shape)
    wt = jnp.transpose(w, (2, 3, 4, 1, 0)).reshape(kd * kh * kw * ci, co)
    wt = wt.astype(jnp.bfloat16)
    b = bias.reshape(1, co)

    n, d, h, wsp, _ = (int(s) for s in x.shape)
    do, ho, wo = (d - kd) // 2 + 1, (h - kh) // 2 + 1, (wsp - kw) // 2 + 1
    cols = []
    for dd in range(kd):
        for hh in range(kh):
            for ww in range(kw):
                cols.append(x[:, dd:dd + 2 * do:2, hh:hh + 2 * ho:2,
                              ww:ww + 2 * wo:2, :])
    lhs = jnp.concatenate(cols, axis=-1).reshape(n * do * ho * wo,
                                                 kd * kh * kw * ci)
    out = _matmul_bias_relu(lhs, wt, b, jnp.float32)
    return out.reshape(n, do, ho, wo, co)


def max_pool3d_k3s2(x):
    """F.max_pool3d(kernel_size=3, stride=2); x: (N, D, H, W, C) f32."""
    n, d, h, w, c = (int(s) for s in x.shape)
    do, ho, wo = (d - 3) // 2 + 1, (h - 3) // 2 + 1, (w - 3) // 2 + 1
    ct = c if c <= 128 else 128
    xf = x.reshape(n, d * h, w, c)                   # free reshape
    blk = (d * h * w * ct + do * ho * (w - 2) * ct) * 4
    out = pl.pallas_call(
        functools.partial(_maxpool_kernel, d_out=do, h_out=ho, h_in=h, w_in=w),
        out_shape=jax.ShapeDtypeStruct((n, do * ho, w - 2, c), jnp.float32),
        grid=(n, pl.cdiv(c, ct)),
        in_specs=[pl.BlockSpec((1, d * h, w, ct), lambda i, j: (i, 0, 0, j))],
        out_specs=pl.BlockSpec((1, do * ho, w - 2, ct),
                               lambda i, j: (i, 0, 0, j)),
        compiler_params=_mosaic_params(blk, ("parallel", "parallel")),
    )(xf)
    out = out.reshape(n, do, ho, w - 2, c)[:, :, :, ::2, :]   # W decimation
    return out


# ------------------------------ InceptionD forward ---------------------------

def inception_d_forward(x_ncdhw, params):
    x = jnp.transpose(x_ncdhw, (0, 2, 3, 4, 1)).astype(jnp.float32)  # NDHWC

    # both 1x1x1 stems share one kernel (raw input read once)
    y3, y7 = fused_pointwise_pair(x, params['branch3x3_1'],
                                  params['branch7x7x3_1'])

    # branch3x3: 1x1x1 -> 3x3x3 stride 2 (96 -> 160)
    b3 = conv3x3x3_s2_bn_relu(y3, params['branch3x3_2'])

    # branch7x7x3: 1x1x1 -> (1,1,7) -> (1,7,1) -> (7,1,1) -> 3x3x3 stride 2
    z = sep_conv_bn_relu(y7, params['branch7x7x3_2'], axis=3)   # along W
    z = sep_conv_bn_relu(z, params['branch7x7x3_3'], axis=2)    # along H
    z = sep_conv_bn_relu(z, params['branch7x7x3_4'], axis=1)    # along D
    b77 = conv3x3x3_s2_bn_relu(z, params['branch7x7x3_5'])

    # branch_pool: max_pool3d(kernel=3, stride=2) of the raw input
    bp = max_pool3d_k3s2(x)

    out = jnp.concatenate([b3, b77, bp], axis=-1)
    return jnp.transpose(out, (0, 4, 1, 2, 3))                   # -> NCDHW


# -------------------- deterministic parameter construction -------------------

def make_conv_bn_params(key, cin, cout, ks):
    kd, kh, kw = ks
    kw_, kg, kb, km, kv = jax.random.split(key, 5)
    fan_in = cin * kd * kh * kw
    w = jax.random.normal(kw_, (cout, cin, kd, kh, kw), jnp.float32) / jnp.sqrt(fan_in)
    gamma = jax.random.uniform(kg, (cout,), jnp.float32, 0.5, 1.5)
    beta = jax.random.normal(kb, (cout,), jnp.float32) * 0.1
    mean = jax.random.normal(km, (cout,), jnp.float32) * 0.1
    var = jax.random.uniform(kv, (cout,), jnp.float32, 0.5, 1.5)
    scale = gamma / jnp.sqrt(var + 1e-3)        # BN eps = 0.001
    bias = beta - mean * scale
    return w, scale, bias


def make_inception_d_params(key, in_channels):
    ks = jax.random.split(key, 7)
    return {
        'branch3x3_1':   make_conv_bn_params(ks[0], in_channels, 96, (1, 1, 1)),
        'branch3x3_2':   make_conv_bn_params(ks[1], 96, 160, (3, 3, 3)),
        'branch7x7x3_1': make_conv_bn_params(ks[2], in_channels, 96, (1, 1, 1)),
        'branch7x7x3_2': make_conv_bn_params(ks[3], 96, 96, (1, 1, 7)),
        'branch7x7x3_3': make_conv_bn_params(ks[4], 96, 96, (1, 7, 1)),
        'branch7x7x3_4': make_conv_bn_params(ks[5], 96, 96, (7, 1, 1)),
        'branch7x7x3_5': make_conv_bn_params(ks[6], 96, 96, (3, 3, 3)),
    }


# ------------------------------ pure-JAX reference ---------------------------

def _ref_conv_bn_relu(x, params, stride, pad):
    w, bias = _fold_bn(params)
    wk = jnp.transpose(w, (2, 3, 4, 1, 0)).astype(jnp.bfloat16)  # OIDHW->DHWIO
    y = lax.conv_general_dilated(
        x.astype(jnp.bfloat16), wk,
        window_strides=(stride,) * 3,
        padding=[(pad[0], pad[0]), (pad[1], pad[1]), (pad[2], pad[2])],
        dimension_numbers=('NDHWC', 'DHWIO', 'NDHWC'),
        preferred_element_type=jnp.float32)
    return jnp.maximum(y + bias, 0.0)


def ref_forward(x_ncdhw, params):
    # mirrors the kernel pipeline's storage precision (bf16 intermediates)
    x = jnp.transpose(x_ncdhw, (0, 2, 3, 4, 1)).astype(jnp.float32)
    bf = lambda t: t.astype(jnp.bfloat16)
    y = bf(_ref_conv_bn_relu(x, params['branch3x3_1'], 1, (0, 0, 0)))
    b3 = _ref_conv_bn_relu(y, params['branch3x3_2'], 2, (0, 0, 0))
    z = bf(_ref_conv_bn_relu(x, params['branch7x7x3_1'], 1, (0, 0, 0)))
    z = bf(_ref_conv_bn_relu(z, params['branch7x7x3_2'], 1, (0, 0, 3)))
    z = bf(_ref_conv_bn_relu(z, params['branch7x7x3_3'], 1, (0, 3, 0)))
    z = bf(_ref_conv_bn_relu(z, params['branch7x7x3_4'], 1, (3, 0, 0)))
    b77 = _ref_conv_bn_relu(z, params['branch7x7x3_5'], 2, (0, 0, 0))
    p = lax.reduce_window(x, -jnp.inf, lax.max,
                          (1, 3, 3, 3, 1), (1, 2, 2, 2, 1), 'VALID')
    out = jnp.concatenate([b3, b77, p], axis=-1)
    return jnp.transpose(out, (0, 4, 1, 2, 3))


# ----------------------------------- main -------------------------------------

if __name__ == "__main__":
    key = jax.random.PRNGKey(0)
    kx, kp = jax.random.split(key)

    N, C, D, H, W = 2, 4, 9, 9, 9                      # small NCDHW input
    x = jax.random.normal(kx, (N, C, D, H, W), jnp.float32)
    params = make_inception_d_params(kp, C)

    fwd = jax.jit(inception_d_forward)
    out = jax.block_until_ready(fwd(x, params))
    assert out.shape == (N, 160 + 96 + C, 4, 4, 4), out.shape
    assert out.dtype == jnp.float32

    ref = jax.block_until_ready(ref_forward(x, params))
    max_err = float(jnp.max(jnp.abs(out - ref)))
    assert jnp.allclose(out, ref, atol=2e-2, rtol=2e-2), max_err

    print("KERNEL_OK")
</pallas_src>

<mosaic_0001>
module attributes {stable_mosaic.version = 11 : i64} {
  func.func @_maxpool_kernel(%arg0: i32, %arg1: i32, %arg2: memref<1x81x9x4xf32, #tpu.memory_space<vmem>>, %arg3: memref<1x16x7x4xf32, #tpu.memory_space<vmem>>) attributes {dimension_semantics = [#tpu.dimension_semantics<parallel>, #tpu.dimension_semantics<parallel>], iteration_bounds = array<i64: 2, 1>, scalar_prefetch = 0 : i64, scratch_operands = 0 : i64, tpu.core_type = #tpu.core_type<tc>, window_params = [{transform_indices = @transform_0, window_bounds = array<i64: 1, 81, 9, 4>}, {transform_indices = @transform_1, window_bounds = array<i64: 1, 16, 7, 4>}]} {
    %c0 = arith.constant 0 : index
    %c0_0 = arith.constant 0 : index
    %c0_1 = arith.constant 0 : index
    %c0_2 = arith.constant 0 : index
    %0 = vector.load %arg2[%c0, %c0_0, %c0_1, %c0_2] : memref<1x81x9x4xf32, #tpu.memory_space<vmem>>, vector<1x1x9x4xf32>
    %1 = vector.shape_cast %0 : vector<1x1x9x4xf32> to vector<9x4xf32>
    %c0_3 = arith.constant 0 : index
    %c1 = arith.constant 1 : index
    %c0_4 = arith.constant 0 : index
    %c0_5 = arith.constant 0 : index
    %2 = vector.load %arg2[%c0_3, %c1, %c0_4, %c0_5] : memref<1x81x9x4xf32, #tpu.memory_space<vmem>>, vector<1x1x9x4xf32>
    %3 = vector.shape_cast %2 : vector<1x1x9x4xf32> to vector<9x4xf32>
    %4 = arith.maximumf %1, %3 : vector<9x4xf32>
    %c0_6 = arith.constant 0 : index
    %c2 = arith.constant 2 : index
    %c0_7 = arith.constant 0 : index
    %c0_8 = arith.constant 0 : index
    %5 = vector.load %arg2[%c0_6, %c2, %c0_7, %c0_8] : memref<1x81x9x4xf32, #tpu.memory_space<vmem>>, vector<1x1x9x4xf32>
    %6 = vector.shape_cast %5 : vector<1x1x9x4xf32> to vector<9x4xf32>
    %7 = arith.maximumf %4, %6 : vector<9x4xf32>
    %c0_9 = arith.constant 0 : index
    %c9 = arith.constant 9 : index
    %c0_10 = arith.constant 0 : index
    %c0_11 = arith.constant 0 : index
    %8 = vector.load %arg2[%c0_9, %c9, %c0_10, %c0_11] : memref<1x81x9x4xf32, #tpu.memory_space<vmem>>, vector<1x1x9x4xf32>
    %9 = vector.shape_cast %8 : vector<1x1x9x4xf32> to vector<9x4xf32>
    %10 = arith.maximumf %7, %9 : vector<9x4xf32>
    %c0_12 = arith.constant 0 : index
    %c10 = arith.constant 10 : index
    %c0_13 = arith.constant 0 : index
    %c0_14 = arith.constant 0 : index
    %11 = vector.load %arg2[%c0_12, %c10, %c0_13, %c0_14] : memref<1x81x9x4xf32, #tpu.memory_space<vmem>>, vector<1x1x9x4xf32>
    %12 = vector.shape_cast %11 : vector<1x1x9x4xf32> to vector<9x4xf32>
    %13 = arith.maximumf %10, %12 : vector<9x4xf32>
    %c0_15 = arith.constant 0 : index
    %c11 = arith.constant 11 : index
    %c0_16 = arith.constant 0 : index
    %c0_17 = arith.constant 0 : index
    %14 = vector.load %arg2[%c0_15, %c11, %c0_16, %c0_17] : memref<1x81x9x4xf32, #tpu.memory_space<vmem>>, vector<1x1x9x4xf32>
    %15 = vector.shape_cast %14 : vector<1x1x9x4xf32> to vector<9x4xf32>
    %16 = arith.maximumf %13, %15 : vector<9x4xf32>
    %c0_18 = arith.constant 0 : index
    %c18 = arith.constant 18 : index
    %c0_19 = arith.constant 0 : index
    %c0_20 = arith.constant 0 : index
    %17 = vector.load %arg2[%c0_18, %c18, %c0_19, %c0_20] : memref<1x81x9x4xf32, #tpu.memory_space<vmem>>, vector<1x1x9x4xf32>
    %18 = vector.shape_cast %17 : vector<1x1x9x4xf32> to vector<9x4xf32>
    %19 = arith.maximumf %16, %18 : vector<9x4xf32>
    %c0_21 = arith.constant 0 : index
    %c19 = arith.constant 19 : index
    %c0_22 = arith.constant 0 : index
    %c0_23 = arith.constant 0 : index
    %20 = vector.load %arg2[%c0_21, %c19, %c0_22, %c0_23] : memref<1x81x9x4xf32, #tpu.memory_space<vmem>>, vector<1x1x9x4xf32>
    %21 = vector.shape_cast %20 : vector<1x1x9x4xf32> to vector<9x4xf32>
    %22 = arith.maximumf %19, %21 : vector<9x4xf32>
    %c0_24 = arith.constant 0 : index
    %c20 = arith.constant 20 : index
    %c0_25 = arith.constant 0 : index
    %c0_26 = arith.constant 0 : index
    %23 = vector.load %arg2[%c0_24, %c20, %c0_25, %c0_26] : memref<1x81x9x4xf32, #tpu.memory_space<vmem>>, vector<1x1x9x4xf32>
    %24 = vector.shape_cast %23 : vector<1x1x9x4xf32> to vector<9x4xf32>
    %25 = arith.maximumf %22, %24 : vector<9x4xf32>
    %26 = vector.extract_strided_slice %25 {offsets = [0, 0], sizes = [7, 4], strides = [1, 1]} : vector<9x4xf32> to vector<7x4xf32>
    %27 = vector.extract_strided_slice %25 {offsets = [1, 0], sizes = [7, 4], strides = [1, 1]} : vector<9x4xf32> to vector<7x4xf32>
    %28 = arith.maximumf %26, %27 : vector<7x4xf32>
    %29 = vector.extract_strided_slice %25 {offsets = [2, 0], sizes = [7, 4], strides = [1, 1]} : vector<9x4xf32> to vector<7x4xf32>
    %30 = arith.maximumf %28, %29 : vector<7x4xf32>
    %c0_27 = arith.constant 0 : index
    %c0_28 = arith.constant 0 : index
    %c0_29 = arith.constant 0 : index
    %c0_30 = arith.constant 0 : index
    %31 = vector.load %arg3[%c0_27, %c0_28, %c0_29, %c0_30] : memref<1x16x7x4xf32, #tpu.memory_space<vmem>>, vector<1x1x7x4xf32>
    %32 = vector.shape_cast %31 : vector<1x1x7x4xf32> to vector<7x4xf32>
    %33 = vector.shape_cast %30 : vector<7x4xf32> to vector<1x1x7x4xf32>
    tpu.vector_store %arg3[%c0_27, %c0_28, %c0_29, %c0_30], %33 {strides = array<i32>} : memref<1x16x7x4xf32, #tpu.memory_space<vmem>>, vector<1x1x7x4xf32>,
    %c0_31 = arith.constant 0 : index
    %c2_32 = arith.constant 2 : index
    %c0_33 = arith.constant 0 : index
    %c0_34 = arith.constant 0 : index
    %34 = vector.load %arg2[%c0_31, %c2_32, %c0_33, %c0_34] : memref<1x81x9x4xf32, #tpu.memory_space<vmem>>, vector<1x1x9x4xf32>
    %35 = vector.shape_cast %34 : vector<1x1x9x4xf32> to vector<9x4xf32>
    %c0_35 = arith.constant 0 : index
    %c3 = arith.constant 3 : index
    %c0_36 = arith.constant 0 : index
    %c0_37 = arith.constant 0 : index
    %36 = vector.load %arg2[%c0_35, %c3, %c0_36, %c0_37] : memref<1x81x9x4xf32, #tpu.memory_space<vmem>>, vector<1x1x9x4xf32>
    %37 = vector.shape_cast %36 : vector<1x1x9x4xf32> to vector<9x4xf32>
    %38 = arith.maximumf %35, %37 : vector<9x4xf32>
    %c0_38 = arith.constant 0 : index
    %c4 = arith.constant 4 : index
    %c0_39 = arith.constant 0 : index
    %c0_40 = arith.constant 0 : index
    %39 = vector.load %arg2[%c0_38, %c4, %c0_39, %c0_40] : memref<1x81x9x4xf32, #tpu.memory_space<vmem>>, vector<1x1x9x4xf32>
    %40 = vector.shape_cast %39 : vector<1x1x9x4xf32> to vector<9x4xf32>
    %41 = arith.maximumf %38, %40 : vector<9x4xf32>
    %c0_41 = arith.constant 0 : index
    %c11_42 = arith.constant 11 : index
    %c0_43 = arith.constant 0 : index
    %c0_44 = arith.constant 0 : index
    %42 = vector.load %arg2[%c0_41, %c11_42, %c0_43, %c0_44] : memref<1x81x9x4xf32, #tpu.memory_space<vmem>>, vector<1x1x9x4xf32>
    %43 = vector.shape_cast %42 : vector<1x1x9x4xf32> to vector<9x4xf32>
    %44 = arith.maximumf %41, %43 : vector<9x4xf32>
    %c0_45 = arith.constant 0 : index
    %c12 = arith.constant 12 : index
    %c0_46 = arith.constant 0 : index
    %c0_47 = arith.constant 0 : index
    %45 = vector.load %arg2[%c0_45, %c12, %c0_46, %c0_47] : memref<1x81x9x4xf32, #tpu.memory_space<vmem>>, vector<1x1x9x4xf32>
    %46 = vector.shape_cast %45 : vector<1x1x9x4xf32> to vector<9x4xf32>
    %47 = arith.maximumf %44, %46 : vector<9x4xf32>
    %c0_48 = arith.constant 0 : index
    %c13 = arith.constant 13 : index
    %c0_49 = arith.constant 0 : index
    %c0_50 = arith.constant 0 : index
    %48 = vector.load %arg2[%c0_48, %c13, %c0_49, %c0_50] : memref<1x81x9x4xf32, #tpu.memory_space<vmem>>, vector<1x1x9x4xf32>
    %49 = vector.shape_cast %48 : vector<1x1x9x4xf32> to vector<9x4xf32>
    %50 = arith.maximumf %47, %49 : vector<9x4xf32>
    %c0_51 = arith.constant 0 : index
    %c20_52 = arith.constant 20 : index
    %c0_53 = arith.constant 0 : index
    %c0_54 = arith.constant 0 : index
    %51 = vector.load %arg2[%c0_51, %c20_52, %c0_53, %c0_54] : memref<1x81x9x4xf32, #tpu.memory_space<vmem>>, vector<1x1x9x4xf32>
    %52 = vector.shape_cast %51 : vector<1x1x9x4xf32> to vector<9x4xf32>
    %53 = arith.maximumf %50, %52 : vector<9x4xf32>
    %c0_55 = arith.constant 0 : index
    %c21 = arith.constant 21 : index
    %c0_56 = arith.constant 0 : index
    %c0_57 = arith.constant 0 : index
    %54 = vector.load %arg2[%c0_55, %c21, %c0_56, %c0_57] : memref<1x81x9x4xf32, #tpu.memory_space<vmem>>, vector<1x1x9x4xf32>
    %55 = vector.shape_cast %54 : vector<1x1x9x4xf32> to vector<9x4xf32>
    %56 = arith.maximumf %53, %55 : vector<9x4xf32>
    %c0_58 = arith.constant 0 : index
    %c22 = arith.constant 22 : index
    %c0_59 = arith.constant 0 : index
    %c0_60 = arith.constant 0 : index
    %57 = vector.load %arg2[%c0_58, %c22, %c0_59, %c0_60] : memref<1x81x9x4xf32, #tpu.memory_space<vmem>>, vector<1x1x9x4xf32>
    %58 = vector.shape_cast %57 : vector<1x1x9x4xf32> to vector<9x4xf32>
    %59 = arith.maximumf %56, %58 : vector<9x4xf32>
    %60 = vector.extract_strided_slice %59 {offsets = [0, 0], sizes = [7, 4], strides = [1, 1]} : vector<9x4xf32> to vector<7x4xf32>
    %61 = vector.extract_strided_slice %59 {offsets = [1, 0], sizes = [7, 4], strides = [1, 1]} : vector<9x4xf32> to vector<7x4xf32>
    %62 = arith.maximumf %60, %61 : vector<7x4xf32>
    %63 = vector.extract_strided_slice %59 {offsets = [2, 0], sizes = [7, 4], strides = [1, 1]} : vector<9x4xf32> to vector<7x4xf32>
    %64 = arith.maximumf %62, %63 : vector<7x4xf32>
    %c0_61 = arith.constant 0 : index
    %c1_62 = arith.constant 1 : index
    %c0_63 = arith.constant 0 : index
    %c0_64 = arith.constant 0 : index
    %65 = vector.load %arg3[%c0_61, %c1_62, %c0_63, %c0_64] : memref<1x16x7x4xf32, #tpu.memory_space<vmem>>, vector<1x1x7x4xf32>
    %66 = vector.shape_cast %65 : vector<1x1x7x4xf32> to vector<7x4xf32>
    %67 = vector.shape_cast %64 : vector<7x4xf32> to vector<1x1x7x4xf32>
    tpu.vector_store %arg3[%c0_61, %c1_62, %c0_63, %c0_64], %67 {strides = array<i32>} : memref<1x16x7x4xf32, #tpu.memory_space<vmem>>, vector<1x1x7x4xf32>,
    %c0_65 = arith.constant 0 : index
    %c4_66 = arith.constant 4 : index
    %c0_67 = arith.constant 0 : index
    %c0_68 = arith.constant 0 : index
    %68 = vector.load %arg2[%c0_65, %c4_66, %c0_67, %c0_68] : memref<1x81x9x4xf32, #tpu.memory_space<vmem>>, vector<1x1x9x4xf32>
    %69 = vector.shape_cast %68 : vector<1x1x9x4xf32> to vector<9x4xf32>
    %c0_69 = arith.constant 0 : index
    %c5 = arith.constant 5 : index
    %c0_70 = arith.constant 0 : index
    %c0_71 = arith.constant 0 : index
    %70 = vector.load %arg2[%c0_69, %c5, %c0_70, %c0_71] : memref<1x81x9x4xf32, #tpu.memory_space<vmem>>, vector<1x1x9x4xf32>
    %71 = vector.shape_cast %70 : vector<1x1x9x4xf32> to vector<9x4xf32>
    %72 = arith.maximumf %69, %71 : vector<9x4xf32>
    %c0_72 = arith.constant 0 : index
    %c6 = arith.constant 6 : index
    %c0_73 = arith.constant 0 : index
    %c0_74 = arith.constant 0 : index
    %73 = vector.load %arg2[%c0_72, %c6, %c0_73, %c0_74] : memref<1x81x9x4xf32, #tpu.memory_space<vmem>>, vector<1x1x9x4xf32>
    %74 = vector.shape_cast %73 : vector<1x1x9x4xf32> to vector<9x4xf32>
    %75 = arith.maximumf %72, %74 : vector<9x4xf32>
    %c0_75 = arith.constant 0 : index
    %c13_76 = arith.constant 13 : index
    %c0_77 = arith.constant 0 : index
    %c0_78 = arith.constant 0 : index
    %76 = vector.load %arg2[%c0_75, %c13_76, %c0_77, %c0_78] : memref<1x81x9x4xf32, #tpu.memory_space<vmem>>, vector<1x1x9x4xf32>
    %77 = vector.shape_cast %76 : vector<1x1x9x4xf32> to vector<9x4xf32>
    %78 = arith.maximumf %75, %77 : vector<9x4xf32>
    %c0_79 = arith.constant 0 : index
    %c14 = arith.constant 14 : index
    %c0_80 = arith.constant 0 : index
    %c0_81 = arith.constant 0 : index
    %79 = vector.load %arg2[%c0_79, %c14, %c0_80, %c0_81] : memref<1x81x9x4xf32, #tpu.memory_space<vmem>>, vector<1x1x9x4xf32>
    %80 = vector.shape_cast %79 : vector<1x1x9x4xf32> to vector<9x4xf32>
    %81 = arith.maximumf %78, %80 : vector<9x4xf32>
    %c0_82 = arith.constant 0 : index
    %c15 = arith.constant 15 : index
    %c0_83 = arith.constant 0 : index
    %c0_84 = arith.constant 0 : index
    %82 = vector.load %arg2[%c0_82, %c15, %c0_83, %c0_84] : memref<1x81x9x4xf32, #tpu.memory_space<vmem>>, vector<1x1x9x4xf32>
    %83 = vector.shape_cast %82 : vector<1x1x9x4xf32> to vector<9x4xf32>
    %84 = arith.maximumf %81, %83 : vector<9x4xf32>
    %c0_85 = arith.constant 0 : index
    %c22_86 = arith.constant 22 : index
    %c0_87 = arith.constant 0 : index
    %c0_88 = arith.constant 0 : index
    %85 = vector.load %arg2[%c0_85, %c22_86, %c0_87, %c0_88] : memref<1x81x9x4xf32, #tpu.memory_space<vmem>>, vector<1x1x9x4xf32>
    %86 = vector.shape_cast %85 : vector<1x1x9x4xf32> to vector<9x4xf32>
    %87 = arith.maximumf %84, %86 : vector<9x4xf32>
    %c0_89 = arith.constant 0 : index
    %c23 = arith.constant 23 : index
    %c0_90 = arith.constant 0 : index
    %c0_91 = arith.constant 0 : index
    %88 = vector.load %arg2[%c0_89, %c23, %c0_90, %c0_91] : memref<1x81x9x4xf32, #tpu.memory_space<vmem>>, vector<1x1x9x4xf32>
    %89 = vector.shape_cast %88 : vector<1x1x9x4xf32> to vector<9x4xf32>
    %90 = arith.maximumf %87, %89 : vector<9x4xf32>
    %c0_92 = arith.constant 0 : index
    %c24 = arith.constant 24 : index
    %c0_93 = arith.constant 0 : index
    %c0_94 = arith.constant 0 : index
    %91 = vector.load %arg2[%c0_92, %c24, %c0_93, %c0_94] : memref<1x81x9x4xf32, #tpu.memory_space<vmem>>, vector<1x1x9x4xf32>
    %92 = vector.shape_cast %91 : vector<1x1x9x4xf32> to vector<9x4xf32>
    %93 = arith.maximumf %90, %92 : vector<9x4xf32>
    %94 = vector.extract_strided_slice %93 {offsets = [0, 0], sizes = [7, 4], strides = [1, 1]} : vector<9x4xf32> to vector<7x4xf32>
    %95 = vector.extract_strided_slice %93 {offsets = [1, 0], sizes = [7, 4], strides = [1, 1]} : vector<9x4xf32> to vector<7x4xf32>
    %96 = arith.maximumf %94, %95 : vector<7x4xf32>
    %97 = vector.extract_strided_slice %93 {offsets = [2, 0], sizes = [7, 4], strides = [1, 1]} : vector<9x4xf32> to vector<7x4xf32>
    %98 = arith.maximumf %96, %97 : vector<7x4xf32>
    %c0_95 = arith.constant 0 : index
    %c2_96 = arith.constant 2 : index
    %c0_97 = arith.constant 0 : index
    %c0_98 = arith.constant 0 : index
    %99 = vector.load %arg3[%c0_95, %c2_96, %c0_97, %c0_98] : memref<1x16x7x4xf32, #tpu.memory_space<vmem>>, vector<1x1x7x4xf32>
    %100 = vector.shape_cast %99 : vector<1x1x7x4xf32> to vector<7x4xf32>
    %101 = vector.shape_cast %98 : vector<7x4xf32> to vector<1x1x7x4xf32>
    tpu.vector_store %arg3[%c0_95, %c2_96, %c0_97, %c0_98], %101 {strides = array<i32>} : memref<1x16x7x4xf32, #tpu.memory_space<vmem>>, vector<1x1x7x4xf32>,
    %c0_99 = arith.constant 0 : index
    %c6_100 = arith.constant 6 : index
    %c0_101 = arith.constant 0 : index
    %c0_102 = arith.constant 0 : index
    %102 = vector.load %arg2[%c0_99, %c6_100, %c0_101, %c0_102] : memref<1x81x9x4xf32, #tpu.memory_space<vmem>>, vector<1x1x9x4xf32>
    %103 = vector.shape_cast %102 : vector<1x1x9x4xf32> to vector<9x4xf32>
    %c0_103 = arith.constant 0 : index
    %c7 = arith.constant 7 : index
    %c0_104 = arith.constant 0 : index
    %c0_105 = arith.constant 0 : index
    %104 = vector.load %arg2[%c0_103, %c7, %c0_104, %c0_105] : memref<1x81x9x4xf32, #tpu.memory_space<vmem>>, vector<1x1x9x4xf32>
    %105 = vector.shape_cast %104 : vector<1x1x9x4xf32> to vector<9x4xf32>
    %106 = arith.maximumf %103, %105 : vector<9x4xf32>
    %c0_106 = arith.constant 0 : index
    %c8 = arith.constant 8 : index
    %c0_107 = arith.constant 0 : index
    %c0_108 = arith.constant 0 : index
    %107 = vector.load %arg2[%c0_106, %c8, %c0_107, %c0_108] : memref<1x81x9x4xf32, #tpu.memory_space<vmem>>, vector<1x1x9x4xf32>
    %108 = vector.shape_cast %107 : vector<1x1x9x4xf32> to vector<9x4xf32>
    %109 = arith.maximumf %106, %108 : vector<9x4xf32>
    %c0_109 = arith.constant 0 : index
    %c15_110 = arith.constant 15 : index
    %c0_111 = arith.constant 0 : index
    %c0_112 = arith.constant 0 : index
    %110 = vector.load %arg2[%c0_109, %c15_110, %c0_111, %c0_112] : memref<1x81x9x4xf32, #tpu.memory_space<vmem>>, vector<1x1x9x4xf32>
    %111 = vector.shape_cast %110 : vector<1x1x9x4xf32> to vector<9x4xf32>
    %112 = arith.maximumf %109, %111 : vector<9x4xf32>
    %c0_113 = arith.constant 0 : index
    %c16 = arith.constant 16 : index
    %c0_114 = arith.constant 0 : index
    %c0_115 = arith.constant 0 : index
    %113 = vector.load %arg2[%c0_113, %c16, %c0_114, %c0_115] : memref<1x81x9x4xf32, #tpu.memory_space<vmem>>, vector<1x1x9x4xf32>
    %114 = vector.shape_cast %113 : vector<1x1x9x4xf32> to vector<9x4xf32>
    %115 = arith.maximumf %112, %114 : vector<9x4xf32>
    %c0_116 = arith.constant 0 : index
    %c17 = arith.constant 17 : index
    %c0_117 = arith.constant 0 : index
    %c0_118 = arith.constant 0 : index
    %116 = vector.load %arg2[%c0_116, %c17, %c0_117, %c0_118] : memref<1x81x9x4xf32, #tpu.memory_space<vmem>>, vector<1x1x9x4xf32>
    %117 = vector.shape_cast %116 : vector<1x1x9x4xf32> to vector<9x4xf32>
    %118 = arith.maximumf %115, %117 : vector<9x4xf32>
    %c0_119 = arith.constant 0 : index
    %c24_120 = arith.constant 24 : index
    %c0_121 = arith.constant 0 : index
    %c0_122 = arith.constant 0 : index
    %119 = vector.load %arg2[%c0_119, %c24_120, %c0_121, %c0_122] : memref<1x81x9x4xf32, #tpu.memory_space<vmem>>, vector<1x1x9x4xf32>
    %120 = vector.shape_cast %119 : vector<1x1x9x4xf32> to vector<9x4xf32>
    %121 = arith.maximumf %118, %120 : vector<9x4xf32>
    %c0_123 = arith.constant 0 : index
    %c25 = arith.constant 25 : index
    %c0_124 = arith.constant 0 : index
    %c0_125 = arith.constant 0 : index
    %122 = vector.load %arg2[%c0_123, %c25, %c0_124, %c0_125] : memref<1x81x9x4xf32, #tpu.memory_space<vmem>>, vector<1x1x9x4xf32>
    %123 = vector.shape_cast %122 : vector<1x1x9x4xf32> to vector<9x4xf32>
    %124 = arith.maximumf %121, %123 : vector<9x4xf32>
    %c0_126 = arith.constant 0 : index
    %c26 = arith.constant 26 : index
    %c0_127 = arith.constant 0 : index
    %c0_128 = arith.constant 0 : index
    %125 = vector.load %arg2[%c0_126, %c26, %c0_127, %c0_128] : memref<1x81x9x4xf32, #tpu.memory_space<vmem>>, vector<1x1x9x4xf32>
    %126 = vector.shape_cast %125 : vector<1x1x9x4xf32> to vector<9x4xf32>
    %127 = arith.maximumf %124, %126 : vector<9x4xf32>
    %128 = vector.extract_strided_slice %127 {offsets = [0, 0], sizes = [7, 4], strides = [1, 1]} : vector<9x4xf32> to vector<7x4xf32>
    %129 = vector.extract_strided_slice %127 {offsets = [1, 0], sizes = [7, 4], strides = [1, 1]} : vector<9x4xf32> to vector<7x4xf32>
    %130 = arith.maximumf %128, %129 : vector<7x4xf32>
    %131 = vector.extract_strided_slice %127 {offsets = [2, 0], sizes = [7, 4], strides = [1, 1]} : vector<9x4xf32> to vector<7x4xf32>
    %132 = arith.maximumf %130, %131 : vector<7x4xf32>
    %c0_129 = arith.constant 0 : index
    %c3_130 = arith.constant 3 : index
    %c0_131 = arith.constant 0 : index
    %c0_132 = arith.constant 0 : index
    %133 = vector.load %arg3[%c0_129, %c3_130, %c0_131, %c0_132] : memref<1x16x7x4xf32, #tpu.memory_space<vmem>>, vector<1x1x7x4xf32>
    %134 = vector.shape_cast %133 : vector<1x1x7x4xf32> to vector<7x4xf32>
    %135 = vector.shape_cast %132 : vector<7x4xf32> to vector<1x1x7x4xf32>
    tpu.vector_store %arg3[%c0_129, %c3_130, %c0_131, %c0_132], %135 {strides = array<i32>} : memref<1x16x7x4xf32, #tpu.memory_space<vmem>>, vector<1x1x7x4xf32>,
    %c0_133 = arith.constant 0 : index
    %c18_134 = arith.constant 18 : index
    %c0_135 = arith.constant 0 : index
    %c0_136 = arith.constant 0 : index
    %136 = vector.load %arg2[%c0_133, %c18_134, %c0_135, %c0_136] : memref<1x81x9x4xf32, #tpu.memory_space<vmem>>, vector<1x1x9x4xf32>
    %137 = vector.shape_cast %136 : vector<1x1x9x4xf32> to vector<9x4xf32>
    %c0_137 = arith.constant 0 : index
    %c19_138 = arith.constant 19 : index
    %c0_139 = arith.constant 0 : index
    %c0_140 = arith.constant 0 : index
    %138 = vector.load %arg2[%c0_137, %c19_138, %c0_139, %c0_140] : memref<1x81x9x4xf32, #tpu.memory_space<vmem>>, vector<1x1x9x4xf32>
    %139 = vector.shape_cast %138 : vector<1x1x9x4xf32> to vector<9x4xf32>
    %140 = arith.maximumf %137, %139 : vector<9x4xf32>
    %c0_141 = arith.constant 0 : index
    %c20_142 = arith.constant 20 : index
    %c0_143 = arith.constant 0 : index
    %c0_144 = arith.constant 0 : index
    %141 = vector.load %arg2[%c0_141, %c20_142, %c0_143, %c0_144] : memref<1x81x9x4xf32, #tpu.memory_space<vmem>>, vector<1x1x9x4xf32>
    %142 = vector.shape_cast %141 : vector<1x1x9x4xf32> to vector<9x4xf32>
    %143 = arith.maximumf %140, %142 : vector<9x4xf32>
    %c0_145 = arith.constant 0 : index
    %c27 = arith.constant 27 : index
    %c0_146 = arith.constant 0 : index
    %c0_147 = arith.constant 0 : index
    %144 = vector.load %arg2[%c0_145, %c27, %c0_146, %c0_147] : memref<1x81x9x4xf32, #tpu.memory_space<vmem>>, vector<1x1x9x4xf32>
    %145 = vector.shape_cast %144 : vector<1x1x9x4xf32> to vector<9x4xf32>
    %146 = arith.maximumf %143, %145 : vector<9x4xf32>
    %c0_148 = arith.constant 0 : index
    %c28 = arith.constant 28 : index
    %c0_149 = arith.constant 0 : index
    %c0_150 = arith.constant 0 : index
    %147 = vector.load %arg2[%c0_148, %c28, %c0_149, %c0_150] : memref<1x81x9x4xf32, #tpu.memory_space<vmem>>, vector<1x1x9x4xf32>
    %148 = vector.shape_cast %147 : vector<1x1x9x4xf32> to vector<9x4xf32>
    %149 = arith.maximumf %146, %148 : vector<9x4xf32>
    %c0_151 = arith.constant 0 : index
    %c29 = arith.constant 29 : index
    %c0_152 = arith.constant 0 : index
    %c0_153 = arith.constant 0 : index
    %150 = vector.load %arg2[%c0_151, %c29, %c0_152, %c0_153] : memref<1x81x9x4xf32, #tpu.memory_space<vmem>>, vector<1x1x9x4xf32>
    %151 = vector.shape_cast %150 : vector<1x1x9x4xf32> to vector<9x4xf32>
    %152 = arith.maximumf %149, %151 : vector<9x4xf32>
    %c0_154 = arith.constant 0 : index
    %c36 = arith.constant 36 : index
    %c0_155 = arith.constant 0 : index
    %c0_156 = arith.constant 0 : index
    %153 = vector.load %arg2[%c0_154, %c36, %c0_155, %c0_156] : memref<1x81x9x4xf32, #tpu.memory_space<vmem>>, vector<1x1x9x4xf32>
    %154 = vector.shape_cast %153 : vector<1x1x9x4xf32> to vector<9x4xf32>
    %155 = arith.maximumf %152, %154 : vector<9x4xf32>
    %c0_157 = arith.constant 0 : index
    %c37 = arith.constant 37 : index
    %c0_158 = arith.constant 0 : index
    %c0_159 = arith.constant 0 : index
    %156 = vector.load %arg2[%c0_157, %c37, %c0_158, %c0_159] : memref<1x81x9x4xf32, #tpu.memory_space<vmem>>, vector<1x1x9x4xf32>
    %157 = vector.shape_cast %156 : vector<1x1x9x4xf32> to vector<9x4xf32>
    %158 = arith.maximumf %155, %157 : vector<9x4xf32>
    %c0_160 = arith.constant 0 : index
    %c38 = arith.constant 38 : index
    %c0_161 = arith.constant 0 : index
    %c0_162 = arith.constant 0 : index
    %159 = vector.load %arg2[%c0_160, %c38, %c0_161, %c0_162] : memref<1x81x9x4xf32, #tpu.memory_space<vmem>>, vector<1x1x9x4xf32>
    %160 = vector.shape_cast %159 : vector<1x1x9x4xf32> to vector<9x4xf32>
    %161 = arith.maximumf %158, %160 : vector<9x4xf32>
    %162 = vector.extract_strided_slice %161 {offsets = [0, 0], sizes = [7, 4], strides = [1, 1]} : vector<9x4xf32> to vector<7x4xf32>
    %163 = vector.extract_strided_slice %161 {offsets = [1, 0], sizes = [7, 4], strides = [1, 1]} : vector<9x4xf32> to vector<7x4xf32>
    %164 = arith.maximumf %162, %163 : vector<7x4xf32>
    %165 = vector.extract_strided_slice %161 {offsets = [2, 0], sizes = [7, 4], strides = [1, 1]} : vector<9x4xf32> to vector<7x4xf32>
    %166 = arith.maximumf %164, %165 : vector<7x4xf32>
    %c0_163 = arith.constant 0 : index
    %c4_164 = arith.constant 4 : index
    %c0_165 = arith.constant 0 : index
    %c0_166 = arith.constant 0 : index
    %167 = vector.load %arg3[%c0_163, %c4_164, %c0_165, %c0_166] : memref<1x16x7x4xf32, #tpu.memory_space<vmem>>, vector<1x1x7x4xf32>
    %168 = vector.shape_cast %167 : vector<1x1x7x4xf32> to vector<7x4xf32>
    %169 = vector.shape_cast %166 : vector<7x4xf32> to vector<1x1x7x4xf32>
    tpu.vector_store %arg3[%c0_163, %c4_164, %c0_165, %c0_166], %169 {strides = array<i32>} : memref<1x16x7x4xf32, #tpu.memory_space<vmem>>, vector<1x1x7x4xf32>,
    %c0_167 = arith.constant 0 : index
    %c20_168 = arith.constant 20 : index
    %c0_169 = arith.constant 0 : index
    %c0_170 = arith.constant 0 : index
    %170 = vector.load %arg2[%c0_167, %c20_168, %c0_169, %c0_170] : memref<1x81x9x4xf32, #tpu.memory_space<vmem>>, vector<1x1x9x4xf32>
    %171 = vector.shape_cast %170 : vector<1x1x9x4xf32> to vector<9x4xf32>
    %c0_171 = arith.constant 0 : index
    %c21_172 = arith.constant 21 : index
    %c0_173 = arith.constant 0 : index
    %c0_174 = arith.constant 0 : index
    %172 = vector.load %arg2[%c0_171, %c21_172, %c0_173, %c0_174] : memref<1x81x9x4xf32, #tpu.memory_space<vmem>>, vector<1x1x9x4xf32>
    %173 = vector.shape_cast %172 : vector<1x1x9x4xf32> to vector<9x4xf32>
    %174 = arith.maximumf %171, %173 : vector<9x4xf32>
    %c0_175 = arith.constant 0 : index
    %c22_176 = arith.constant 22 : index
    %c0_177 = arith.constant 0 : index
    %c0_178 = arith.constant 0 : index
    %175 = vector.load %arg2[%c0_175, %c22_176, %c0_177, %c0_178] : memref<1x81x9x4xf32, #tpu.memory_space<vmem>>, vector<1x1x9x4xf32>
    %176 = vector.shape_cast %175 : vector<1x1x9x4xf32> to vector<9x4xf32>
    %177 = arith.maximumf %174, %176 : vector<9x4xf32>
    %c0_179 = arith.constant 0 : index
    %c29_180 = arith.constant 29 : index
    %c0_181 = arith.constant 0 : index
    %c0_182 = arith.constant 0 : index
    %178 = vector.load %arg2[%c0_179, %c29_180, %c0_181, %c0_182] : memref<1x81x9x4xf32, #tpu.memory_space<vmem>>, vector<1x1x9x4xf32>
    %179 = vector.shape_cast %178 : vector<1x1x9x4xf32> to vector<9x4xf32>
    %180 = arith.maximumf %177, %179 : vector<9x4xf32>
    %c0_183 = arith.constant 0 : index
    %c30 = arith.constant 30 : index
    %c0_184 = arith.constant 0 : index
    %c0_185 = arith.constant 0 : index
    %181 = vector.load %arg2[%c0_183, %c30, %c0_184, %c0_185] : memref<1x81x9x4xf32, #tpu.memory_space<vmem>>, vector<1x1x9x4xf32>
    %182 = vector.shape_cast %181 : vector<1x1x9x4xf32> to vector<9x4xf32>
    %183 = arith.maximumf %180, %182 : vector<9x4xf32>
    %c0_186 = arith.constant 0 : index
    %c31 = arith.constant 31 : index
    %c0_187 = arith.constant 0 : index
    %c0_188 = arith.constant 0 : index
    %184 = vector.load %arg2[%c0_186, %c31, %c0_187, %c0_188] : memref<1x81x9x4xf32, #tpu.memory_space<vmem>>, vector<1x1x9x4xf32>
    %185 = vector.shape_cast %184 : vector<1x1x9x4xf32> to vector<9x4xf32>
    %186 = arith.maximumf %183, %185 : vector<9x4xf32>
    %c0_189 = arith.constant 0 : index
    %c38_190 = arith.constant 38 : index
    %c0_191 = arith.constant 0 : index
    %c0_192 = arith.constant 0 : index
    %187 = vector.load %arg2[%c0_189, %c38_190, %c0_191, %c0_192] : memref<1x81x9x4xf32, #tpu.memory_space<vmem>>, vector<1x1x9x4xf32>
    %188 = vector.shape_cast %187 : vector<1x1x9x4xf32> to vector<9x4xf32>
    %189 = arith.maximumf %186, %188 : vector<9x4xf32>
    %c0_193 = arith.constant 0 : index
    %c39 = arith.constant 39 : index
    %c0_194 = arith.constant 0 : index
    %c0_195 = arith.constant 0 : index
    %190 = vector.load %arg2[%c0_193, %c39, %c0_194, %c0_195] : memref<1x81x9x4xf32, #tpu.memory_space<vmem>>, vector<1x1x9x4xf32>
    %191 = vector.shape_cast %190 : vector<1x1x9x4xf32> to vector<9x4xf32>
    %192 = arith.maximumf %189, %191 : vector<9x4xf32>
    %c0_196 = arith.constant 0 : index
    %c40 = arith.constant 40 : index
    %c0_197 = arith.constant 0 : index
    %c0_198 = arith.constant 0 : index
    %193 = vector.load %arg2[%c0_196, %c40, %c0_197, %c0_198] : memref<1x81x9x4xf32, #tpu.memory_space<vmem>>, vector<1x1x9x4xf32>
    %194 = vector.shape_cast %193 : vector<1x1x9x4xf32> to vector<9x4xf32>
    %195 = arith.maximumf %192, %194 : vector<9x4xf32>
    %196 = vector.extract_strided_slice %195 {offsets = [0, 0], sizes = [7, 4], strides = [1, 1]} : vector<9x4xf32> to vector<7x4xf32>
    %197 = vector.extract_strided_slice %195 {offsets = [1, 0], sizes = [7, 4], strides = [1, 1]} : vector<9x4xf32> to vector<7x4xf32>
    %198 = arith.maximumf %196, %197 : vector<7x4xf32>
    %199 = vector.extract_strided_slice %195 {offsets = [2, 0], sizes = [7, 4], strides = [1, 1]} : vector<9x4xf32> to vector<7x4xf32>
    %200 = arith.maximumf %198, %199 : vector<7x4xf32>
    %c0_199 = arith.constant 0 : index
    %c5_200 = arith.constant 5 : index
    %c0_201 = arith.constant 0 : index
    %c0_202 = arith.constant 0 : index
    %201 = vector.load %arg3[%c0_199, %c5_200, %c0_201, %c0_202] : memref<1x16x7x4xf32, #tpu.memory_space<vmem>>, vector<1x1x7x4xf32>
    %202 = vector.shape_cast %201 : vector<1x1x7x4xf32> to vector<7x4xf32>
    %203 = vector.shape_cast %200 : vector<7x4xf32> to vector<1x1x7x4xf32>
    tpu.vector_store %arg3[%c0_199, %c5_200, %c0_201, %c0_202], %203 {strides = array<i32>} : memref<1x16x7x4xf32, #tpu.memory_space<vmem>>, vector<1x1x7x4xf32>,
    %c0_203 = arith.constant 0 : index
    %c22_204 = arith.constant 22 : index
    %c0_205 = arith.constant 0 : index
    %c0_206 = arith.constant 0 : index
    %204 = vector.load %arg2[%c0_203, %c22_204, %c0_205, %c0_206] : memref<1x81x9x4xf32, #tpu.memory_space<vmem>>, vector<1x1x9x4xf32>
    %205 = vector.shape_cast %204 : vector<1x1x9x4xf32> to vector<9x4xf32>
    %c0_207 = arith.constant 0 : index
    %c23_208 = arith.constant 23 : index
    %c0_209 = arith.constant 0 : index
    %c0_210 = arith.constant 0 : index
    %206 = vector.load %arg2[%c0_207, %c23_208, %c0_209, %c0_210] : memref<1x81x9x4xf32, #tpu.memory_space<vmem>>, vector<1x1x9x4xf32>
    %207 = vector.shape_cast %206 : vector<1x1x9x4xf32> to vector<9x4xf32>
    %208 = arith.maximumf %205, %207 : vector<9x4xf32>
    %c0_211 = arith.constant 0 : index
    %c24_212 = arith.constant 24 : index
    %c0_213 = arith.constant 0 : index
    %c0_214 = arith.constant 0 : index
    %209 = vector.load %arg2[%c0_211, %c24_212, %c0_213, %c0_214] : memref<1x81x9x4xf32, #tpu.memory_space<vmem>>, vector<1x1x9x4xf32>
    %210 = vector.shape_cast %209 : vector<1x1x9x4xf32> to vector<9x4xf32>
    %211 = arith.maximumf %208, %210 : vector<9x4xf32>
    %c0_215 = arith.constant 0 : index
    %c31_216 = arith.constant 31 : index
    %c0_217 = arith.constant 0 : index
    %c0_218 = arith.constant 0 : index
    %212 = vector.load %arg2[%c0_215, %c31_216, %c0_217, %c0_218] : memref<1x81x9x4xf32, #tpu.memory_space<vmem>>, vector<1x1x9x4xf32>
    %213 = vector.shape_cast %212 : vector<1x1x9x4xf32> to vector<9x4xf32>
    %214 = arith.maximumf %211, %213 : vector<9x4xf32>
    %c0_219 = arith.constant 0 : index
    %c32 = arith.constant 32 : index
    %c0_220 = arith.constant 0 : index
    %c0_221 = arith.constant 0 : index
    %215 = vector.load %arg2[%c0_219, %c32, %c0_220, %c0_221] : memref<1x81x9x4xf32, #tpu.memory_space<vmem>>, vector<1x1x9x4xf32>
    %216 = vector.shape_cast %215 : vector<1x1x9x4xf32> to vector<9x4xf32>
    %217 = arith.maximumf %214, %216 : vector<9x4xf32>
    %c0_222 = arith.constant 0 : index
    %c33 = arith.constant 33 : index
    %c0_223 = arith.constant 0 : index
    %c0_224 = arith.constant 0 : index
    %218 = vector.load %arg2[%c0_222, %c33, %c0_223, %c0_224] : memref<1x81x9x4xf32, #tpu.memory_space<vmem>>, vector<1x1x9x4xf32>
    %219 = vector.shape_cast %218 : vector<1x1x9x4xf32> to vector<9x4xf32>
    %220 = arith.maximumf %217, %219 : vector<9x4xf32>
    %c0_225 = arith.constant 0 : index
    %c40_226 = arith.constant 40 : index
    %c0_227 = arith.constant 0 : index
    %c0_228 = arith.constant 0 : index
    %221 = vector.load %arg2[%c0_225, %c40_226, %c0_227, %c0_228] : memref<1x81x9x4xf32, #tpu.memory_space<vmem>>, vector<1x1x9x4xf32>
    %222 = vector.shape_cast %221 : vector<1x1x9x4xf32> to vector<9x4xf32>
    %223 = arith.maximumf %220, %222 : vector<9x4xf32>
    %c0_229 = arith.constant 0 : index
    %c41 = arith.constant 41 : index
    %c0_230 = arith.constant 0 : index
    %c0_231 = arith.constant 0 : index
    %224 = vector.load %arg2[%c0_229, %c41, %c0_230, %c0_231] : memref<1x81x9x4xf32, #tpu.memory_space<vmem>>, vector<1x1x9x4xf32>
    %225 = vector.shape_cast %224 : vector<1x1x9x4xf32> to vector<9x4xf32>
    %226 = arith.maximumf %223, %225 : vector<9x4xf32>
    %c0_232 = arith.constant 0 : index
    %c42 = arith.constant 42 : index
    %c0_233 = arith.constant 0 : index
    %c0_234 = arith.constant 0 : index
    %227 = vector.load %arg2[%c0_232, %c42, %c0_233, %c0_234] : memref<1x81x9x4xf32, #tpu.memory_space<vmem>>, vector<1x1x9x4xf32>
    %228 = vector.shape_cast %227 : vector<1x1x9x4xf32> to vector<9x4xf32>
    %229 = arith.maximumf %226, %228 : vector<9x4xf32>
    %230 = vector.extract_strided_slice %229 {offsets = [0, 0], sizes = [7, 4], strides = [1, 1]} : vector<9x4xf32> to vector<7x4xf32>
    %231 = vector.extract_strided_slice %229 {offsets = [1, 0], sizes = [7, 4], strides = [1, 1]} : vector<9x4xf32> to vector<7x4xf32>
    %232 = arith.maximumf %230, %231 : vector<7x4xf32>
    %233 = vector.extract_strided_slice %229 {offsets = [2, 0], sizes = [7, 4], strides = [1, 1]} : vector<9x4xf32> to vector<7x4xf32>
    %234 = arith.maximumf %232, %233 : vector<7x4xf32>
    %c0_235 = arith.constant 0 : index
    %c6_236 = arith.constant 6 : index
    %c0_237 = arith.constant 0 : index
    %c0_238 = arith.constant 0 : index
    %235 = vector.load %arg3[%c0_235, %c6_236, %c0_237, %c0_238] : memref<1x16x7x4xf32, #tpu.memory_space<vmem>>, vector<1x1x7x4xf32>
    %236 = vector.shape_cast %235 : vector<1x1x7x4xf32> to vector<7x4xf32>
    %237 = vector.shape_cast %234 : vector<7x4xf32> to vector<1x1x7x4xf32>
    tpu.vector_store %arg3[%c0_235, %c6_236, %c0_237, %c0_238], %237 {strides = array<i32>} : memref<1x16x7x4xf32, #tpu.memory_space<vmem>>, vector<1x1x7x4xf32>,
    %c0_239 = arith.constant 0 : index
    %c24_240 = arith.constant 24 : index
    %c0_241 = arith.constant 0 : index
    %c0_242 = arith.constant 0 : index
    %238 = vector.load %arg2[%c0_239, %c24_240, %c0_241, %c0_242] : memref<1x81x9x4xf32, #tpu.memory_space<vmem>>, vector<1x1x9x4xf32>
    %239 = vector.shape_cast %238 : vector<1x1x9x4xf32> to vector<9x4xf32>
    %c0_243 = arith.constant 0 : index
    %c25_244 = arith.constant 25 : index
    %c0_245 = arith.constant 0 : index
    %c0_246 = arith.constant 0 : index
    %240 = vector.load %arg2[%c0_243, %c25_244, %c0_245, %c0_246] : memref<1x81x9x4xf32, #tpu.memory_space<vmem>>, vector<1x1x9x4xf32>
    %241 = vector.shape_cast %240 : vector<1x1x9x4xf32> to vector<9x4xf32>
    %242 = arith.maximumf %239, %241 : vector<9x4xf32>
    %c0_247 = arith.constant 0 : index
    %c26_248 = arith.constant 26 : index
    %c0_249 = arith.constant 0 : index
    %c0_250 = arith.constant 0 : index
    %243 = vector.load %arg2[%c0_247, %c26_248, %c0_249, %c0_250] : memref<1x81x9x4xf32, #tpu.memory_space<vmem>>, vector<1x1x9x4xf32>
    %244 = vector.shape_cast %243 : vector<1x1x9x4xf32> to vector<9x4xf32>
    %245 = arith.maximumf %242, %244 : vector<9x4xf32>
    %c0_251 = arith.constant 0 : index
    %c33_252 = arith.constant 33 : index
    %c0_253 = arith.constant 0 : index
    %c0_254 = arith.constant 0 : index
    %246 = vector.load %arg2[%c0_251, %c33_252, %c0_253, %c0_254] : memref<1x81x9x4xf32, #tpu.memory_space<vmem>>, vector<1x1x9x4xf32>
    %247 = vector.shape_cast %246 : vector<1x1x9x4xf32> to vector<9x4xf32>
    %248 = arith.maximumf %245, %247 : vector<9x4xf32>
    %c0_255 = arith.constant 0 : index
    %c34 = arith.constant 34 : index
    %c0_256 = arith.constant 0 : index
    %c0_257 = arith.constant 0 : index
    %249 = vector.load %arg2[%c0_255, %c34, %c0_256, %c0_257] : memref<1x81x9x4xf32, #tpu.memory_space<vmem>>, vector<1x1x9x4xf32>
    %250 = vector.shape_cast %249 : vector<1x1x9x4xf32> to vector<9x4xf32>
    %251 = arith.maximumf %248, %250 : vector<9x4xf32>
    %c0_258 = arith.constant 0 : index
    %c35 = arith.constant 35 : index
    %c0_259 = arith.constant 0 : index
    %c0_260 = arith.constant 0 : index
    %252 = vector.load %arg2[%c0_258, %c35, %c0_259, %c0_260] : memref<1x81x9x4xf32, #tpu.memory_space<vmem>>, vector<1x1x9x4xf32>
    %253 = vector.shape_cast %252 : vector<1x1x9x4xf32> to vector<9x4xf32>
    %254 = arith.maximumf %251, %253 : vector<9x4xf32>
    %c0_261 = arith.constant 0 : index
    %c42_262 = arith.constant 42 : index
    %c0_263 = arith.constant 0 : index
    %c0_264 = arith.constant 0 : index
    %255 = vector.load %arg2[%c0_261, %c42_262, %c0_263, %c0_264] : memref<1x81x9x4xf32, #tpu.memory_space<vmem>>, vector<1x1x9x4xf32>
    %256 = vector.shape_cast %255 : vector<1x1x9x4xf32> to vector<9x4xf32>
    %257 = arith.maximumf %254, %256 : vector<9x4xf32>
    %c0_265 = arith.constant 0 : index
    %c43 = arith.constant 43 : index
    %c0_266 = arith.constant 0 : index
    %c0_267 = arith.constant 0 : index
    %258 = vector.load %arg2[%c0_265, %c43, %c0_266, %c0_267] : memref<1x81x9x4xf32, #tpu.memory_space<vmem>>, vector<1x1x9x4xf32>
    %259 = vector.shape_cast %258 : vector<1x1x9x4xf32> to vector<9x4xf32>
    %260 = arith.maximumf %257, %259 : vector<9x4xf32>
    %c0_268 = arith.constant 0 : index
    %c44 = arith.constant 44 : index
    %c0_269 = arith.constant 0 : index
    %c0_270 = arith.constant 0 : index
    %261 = vector.load %arg2[%c0_268, %c44, %c0_269, %c0_270] : memref<1x81x9x4xf32, #tpu.memory_space<vmem>>, vector<1x1x9x4xf32>
    %262 = vector.shape_cast %261 : vector<1x1x9x4xf32> to vector<9x4xf32>
    %263 = arith.maximumf %260, %262 : vector<9x4xf32>
    %264 = vector.extract_strided_slice %263 {offsets = [0, 0], sizes = [7, 4], strides = [1, 1]} : vector<9x4xf32> to vector<7x4xf32>
    %265 = vector.extract_strided_slice %263 {offsets = [1, 0], sizes = [7, 4], strides = [1, 1]} : vector<9x4xf32> to vector<7x4xf32>
    %266 = arith.maximumf %264, %265 : vector<7x4xf32>
    %267 = vector.extract_strided_slice %263 {offsets = [2, 0], sizes = [7, 4], strides = [1, 1]} : vector<9x4xf32> to vector<7x4xf32>
    %268 = arith.maximumf %266, %267 : vector<7x4xf32>
    %c0_271 = arith.constant 0 : index
    %c7_272 = arith.constant 7 : index
    %c0_273 = arith.constant 0 : index
    %c0_274 = arith.constant 0 : index
    %269 = vector.load %arg3[%c0_271, %c7_272, %c0_273, %c0_274] : memref<1x16x7x4xf32, #tpu.memory_space<vmem>>, vector<1x1x7x4xf32>
    %270 = vector.shape_cast %269 : vector<1x1x7x4xf32> to vector<7x4xf32>
    %271 = vector.shape_cast %268 : vector<7x4xf32> to vector<1x1x7x4xf32>
    tpu.vector_store %arg3[%c0_271, %c7_272, %c0_273, %c0_274], %271 {strides = array<i32>} : memref<1x16x7x4xf32, #tpu.memory_space<vmem>>, vector<1x1x7x4xf32>,
    %c0_275 = arith.constant 0 : index
    %c36_276 = arith.constant 36 : index
    %c0_277 = arith.constant 0 : index
    %c0_278 = arith.constant 0 : index
    %272 = vector.load %arg2[%c0_275, %c36_276, %c0_277, %c0_278] : memref<1x81x9x4xf32, #tpu.memory_space<vmem>>, vector<1x1x9x4xf32>
    %273 = vector.shape_cast %272 : vector<1x1x9x4xf32> to vector<9x4xf32>
    %c0_279 = arith.constant 0 : index
    %c37_280 = arith.constant 37 : index
    %c0_281 = arith.constant 0 : index
    %c0_282 = arith.constant 0 : index
    %274 = vector.load %arg2[%c0_279, %c37_280, %c0_281, %c0_282] : memref<1x81x9x4xf32, #tpu.memory_space<vmem>>, vector<1x1x9x4xf32>
    %275 = vector.shape_cast %274 : vector<1x1x9x4xf32> to vector<9x4xf32>
    %276 = arith.maximumf %273, %275 : vector<9x4xf32>
    %c0_283 = arith.constant 0 : index
    %c38_284 = arith.constant 38 : index
    %c0_285 = arith.constant 0 : index
    %c0_286 = arith.constant 0 : index
    %277 = vector.load %arg2[%c0_283, %c38_284, %c0_285, %c0_286] : memref<1x81x9x4xf32, #tpu.memory_space<vmem>>, vector<1x1x9x4xf32>
    %278 = vector.shape_cast %277 : vector<1x1x9x4xf32> to vector<9x4xf32>
    %279 = arith.maximumf %276, %278 : vector<9x4xf32>
    %c0_287 = arith.constant 0 : index
    %c45 = arith.constant 45 : index
    %c0_288 = arith.constant 0 : index
    %c0_289 = arith.constant 0 : index
    %280 = vector.load %arg2[%c0_287, %c45, %c0_288, %c0_289] : memref<1x81x9x4xf32, #tpu.memory_space<vmem>>, vector<1x1x9x4xf32>
    %281 = vector.shape_cast %280 : vector<1x1x9x4xf32> to vector<9x4xf32>
    %282 = arith.maximumf %279, %281 : vector<9x4xf32>
    %c0_290 = arith.constant 0 : index
    %c46 = arith.constant 46 : index
    %c0_291 = arith.constant 0 : index
    %c0_292 = arith.constant 0 : index
    %283 = vector.load %arg2[%c0_290, %c46, %c0_291, %c0_292] : memref<1x81x9x4xf32, #tpu.memory_space<vmem>>, vector<1x1x9x4xf32>
    %284 = vector.shape_cast %283 : vector<1x1x9x4xf32> to vector<9x4xf32>
    %285 = arith.maximumf %282, %284 : vector<9x4xf32>
    %c0_293 = arith.constant 0 : index
    %c47 = arith.constant 47 : index
    %c0_294 = arith.constant 0 : index
    %c0_295 = arith.constant 0 : index
    %286 = vector.load %arg2[%c0_293, %c47, %c0_294, %c0_295] : memref<1x81x9x4xf32, #tpu.memory_space<vmem>>, vector<1x1x9x4xf32>
    %287 = vector.shape_cast %286 : vector<1x1x9x4xf32> to vector<9x4xf32>
    %288 = arith.maximumf %285, %287 : vector<9x4xf32>
    %c0_296 = arith.constant 0 : index
    %c54 = arith.constant 54 : index
    %c0_297 = arith.constant 0 : index
    %c0_298 = arith.constant 0 : index
    %289 = vector.load %arg2[%c0_296, %c54, %c0_297, %c0_298] : memref<1x81x9x4xf32, #tpu.memory_space<vmem>>, vector<1x1x9x4xf32>
    %290 = vector.shape_cast %289 : vector<1x1x9x4xf32> to vector<9x4xf32>
    %291 = arith.maximumf %288, %290 : vector<9x4xf32>
    %c0_299 = arith.constant 0 : index
    %c55 = arith.constant 55 : index
    %c0_300 = arith.constant 0 : index
    %c0_301 = arith.constant 0 : index
    %292 = vector.load %arg2[%c0_299, %c55, %c0_300, %c0_301] : memref<1x81x9x4xf32, #tpu.memory_space<vmem>>, vector<1x1x9x4xf32>
    %293 = vector.shape_cast %292 : vector<1x1x9x4xf32> to vector<9x4xf32>
    %294 = arith.maximumf %291, %293 : vector<9x4xf32>
    %c0_302 = arith.constant 0 : index
    %c56 = arith.constant 56 : index
    %c0_303 = arith.constant 0 : index
    %c0_304 = arith.constant 0 : index
    %295 = vector.load %arg2[%c0_302, %c56, %c0_303, %c0_304] : memref<1x81x9x4xf32, #tpu.memory_space<vmem>>, vector<1x1x9x4xf32>
    %296 = vector.shape_cast %295 : vector<1x1x9x4xf32> to vector<9x4xf32>
    %297 = arith.maximumf %294, %296 : vector<9x4xf32>
    %298 = vector.extract_strided_slice %297 {offsets = [0, 0], sizes = [7, 4], strides = [1, 1]} : vector<9x4xf32> to vector<7x4xf32>
    %299 = vector.extract_strided_slice %297 {offsets = [1, 0], sizes = [7, 4], strides = [1, 1]} : vector<9x4xf32> to vector<7x4xf32>
    %300 = arith.maximumf %298, %299 : vector<7x4xf32>
    %301 = vector.extract_strided_slice %297 {offsets = [2, 0], sizes = [7, 4], strides = [1, 1]} : vector<9x4xf32> to vector<7x4xf32>
    %302 = arith.maximumf %300, %301 : vector<7x4xf32>
    %c0_305 = arith.constant 0 : index
    %c8_306 = arith.constant 8 : index
    %c0_307 = arith.constant 0 : index
    %c0_308 = arith.constant 0 : index
    %303 = vector.load %arg3[%c0_305, %c8_306, %c0_307, %c0_308] : memref<1x16x7x4xf32, #tpu.memory_space<vmem>>, vector<1x1x7x4xf32>
    %304 = vector.shape_cast %303 : vector<1x1x7x4xf32> to vector<7x4xf32>
    %305 = vector.shape_cast %302 : vector<7x4xf32> to vector<1x1x7x4xf32>
    tpu.vector_store %arg3[%c0_305, %c8_306, %c0_307, %c0_308], %305 {strides = array<i32>} : memref<1x16x7x4xf32, #tpu.memory_space<vmem>>, vector<1x1x7x4xf32>,
    %c0_309 = arith.constant 0 : index
    %c38_310 = arith.constant 38 : index
    %c0_311 = arith.constant 0 : index
    %c0_312 = arith.constant 0 : index
    %306 = vector.load %arg2[%c0_309, %c38_310, %c0_311, %c0_312] : memref<1x81x9x4xf32, #tpu.memory_space<vmem>>, vector<1x1x9x4xf32>
    %307 = vector.shape_cast %306 : vector<1x1x9x4xf32> to vector<9x4xf32>
    %c0_313 = arith.constant 0 : index
    %c39_314 = arith.constant 39 : index
    %c0_315 = arith.constant 0 : index
    %c0_316 = arith.constant 0 : index
    %308 = vector.load %arg2[%c0_313, %c39_314, %c0_315, %c0_316] : memref<1x81x9x4xf32, #tpu.memory_space<vmem>>, vector<1x1x9x4xf32>
    %309 = vector.shape_cast %308 : vector<1x1x9x4xf32> to vector<9x4xf32>
    %310 = arith.maximumf %307, %309 : vector<9x4xf32>
    %c0_317 = arith.constant 0 : index
    %c40_318 = arith.constant 40 : index
    %c0_319 = arith.constant 0 : index
    %c0_320 = arith.constant 0 : index
    %311 = vector.load %arg2[%c0_317, %c40_318, %c0_319, %c0_320] : memref<1x81x9x4xf32, #tpu.memory_space<vmem>>, vector<1x1x9x4xf32>
    %312 = vector.shape_cast %311 : vector<1x1x9x4xf32> to vector<9x4xf32>
    %313 = arith.maximumf %310, %312 : vector<9x4xf32>
    %c0_321 = arith.constant 0 : index
    %c47_322 = arith.constant 47 : index
    %c0_323 = arith.constant 0 : index
    %c0_324 = arith.constant 0 : index
    %314 = vector.load %arg2[%c0_321, %c47_322, %c0_323, %c0_324] : memref<1x81x9x4xf32, #tpu.memory_space<vmem>>, vector<1x1x9x4xf32>
    %315 = vector.shape_cast %314 : vector<1x1x9x4xf32> to vector<9x4xf32>
    %316 = arith.maximumf %313, %315 : vector<9x4xf32>
    %c0_325 = arith.constant 0 : index
    %c48 = arith.constant 48 : index
    %c0_326 = arith.constant 0 : index
    %c0_327 = arith.constant 0 : index
    %317 = vector.load %arg2[%c0_325, %c48, %c0_326, %c0_327] : memref<1x81x9x4xf32, #tpu.memory_space<vmem>>, vector<1x1x9x4xf32>
    %318 = vector.shape_cast %317 : vector<1x1x9x4xf32> to vector<9x4xf32>
    %319 = arith.maximumf %316, %318 : vector<9x4xf32>
    %c0_328 = arith.constant 0 : index
    %c49 = arith.constant 49 : index
    %c0_329 = arith.constant 0 : index
    %c0_330 = arith.constant 0 : index
    %320 = vector.load %arg2[%c0_328, %c49, %c0_329, %c0_330] : memref<1x81x9x4xf32, #tpu.memory_space<vmem>>, vector<1x1x9x4xf32>
    %321 = vector.shape_cast %320 : vector<1x1x9x4xf32> to vector<9x4xf32>
    %322 = arith.maximumf %319, %321 : vector<9x4xf32>
    %c0_331 = arith.constant 0 : index
    %c56_332 = arith.constant 56 : index
    %c0_333 = arith.constant 0 : index
    %c0_334 = arith.constant 0 : index
    %323 = vector.load %arg2[%c0_331, %c56_332, %c0_333, %c0_334] : memref<1x81x9x4xf32, #tpu.memory_space<vmem>>, vector<1x1x9x4xf32>
    %324 = vector.shape_cast %323 : vector<1x1x9x4xf32> to vector<9x4xf32>
    %325 = arith.maximumf %322, %324 : vector<9x4xf32>
    %c0_335 = arith.constant 0 : index
    %c57 = arith.constant 57 : index
    %c0_336 = arith.constant 0 : index
    %c0_337 = arith.constant 0 : index
    %326 = vector.load %arg2[%c0_335, %c57, %c0_336, %c0_337] : memref<1x81x9x4xf32, #tpu.memory_space<vmem>>, vector<1x1x9x4xf32>
    %327 = vector.shape_cast %326 : vector<1x1x9x4xf32> to vector<9x4xf32>
    %328 = arith.maximumf %325, %327 : vector<9x4xf32>
    %c0_338 = arith.constant 0 : index
    %c58 = arith.constant 58 : index
    %c0_339 = arith.constant 0 : index
    %c0_340 = arith.constant 0 : index
    %329 = vector.load %arg2[%c0_338, %c58, %c0_339, %c0_340] : memref<1x81x9x4xf32, #tpu.memory_space<vmem>>, vector<1x1x9x4xf32>
    %330 = vector.shape_cast %329 : vector<1x1x9x4xf32> to vector<9x4xf32>
    %331 = arith.maximumf %328, %330 : vector<9x4xf32>
    %332 = vector.extract_strided_slice %331 {offsets = [0, 0], sizes = [7, 4], strides = [1, 1]} : vector<9x4xf32> to vector<7x4xf32>
    %333 = vector.extract_strided_slice %331 {offsets = [1, 0], sizes = [7, 4], strides = [1, 1]} : vector<9x4xf32> to vector<7x4xf32>
    %334 = arith.maximumf %332, %333 : vector<7x4xf32>
    %335 = vector.extract_strided_slice %331 {offsets = [2, 0], sizes = [7, 4], strides = [1, 1]} : vector<9x4xf32> to vector<7x4xf32>
    %336 = arith.maximumf %334, %335 : vector<7x4xf32>
    %c0_341 = arith.constant 0 : index
    %c9_342 = arith.constant 9 : index
    %c0_343 = arith.constant 0 : index
    %c0_344 = arith.constant 0 : index
    %337 = vector.load %arg3[%c0_341, %c9_342, %c0_343, %c0_344] : memref<1x16x7x4xf32, #tpu.memory_space<vmem>>, vector<1x1x7x4xf32>
    %338 = vector.shape_cast %337 : vector<1x1x7x4xf32> to vector<7x4xf32>
    %339 = vector.shape_cast %336 : vector<7x4xf32> to vector<1x1x7x4xf32>
    tpu.vector_store %arg3[%c0_341, %c9_342, %c0_343, %c0_344], %339 {strides = array<i32>} : memref<1x16x7x4xf32, #tpu.memory_space<vmem>>, vector<1x1x7x4xf32>,
    %c0_345 = arith.constant 0 : index
    %c40_346 = arith.constant 40 : index
    %c0_347 = arith.constant 0 : index
    %c0_348 = arith.constant 0 : index
    %340 = vector.load %arg2[%c0_345, %c40_346, %c0_347, %c0_348] : memref<1x81x9x4xf32, #tpu.memory_space<vmem>>, vector<1x1x9x4xf32>
    %341 = vector.shape_cast %340 : vector<1x1x9x4xf32> to vector<9x4xf32>
    %c0_349 = arith.constant 0 : index
    %c41_350 = arith.constant 41 : index
    %c0_351 = arith.constant 0 : index
    %c0_352 = arith.constant 0 : index
    %342 = vector.load %arg2[%c0_349, %c41_350, %c0_351, %c0_352] : memref<1x81x9x4xf32, #tpu.memory_space<vmem>>, vector<1x1x9x4xf32>
    %343 = vector.shape_cast %342 : vector<1x1x9x4xf32> to vector<9x4xf32>
    %344 = arith.maximumf %341, %343 : vector<9x4xf32>
    %c0_353 = arith.constant 0 : index
    %c42_354 = arith.constant 42 : index
    %c0_355 = arith.constant 0 : index
    %c0_356 = arith.constant 0 : index
    %345 = vector.load %arg2[%c0_353, %c42_354, %c0_355, %c0_356] : memref<1x81x9x4xf32, #tpu.memory_space<vmem>>, vector<1x1x9x4xf32>
    %346 = vector.shape_cast %345 : vector<1x1x9x4xf32> to vector<9x4xf32>
    %347 = arith.maximumf %344, %346 : vector<9x4xf32>
    %c0_357 = arith.constant 0 : index
    %c49_358 = arith.constant 49 : index
    %c0_359 = arith.constant 0 : index
    %c0_360 = arith.constant 0 : index
    %348 = vector.load %arg2[%c0_357, %c49_358, %c0_359, %c0_360] : memref<1x81x9x4xf32, #tpu.memory_space<vmem>>, vector<1x1x9x4xf32>
    %349 = vector.shape_cast %348 : vector<1x1x9x4xf32> to vector<9x4xf32>
    %350 = arith.maximumf %347, %349 : vector<9x4xf32>
    %c0_361 = arith.constant 0 : index
    %c50 = arith.constant 50 : index
    %c0_362 = arith.constant 0 : index
    %c0_363 = arith.constant 0 : index
    %351 = vector.load %arg2[%c0_361, %c50, %c0_362, %c0_363] : memref<1x81x9x4xf32, #tpu.memory_space<vmem>>, vector<1x1x9x4xf32>
    %352 = vector.shape_cast %351 : vector<1x1x9x4xf32> to vector<9x4xf32>
    %353 = arith.maximumf %350, %352 : vector<9x4xf32>
    %c0_364 = arith.constant 0 : index
    %c51 = arith.constant 51 : index
    %c0_365 = arith.constant 0 : index
    %c0_366 = arith.constant 0 : index
    %354 = vector.load %arg2[%c0_364, %c51, %c0_365, %c0_366] : memref<1x81x9x4xf32, #tpu.memory_space<vmem>>, vector<1x1x9x4xf32>
    %355 = vector.shape_cast %354 : vector<1x1x9x4xf32> to vector<9x4xf32>
    %356 = arith.maximumf %353, %355 : vector<9x4xf32>
    %c0_367 = arith.constant 0 : index
    %c58_368 = arith.constant 58 : index
    %c0_369 = arith.constant 0 : index
    %c0_370 = arith.constant 0 : index
    %357 = vector.load %arg2[%c0_367, %c58_368, %c0_369, %c0_370] : memref<1x81x9x4xf32, #tpu.memory_space<vmem>>, vector<1x1x9x4xf32>
    %358 = vector.shape_cast %357 : vector<1x1x9x4xf32> to vector<9x4xf32>
    %359 = arith.maximumf %356, %358 : vector<9x4xf32>
    %c0_371 = arith.constant 0 : index
    %c59 = arith.constant 59 : index
    %c0_372 = arith.constant 0 : index
    %c0_373 = arith.constant 0 : index
    %360 = vector.load %arg2[%c0_371, %c59, %c0_372, %c0_373] : memref<1x81x9x4xf32, #tpu.memory_space<vmem>>, vector<1x1x9x4xf32>
    %361 = vector.shape_cast %360 : vector<1x1x9x4xf32> to vector<9x4xf32>
    %362 = arith.maximumf %359, %361 : vector<9x4xf32>
    %c0_374 = arith.constant 0 : index
    %c60 = arith.constant 60 : index
    %c0_375 = arith.constant 0 : index
    %c0_376 = arith.constant 0 : index
    %363 = vector.load %arg2[%c0_374, %c60, %c0_375, %c0_376] : memref<1x81x9x4xf32, #tpu.memory_space<vmem>>, vector<1x1x9x4xf32>
    %364 = vector.shape_cast %363 : vector<1x1x9x4xf32> to vector<9x4xf32>
    %365 = arith.maximumf %362, %364 : vector<9x4xf32>
    %366 = vector.extract_strided_slice %365 {offsets = [0, 0], sizes = [7, 4], strides = [1, 1]} : vector<9x4xf32> to vector<7x4xf32>
    %367 = vector.extract_strided_slice %365 {offsets = [1, 0], sizes = [7, 4], strides = [1, 1]} : vector<9x4xf32> to vector<7x4xf32>
    %368 = arith.maximumf %366, %367 : vector<7x4xf32>
    %369 = vector.extract_strided_slice %365 {offsets = [2, 0], sizes = [7, 4], strides = [1, 1]} : vector<9x4xf32> to vector<7x4xf32>
    %370 = arith.maximumf %368, %369 : vector<7x4xf32>
    %c0_377 = arith.constant 0 : index
    %c10_378 = arith.constant 10 : index
    %c0_379 = arith.constant 0 : index
    %c0_380 = arith.constant 0 : index
    %371 = vector.load %arg3[%c0_377, %c10_378, %c0_379, %c0_380] : memref<1x16x7x4xf32, #tpu.memory_space<vmem>>, vector<1x1x7x4xf32>
    %372 = vector.shape_cast %371 : vector<1x1x7x4xf32> to vector<7x4xf32>
    %373 = vector.shape_cast %370 : vector<7x4xf32> to vector<1x1x7x4xf32>
    tpu.vector_store %arg3[%c0_377, %c10_378, %c0_379, %c0_380], %373 {strides = array<i32>} : memref<1x16x7x4xf32, #tpu.memory_space<vmem>>, vector<1x1x7x4xf32>,
    %c0_381 = arith.constant 0 : index
    %c42_382 = arith.constant 42 : index
    %c0_383 = arith.constant 0 : index
    %c0_384 = arith.constant 0 : index
    %374 = vector.load %arg2[%c0_381, %c42_382, %c0_383, %c0_384] : memref<1x81x9x4xf32, #tpu.memory_space<vmem>>, vector<1x1x9x4xf32>
    %375 = vector.shape_cast %374 : vector<1x1x9x4xf32> to vector<9x4xf32>
    %c0_385 = arith.constant 0 : index
    %c43_386 = arith.constant 43 : index
    %c0_387 = arith.constant 0 : index
    %c0_388 = arith.constant 0 : index
    %376 = vector.load %arg2[%c0_385, %c43_386, %c0_387, %c0_388] : memref<1x81x9x4xf32, #tpu.memory_space<vmem>>, vector<1x1x9x4xf32>
    %377 = vector.shape_cast %376 : vector<1x1x9x4xf32> to vector<9x4xf32>
    %378 = arith.maximumf %375, %377 : vector<9x4xf32>
    %c0_389 = arith.constant 0 : index
    %c44_390 = arith.constant 44 : index
    %c0_391 = arith.constant 0 : index
    %c0_392 = arith.constant 0 : index
    %379 = vector.load %arg2[%c0_389, %c44_390, %c0_391, %c0_392] : memref<1x81x9x4xf32, #tpu.memory_space<vmem>>, vector<1x1x9x4xf32>
    %380 = vector.shape_cast %379 : vector<1x1x9x4xf32> to vector<9x4xf32>
    %381 = arith.maximumf %378, %380 : vector<9x4xf32>
    %c0_393 = arith.constant 0 : index
    %c51_394 = arith.constant 51 : index
    %c0_395 = arith.constant 0 : index
    %c0_396 = arith.constant 0 : index
    %382 = vector.load %arg2[%c0_393, %c51_394, %c0_395, %c0_396] : memref<1x81x9x4xf32, #tpu.memory_space<vmem>>, vector<1x1x9x4xf32>
    %383 = vector.shape_cast %382 : vector<1x1x9x4xf32> to vector<9x4xf32>
    %384 = arith.maximumf %381, %383 : vector<9x4xf32>
    %c0_397 = arith.constant 0 : index
    %c52 = arith.constant 52 : index
    %c0_398 = arith.constant 0 : index
    %c0_399 = arith.constant 0 : index
    %385 = vector.load %arg2[%c0_397, %c52, %c0_398, %c0_399] : memref<1x81x9x4xf32, #tpu.memory_space<vmem>>, vector<1x1x9x4xf32>
    %386 = vector.shape_cast %385 : vector<1x1x9x4xf32> to vector<9x4xf32>
    %387 = arith.maximumf %384, %386 : vector<9x4xf32>
    %c0_400 = arith.constant 0 : index
    %c53 = arith.constant 53 : index
    %c0_401 = arith.constant 0 : index
    %c0_402 = arith.constant 0 : index
    %388 = vector.load %arg2[%c0_400, %c53, %c0_401, %c0_402] : memref<1x81x9x4xf32, #tpu.memory_space<vmem>>, vector<1x1x9x4xf32>
    %389 = vector.shape_cast %388 : vector<1x1x9x4xf32> to vector<9x4xf32>
    %390 = arith.maximumf %387, %389 : vector<9x4xf32>
    %c0_403 = arith.constant 0 : index
    %c60_404 = arith.constant 60 : index
    %c0_405 = arith.constant 0 : index
    %c0_406 = arith.constant 0 : index
    %391 = vector.load %arg2[%c0_403, %c60_404, %c0_405, %c0_406] : memref<1x81x9x4xf32, #tpu.memory_space<vmem>>, vector<1x1x9x4xf32>
    %392 = vector.shape_cast %391 : vector<1x1x9x4xf32> to vector<9x4xf32>
    %393 = arith.maximumf %390, %392 : vector<9x4xf32>
    %c0_407 = arith.constant 0 : index
    %c61 = arith.constant 61 : index
    %c0_408 = arith.constant 0 : index
    %c0_409 = arith.constant 0 : index
    %394 = vector.load %arg2[%c0_407, %c61, %c0_408, %c0_409] : memref<1x81x9x4xf32, #tpu.memory_space<vmem>>, vector<1x1x9x4xf32>
    %395 = vector.shape_cast %394 : vector<1x1x9x4xf32> to vector<9x4xf32>
    %396 = arith.maximumf %393, %395 : vector<9x4xf32>
    %c0_410 = arith.constant 0 : index
    %c62 = arith.constant 62 : index
    %c0_411 = arith.constant 0 : index
    %c0_412 = arith.constant 0 : index
    %397 = vector.load %arg2[%c0_410, %c62, %c0_411, %c0_412] : memref<1x81x9x4xf32, #tpu.memory_space<vmem>>, vector<1x1x9x4xf32>
    %398 = vector.shape_cast %397 : vector<1x1x9x4xf32> to vector<9x4xf32>
    %399 = arith.maximumf %396, %398 : vector<9x4xf32>
    %400 = vector.extract_strided_slice %399 {offsets = [0, 0], sizes = [7, 4], strides = [1, 1]} : vector<9x4xf32> to vector<7x4xf32>
    %401 = vector.extract_strided_slice %399 {offsets = [1, 0], sizes = [7, 4], strides = [1, 1]} : vector<9x4xf32> to vector<7x4xf32>
    %402 = arith.maximumf %400, %401 : vector<7x4xf32>
    %403 = vector.extract_strided_slice %399 {offsets = [2, 0], sizes = [7, 4], strides = [1, 1]} : vector<9x4xf32> to vector<7x4xf32>
    %404 = arith.maximumf %402, %403 : vector<7x4xf32>
    %c0_413 = arith.constant 0 : index
    %c11_414 = arith.constant 11 : index
    %c0_415 = arith.constant 0 : index
    %c0_416 = arith.constant 0 : index
    %405 = vector.load %arg3[%c0_413, %c11_414, %c0_415, %c0_416] : memref<1x16x7x4xf32, #tpu.memory_space<vmem>>, vector<1x1x7x4xf32>
    %406 = vector.shape_cast %405 : vector<1x1x7x4xf32> to vector<7x4xf32>
    %407 = vector.shape_cast %404 : vector<7x4xf32> to vector<1x1x7x4xf32>
    tpu.vector_store %arg3[%c0_413, %c11_414, %c0_415, %c0_416], %407 {strides = array<i32>} : memref<1x16x7x4xf32, #tpu.memory_space<vmem>>, vector<1x1x7x4xf32>,
    %c0_417 = arith.constant 0 : index
    %c54_418 = arith.constant 54 : index
    %c0_419 = arith.constant 0 : index
    %c0_420 = arith.constant 0 : index
    %408 = vector.load %arg2[%c0_417, %c54_418, %c0_419, %c0_420] : memref<1x81x9x4xf32, #tpu.memory_space<vmem>>, vector<1x1x9x4xf32>
    %409 = vector.shape_cast %408 : vector<1x1x9x4xf32> to vector<9x4xf32>
    %c0_421 = arith.constant 0 : index
    %c55_422 = arith.constant 55 : index
    %c0_423 = arith.constant 0 : index
    %c0_424 = arith.constant 0 : index
    %410 = vector.load %arg2[%c0_421, %c55_422, %c0_423, %c0_424] : memref<1x81x9x4xf32, #tpu.memory_space<vmem>>, vector<1x1x9x4xf32>
    %411 = vector.shape_cast %410 : vector<1x1x9x4xf32> to vector<9x4xf32>
    %412 = arith.maximumf %409, %411 : vector<9x4xf32>
    %c0_425 = arith.constant 0 : index
    %c56_426 = arith.constant 56 : index
    %c0_427 = arith.constant 0 : index
    %c0_428 = arith.constant 0 : index
    %413 = vector.load %arg2[%c0_425, %c56_426, %c0_427, %c0_428] : memref<1x81x9x4xf32, #tpu.memory_space<vmem>>, vector<1x1x9x4xf32>
    %414 = vector.shape_cast %413 : vector<1x1x9x4xf32> to vector<9x4xf32>
    %415 = arith.maximumf %412, %414 : vector<9x4xf32>
    %c0_429 = arith.constant 0 : index
    %c63 = arith.constant 63 : index
    %c0_430 = arith.constant 0 : index
    %c0_431 = arith.constant 0 : index
    %416 = vector.load %arg2[%c0_429, %c63, %c0_430, %c0_431] : memref<1x81x9x4xf32, #tpu.memory_space<vmem>>, vector<1x1x9x4xf32>
    %417 = vector.shape_cast %416 : vector<1x1x9x4xf32> to vector<9x4xf32>
    %418 = arith.maximumf %415, %417 : vector<9x4xf32>
    %c0_432 = arith.constant 0 : index
    %c64 = arith.constant 64 : index
    %c0_433 = arith.constant 0 : index
    %c0_434 = arith.constant 0 : index
    %419 = vector.load %arg2[%c0_432, %c64, %c0_433, %c0_434] : memref<1x81x9x4xf32, #tpu.memory_space<vmem>>, vector<1x1x9x4xf32>
    %420 = vector.shape_cast %419 : vector<1x1x9x4xf32> to vector<9x4xf32>
    %421 = arith.maximumf %418, %420 : vector<9x4xf32>
    %c0_435 = arith.constant 0 : index
    %c65 = arith.constant 65 : index
    %c0_436 = arith.constant 0 : index
    %c0_437 = arith.constant 0 : index
    %422 = vector.load %arg2[%c0_435, %c65, %c0_436, %c0_437] : memref<1x81x9x4xf32, #tpu.memory_space<vmem>>, vector<1x1x9x4xf32>
    %423 = vector.shape_cast %422 : vector<1x1x9x4xf32> to vector<9x4xf32>
    %424 = arith.maximumf %421, %423 : vector<9x4xf32>
    %c0_438 = arith.constant 0 : index
    %c72 = arith.constant 72 : index
    %c0_439 = arith.constant 0 : index
    %c0_440 = arith.constant 0 : index
    %425 = vector.load %arg2[%c0_438, %c72, %c0_439, %c0_440] : memref<1x81x9x4xf32, #tpu.memory_space<vmem>>, vector<1x1x9x4xf32>
    %426 = vector.shape_cast %425 : vector<1x1x9x4xf32> to vector<9x4xf32>
    %427 = arith.maximumf %424, %426 : vector<9x4xf32>
    %c0_441 = arith.constant 0 : index
    %c73 = arith.constant 73 : index
    %c0_442 = arith.constant 0 : index
    %c0_443 = arith.constant 0 : index
    %428 = vector.load %arg2[%c0_441, %c73, %c0_442, %c0_443] : memref<1x81x9x4xf32, #tpu.memory_space<vmem>>, vector<1x1x9x4xf32>
    %429 = vector.shape_cast %428 : vector<1x1x9x4xf32> to vector<9x4xf32>
    %430 = arith.maximumf %427, %429 : vector<9x4xf32>
    %c0_444 = arith.constant 0 : index
    %c74 = arith.constant 74 : index
    %c0_445 = arith.constant 0 : index
    %c0_446 = arith.constant 0 : index
    %431 = vector.load %arg2[%c0_444, %c74, %c0_445, %c0_446] : memref<1x81x9x4xf32, #tpu.memory_space<vmem>>, vector<1x1x9x4xf32>
    %432 = vector.shape_cast %431 : vector<1x1x9x4xf32> to vector<9x4xf32>
    %433 = arith.maximumf %430, %432 : vector<9x4xf32>
    %434 = vector.extract_strided_slice %433 {offsets = [0, 0], sizes = [7, 4], strides = [1, 1]} : vector<9x4xf32> to vector<7x4xf32>
    %435 = vector.extract_strided_slice %433 {offsets = [1, 0], sizes = [7, 4], strides = [1, 1]} : vector<9x4xf32> to vector<7x4xf32>
    %436 = arith.maximumf %434, %435 : vector<7x4xf32>
    %437 = vector.extract_strided_slice %433 {offsets = [2, 0], sizes = [7, 4], strides = [1, 1]} : vector<9x4xf32> to vector<7x4xf32>
    %438 = arith.maximumf %436, %437 : vector<7x4xf32>
    %c0_447 = arith.constant 0 : index
    %c12_448 = arith.constant 12 : index
    %c0_449 = arith.constant 0 : index
    %c0_450 = arith.constant 0 : index
    %439 = vector.load %arg3[%c0_447, %c12_448, %c0_449, %c0_450] : memref<1x16x7x4xf32, #tpu.memory_space<vmem>>, vector<1x1x7x4xf32>
    %440 = vector.shape_cast %439 : vector<1x1x7x4xf32> to vector<7x4xf32>
    %441 = vector.shape_cast %438 : vector<7x4xf32> to vector<1x1x7x4xf32>
    tpu.vector_store %arg3[%c0_447, %c12_448, %c0_449, %c0_450], %441 {strides = array<i32>} : memref<1x16x7x4xf32, #tpu.memory_space<vmem>>, vector<1x1x7x4xf32>,
    %c0_451 = arith.constant 0 : index
    %c56_452 = arith.constant 56 : index
    %c0_453 = arith.constant 0 : index
    %c0_454 = arith.constant 0 : index
    %442 = vector.load %arg2[%c0_451, %c56_452, %c0_453, %c0_454] : memref<1x81x9x4xf32, #tpu.memory_space<vmem>>, vector<1x1x9x4xf32>
    %443 = vector.shape_cast %442 : vector<1x1x9x4xf32> to vector<9x4xf32>
    %c0_455 = arith.constant 0 : index
    %c57_456 = arith.constant 57 : index
    %c0_457 = arith.constant 0 : index
    %c0_458 = arith.constant 0 : index
    %444 = vector.load %arg2[%c0_455, %c57_456, %c0_457, %c0_458] : memref<1x81x9x4xf32, #tpu.memory_space<vmem>>, vector<1x1x9x4xf32>
    %445 = vector.shape_cast %444 : vector<1x1x9x4xf32> to vector<9x4xf32>
    %446 = arith.maximumf %443, %445 : vector<9x4xf32>
    %c0_459 = arith.constant 0 : index
    %c58_460 = arith.constant 58 : index
    %c0_461 = arith.constant 0 : index
    %c0_462 = arith.constant 0 : index
    %447 = vector.load %arg2[%c0_459, %c58_460, %c0_461, %c0_462] : memref<1x81x9x4xf32, #tpu.memory_space<vmem>>, vector<1x1x9x4xf32>
    %448 = vector.shape_cast %447 : vector<1x1x9x4xf32> to vector<9x4xf32>
    %449 = arith.maximumf %446, %448 : vector<9x4xf32>
    %c0_463 = arith.constant 0 : index
    %c65_464 = arith.constant 65 : index
    %c0_465 = arith.constant 0 : index
    %c0_466 = arith.constant 0 : index
    %450 = vector.load %arg2[%c0_463, %c65_464, %c0_465, %c0_466] : memref<1x81x9x4xf32, #tpu.memory_space<vmem>>, vector<1x1x9x4xf32>
    %451 = vector.shape_cast %450 : vector<1x1x9x4xf32> to vector<9x4xf32>
    %452 = arith.maximumf %449, %451 : vector<9x4xf32>
    %c0_467 = arith.constant 0 : index
    %c66 = arith.constant 66 : index
    %c0_468 = arith.constant 0 : index
    %c0_469 = arith.constant 0 : index
    %453 = vector.load %arg2[%c0_467, %c66, %c0_468, %c0_469] : memref<1x81x9x4xf32, #tpu.memory_space<vmem>>, vector<1x1x9x4xf32>
    %454 = vector.shape_cast %453 : vector<1x1x9x4xf32> to vector<9x4xf32>
    %455 = arith.maximumf %452, %454 : vector<9x4xf32>
    %c0_470 = arith.constant 0 : index
    %c67 = arith.constant 67 : index
    %c0_471 = arith.constant 0 : index
    %c0_472 = arith.constant 0 : index
    %456 = vector.load %arg2[%c0_470, %c67, %c0_471, %c0_472] : memref<1x81x9x4xf32, #tpu.memory_space<vmem>>, vector<1x1x9x4xf32>
    %457 = vector.shape_cast %456 : vector<1x1x9x4xf32> to vector<9x4xf32>
    %458 = arith.maximumf %455, %457 : vector<9x4xf32>
    %c0_473 = arith.constant 0 : index
    %c74_474 = arith.constant 74 : index
    %c0_475 = arith.constant 0 : index
    %c0_476 = arith.constant 0 : index
    %459 = vector.load %arg2[%c0_473, %c74_474, %c0_475, %c0_476] : memref<1x81x9x4xf32, #tpu.memory_space<vmem>>, vector<1x1x9x4xf32>
    %460 = vector.shape_cast %459 : vector<1x1x9x4xf32> to vector<9x4xf32>
    %461 = arith.maximumf %458, %460 : vector<9x4xf32>
    %c0_477 = arith.constant 0 : index
    %c75 = arith.constant 75 : index
    %c0_478 = arith.constant 0 : index
    %c0_479 = arith.constant 0 : index
    %462 = vector.load %arg2[%c0_477, %c75, %c0_478, %c0_479] : memref<1x81x9x4xf32, #tpu.memory_space<vmem>>, vector<1x1x9x4xf32>
    %463 = vector.shape_cast %462 : vector<1x1x9x4xf32> to vector<9x4xf32>
    %464 = arith.maximumf %461, %463 : vector<9x4xf32>
    %c0_480 = arith.constant 0 : index
    %c76 = arith.constant 76 : index
    %c0_481 = arith.constant 0 : index
    %c0_482 = arith.constant 0 : index
    %465 = vector.load %arg2[%c0_480, %c76, %c0_481, %c0_482] : memref<1x81x9x4xf32, #tpu.memory_space<vmem>>, vector<1x1x9x4xf32>
    %466 = vector.shape_cast %465 : vector<1x1x9x4xf32> to vector<9x4xf32>
    %467 = arith.maximumf %464, %466 : vector<9x4xf32>
    %468 = vector.extract_strided_slice %467 {offsets = [0, 0], sizes = [7, 4], strides = [1, 1]} : vector<9x4xf32> to vector<7x4xf32>
    %469 = vector.extract_strided_slice %467 {offsets = [1, 0], sizes = [7, 4], strides = [1, 1]} : vector<9x4xf32> to vector<7x4xf32>
    %470 = arith.maximumf %468, %469 : vector<7x4xf32>
    %471 = vector.extract_strided_slice %467 {offsets = [2, 0], sizes = [7, 4], strides = [1, 1]} : vector<9x4xf32> to vector<7x4xf32>
    %472 = arith.maximumf %470, %471 : vector<7x4xf32>
    %c0_483 = arith.constant 0 : index
    %c13_484 = arith.constant 13 : index
    %c0_485 = arith.constant 0 : index
    %c0_486 = arith.constant 0 : index
    %473 = vector.load %arg3[%c0_483, %c13_484, %c0_485, %c0_486] : memref<1x16x7x4xf32, #tpu.memory_space<vmem>>, vector<1x1x7x4xf32>
    %474 = vector.shape_cast %473 : vector<1x1x7x4xf32> to vector<7x4xf32>
    %475 = vector.shape_cast %472 : vector<7x4xf32> to vector<1x1x7x4xf32>
    tpu.vector_store %arg3[%c0_483, %c13_484, %c0_485, %c0_486], %475 {strides = array<i32>} : memref<1x16x7x4xf32, #tpu.memory_space<vmem>>, vector<1x1x7x4xf32>,
    %c0_487 = arith.constant 0 : index
    %c58_488 = arith.constant 58 : index
    %c0_489 = arith.constant 0 : index
    %c0_490 = arith.constant 0 : index
    %476 = vector.load %arg2[%c0_487, %c58_488, %c0_489, %c0_490] : memref<1x81x9x4xf32, #tpu.memory_space<vmem>>, vector<1x1x9x4xf32>
    %477 = vector.shape_cast %476 : vector<1x1x9x4xf32> to vector<9x4xf32>
    %c0_491 = arith.constant 0 : index
    %c59_492 = arith.constant 59 : index
    %c0_493 = arith.constant 0 : index
    %c0_494 = arith.constant 0 : index
    %478 = vector.load %arg2[%c0_491, %c59_492, %c0_493, %c0_494] : memref<1x81x9x4xf32, #tpu.memory_space<vmem>>, vector<1x1x9x4xf32>
    %479 = vector.shape_cast %478 : vector<1x1x9x4xf32> to vector<9x4xf32>
    %480 = arith.maximumf %477, %479 : vector<9x4xf32>
    %c0_495 = arith.constant 0 : index
    %c60_496 = arith.constant 60 : index
    %c0_497 = arith.constant 0 : index
    %c0_498 = arith.constant 0 : index
    %481 = vector.load %arg2[%c0_495, %c60_496, %c0_497, %c0_498] : memref<1x81x9x4xf32, #tpu.memory_space<vmem>>, vector<1x1x9x4xf32>
    %482 = vector.shape_cast %481 : vector<1x1x9x4xf32> to vector<9x4xf32>
    %483 = arith.maximumf %480, %482 : vector<9x4xf32>
    %c0_499 = arith.constant 0 : index
    %c67_500 = arith.constant 67 : index
    %c0_501 = arith.constant 0 : index
    %c0_502 = arith.constant 0 : index
    %484 = vector.load %arg2[%c0_499, %c67_500, %c0_501, %c0_502] : memref<1x81x9x4xf32, #tpu.memory_space<vmem>>, vector<1x1x9x4xf32>
    %485 = vector.shape_cast %484 : vector<1x1x9x4xf32> to vector<9x4xf32>
    %486 = arith.maximumf %483, %485 : vector<9x4xf32>
    %c0_503 = arith.constant 0 : index
    %c68 = arith.constant 68 : index
    %c0_504 = arith.constant 0 : index
    %c0_505 = arith.constant 0 : index
    %487 = vector.load %arg2[%c0_503, %c68, %c0_504, %c0_505] : memref<1x81x9x4xf32, #tpu.memory_space<vmem>>, vector<1x1x9x4xf32>
    %488 = vector.shape_cast %487 : vector<1x1x9x4xf32> to vector<9x4xf32>
    %489 = arith.maximumf %486, %488 : vector<9x4xf32>
    %c0_506 = arith.constant 0 : index
    %c69 = arith.constant 69 : index
    %c0_507 = arith.constant 0 : index
    %c0_508 = arith.constant 0 : index
    %490 = vector.load %arg2[%c0_506, %c69, %c0_507, %c0_508] : memref<1x81x9x4xf32, #tpu.memory_space<vmem>>, vector<1x1x9x4xf32>
    %491 = vector.shape_cast %490 : vector<1x1x9x4xf32> to vector<9x4xf32>
    %492 = arith.maximumf %489, %491 : vector<9x4xf32>
    %c0_509 = arith.constant 0 : index
    %c76_510 = arith.constant 76 : index
    %c0_511 = arith.constant 0 : index
    %c0_512 = arith.constant 0 : index
    %493 = vector.load %arg2[%c0_509, %c76_510, %c0_511, %c0_512] : memref<1x81x9x4xf32, #tpu.memory_space<vmem>>, vector<1x1x9x4xf32>
    %494 = vector.shape_cast %493 : vector<1x1x9x4xf32> to vector<9x4xf32>
    %495 = arith.maximumf %492, %494 : vector<9x4xf32>
    %c0_513 = arith.constant 0 : index
    %c77 = arith.constant 77 : index
    %c0_514 = arith.constant 0 : index
    %c0_515 = arith.constant 0 : index
    %496 = vector.load %arg2[%c0_513, %c77, %c0_514, %c0_515] : memref<1x81x9x4xf32, #tpu.memory_space<vmem>>, vector<1x1x9x4xf32>
    %497 = vector.shape_cast %496 : vector<1x1x9x4xf32> to vector<9x4xf32>
    %498 = arith.maximumf %495, %497 : vector<9x4xf32>
    %c0_516 = arith.constant 0 : index
    %c78 = arith.constant 78 : index
    %c0_517 = arith.constant 0 : index
    %c0_518 = arith.constant 0 : index
    %499 = vector.load %arg2[%c0_516, %c78, %c0_517, %c0_518] : memref<1x81x9x4xf32, #tpu.memory_space<vmem>>, vector<1x1x9x4xf32>
    %500 = vector.shape_cast %499 : vector<1x1x9x4xf32> to vector<9x4xf32>
    %501 = arith.maximumf %498, %500 : vector<9x4xf32>
    %502 = vector.extract_strided_slice %501 {offsets = [0, 0], sizes = [7, 4], strides = [1, 1]} : vector<9x4xf32> to vector<7x4xf32>
    %503 = vector.extract_strided_slice %501 {offsets = [1, 0], sizes = [7, 4], strides = [1, 1]} : vector<9x4xf32> to vector<7x4xf32>
    %504 = arith.maximumf %502, %503 : vector<7x4xf32>
    %505 = vector.extract_strided_slice %501 {offsets = [2, 0], sizes = [7, 4], strides = [1, 1]} : vector<9x4xf32> to vector<7x4xf32>
    %506 = arith.maximumf %504, %505 : vector<7x4xf32>
    %c0_519 = arith.constant 0 : index
    %c14_520 = arith.constant 14 : index
    %c0_521 = arith.constant 0 : index
    %c0_522 = arith.constant 0 : index
    %507 = vector.load %arg3[%c0_519, %c14_520, %c0_521, %c0_522] : memref<1x16x7x4xf32, #tpu.memory_space<vmem>>, vector<1x1x7x4xf32>
    %508 = vector.shape_cast %507 : vector<1x1x7x4xf32> to vector<7x4xf32>
    %509 = vector.shape_cast %506 : vector<7x4xf32> to vector<1x1x7x4xf32>
    tpu.vector_store %arg3[%c0_519, %c14_520, %c0_521, %c0_522], %509 {strides = array<i32>} : memref<1x16x7x4xf32, #tpu.memory_space<vmem>>, vector<1x1x7x4xf32>,
    %c0_523 = arith.constant 0 : index
    %c60_524 = arith.constant 60 : index
    %c0_525 = arith.constant 0 : index
    %c0_526 = arith.constant 0 : index
    %510 = vector.load %arg2[%c0_523, %c60_524, %c0_525, %c0_526] : memref<1x81x9x4xf32, #tpu.memory_space<vmem>>, vector<1x1x9x4xf32>
    %511 = vector.shape_cast %510 : vector<1x1x9x4xf32> to vector<9x4xf32>
    %c0_527 = arith.constant 0 : index
    %c61_528 = arith.constant 61 : index
    %c0_529 = arith.constant 0 : index
    %c0_530 = arith.constant 0 : index
    %512 = vector.load %arg2[%c0_527, %c61_528, %c0_529, %c0_530] : memref<1x81x9x4xf32, #tpu.memory_space<vmem>>, vector<1x1x9x4xf32>
    %513 = vector.shape_cast %512 : vector<1x1x9x4xf32> to vector<9x4xf32>
    %514 = arith.maximumf %511, %513 : vector<9x4xf32>
    %c0_531 = arith.constant 0 : index
    %c62_532 = arith.constant 62 : index
    %c0_533 = arith.constant 0 : index
    %c0_534 = arith.constant 0 : index
    %515 = vector.load %arg2[%c0_531, %c62_532, %c0_533, %c0_534] : memref<1x81x9x4xf32, #tpu.memory_space<vmem>>, vector<1x1x9x4xf32>
    %516 = vector.shape_cast %515 : vector<1x1x9x4xf32> to vector<9x4xf32>
    %517 = arith.maximumf %514, %516 : vector<9x4xf32>
    %c0_535 = arith.constant 0 : index
    %c69_536 = arith.constant 69 : index
    %c0_537 = arith.constant 0 : index
    %c0_538 = arith.constant 0 : index
    %518 = vector.load %arg2[%c0_535, %c69_536, %c0_537, %c0_538] : memref<1x81x9x4xf32, #tpu.memory_space<vmem>>, vector<1x1x9x4xf32>
    %519 = vector.shape_cast %518 : vector<1x1x9x4xf32> to vector<9x4xf32>
    %520 = arith.maximumf %517, %519 : vector<9x4xf32>
    %c0_539 = arith.constant 0 : index
    %c70 = arith.constant 70 : index
    %c0_540 = arith.constant 0 : index
    %c0_541 = arith.constant 0 : index
    %521 = vector.load %arg2[%c0_539, %c70, %c0_540, %c0_541] : memref<1x81x9x4xf32, #tpu.memory_space<vmem>>, vector<1x1x9x4xf32>
    %522 = vector.shape_cast %521 : vector<1x1x9x4xf32> to vector<9x4xf32>
    %523 = arith.maximumf %520, %522 : vector<9x4xf32>
    %c0_542 = arith.constant 0 : index
    %c71 = arith.constant 71 : index
    %c0_543 = arith.constant 0 : index
    %c0_544 = arith.constant 0 : index
    %524 = vector.load %arg2[%c0_542, %c71, %c0_543, %c0_544] : memref<1x81x9x4xf32, #tpu.memory_space<vmem>>, vector<1x1x9x4xf32>
    %525 = vector.shape_cast %524 : vector<1x1x9x4xf32> to vector<9x4xf32>
    %526 = arith.maximumf %523, %525 : vector<9x4xf32>
    %c0_545 = arith.constant 0 : index
    %c78_546 = arith.constant 78 : index
    %c0_547 = arith.constant 0 : index
    %c0_548 = arith.constant 0 : index
    %527 = vector.load %arg2[%c0_545, %c78_546, %c0_547, %c0_548] : memref<1x81x9x4xf32, #tpu.memory_space<vmem>>, vector<1x1x9x4xf32>
    %528 = vector.shape_cast %527 : vector<1x1x9x4xf32> to vector<9x4xf32>
    %529 = arith.maximumf %526, %528 : vector<9x4xf32>
    %c0_549 = arith.constant 0 : index
    %c79 = arith.constant 79 : index
    %c0_550 = arith.constant 0 : index
    %c0_551 = arith.constant 0 : index
    %530 = vector.load %arg2[%c0_549, %c79, %c0_550, %c0_551] : memref<1x81x9x4xf32, #tpu.memory_space<vmem>>, vector<1x1x9x4xf32>
    %531 = vector.shape_cast %530 : vector<1x1x9x4xf32> to vector<9x4xf32>
    %532 = arith.maximumf %529, %531 : vector<9x4xf32>
    %c0_552 = arith.constant 0 : index
    %c80 = arith.constant 80 : index
    %c0_553 = arith.constant 0 : index
    %c0_554 = arith.constant 0 : index
    %533 = vector.load %arg2[%c0_552, %c80, %c0_553, %c0_554] : memref<1x81x9x4xf32, #tpu.memory_space<vmem>>, vector<1x1x9x4xf32>
    %534 = vector.shape_cast %533 : vector<1x1x9x4xf32> to vector<9x4xf32>
    %535 = arith.maximumf %532, %534 : vector<9x4xf32>
    %536 = vector.extract_strided_slice %535 {offsets = [0, 0], sizes = [7, 4], strides = [1, 1]} : vector<9x4xf32> to vector<7x4xf32>
    %537 = vector.extract_strided_slice %535 {offsets = [1, 0], sizes = [7, 4], strides = [1, 1]} : vector<9x4xf32> to vector<7x4xf32>
    %538 = arith.maximumf %536, %537 : vector<7x4xf32>
    %539 = vector.extract_strided_slice %535 {offsets = [2, 0], sizes = [7, 4], strides = [1, 1]} : vector<9x4xf32> to vector<7x4xf32>
    %540 = arith.maximumf %538, %539 : vector<7x4xf32>
    %c0_555 = arith.constant 0 : index
    %c15_556 = arith.constant 15 : index
    %c0_557 = arith.constant 0 : index
    %c0_558 = arith.constant 0 : index
    %541 = vector.load %arg3[%c0_555, %c15_556, %c0_557, %c0_558] : memref<1x16x7x4xf32, #tpu.memory_space<vmem>>, vector<1x1x7x4xf32>
    %542 = vector.shape_cast %541 : vector<1x1x7x4xf32> to vector<7x4xf32>
    %543 = vector.shape_cast %540 : vector<7x4xf32> to vector<1x1x7x4xf32>
    tpu.vector_store %arg3[%c0_555, %c15_556, %c0_557, %c0_558], %543 {strides = array<i32>} : memref<1x16x7x4xf32, #tpu.memory_space<vmem>>, vector<1x1x7x4xf32>,
    return
  }
  func.func @transform_0(%arg0: i32, %arg1: i32) -> (i32, i32, i32, i32) {
    %c0_i32 = arith.constant 0 : i32
    %c0_i32_0 = arith.constant 0 : i32
    %c0_i32_1 = arith.constant 0 : i32
    return %arg0, %c0_i32, %c0_i32_0, %arg1 : i32, i32, i32, i32
  }
  func.func @transform_1(%arg0: i32, %arg1: i32) -> (i32, i32, i32, i32) {
    %c0_i32 = arith.constant 0 : i32
    %c0_i32_0 = arith.constant 0 : i32
    %c0_i32_1 = arith.constant 0 : i32
    return %arg0, %c0_i32, %c0_i32_0, %arg1 : i32, i32, i32, i32
  }
}

module attributes {stable_mosaic.version = 11 : i64} {
  func.func @_matmul_bias_relu_kernel(%arg0: i32, %arg1: memref<736x4xf32, #tpu.memory_space<vmem>>, %arg2: memref<4x192xbf16, #tpu.memory_space<vmem>>, %arg3: memref<1x192xf32, #tpu.memory_space<vmem>>, %arg4: memref<736x192xbf16, #tpu.memory_space<vmem>>) attributes {dimension_semantics = [#tpu.dimension_semantics<parallel>], iteration_bounds = array<i64: 2>, scalar_prefetch = 0 : i64, scratch_operands = 0 : i64, tpu.core_type = #tpu.core_type<tc>, window_params = [{transform_indices = @transform_0, window_bounds = array<i64: 736, 4>}, {pipeline_mode = #tpu.pipeline_mode<synchronous>, transform_indices = @transform_1, window_bounds = array<i64: 4, 192>}, {pipeline_mode = #tpu.pipeline_mode<synchronous>, transform_indices = @transform_2, window_bounds = array<i64: 1, 192>}, {transform_indices = @transform_3, window_bounds = array<i64: 736, 192>}]} {
    %c0 = arith.constant 0 : index
    %c0_0 = arith.constant 0 : index
    %0 = vector.load %arg1[%c0, %c0_0] : memref<736x4xf32, #tpu.memory_space<vmem>>, vector<736x4xf32>
    %1 = arith.truncf %0 : vector<736x4xf32> to vector<736x4xbf16>
    %c0_1 = arith.constant 0 : index
    %c0_2 = arith.constant 0 : index
    %2 = vector.load %arg2[%c0_1, %c0_2] : memref<4x192xbf16, #tpu.memory_space<vmem>>, vector<4x192xbf16>
    %cst = arith.constant dense<0.000000e+00> : vector<736x192xf32>
    %3 = tpu.matmul %1, %2, %cst {dimension_numbers = #tpu.dot_dimension_numbers<[1], [0], [0], [1], [0, 0, 1, 1], [], []>} : vector<736x4xbf16>, vector<4x192xbf16>, vector<736x192xf32> -> vector<736x192xf32>
    %c0_3 = arith.constant 0 : index
    %c0_4 = arith.constant 0 : index
    %4 = vector.load %arg3[%c0_3, %c0_4] : memref<1x192xf32, #tpu.memory_space<vmem>>, vector<1x192xf32>
    %5 = vector.broadcast %4 : vector<1x192xf32> to vector<736x192xf32>
    %6 = arith.addf %3, %5 : vector<736x192xf32>
    %cst_5 = arith.constant 0.000000e+00 : f32
    %7 = vector.broadcast %cst_5 : f32 to vector<736x192xf32>
    %8 = arith.maximumf %6, %7 : vector<736x192xf32>
    %9 = arith.truncf %8 : vector<736x192xf32> to vector<736x192xbf16>
    %c0_6 = arith.constant 0 : index
    %c0_7 = arith.constant 0 : index
    %10 = vector.load %arg4[%c0_6, %c0_7] : memref<736x192xbf16, #tpu.memory_space<vmem>>, vector<736x192xbf16>
    tpu.vector_store %arg4[%c0_6, %c0_7], %9 {strides = array<i32>} : memref<736x192xbf16, #tpu.memory_space<vmem>>, vector<736x192xbf16>,
    return
  }
  func.func @transform_0(%arg0: i32) -> (i32, i32) {
    %c0_i32 = arith.constant 0 : i32
    %c0_i32_0 = arith.constant 0 : i32
    return %arg0, %c0_i32 : i32, i32
  }
  func.func @transform_1(%arg0: i32) -> (i32, i32) {
    %c0_i32 = arith.constant 0 : i32
    %c0_i32_0 = arith.constant 0 : i32
    %c0_i32_1 = arith.constant 0 : i32
    return %c0_i32, %c0_i32_0 : i32, i32
  }
  func.func @transform_2(%arg0: i32) -> (i32, i32) {
    %c0_i32 = arith.constant 0 : i32
    %c0_i32_0 = arith.constant 0 : i32
    %c0_i32_1 = arith.constant 0 : i32
    return %c0_i32, %c0_i32_0 : i32, i32
  }
  func.func @transform_3(%arg0: i32) -> (i32, i32) {
    %c0_i32 = arith.constant 0 : i32
    %c0_i32_0 = arith.constant 0 : i32
    return %arg0, %c0_i32 : i32, i32
  }
}

module attributes {stable_mosaic.version = 11 : i64} {
  func.func @_sep_conv_kernel(%arg0: i32, %arg1: i32, %arg2: memref<15x88x96xbf16, #tpu.memory_space<vmem>>, %arg3: memref<7x96x96xbf16, #tpu.memory_space<vmem>>, %arg4: memref<1x96xf32, #tpu.memory_space<vmem>>, %arg5: memref<1x88x96xbf16, #tpu.memory_space<vmem>>) attributes {dimension_semantics = [#tpu.dimension_semantics<parallel>, #tpu.dimension_semantics<arbitrary>], iteration_bounds = array<i64: 2, 9>, scalar_prefetch = 0 : i64, scratch_operands = 0 : i64, tpu.core_type = #tpu.core_type<tc>, window_params = [{transform_indices = @transform_0, window_bounds = array<i64: 15, 88, 96>}, {pipeline_mode = #tpu.pipeline_mode<synchronous>, transform_indices = @transform_1, window_bounds = array<i64: 7, 96, 96>}, {pipeline_mode = #tpu.pipeline_mode<synchronous>, transform_indices = @transform_2, window_bounds = array<i64: 1, 96>}, {transform_indices = @transform_3, window_bounds = array<i64: 1, 88, 96>}]} {
    %0 = arith.index_cast %arg1 : i32 to index
    %c0 = arith.constant 0 : index
    %c0_0 = arith.constant 0 : index
    %1 = vector.load %arg2[%0, %c0, %c0_0] : memref<15x88x96xbf16, #tpu.memory_space<vmem>>, vector<1x88x96xbf16>
    %2 = vector.shape_cast %1 : vector<1x88x96xbf16> to vector<88x96xbf16>
    %c0_1 = arith.constant 0 : index
    %c0_2 = arith.constant 0 : index
    %c0_3 = arith.constant 0 : index
    %3 = vector.load %arg3[%c0_1, %c0_2, %c0_3] : memref<7x96x96xbf16, #tpu.memory_space<vmem>>, vector<1x96x96xbf16>
    %4 = vector.shape_cast %3 : vector<1x96x96xbf16> to vector<96x96xbf16>
    %cst = arith.constant dense<0.000000e+00> : vector<88x96xf32>
    %5 = tpu.matmul %2, %4, %cst {dimension_numbers = #tpu.dot_dimension_numbers<[1], [0], [0], [1], [0, 0, 1, 1], [], []>} : vector<88x96xbf16>, vector<96x96xbf16>, vector<88x96xf32> -> vector<88x96xf32>
    %c1_i32 = arith.constant 1 : i32
    %6 = arith.addi %arg1, %c1_i32 : i32
    %7 = arith.index_cast %6 : i32 to index
    %c0_4 = arith.constant 0 : index
    %c0_5 = arith.constant 0 : index
    %8 = vector.load %arg2[%7, %c0_4, %c0_5] : memref<15x88x96xbf16, #tpu.memory_space<vmem>>, vector<1x88x96xbf16>
    %9 = vector.shape_cast %8 : vector<1x88x96xbf16> to vector<88x96xbf16>
    %c1 = arith.constant 1 : index
    %c0_6 = arith.constant 0 : index
    %c0_7 = arith.constant 0 : index
    %10 = vector.load %arg3[%c1, %c0_6, %c0_7] : memref<7x96x96xbf16, #tpu.memory_space<vmem>>, vector<1x96x96xbf16>
    %11 = vector.shape_cast %10 : vector<1x96x96xbf16> to vector<96x96xbf16>
    %cst_8 = arith.constant dense<0.000000e+00> : vector<88x96xf32>
    %12 = tpu.matmul %9, %11, %cst_8 {dimension_numbers = #tpu.dot_dimension_numbers<[1], [0], [0], [1], [0, 0, 1, 1], [], []>} : vector<88x96xbf16>, vector<96x96xbf16>, vector<88x96xf32> -> vector<88x96xf32>
    %13 = arith.addf %5, %12 : vector<88x96xf32>
    %c2_i32 = arith.constant 2 : i32
    %14 = arith.addi %arg1, %c2_i32 : i32
    %15 = arith.index_cast %14 : i32 to index
    %c0_9 = arith.constant 0 : index
    %c0_10 = arith.constant 0 : index
    %16 = vector.load %arg2[%15, %c0_9, %c0_10] : memref<15x88x96xbf16, #tpu.memory_space<vmem>>, vector<1x88x96xbf16>
    %17 = vector.shape_cast %16 : vector<1x88x96xbf16> to vector<88x96xbf16>
    %c2 = arith.constant 2 : index
    %c0_11 = arith.constant 0 : index
    %c0_12 = arith.constant 0 : index
    %18 = vector.load %arg3[%c2, %c0_11, %c0_12] : memref<7x96x96xbf16, #tpu.memory_space<vmem>>, vector<1x96x96xbf16>
    %19 = vector.shape_cast %18 : vector<1x96x96xbf16> to vector<96x96xbf16>
    %cst_13 = arith.constant dense<0.000000e+00> : vector<88x96xf32>
    %20 = tpu.matmul %17, %19, %cst_13 {dimension_numbers = #tpu.dot_dimension_numbers<[1], [0], [0], [1], [0, 0, 1, 1], [], []>} : vector<88x96xbf16>, vector<96x96xbf16>, vector<88x96xf32> -> vector<88x96xf32>
    %21 = arith.addf %13, %20 : vector<88x96xf32>
    %c3_i32 = arith.constant 3 : i32
    %22 = arith.addi %arg1, %c3_i32 : i32
    %23 = arith.index_cast %22 : i32 to index
    %c0_14 = arith.constant 0 : index
    %c0_15 = arith.constant 0 : index
    %24 = vector.load %arg2[%23, %c0_14, %c0_15] : memref<15x88x96xbf16, #tpu.memory_space<vmem>>, vector<1x88x96xbf16>
    %25 = vector.shape_cast %24 : vector<1x88x96xbf16> to vector<88x96xbf16>
    %c3 = arith.constant 3 : index
    %c0_16 = arith.constant 0 : index
    %c0_17 = arith.constant 0 : index
    %26 = vector.load %arg3[%c3, %c0_16, %c0_17] : memref<7x96x96xbf16, #tpu.memory_space<vmem>>, vector<1x96x96xbf16>
    %27 = vector.shape_cast %26 : vector<1x96x96xbf16> to vector<96x96xbf16>
    %cst_18 = arith.constant dense<0.000000e+00> : vector<88x96xf32>
    %28 = tpu.matmul %25, %27, %cst_18 {dimension_numbers = #tpu.dot_dimension_numbers<[1], [0], [0], [1], [0, 0, 1, 1], [], []>} : vector<88x96xbf16>, vector<96x96xbf16>, vector<88x96xf32> -> vector<88x96xf32>
    %29 = arith.addf %21, %28 : vector<88x96xf32>
    %c4_i32 = arith.constant 4 : i32
    %30 = arith.addi %arg1, %c4_i32 : i32
    %31 = arith.index_cast %30 : i32 to index
    %c0_19 = arith.constant 0 : index
    %c0_20 = arith.constant 0 : index
    %32 = vector.load %arg2[%31, %c0_19, %c0_20] : memref<15x88x96xbf16, #tpu.memory_space<vmem>>, vector<1x88x96xbf16>
    %33 = vector.shape_cast %32 : vector<1x88x96xbf16> to vector<88x96xbf16>
    %c4 = arith.constant 4 : index
    %c0_21 = arith.constant 0 : index
    %c0_22 = arith.constant 0 : index
    %34 = vector.load %arg3[%c4, %c0_21, %c0_22] : memref<7x96x96xbf16, #tpu.memory_space<vmem>>, vector<1x96x96xbf16>
    %35 = vector.shape_cast %34 : vector<1x96x96xbf16> to vector<96x96xbf16>
    %cst_23 = arith.constant dense<0.000000e+00> : vector<88x96xf32>
    %36 = tpu.matmul %33, %35, %cst_23 {dimension_numbers = #tpu.dot_dimension_numbers<[1], [0], [0], [1], [0, 0, 1, 1], [], []>} : vector<88x96xbf16>, vector<96x96xbf16>, vector<88x96xf32> -> vector<88x96xf32>
    %37 = arith.addf %29, %36 : vector<88x96xf32>
    %c5_i32 = arith.constant 5 : i32
    %38 = arith.addi %arg1, %c5_i32 : i32
    %39 = arith.index_cast %38 : i32 to index
    %c0_24 = arith.constant 0 : index
    %c0_25 = arith.constant 0 : index
    %40 = vector.load %arg2[%39, %c0_24, %c0_25] : memref<15x88x96xbf16, #tpu.memory_space<vmem>>, vector<1x88x96xbf16>
    %41 = vector.shape_cast %40 : vector<1x88x96xbf16> to vector<88x96xbf16>
    %c5 = arith.constant 5 : index
    %c0_26 = arith.constant 0 : index
    %c0_27 = arith.constant 0 : index
    %42 = vector.load %arg3[%c5, %c0_26, %c0_27] : memref<7x96x96xbf16, #tpu.memory_space<vmem>>, vector<1x96x96xbf16>
    %43 = vector.shape_cast %42 : vector<1x96x96xbf16> to vector<96x96xbf16>
    %cst_28 = arith.constant dense<0.000000e+00> : vector<88x96xf32>
    %44 = tpu.matmul %41, %43, %cst_28 {dimension_numbers = #tpu.dot_dimension_numbers<[1], [0], [0], [1], [0, 0, 1, 1], [], []>} : vector<88x96xbf16>, vector<96x96xbf16>, vector<88x96xf32> -> vector<88x96xf32>
    %45 = arith.addf %37, %44 : vector<88x96xf32>
    %c6_i32 = arith.constant 6 : i32
    %46 = arith.addi %arg1, %c6_i32 : i32
    %47 = arith.index_cast %46 : i32 to index
    %c0_29 = arith.constant 0 : index
    %c0_30 = arith.constant 0 : index
    %48 = vector.load %arg2[%47, %c0_29, %c0_30] : memref<15x88x96xbf16, #tpu.memory_space<vmem>>, vector<1x88x96xbf16>
    %49 = vector.shape_cast %48 : vector<1x88x96xbf16> to vector<88x96xbf16>
    %c6 = arith.constant 6 : index
    %c0_31 = arith.constant 0 : index
    %c0_32 = arith.constant 0 : index
    %50 = vector.load %arg3[%c6, %c0_31, %c0_32] : memref<7x96x96xbf16, #tpu.memory_space<vmem>>, vector<1x96x96xbf16>
    %51 = vector.shape_cast %50 : vector<1x96x96xbf16> to vector<96x96xbf16>
    %cst_33 = arith.constant dense<0.000000e+00> : vector<88x96xf32>
    %52 = tpu.matmul %49, %51, %cst_33 {dimension_numbers = #tpu.dot_dimension_numbers<[1], [0], [0], [1], [0, 0, 1, 1], [], []>} : vector<88x96xbf16>, vector<96x96xbf16>, vector<88x96xf32> -> vector<88x96xf32>
    %53 = arith.addf %45, %52 : vector<88x96xf32>
    %c0_34 = arith.constant 0 : index
    %c0_35 = arith.constant 0 : index
    %54 = vector.load %arg4[%c0_34, %c0_35] : memref<1x96xf32, #tpu.memory_space<vmem>>, vector<1x96xf32>
    %55 = vector.broadcast %54 : vector<1x96xf32> to vector<88x96xf32>
    %56 = arith.addf %53, %55 : vector<88x96xf32>
    %cst_36 = arith.constant 0.000000e+00 : f32
    %57 = vector.broadcast %cst_36 : f32 to vector<88x96xf32>
    %58 = arith.maximumf %56, %57 : vector<88x96xf32>
    %59 = arith.truncf %58 : vector<88x96xf32> to vector<88x96xbf16>
    %c0_37 = arith.constant 0 : index
    %c0_38 = arith.constant 0 : index
    %c0_39 = arith.constant 0 : index
    %60 = vector.load %arg5[%c0_37, %c0_38, %c0_39] : memref<1x88x96xbf16, #tpu.memory_space<vmem>>, vector<1x88x96xbf16>
    %61 = vector.shape_cast %60 : vector<1x88x96xbf16> to vector<88x96xbf16>
    %62 = vector.shape_cast %59 : vector<88x96xbf16> to vector<1x88x96xbf16>
    tpu.vector_store %arg5[%c0_37, %c0_38, %c0_39], %62 {strides = array<i32>} : memref<1x88x96xbf16, #tpu.memory_space<vmem>>, vector<1x88x96xbf16>,
    return
  }
  func.func @transform_0(%arg0: i32, %arg1: i32) -> (i32, i32, i32) {
    %c0_i32 = arith.constant 0 : i32
    %c0_i32_0 = arith.constant 0 : i32
    %c0_i32_1 = arith.constant 0 : i32
    return %c0_i32, %arg0, %c0_i32_0 : i32, i32, i32
  }
  func.func @transform_1(%arg0: i32, %arg1: i32) -> (i32, i32, i32) {
    %c0_i32 = arith.constant 0 : i32
    %c0_i32_0 = arith.constant 0 : i32
    %c0_i32_1 = arith.constant 0 : i32
    %c0_i32_2 = arith.constant 0 : i32
    return %c0_i32, %c0_i32_0, %c0_i32_1 : i32, i32, i32
  }
  func.func @transform_2(%arg0: i32, %arg1: i32) -> (i32, i32) {
    %c0_i32 = arith.constant 0 : i32
    %c0_i32_0 = arith.constant 0 : i32
    %c0_i32_1 = arith.constant 0 : i32
    return %c0_i32, %c0_i32_0 : i32, i32
  }
  func.func @transform_3(%arg0: i32, %arg1: i32) -> (i32, i32, i32) {
    %c0_i32 = arith.constant 0 : i32
    %c0_i32_0 = arith.constant 0 : i32
    return %arg1, %arg0, %c0_i32 : i32, i32, i32
  }
}

module attributes {stable_mosaic.version = 11 : i64} {
  func.func @_matmul_bias_relu_kernel(%arg0: i32, %arg1: memref<64x2592xbf16, #tpu.memory_space<vmem>>, %arg2: memref<2592x96xbf16, #tpu.memory_space<vmem>>, %arg3: memref<1x96xf32, #tpu.memory_space<vmem>>, %arg4: memref<64x96xf32, #tpu.memory_space<vmem>>) attributes {dimension_semantics = [#tpu.dimension_semantics<parallel>], iteration_bounds = array<i64: 2>, scalar_prefetch = 0 : i64, scratch_operands = 0 : i64, tpu.core_type = #tpu.core_type<tc>, window_params = [{transform_indices = @transform_0, window_bounds = array<i64: 64, 2592>}, {pipeline_mode = #tpu.pipeline_mode<synchronous>, transform_indices = @transform_1, window_bounds = array<i64: 2592, 96>}, {pipeline_mode = #tpu.pipeline_mode<synchronous>, transform_indices = @transform_2, window_bounds = array<i64: 1, 96>}, {transform_indices = @transform_3, window_bounds = array<i64: 64, 96>}]} {
    %c0 = arith.constant 0 : index
    %c0_0 = arith.constant 0 : index
    %0 = vector.load %arg1[%c0, %c0_0] : memref<64x2592xbf16, #tpu.memory_space<vmem>>, vector<64x2592xbf16>
    %c0_1 = arith.constant 0 : index
    %c0_2 = arith.constant 0 : index
    %1 = vector.load %arg2[%c0_1, %c0_2] : memref<2592x96xbf16, #tpu.memory_space<vmem>>, vector<2592x96xbf16>
    %cst = arith.constant dense<0.000000e+00> : vector<64x96xf32>
    %2 = tpu.matmul %0, %1, %cst {dimension_numbers = #tpu.dot_dimension_numbers<[1], [0], [0], [1], [0, 0, 1, 1], [], []>} : vector<64x2592xbf16>, vector<2592x96xbf16>, vector<64x96xf32> -> vector<64x96xf32>
    %c0_3 = arith.constant 0 : index
    %c0_4 = arith.constant 0 : index
    %3 = vector.load %arg3[%c0_3, %c0_4] : memref<1x96xf32, #tpu.memory_space<vmem>>, vector<1x96xf32>
    %4 = vector.broadcast %3 : vector<1x96xf32> to vector<64x96xf32>
    %5 = arith.addf %2, %4 : vector<64x96xf32>
    %cst_5 = arith.constant 0.000000e+00 : f32
    %6 = vector.broadcast %cst_5 : f32 to vector<64x96xf32>
    %7 = arith.maximumf %5, %6 : vector<64x96xf32>
    %c0_6 = arith.constant 0 : index
    %c0_7 = arith.constant 0 : index
    %8 = vector.load %arg4[%c0_6, %c0_7] : memref<64x96xf32, #tpu.memory_space<vmem>>, vector<64x96xf32>
    tpu.vector_store %arg4[%c0_6, %c0_7], %7 {strides = array<i32>} : memref<64x96xf32, #tpu.memory_space<vmem>>, vector<64x96xf32>,
    return
  }
  func.func @transform_0(%arg0: i32) -> (i32, i32) {
    %c0_i32 = arith.constant 0 : i32
    %c0_i32_0 = arith.constant 0 : i32
    return %arg0, %c0_i32 : i32, i32
  }
  func.func @transform_1(%arg0: i32) -> (i32, i32) {
    %c0_i32 = arith.constant 0 : i32
    %c0_i32_0 = arith.constant 0 : i32
    %c0_i32_1 = arith.constant 0 : i32
    return %c0_i32, %c0_i32_0 : i32, i32
  }
  func.func @transform_2(%arg0: i32) -> (i32, i32) {
    %c0_i32 = arith.constant 0 : i32
    %c0_i32_0 = arith.constant 0 : i32
    %c0_i32_1 = arith.constant 0 : i32
    return %c0_i32, %c0_i32_0 : i32, i32
  }
  func.func @transform_3(%arg0: i32) -> (i32, i32) {
    %c0_i32 = arith.constant 0 : i32
    %c0_i32_0 = arith.constant 0 : i32
    return %arg0, %c0_i32 : i32, i32
  }
}

module attributes {stable_mosaic.version = 11 : i64} {
  func.func @_matmul_bias_relu_kernel(%arg0: i32, %arg1: memref<64x2592xbf16, #tpu.memory_space<vmem>>, %arg2: memref<2592x160xbf16, #tpu.memory_space<vmem>>, %arg3: memref<1x160xf32, #tpu.memory_space<vmem>>, %arg4: memref<64x160xf32, #tpu.memory_space<vmem>>) attributes {dimension_semantics = [#tpu.dimension_semantics<parallel>], iteration_bounds = array<i64: 2>, scalar_prefetch = 0 : i64, scratch_operands = 0 : i64, tpu.core_type = #tpu.core_type<tc>, window_params = [{transform_indices = @transform_0, window_bounds = array<i64: 64, 2592>}, {pipeline_mode = #tpu.pipeline_mode<synchronous>, transform_indices = @transform_1, window_bounds = array<i64: 2592, 160>}, {pipeline_mode = #tpu.pipeline_mode<synchronous>, transform_indices = @transform_2, window_bounds = array<i64: 1, 160>}, {transform_indices = @transform_3, window_bounds = array<i64: 64, 160>}]} {
    %c0 = arith.constant 0 : index
    %c0_0 = arith.constant 0 : index
    %0 = vector.load %arg1[%c0, %c0_0] : memref<64x2592xbf16, #tpu.memory_space<vmem>>, vector<64x2592xbf16>
    %c0_1 = arith.constant 0 : index
    %c0_2 = arith.constant 0 : index
    %1 = vector.load %arg2[%c0_1, %c0_2] : memref<2592x160xbf16, #tpu.memory_space<vmem>>, vector<2592x160xbf16>
    %cst = arith.constant dense<0.000000e+00> : vector<64x160xf32>
    %2 = tpu.matmul %0, %1, %cst {dimension_numbers = #tpu.dot_dimension_numbers<[1], [0], [0], [1], [0, 0, 1, 1], [], []>} : vector<64x2592xbf16>, vector<2592x160xbf16>, vector<64x160xf32> -> vector<64x160xf32>
    %c0_3 = arith.constant 0 : index
    %c0_4 = arith.constant 0 : index
    %3 = vector.load %arg3[%c0_3, %c0_4] : memref<1x160xf32, #tpu.memory_space<vmem>>, vector<1x160xf32>
    %4 = vector.broadcast %3 : vector<1x160xf32> to vector<64x160xf32>
    %5 = arith.addf %2, %4 : vector<64x160xf32>
    %cst_5 = arith.constant 0.000000e+00 : f32
    %6 = vector.broadcast %cst_5 : f32 to vector<64x160xf32>
    %7 = arith.maximumf %5, %6 : vector<64x160xf32>
    %c0_6 = arith.constant 0 : index
    %c0_7 = arith.constant 0 : index
    %8 = vector.load %arg4[%c0_6, %c0_7] : memref<64x160xf32, #tpu.memory_space<vmem>>, vector<64x160xf32>
    tpu.vector_store %arg4[%c0_6, %c0_7], %7 {strides = array<i32>} : memref<64x160xf32, #tpu.memory_space<vmem>>, vector<64x160xf32>,
    return
  }
  func.func @transform_0(%arg0: i32) -> (i32, i32) {
    %c0_i32 = arith.constant 0 : i32
    %c0_i32_0 = arith.constant 0 : i32
    return %arg0, %c0_i32 : i32, i32
  }
  func.func @transform_1(%arg0: i32) -> (i32, i32) {
    %c0_i32 = arith.constant 0 : i32
    %c0_i32_0 = arith.constant 0 : i32
    %c0_i32_1 = arith.constant 0 : i32
    return %c0_i32, %c0_i32_0 : i32, i32
  }
  func.func @transform_2(%arg0: i32) -> (i32, i32) {
    %c0_i32 = arith.constant 0 : i32
    %c0_i32_0 = arith.constant 0 : i32
    %c0_i32_1 = arith.constant 0 : i32
    return %c0_i32, %c0_i32_0 : i32, i32
  }
  func.func @transform_3(%arg0: i32) -> (i32, i32) {
    %c0_i32 = arith.constant 0 : i32
    %c0_i32_0 = arith.constant 0 : i32
    return %arg0, %c0_i32 : i32, i32
  }
}

</mosaic_0001>

<bundles_post_ra>
// kernel: inception_d_forward.13
= control target key start
LH: loop header
LB: loop body
LE: loop exit
PB: predicated region body
PF: predicated region fallthrough
CT: control target
= control target key end

     0   :  { %s1419_s6 = smov 0   ;;  %s1421_s7 = smov 0   ;;  %s1854_s0 = inlined_call_operand.vmem [shape: f32[2,81,9,4], index: 0, kind: input, shape index: {}]   ;;  %s1855_s1 = inlined_call_operand.vmem [shape: f32[2,16,7,4], index: 1, kind: output, shape index: {}]  }
   0x1   :  { %s1423_s8 = smov 0  }
   0x2 LB: > { %s23_s9 = sadd.s32 1, %s1403_s7  ;;  %p1052_p0 = scmp.ge.s32.totalorder %s1407_s8, 1  ;;  %s1407_s8 = sphi %s1423_s8, %s11_s8   ;;  %s1403_s7 = sphi %s1421_s7, %s1857_s7   ;;  %s1399_s6 = sphi %s1419_s6, %s1856_s6  }
   0x3   : > { %p25_p1 = scmp.ge.s32.totalorder %s23_s9, 2  ;;  %p106_p2 = scmp.lt.s32.totalorder %s1407_s8, 3 }
   0x5   : > { %s1859_s9 = smov (%p25_p1, %s23_s9), 0  ;;  %p107_p3 = pnand %p1052_p0, %p106_p2 }
   0x6   : > { %p132_p4 = scmp.lt.s32.totalorder (!%p107_p3), %s1399_s6, 1  ;;  %vm195_vm0 = vcmask (!%p107_p3), 1045504   ;;  %vm201_vm1 = vcmask (!%p107_p3), 30720  }
   0x7   : > { %110 = sbr.rel (%p107_p3) target bundleno = 123 (0x7b), region = 24 }
   0xe   : > { %s1861_s6 = smov (!%p132_p4, %s1399_s6), 1 }
   0xf   : > { %s1360_s10 = smul.u32 1296, %s1861_s6  ;;  %s1359_s14 = sshll.u32 %s1861_s6, 7 }
  0x10   : > { %s1514_s17 = scalar_lea.vmem %s1855_s1, %s1359_s14 }
  0x11   : > { %s1443_s13 = scalar_lea.vmem %s1854_s0, %s1360_s10 }
  0x12   : > { %v148_v0 = vld [vmem:[%s1443_s13] sm:$0xff]  ;;  %v149_v1 = vld [vmem:[%s1443_s13 + $0x8] sm:$0x1]  ;;  %v1056_v2 = vld [vmem:[%s1443_s13 + $0x10] sm:$0xff] }
  0x13   : > { %v1057_v3 = vld [vmem:[%s1443_s13 + $0x18] sm:$0x1]  ;;  %v153_v4 = vmax.f32 %v148_v0, %v1056_v2  ;;  %v1059_v5 = vld [vmem:[%s1443_s13 + $0x28] sm:$0x1]  ;;  %v1058_v7 = vld [vmem:[%s1443_s13 + $0x20] sm:$0xff] }
  0x14   : > { %v154_v6 = vmax.f32 %v149_v1, %v1057_v3  ;;  %v1060_v8 = vld [vmem:[%s1443_s13 + $0x90] sm:$0xff]  ;;  %v1061_v10 = vld [vmem:[%s1443_s13 + $0x98] sm:$0x1]  ;;  %v1062_v12 = vld [vmem:[%s1443_s13 + $0xa0] sm:$0xff] }
  0x15   : > { %v158_v9 = vmax.f32 %v153_v4, %v1058_v7  ;;  %v1063_v14 = vld [vmem:[%s1443_s13 + $0xa8] sm:$0x1]  ;;  %v1065_v15 = vld [vmem:[%s1443_s13 + $0xb8] sm:$0x1]  ;;  %v1064_v17 = vld [vmem:[%s1443_s13 + $0xb0] sm:$0xff] }
  0x16   : > { %v159_v11 = vmax.f32 %v154_v6, %v1059_v5  ;;  %v1073_v18 = vld [vmem:[%s1443_s13 + $0x28] sm:$0x1]  ;;  %v1074_v19 = vld [vmem:[%s1443_s13 + $0x30] sm:$0xff]  ;;  %v1075_v20 = vld [vmem:[%s1443_s13 + $0x38] sm:$0x1] }
  0x17   : > { %v163_v13 = vmax.f32 %v158_v9, %v1060_v8  ;;  %v1066_v22 = vld [vmem:[%s1443_s13 + $0x120] sm:$0xff]  ;;  %v1068_v23 = vld [vmem:[%s1443_s13 + $0x130] sm:$0xff]  ;;  %v208_v24 = vmax.f32 %v1058_v7, %v1074_v19  ;;  %v209_v25 = vmax.f32 %v1073_v18, %v1075_v20  ;;  %v1077_v26 = vld [vmem:[%s1443_s13 + $0x48] sm:$0x1] }
  0x18   : > { %v164_v16 = vmax.f32 %v159_v11, %v1061_v10  ;;  %v1070_v28 = vld [vmem:[%s1443_s13 + $0x140] sm:$0xff]  ;;  %v1079_v30 = vld [vmem:[%s1443_s13 + $0xb8] sm:$0x1]  ;;  %v1067_v32 = vld [vmem:[%s1443_s13 + $0x128] sm:$0x1]  ;;  %v363_v40 = vmax.f32 %v1066_v22, %v1068_v23 }
  0x19   : > { %v168_v21 = vmax.f32 %v163_v13, %v1062_v12  ;;  %v1076_v29 = vld [vmem:[%s1443_s13 + $0x40] sm:$0xff]  ;;  %v214_v34 = vmax.f32 %v209_v25, %v1077_v26  ;;  %v1468_v35 = vld [vmem:[%s1443_s13 + $0x150] sm:$0xff]  ;;  %v1069_v37 = vld [vmem:[%s1443_s13 + $0x138] sm:$0x1] }
  0x1a   : > { %v169_v27 = vmax.f32 %v164_v16, %v1063_v14  ;;  %v213_v33 = vmax.f32 %v208_v24, %v1076_v29  ;;  %v1080_v38 = vld [vmem:[%s1443_s13 + $0xc0] sm:$0xff]  ;;  %v1081_v39 = vld [vmem:[%s1443_s13 + $0xc8] sm:$0x1]  ;;  %v1093_v46 = vld [vmem:[%s1443_s13 + $0x50] sm:$0xff]  ;;  %v415_v48 = vmax.f32 %v1070_v28, %v1468_v35  ;;  %v1490_v2 = vmax.f32 %v363_v40, %v1070_v28 }
  0x1b   : > { %v173_v31 = vmax.f32 %v168_v21, %v1064_v17  ;;  %v1071_v42 = vld [vmem:[%s1443_s13 + $0x148] sm:$0x1]  ;;  %v218_v44 = vmax.f32 %v214_v34, %v1079_v30  ;;  %v1094_v47 = vld [vmem:[%s1443_s13 + $0x58] sm:$0x1]  ;;  %v1082_v50 = vld [vmem:[%s1443_s13 + $0xd0] sm:$0xff]  ;;  %v260_v52 = vmax.f32 %v1076_v29, %v1093_v46 }
  0x1c   : > { %v174_v36 = vmax.f32 %v169_v27, %v1065_v15  ;;  %v217_v43 = vmax.f32 %v213_v33, %v1064_v17  ;;  %v1092_v45 = vld [vmem:[%s1443_s13 + $0x48] sm:$0x1]  ;;  %v1083_v51 = vld [vmem:[%s1443_s13 + $0xd8] sm:$0x1]  ;;  %v1482_v58 = vld [vmem:[%s1443_s13 + $0x160] sm:$0xff] }
  0x1d   : > { %v178_v41 = vmax.f32 %v173_v31, %v1066_v22  ;;  %v261_v53 = vmax.f32 %v1092_v45, %v1094_v47  ;;  %v1096_v54 = vld [vmem:[%s1443_s13 + $0x68] sm:$0x1]  ;;  %v223_v57 = vmax.f32 %v218_v44, %v1081_v39  ;;  %v1095_v59 = vld [vmem:[%s1443_s13 + $0x60] sm:$0xff]  ;;  %v1098_v60 = vld [vmem:[%s1443_s13 + $0xd8] sm:$0x1]  ;;  %v1496_v9 = vmax.f32 %v415_v48, %v1482_v58 }
  0x1e   : > { %v179_v49 = vmax.f32 %v174_v36, %v1067_v32  ;;  %v222_v56 = vmax.f32 %v217_v43, %v1080_v38  ;;  %v1085_v62 = vld [vmem:[%s1443_s13 + $0x148] sm:$0x1]  ;;  %v265_v63 = vmax.f32 %v260_v52, %v1095_v59  ;;  %v1488_v1 = vld [vmem:[%s1443_s13 + $0x170] sm:$0xff]  ;;  %v1087_v6 = vld [vmem:[%s1443_s13 + $0x158] sm:$0x1] }
  0x1f   : > { %v183_v55 = vmax.f32 %v178_v41, %v1068_v23  ;;  %v266_v0 = vmax.f32 %v261_v53, %v1096_v54  ;;  %v228_v5 = vmax.f32 %v223_v57, %v1083_v51  ;;  %v1099_v7 = vld [vmem:[%s1443_s13 + $0xe0] sm:$0xff]  ;;  %v1100_v8 = vld [vmem:[%s1443_s13 + $0xe8] sm:$0x1]  ;;  %v1112_v14 = vld [vmem:[%s1443_s13 + $0x70] sm:$0xff]  ;;  %v465_v16 = vmax.f32 %v1482_v58, %v1488_v1 }
  0x20   : > { %v184_v61 = vmax.f32 %v179_v49, %v1069_v37  ;;  %v227_v4 = vmax.f32 %v222_v56, %v1082_v50  ;;  %v269_v11 = vmax.f32 %v265_v63, %v1082_v50  ;;  %v1111_v13 = vld [vmem:[%s1443_s13 + $0x68] sm:$0x1]  ;;  %v1113_v15 = vld [vmem:[%s1443_s13 + $0x78] sm:$0x1]  ;;  %v1114_v22 = vld [vmem:[%s1443_s13 + $0x80] sm:$0xff]  ;;  %v312_v27 = vmax.f32 %v1095_v59, %v1112_v14 }
  0x21   : > { %v188_v3 = vmax.f32 %v183_v55, %v1070_v28  ;;  %v270_v12 = vmax.f32 %v266_v0, %v1098_v60  ;;  %v232_v20 = vmax.f32 %v228_v5, %v1085_v62  ;;  %v1102_v21 = vld [vmem:[%s1443_s13 + $0xf8] sm:$0x1]  ;;  %v1089_v24 = vld [vmem:[%s1443_s13 + $0x168] sm:$0x1]  ;;  %v1101_v33 = vld [vmem:[%s1443_s13 + $0xf0] sm:$0xff]  ;;  %v313_v34 = vmax.f32 %v1111_v13, %v1113_v15 }
  0x22   : > { %v189_v10 = vmax.f32 %v184_v61, %v1071_v42  ;;  %v231_v19 = vmax.f32 %v227_v4, %v1070_v28  ;;  %v274_v25 = vmax.f32 %v269_v11, %v1099_v7  ;;  %v1115_v29 = vld [vmem:[%s1443_s13 + $0x88] sm:$0x1]  ;;  %v1106_v39 = vld [vmem:[%s1443_s13 + $0x178] sm:$0x1]  ;;  %v1118_v41 = vld [vmem:[%s1443_s13 + $0x100] sm:$0xff] }
  0x23   : > { %v191_v17 = vrot.slane %v188_v3, 1  ;;  %v196_v18 = vrot.slane %v188_v3, 2  ;;  %v275_v26 = vmax.f32 %v270_v12, %v1100_v8  ;;  %v237_v32 = vmax.f32 %v232_v20, %v1087_v6  ;;  %v1104_v28 = vld [vmem:[%s1443_s13 + $0x168] sm:$0x1]  ;;  %v1117_v40 = vld [vmem:[%s1443_s13 + $0xf8] sm:$0x1] }
  0x24   : > { %v197_v23 = vrot.slane %v189_v10, 2  ;;  %v236_v31 = vmax.f32 %v231_v19, %v1468_v35  ;;  %v279_v37 = vmax.f32 %v274_v25, %v1101_v33  ;;  %v317_v35 = vmax.f32 %v312_v27, %v1114_v22  ;;  %v1130_v46 = vld [vmem:[%s1443_s13 + $0x128] sm:$0x1]  ;;  %v1132_v47 = vld [vmem:[%s1443_s13 + $0x138] sm:$0x1]  ;;  %v1135_v55 = vld [vmem:[%s1443_s13 + $0x1b0] sm:$0xff] }
  0x25   : > { %v193_v30 = vmax.f32 %v188_v3, %v191_v17  ;;  %v280_v38 = vmax.f32 %v275_v26, %v1102_v21  ;;  %v242_v44 = vmax.f32 %v237_v32, %v1089_v24  ;;  %v318_v45 = vmax.f32 %v313_v34, %v1115_v29  ;;  %v1134_v48 = vld [vmem:[%s1443_s13 + $0x148] sm:$0x1]  ;;  %v1120_v61 = vld [vmem:[%s1443_s13 + $0x110] sm:$0xff]  ;;  %v1136_v62 = vld [vmem:[%s1443_s13 + $0x1b8] sm:$0x1] }
  0x26   : > { %v198_v36 = vsel %vm195_vm0, %v196_v18, %v197_v23  ;;  %v241_v43 = vmax.f32 %v236_v31, %v1482_v58  ;;  %v283_v49 = vmax.f32 %v279_v37, %v1482_v58  ;;  %v1108_v51 = vld [vmem:[%s1443_s13 + $0x188] sm:$0x1]  ;;  %v321_v52 = vmax.f32 %v317_v35, %v1101_v33  ;;  %v1121_v4 = vld [vmem:[%s1443_s13 + $0x118] sm:$0x1]  ;;  %v1137_v6 = vld [vmem:[%s1443_s13 + $0x1c0] sm:$0xff] }
  0x27   : > { %v200_v42 = vmax.f32 %v193_v30, %v198_v36  ;;  %v284_v50 = vmax.f32 %v280_v38, %v1104_v28  ;;  %v1119_v53 = vld [vmem:[%s1443_s13 + $0x108] sm:$0x1]  ;;  %v364_v54 = vmax.f32 %v1130_v46, %v1132_v47  ;;  %v249_v59 = vrot.slane %v242_v44, 2  ;;  %v1537_v10 = vld [vmem:[%s1443_s13 + $0x180] sm:$0xff]  ;;  %v1125_v18 = vld [vmem:[%s1443_s13 + $0x198] sm:$0x1] }
  0x28   : > { %v244_v56 = vrot.slane %v241_v43, 1  ;;  %v248_v57 = vrot.slane %v241_v43, 2  ;;  %v322_v60 = vmax.f32 %v318_v45, %v1117_v40  ;;  %v288_v63 = vmax.f32 %v283_v49, %v1488_v1  ;;  %v1123_v12 = vld [vmem:[%s1443_s13 + $0x188] sm:$0x1]  ;;  %v1151_v22 = vld [vmem:[%s1443_s13 + $0x158] sm:$0x1] }
  0x29   : > { %202 = vst.msk [vmem:[%s1514_s17] sm:$0x7f] %vm201_vm1, %v200_v42  ;;  %v289_v0 = vmax.f32 %v284_v50, %v1106_v39  ;;  %v326_v3 = vmax.f32 %v321_v52, %v1118_v41  ;;  %v368_v5 = vmax.f32 %v364_v54, %v1134_v48  ;;  %v372_v13 = vmax.f32 %v1490_v2, %v1135_v55  ;;  %v1138_v20 = vld [vmem:[%s1443_s13 + $0x1c8] sm:$0x1]  ;;  %v1139_v26 = vld [vmem:[%s1443_s13 + $0x1d0] sm:$0xff]  ;;  %v1156_v40 = vld [vmem:[%s1443_s13 + $0x1e0] sm:$0xff] }
  0x2a   : > { %v246_v7 = vmax.f32 %v241_v43, %v244_v56  ;;  %v250_v8 = vsel %vm195_vm0, %v248_v57, %v249_v59  ;;  %v327_v11 = vmax.f32 %v322_v60, %v1119_v53  ;;  %v293_v14 = vmax.f32 %v288_v63, %v1537_v10  ;;  %v1149_v21 = vld [vmem:[%s1443_s13 + $0x148] sm:$0x1]  ;;  %v1140_v27 = vld [vmem:[%s1443_s13 + $0x1d8] sm:$0x1]  ;;  %v1554_v36 = vld [vmem:[%s1443_s13 + $0x190] sm:$0xff] }
  0x2b   : > { %v294_v15 = vmax.f32 %v289_v0, %v1108_v51  ;;  %v331_v17 = vmax.f32 %v326_v3, %v1120_v61  ;;  %v373_v19 = vmax.f32 %v368_v5, %v1136_v62  ;;  %v377_v25 = vmax.f32 %v372_v13, %v1137_v6  ;;  %v1153_v29 = vld [vmem:[%s1443_s13 + $0x168] sm:$0x1]  ;;  %v1155_v28 = vld [vmem:[%s1443_s13 + $0x1d8] sm:$0x1]  ;;  %v1561_v44 = vld [vmem:[%s1443_s13 + $0x240] sm:$0xff] }
  0x2c   : > { %v252_v23 = vmax.f32 %v246_v7, %v250_v8  ;;  %v332_v24 = vmax.f32 %v327_v11, %v1121_v4  ;;  %v416_v2 = vmax.f32 %v1149_v21, %v1151_v22  ;;  %v296_v30 = vrot.slane %v293_v14, 1  ;;  %v1127_v37 = vld [vmem:[%s1443_s13 + $0x1a8] sm:$0x1]  ;;  %v1567_v49 = vld [vmem:[%s1443_s13 + $0x1a0] sm:$0xff]  ;;  %v1170_v54 = vld [vmem:[%s1443_s13 + $0x178] sm:$0x1] }
  0x2d   : > { %v300_v31 = vrot.slane %v293_v14, 2  ;;  %v301_v32 = vrot.slane %v294_v15, 2  ;;  %v335_v33 = vmax.f32 %v331_v17, %v1537_v10  ;;  %v378_v38 = vmax.f32 %v373_v19, %v1138_v20  ;;  %v1142_v45 = vld [vmem:[%s1443_s13 + $0x248] sm:$0x1]  ;;  %v1574_v57 = vld [vmem:[%s1443_s13 + $0x250] sm:$0xff]  ;;  %v1584_v8 = vld [vmem:[%s1443_s13 + $0x260] sm:$0xff] }
  0x2e   : > { %1090 = vst.msk [vmem:[%s1514_s17 + $0x8] sm:$0x7f] %vm201_vm1, %v252_v23  ;;  %v336_v34 = vmax.f32 %v332_v24, %v1123_v12  ;;  %v382_v39 = vmax.f32 %v377_v25, %v1139_v26  ;;  %v420_v35 = vmax.f32 %v416_v2, %v1153_v29  ;;  %v298_v41 = vmax.f32 %v293_v14, %v296_v30  ;;  %v1157_v47 = vld [vmem:[%s1443_s13 + $0x1e8] sm:$0x1]  ;;  %v1159_v60 = vld [vmem:[%s1443_s13 + $0x1f8] sm:$0x1] }
  0x2f   : > { %v302_v42 = vsel %vm195_vm0, %v300_v31, %v301_v32  ;;  %v340_v43 = vmax.f32 %v335_v33, %v1554_v36  ;;  %v423_v46 = vmax.f32 %v1496_v9, %v1139_v26  ;;  %v383_v50 = vmax.f32 %v378_v38, %v1140_v27  ;;  %v1168_v53 = vld [vmem:[%s1443_s13 + $0x168] sm:$0x1]  ;;  %v1144_v9 = vld [vmem:[%s1443_s13 + $0x258] sm:$0x1]  ;;  %v1158_v4 = vld [vmem:[%s1443_s13 + $0x1f0] sm:$0xff] }
  0x30   : > { %v341_v48 = vmax.f32 %v336_v34, %v1125_v18  ;;  %v387_v51 = vmax.f32 %v382_v39, %v1561_v44  ;;  %v424_v52 = vmax.f32 %v420_v35, %v1155_v28  ;;  %v304_v55 = vmax.f32 %v298_v41, %v302_v42  ;;  %v1172_v5 = vld [vmem:[%s1443_s13 + $0x188] sm:$0x1]  ;;  %v1594_v20 = vld [vmem:[%s1443_s13 + $0x270] sm:$0xff]  ;;  %v1174_v21 = vld [vmem:[%s1443_s13 + $0x1f8] sm:$0x1] }
  0x31   : > { %v345_v56 = vmax.f32 %v340_v43, %v1567_v49  ;;  %v428_v59 = vmax.f32 %v423_v46, %v1156_v40  ;;  %v466_v61 = vmax.f32 %v1168_v53, %v1170_v54  ;;  %v388_v63 = vmax.f32 %v383_v50, %v1142_v45  ;;  %v1146_v11 = vld [vmem:[%s1443_s13 + $0x268] sm:$0x1]  ;;  %v1163_v24 = vld [vmem:[%s1443_s13 + $0x278] sm:$0x1]  ;;  %v1175_v58 = vld [vmem:[%s1443_s13 + $0x200] sm:$0xff] }
  0x32   : > { %v346_v62 = vmax.f32 %v341_v48, %v1127_v37  ;;  %v392_v0 = vmax.f32 %v387_v51, %v1574_v57  ;;  %v429_v3 = vmax.f32 %v424_v52, %v1157_v47  ;;  %1109 = vst.msk [vmem:[%s1514_s17 + $0x10] sm:$0x7f] %vm201_vm1, %v304_v55  ;;  %v469_v13 = vmax.f32 %v465_v16, %v1537_v10  ;;  %v1161_v19 = vld [vmem:[%s1443_s13 + $0x268] sm:$0x1]  ;;  %v1189_v31 = vld [vmem:[%s1443_s13 + $0x198] sm:$0x1] }
  0x33   : > { %v348_v6 = vrot.slane %v345_v56, 1  ;;  %v352_v7 = vrot.slane %v345_v56, 2  ;;  %v433_v12 = vmax.f32 %v428_v59, %v1158_v4  ;;  %v393_v15 = vmax.f32 %v388_v63, %v1144_v9  ;;  %v1176_v1 = vld [vmem:[%s1443_s13 + $0x208] sm:$0x1]  ;;  %v1606_v39 = vld [vmem:[%s1443_s13 + $0x280] sm:$0xff]  ;;  %v1177_v46 = vld [vmem:[%s1443_s13 + $0x210] sm:$0xff] }
  0x34   : > { %v353_v14 = vrot.slane %v346_v62, 2  ;;  %v397_v17 = vmax.f32 %v392_v0, %v1584_v8  ;;  %v434_v18 = vmax.f32 %v429_v3, %v1159_v60  ;;  %v470_v25 = vmax.f32 %v466_v61, %v1172_v5  ;;  %v1187_v30 = vld [vmem:[%s1443_s13 + $0x188] sm:$0x1]  ;;  %v1178_v47 = vld [vmem:[%s1443_s13 + $0x218] sm:$0x1]  ;;  %v1625_v61 = vld [vmem:[%s1443_s13 + $0x290] sm:$0xff] }
  0x35   : > { %v350_v22 = vmax.f32 %v345_v56, %v348_v6  ;;  %v437_v23 = vmax.f32 %v433_v12, %v1584_v8  ;;  %v473_v26 = vmax.f32 %v469_v13, %v1158_v4  ;;  %v398_v27 = vmax.f32 %v393_v15, %v1146_v11  ;;  %v1165_v35 = vld [vmem:[%s1443_s13 + $0x288] sm:$0x1]  ;;  %v1208_v54 = vld [vmem:[%s1443_s13 + $0x258] sm:$0x1]  ;;  %v1194_v63 = vld [vmem:[%s1443_s13 + $0x220] sm:$0xff] }
  0x36   : > { %v354_v16 = vsel %vm195_vm0, %v352_v7, %v353_v14  ;;  %v400_v2 = vrot.slane %v397_v17, 1  ;;  %v404_v29 = vrot.slane %v397_v17, 2  ;;  %v438_v33 = vmax.f32 %v434_v18, %v1161_v19  ;;  %v1191_v50 = vld [vmem:[%s1443_s13 + $0x1a8] sm:$0x1]  ;;  %v1193_v62 = vld [vmem:[%s1443_s13 + $0x218] sm:$0x1] }
  0x37   : > { %v356_v32 = vmax.f32 %v350_v22, %v354_v16  ;;  %v442_v28 = vmax.f32 %v437_v23, %v1594_v20  ;;  %v474_v34 = vmax.f32 %v470_v25, %v1174_v21  ;;  %v405_v38 = vrot.slane %v398_v27, 2  ;;  %v1180_v53 = vld [vmem:[%s1443_s13 + $0x288] sm:$0x1]  ;;  %v1182_v3 = vld [vmem:[%s1443_s13 + $0x298] sm:$0x1]  ;;  %v1196_v12 = vld [vmem:[%s1443_s13 + $0x230] sm:$0xff] }
  0x38   : > { %v402_v37 = vmax.f32 %v397_v17, %v400_v2  ;;  %v478_v40 = vmax.f32 %v473_v26, %v1175_v58  ;;  %v515_v41 = vmax.f32 %v1537_v10, %v1554_v36  ;;  %v443_v42 = vmax.f32 %v438_v33, %v1163_v24  ;;  %v1206_v36 = vld [vmem:[%s1443_s13 + $0x248] sm:$0x1]  ;;  %v1212_v15 = vld [vmem:[%s1443_s13 + $0x2d8] sm:$0x1]  ;;  %v1213_v22 = vld [vmem:[%s1443_s13 + $0x2e0] sm:$0xff] }
  0x39   : > { %1128 = vst.msk [vmem:[%s1514_s17 + $0x18] sm:$0x7f] %vm201_vm1, %v356_v32  ;;  %v447_v43 = vmax.f32 %v442_v28, %v1606_v39  ;;  %v479_v45 = vmax.f32 %v474_v34, %v1176_v1  ;;  %v516_v48 = vmax.f32 %v1187_v30, %v1189_v31  ;;  %v406_v51 = vsel %vm195_vm0, %v404_v29, %v405_v38  ;;  %v1195_v11 = vld [vmem:[%s1443_s13 + $0x228] sm:$0x1]  ;;  %v1227_v24 = vld [vmem:[%s1443_s13 + $0x278] sm:$0x1] }
  0x3a   : > { %v483_v52 = vmax.f32 %v478_v40, %v1177_v46  ;;  %v519_v10 = vmax.f32 %v515_v41, %v1567_v49  ;;  %v565_v55 = vmax.f32 %v1561_v44, %v1574_v57  ;;  %v408_v56 = vmax.f32 %v402_v37, %v406_v51  ;;  %v1210_v44 = vld [vmem:[%s1443_s13 + $0x268] sm:$0x1]  ;;  %v1211_v57 = vld [vmem:[%s1443_s13 + $0x2d0] sm:$0xff]  ;;  %v1645_v26 = vld [vmem:[%s1443_s13 + $0x2a0] sm:$0xff] }
  0x3b   : > { %v448_v9 = vmax.f32 %v443_v42, %v1165_v35  ;;  %v450_v59 = vrot.slane %v447_v43, 1  ;;  %v454_v60 = vrot.slane %v447_v43, 2  ;;  %v484_v49 = vmax.f32 %v479_v45, %v1178_v47  ;;  %v1225_v23 = vld [vmem:[%s1443_s13 + $0x268] sm:$0x1]  ;;  %v1197_v1 = vld [vmem:[%s1443_s13 + $0x238] sm:$0x1] }
  0x3c   : > { %v487_v0 = vmax.f32 %v483_v52, %v1606_v39  ;;  %v520_v4 = vmax.f32 %v516_v48, %v1191_v50  ;;  %v523_v5 = vmax.f32 %v519_v10, %v1177_v46  ;;  %1147 = vst.msk [vmem:[%s1514_s17 + $0x20] sm:$0x7f] %vm201_vm1, %v408_v56  ;;  %v566_v13 = vmax.f32 %v1206_v36, %v1208_v54  ;;  %v1184_v58 = vld [vmem:[%s1443_s13 + $0x2a8] sm:$0x1]  ;;  %v1215_v45 = vld [vmem:[%s1443_s13 + $0x2f0] sm:$0xff]  ;;  %v1668_v56 = vld [vmem:[%s1443_s13 + $0x360] sm:$0xff] }
  0x3d   : > { %v452_v6 = vmax.f32 %v447_v43, %v450_v59  ;;  %v455_v7 = vrot.slane %v448_v9, 2  ;;  %v569_v14 = vmax.f32 %v565_v55, %v1584_v8  ;;  %v488_v17 = vmax.f32 %v484_v49, %v1180_v53  ;;  %v1214_v33 = vld [vmem:[%s1443_s13 + $0x2e8] sm:$0x1]  ;;  %v1658_v43 = vld [vmem:[%s1443_s13 + $0x2b0] sm:$0xff]  ;;  %v1216_v46 = vld [vmem:[%s1443_s13 + $0x2f8] sm:$0x1] }
  0x3e   : > { %v492_v18 = vmax.f32 %v487_v0, %v1625_v61  ;;  %v524_v19 = vmax.f32 %v520_v4, %v1193_v62  ;;  %v528_v21 = vmax.f32 %v523_v5, %v1194_v63  ;;  %v570_v16 = vmax.f32 %v566_v13, %v1210_v44  ;;  %v1199_v34 = vld [vmem:[%s1443_s13 + $0x2a8] sm:$0x1]  ;;  %v1201_v48 = vld [vmem:[%s1443_s13 + $0x2b8] sm:$0x1] }
  0x3f   : > { %v456_v25 = vsel %vm195_vm0, %v454_v60, %v455_v7  ;;  %v574_v27 = vmax.f32 %v569_v14, %v1211_v57  ;;  %v617_v2 = vmax.f32 %v1584_v8, %v1594_v20  ;;  %v493_v30 = vmax.f32 %v488_v17, %v1182_v3  ;;  %v1229_v40 = vld [vmem:[%s1443_s13 + $0x288] sm:$0x1]  ;;  %v1231_v10 = vld [vmem:[%s1443_s13 + $0x2f8] sm:$0x1]  ;;  %v1232_v60 = vld [vmem:[%s1443_s13 + $0x300] sm:$0xff] }
  0x40   : > { %v458_v29 = vmax.f32 %v452_v6, %v456_v25  ;;  %v497_v31 = vmax.f32 %v492_v18, %v1645_v26  ;;  %v529_v32 = vmax.f32 %v524_v19, %v1195_v11  ;;  %v533_v28 = vmax.f32 %v528_v21, %v1196_v12  ;;  %v1203_v50 = vld [vmem:[%s1443_s13 + $0x2c8] sm:$0x1]  ;;  %v1246_v5 = vld [vmem:[%s1443_s13 + $0x298] sm:$0x1]  ;;  %v1679_v6 = vld [vmem:[%s1443_s13 + $0x2c0] sm:$0xff] }
  0x41   : > { %v575_v37 = vmax.f32 %v570_v16, %v1212_v15  ;;  %v579_v38 = vmax.f32 %v574_v27, %v1213_v22  ;;  %v618_v35 = vmax.f32 %v1225_v23, %v1227_v24  ;;  %v498_v8 = vmax.f32 %v493_v30, %v1184_v58  ;;  %v1218_v9 = vld [vmem:[%s1443_s13 + $0x368] sm:$0x1]  ;;  %v1682_v7 = vld [vmem:[%s1443_s13 + $0x370] sm:$0xff]  ;;  %v1220_v11 = vld [vmem:[%s1443_s13 + $0x378] sm:$0x1] }
  0x42   : > { %1166 = vst.msk [vmem:[%s1514_s17 + $0x28] sm:$0x7f] %vm201_vm1, %v458_v29  ;;  %v500_v20 = vrot.slane %v497_v31, 1  ;;  %v504_v41 = vrot.slane %v497_v31, 2  ;;  %v534_v42 = vmax.f32 %v529_v32, %v1197_v1  ;;  %v537_v47 = vmax.f32 %v533_v28, %v1645_v26  ;;  %v1233_v3 = vld [vmem:[%s1443_s13 + $0x308] sm:$0x1] }
  0x43   : > { %v580_v51 = vmax.f32 %v575_v37, %v1214_v33  ;;  %v584_v52 = vmax.f32 %v579_v38, %v1215_v45  ;;  %v621_v53 = vmax.f32 %v617_v2, %v1606_v39  ;;  %v505_v54 = vrot.slane %v498_v8, 2  ;;  %v1244_v4 = vld [vmem:[%s1443_s13 + $0x288] sm:$0x1]  ;;  %v1235_v19 = vld [vmem:[%s1443_s13 + $0x318] sm:$0x1]  ;;  %v1691_v22 = vld [vmem:[%s1443_s13 + $0x380] sm:$0xff] }
  0x44   : > { %v502_v36 = vmax.f32 %v497_v31, %v500_v20  ;;  %v538_v55 = vmax.f32 %v534_v42, %v1199_v34  ;;  %v622_v59 = vmax.f32 %v618_v35, %v1229_v40  ;;  %v542_v62 = vmax.f32 %v537_v47, %v1658_v43  ;;  %v1222_v23 = vld [vmem:[%s1443_s13 + $0x388] sm:$0x1]  ;;  %v1234_v58 = vld [vmem:[%s1443_s13 + $0x310] sm:$0xff]  ;;  %v1239_v35 = vld [vmem:[%s1443_s13 + $0x398] sm:$0x1] }
  0x45   : > { %v585_v63 = vmax.f32 %v580_v51, %v1216_v46  ;;  %v589_v49 = vmax.f32 %v584_v52, %v1668_v56  ;;  %v625_v0 = vmax.f32 %v621_v53, %v1215_v45  ;;  %v506_v44 = vsel %vm195_vm0, %v504_v41, %v505_v54  ;;  %v1237_v2 = vld [vmem:[%s1443_s13 + $0x388] sm:$0x1]  ;;  %v1250_v40 = vld [vmem:[%s1443_s13 + $0x318] sm:$0x1]  ;;  %v1251_v45 = vld [vmem:[%s1443_s13 + $0x320] sm:$0xff] }
  0x46   : > { %v543_v57 = vmax.f32 %v538_v55, %v1201_v48  ;;  %v626_v12 = vmax.f32 %v622_v59, %v1231_v10  ;;  %v667_v13 = vmax.f32 %v1606_v39, %v1625_v61  ;;  %v508_v14 = vmax.f32 %v502_v36, %v506_v44  ;;  %v1248_v29 = vld [vmem:[%s1443_s13 + $0x2a8] sm:$0x1]  ;;  %v1265_v47 = vld [vmem:[%s1443_s13 + $0x2b8] sm:$0x1]  ;;  %v1709_v52 = vld [vmem:[%s1443_s13 + $0x390] sm:$0xff] }
  0x47   : > { %v547_v15 = vmax.f32 %v542_v62, %v1679_v6  ;;  %v590_v17 = vmax.f32 %v585_v63, %v1218_v9  ;;  %v594_v18 = vmax.f32 %v589_v49, %v1682_v7  ;;  %v630_v24 = vmax.f32 %v625_v0, %v1232_v60  ;;  %v1263_v46 = vld [vmem:[%s1443_s13 + $0x2a8] sm:$0x1]  ;;  %v1284_v63 = vld [vmem:[%s1443_s13 + $0x378] sm:$0x1]  ;;  %v1723_v0 = vld [vmem:[%s1443_s13 + $0x3a0] sm:$0xff] }
  0x48   : > { %v548_v21 = vmax.f32 %v543_v57, %v1203_v50  ;;  %v631_v25 = vmax.f32 %v626_v12, %v1233_v3  ;;  %v668_v1 = vmax.f32 %v1244_v4, %v1246_v5  ;;  %1185 = vst.msk [vmem:[%s1514_s17 + $0x30] sm:$0x7f] %vm201_vm1, %v508_v14  ;;  %v671_v33 = vmax.f32 %v667_v13, %v1645_v26  ;;  %v1241_v53 = vld [vmem:[%s1443_s13 + $0x3a8] sm:$0x1]  ;;  %v1254_v4 = vld [vmem:[%s1443_s13 + $0x338] sm:$0x1] }
  0x49   : > { %v550_v39 = vrot.slane %v547_v15, 1  ;;  %v554_v61 = vrot.slane %v547_v15, 2  ;;  %v595_v16 = vmax.f32 %v590_v17, %v1220_v11  ;;  %v599_v27 = vmax.f32 %v594_v18, %v1691_v22  ;;  %v1252_v36 = vld [vmem:[%s1443_s13 + $0x328] sm:$0x1]  ;;  %v1253_v12 = vld [vmem:[%s1443_s13 + $0x330] sm:$0xff] }
  0x4a   : > { %v555_v30 = vrot.slane %v548_v21, 2  ;;  %v635_v31 = vmax.f32 %v630_v24, %v1234_v58  ;;  %v636_v32 = vmax.f32 %v631_v25, %v1235_v19  ;;  %v672_v42 = vmax.f32 %v668_v1, %v1248_v29  ;;  %v1267_v60 = vld [vmem:[%s1443_s13 + $0x2c8] sm:$0x1]  ;;  %v1269_v13 = vld [vmem:[%s1443_s13 + $0x338] sm:$0x1]  ;;  %v1270_v19 = vld [vmem:[%s1443_s13 + $0x340] sm:$0xff] }
  0x4b   : > { %v552_v28 = vmax.f32 %v547_v15, %v550_v39  ;;  %v600_v34 = vmax.f32 %v595_v16, %v1222_v23  ;;  %v602_v37 = vrot.slane %v599_v27, 1  ;;  %v606_v38 = vrot.slane %v599_v27, 2  ;;  %v1282_v62 = vld [vmem:[%s1443_s13 + $0x368] sm:$0x1]  ;;  %v1287_v39 = vld [vmem:[%s1443_s13 + $0x3f0] sm:$0xff] }
  0x4c   : > { %v556_v8 = vsel %vm195_vm0, %v554_v61, %v555_v30  ;;  %v639_v20 = vmax.f32 %v635_v31, %v1691_v22  ;;  %v640_v41 = vmax.f32 %v636_v32, %v1237_v2  ;;  %v675_v10 = vmax.f32 %v671_v33, %v1234_v58  ;;  %v1256_v15 = vld [vmem:[%s1443_s13 + $0x3a8] sm:$0x1]  ;;  %v1738_v58 = vld [vmem:[%s1443_s13 + $0x3b0] sm:$0xff]  ;;  %v1258_v61 = vld [vmem:[%s1443_s13 + $0x3b8] sm:$0x1] }
  0x4d   : > { %v558_v48 = vmax.f32 %v552_v28, %v556_v8  ;;  %v604_v50 = vmax.f32 %v599_v27, %v602_v37  ;;  %v607_v51 = vrot.slane %v600_v34, 2  ;;  %v676_v9 = vmax.f32 %v672_v42, %v1250_v40  ;;  %v1271_v1 = vld [vmem:[%s1443_s13 + $0x348] sm:$0x1]  ;;  %v1288_v30 = vld [vmem:[%s1443_s13 + $0x3f8] sm:$0x1]  ;;  %v1272_v28 = vld [vmem:[%s1443_s13 + $0x350] sm:$0xff] }
  0x4e   : > { %v644_v54 = vmax.f32 %v639_v20, %v1709_v52  ;;  %v645_v55 = vmax.f32 %v640_v41, %v1239_v35  ;;  %v717_v59 = vmax.f32 %v1645_v26, %v1658_v43  ;;  %v680_v3 = vmax.f32 %v675_v10, %v1251_v45  ;;  %v1260_v16 = vld [vmem:[%s1443_s13 + $0x3c8] sm:$0x1]  ;;  %v1273_v34 = vld [vmem:[%s1443_s13 + $0x358] sm:$0x1] }
  0x4f   : > { %1204 = vst.msk [vmem:[%s1514_s17 + $0x38] sm:$0x7f] %vm201_vm1, %v558_v48  ;;  %v608_v49 = vsel %vm195_vm0, %v606_v38, %v607_v51  ;;  %v718_v5 = vmax.f32 %v1263_v46, %v1265_v47  ;;  %v767_v26 = vmax.f32 %v1668_v56, %v1682_v7  ;;  %v681_v11 = vmax.f32 %v676_v9, %v1252_v36  ;;  %v1286_v56 = vld [vmem:[%s1443_s13 + $0x388] sm:$0x1]  ;;  %v1289_v38 = vld [vmem:[%s1443_s13 + $0x400] sm:$0xff] }
  0x50   : > { %v610_v43 = vmax.f32 %v604_v50, %v608_v49  ;;  %v649_v44 = vmax.f32 %v644_v54, %v1723_v0  ;;  %v650_v57 = vmax.f32 %v645_v55, %v1241_v53  ;;  %v685_v14 = vmax.f32 %v680_v3, %v1253_v12  ;;  %v1290_v41 = vld [vmem:[%s1443_s13 + $0x408] sm:$0x1]  ;;  %v1303_v45 = vld [vmem:[%s1443_s13 + $0x398] sm:$0x1]  ;;  %v1756_v48 = vld [vmem:[%s1443_s13 + $0x3c0] sm:$0xff] }
  0x51   : > { %v721_v17 = vmax.f32 %v717_v59, %v1679_v6  ;;  %v722_v18 = vmax.f32 %v718_v5, %v1267_v60  ;;  %v768_v21 = vmax.f32 %v1282_v62, %v1284_v63  ;;  %v686_v25 = vmax.f32 %v681_v11, %v1254_v4  ;;  %v1301_v42 = vld [vmem:[%s1443_s13 + $0x388] sm:$0x1]  ;;  %v1292_v9 = vld [vmem:[%s1443_s13 + $0x418] sm:$0x1]  ;;  %v1291_v49 = vld [vmem:[%s1443_s13 + $0x410] sm:$0xff] }
  0x52   : > { %1223 = vst.msk [vmem:[%s1514_s17 + $0x40] sm:$0x7f] %vm201_vm1, %v610_v43  ;;  %v652_v7 = vrot.slane %v649_v44, 1  ;;  %v656_v23 = vrot.slane %v649_v44, 2  ;;  %v657_v24 = vrot.slane %v650_v57, 2  ;;  %v689_v6 = vmax.f32 %v685_v14, %v1723_v0  ;;  %v1293_v3 = vld [vmem:[%s1443_s13 + $0x480] sm:$0xff] }
  0x53   : > { %v725_v27 = vmax.f32 %v721_v17, %v1253_v12  ;;  %v726_v2 = vmax.f32 %v722_v18, %v1269_v13  ;;  %v771_v29 = vmax.f32 %v767_v26, %v1691_v22  ;;  %v690_v33 = vmax.f32 %v686_v25, %v1256_v15  ;;  %v1275_v50 = vld [vmem:[%s1443_s13 + $0x3c8] sm:$0x1]  ;;  %v1277_v62 = vld [vmem:[%s1443_s13 + $0x3d8] sm:$0x1]  ;;  %v1774_v12 = vld [vmem:[%s1443_s13 + $0x3d0] sm:$0xff] }
  0x54   : > { %v654_v31 = vmax.f32 %v649_v44, %v652_v7  ;;  %v658_v32 = vsel %vm195_vm0, %v656_v23, %v657_v24  ;;  %v772_v37 = vmax.f32 %v768_v21, %v1286_v56  ;;  %v694_v35 = vmax.f32 %v689_v6, %v1738_v58  ;;  %v1305_v59 = vld [vmem:[%s1443_s13 + $0x3a8] sm:$0x1]  ;;  %v1307_v57 = vld [vmem:[%s1443_s13 + $0x418] sm:$0x1]  ;;  %v1308_v18 = vld [vmem:[%s1443_s13 + $0x420] sm:$0xff] }
  0x55   : > { %v730_v40 = vmax.f32 %v725_v27, %v1270_v19  ;;  %v731_v8 = vmax.f32 %v726_v2, %v1271_v1  ;;  %v776_v20 = vmax.f32 %v771_v29, %v1287_v39  ;;  %v695_v47 = vmax.f32 %v690_v33, %v1258_v61  ;;  %v1294_v44 = vld [vmem:[%s1443_s13 + $0x488] sm:$0x1]  ;;  %v1295_v7 = vld [vmem:[%s1443_s13 + $0x490] sm:$0xff]  ;;  %v1296_v23 = vld [vmem:[%s1443_s13 + $0x498] sm:$0x1] }
  0x56   : > { %v660_v46 = vmax.f32 %v654_v31, %v658_v32  ;;  %v777_v51 = vmax.f32 %v772_v37, %v1288_v30  ;;  %v819_v53 = vmax.f32 %v1691_v22, %v1709_v52  ;;  %v699_v10 = vmax.f32 %v694_v35, %v1756_v48  ;;  %v1279_v13 = vld [vmem:[%s1443_s13 + $0x3e8] sm:$0x1]  ;;  %v1784_v39 = vld [vmem:[%s1443_s13 + $0x3e0] sm:$0xff]  ;;  %v1311_v32 = vld [vmem:[%s1443_s13 + $0x438] sm:$0x1] }
  0x57   : > { %v735_v36 = vmax.f32 %v730_v40, %v1272_v28  ;;  %v736_v54 = vmax.f32 %v731_v8, %v1273_v34  ;;  %v781_v55 = vmax.f32 %v776_v20, %v1289_v38  ;;  %v700_v60 = vmax.f32 %v695_v47, %v1260_v16  ;;  %v1309_v25 = vld [vmem:[%s1443_s13 + $0x428] sm:$0x1]  ;;  %v1322_v28 = vld [vmem:[%s1443_s13 + $0x3b8] sm:$0x1]  ;;  %v1297_v38 = vld [vmem:[%s1443_s13 + $0x4a0] sm:$0xff] }
  0x58   : > { %1242 = vst.msk [vmem:[%s1514_s17 + $0x48] sm:$0x7f] %vm201_vm1, %v660_v46  ;;  %v782_v63 = vmax.f32 %v777_v51, %v1290_v41  ;;  %v820_v22 = vmax.f32 %v1301_v42, %v1303_v45  ;;  %v823_v52 = vmax.f32 %v819_v53, %v1723_v0  ;;  %v702_v4 = vrot.slane %v699_v10, 1  ;;  %v1298_v16 = vld [vmem:[%s1443_s13 + $0x4a8] sm:$0x1]  ;;  %v1310_v40 = vld [vmem:[%s1443_s13 + $0x430] sm:$0xff] }
  0x59   : > { %v706_v5 = vrot.slane %v699_v10, 2  ;;  %v739_v26 = vmax.f32 %v735_v36, %v1756_v48  ;;  %v740_v43 = vmax.f32 %v736_v54, %v1275_v50  ;;  %v707_v11 = vrot.slane %v700_v60, 2  ;;  %v1320_v33 = vld [vmem:[%s1443_s13 + $0x3a8] sm:$0x1]  ;;  %v1314_v53 = vld [vmem:[%s1443_s13 + $0x4b0] sm:$0xff] }
  0x5a   : > { %v786_v14 = vmax.f32 %v781_v55, %v1291_v49  ;;  %v787_v15 = vmax.f32 %v782_v63, %v1292_v9  ;;  %v824_v17 = vmax.f32 %v820_v22, %v1305_v59  ;;  %v704_v19 = vmax.f32 %v699_v10, %v702_v4  ;;  %v1313_v46 = vld [vmem:[%s1443_s13 + $0x4a8] sm:$0x1]  ;;  %v1315_v55 = vld [vmem:[%s1443_s13 + $0x4b8] sm:$0x1]  ;;  %v1327_v22 = vld [vmem:[%s1443_s13 + $0x440] sm:$0xff] }
  0x5b   : > { %v744_v21 = vmax.f32 %v739_v26, %v1774_v12  ;;  %v745_v56 = vmax.f32 %v740_v43, %v1277_v62  ;;  %v827_v24 = vmax.f32 %v823_v52, %v1291_v49  ;;  %v708_v1 = vsel %vm195_vm0, %v706_v5, %v707_v11  ;;  %v1324_v36 = vld [vmem:[%s1443_s13 + $0x3c8] sm:$0x1]  ;;  %v1326_v59 = vld [vmem:[%s1443_s13 + $0x438] sm:$0x1] }
  0x5c   : > { %v791_v6 = vmax.f32 %v786_v14, %v1293_v3  ;;  %v792_v61 = vmax.f32 %v787_v15, %v1294_v44  ;;  %v828_v27 = vmax.f32 %v824_v17, %v1307_v57  ;;  %v710_v2 = vmax.f32 %v704_v19, %v708_v1  ;;  %v1339_v60 = vld [vmem:[%s1443_s13 + $0x3c8] sm:$0x1]  ;;  %v1341_v52 = vld [vmem:[%s1443_s13 + $0x3d8] sm:$0x1]  ;;  %v1316_v14 = vld [vmem:[%s1443_s13 + $0x4c0] sm:$0xff] }
  0x5d   : > { %v749_v29 = vmax.f32 %v744_v21, %v1784_v39  ;;  %v750_v30 = vmax.f32 %v745_v56, %v1279_v13  ;;  %v832_v31 = vmax.f32 %v827_v24, %v1308_v18  ;;  %v869_v8 = vmax.f32 %v1723_v0, %v1738_v58  ;;  %v1317_v26 = vld [vmem:[%s1443_s13 + $0x4c8] sm:$0x1]  ;;  %v1329_v56 = vld [vmem:[%s1443_s13 + $0x450] sm:$0xff]  ;;  %v1330_v1 = vld [vmem:[%s1443_s13 + $0x458] sm:$0x1] }
  0x5e   : > { %v796_v34 = vmax.f32 %v791_v6, %v1295_v7  ;;  %v797_v37 = vmax.f32 %v792_v61, %v1296_v23  ;;  %v833_v35 = vmax.f32 %v828_v27, %v1309_v25  ;;  %1261 = vst.msk [vmem:[%s1514_s17 + $0x50] sm:$0x7f] %vm201_vm1, %v710_v2  ;;  %v870_v10 = vmax.f32 %v1320_v33, %v1322_v28  ;;  %v1328_v15 = vld [vmem:[%s1443_s13 + $0x448] sm:$0x1]  ;;  %v1345_v27 = vld [vmem:[%s1443_s13 + $0x458] sm:$0x1] }
  0x5f   : > { %v752_v20 = vrot.slane %v749_v29, 1  ;;  %v756_v41 = vrot.slane %v749_v29, 2  ;;  %v757_v42 = vrot.slane %v750_v30, 2  ;;  %v837_v45 = vmax.f32 %v832_v31, %v1310_v40  ;;  %v1343_v23 = vld [vmem:[%s1443_s13 + $0x3e8] sm:$0x1]  ;;  %v1346_v2 = vld [vmem:[%s1443_s13 + $0x460] sm:$0xff] }
  0x60   : > { %v801_v47 = vmax.f32 %v796_v34, %v1297_v38  ;;  %v802_v50 = vmax.f32 %v797_v37, %v1298_v16  ;;  %v838_v51 = vmax.f32 %v833_v35, %v1311_v32  ;;  %v873_v9 = vmax.f32 %v869_v8, %v1756_v48  ;;  %v1332_v30 = vld [vmem:[%s1443_s13 + $0x4c8] sm:$0x1]  ;;  %v1333_v31 = vld [vmem:[%s1443_s13 + $0x4d0] sm:$0xff] }
  0x61   : > { %v754_v0 = vmax.f32 %v749_v29, %v752_v20  ;;  %v758_v58 = vsel %vm195_vm0, %v756_v41, %v757_v42  ;;  %v841_v54 = vmax.f32 %v837_v45, %v1297_v38  ;;  %v874_v43 = vmax.f32 %v870_v10, %v1324_v36  ;;  %v1347_v37 = vld [vmem:[%s1443_s13 + $0x468] sm:$0x1]  ;;  %v1348_v38 = vld [vmem:[%s1443_s13 + $0x470] sm:$0xff] }
  0x62   : > { %v804_v62 = vrot.slane %v801_v47, 1  ;;  %v808_v63 = vrot.slane %v801_v47, 2  ;;  %v809_v49 = vrot.slane %v802_v50, 2  ;;  %v842_v3 = vmax.f32 %v838_v51, %v1313_v46  ;;  %v1335_v46 = vld [vmem:[%s1443_s13 + $0x4e0] sm:$0xff]  ;;  %v1336_v50 = vld [vmem:[%s1443_s13 + $0x4e8] sm:$0x1] }
  0x63   : > { %v760_v4 = vmax.f32 %v754_v0, %v758_v58  ;;  %v846_v5 = vmax.f32 %v841_v54, %v1314_v53  ;;  %v877_v44 = vmax.f32 %v873_v9, %v1310_v40  ;;  %v919_v17 = vmax.f32 %v1756_v48, %v1774_v12  ;;  %v1334_v40 = vld [vmem:[%s1443_s13 + $0x4d8] sm:$0x1]  ;;  %v1351_v0 = vld [vmem:[%s1443_s13 + $0x4e8] sm:$0x1]  ;;  %v1352_v58 = vld [vmem:[%s1443_s13 + $0x4f0] sm:$0xff] }
  0x64   : > { %v806_v57 = vmax.f32 %v801_v47, %v804_v62  ;;  %v810_v11 = vsel %vm195_vm0, %v808_v63, %v809_v49  ;;  %v847_v13 = vmax.f32 %v842_v3, %v1315_v55  ;;  %v878_v19 = vmax.f32 %v874_v43, %v1326_v59  ;;  %v1349_v47 = vld [vmem:[%s1443_s13 + $0x478] sm:$0x1]  ;;  %v1354_v63 = vld [vmem:[%s1443_s13 + $0x500] sm:$0xff] }
  0x65   : > { %1280 = vst.msk [vmem:[%s1514_s17 + $0x58] sm:$0x7f] %vm201_vm1, %v760_v4  ;;  %v851_v18 = vmax.f32 %v846_v5, %v1316_v14  ;;  %v882_v21 = vmax.f32 %v877_v44, %v1327_v22  ;;  %v920_v7 = vmax.f32 %v1339_v60, %v1341_v52  ;;  %v923_v6 = vmax.f32 %v919_v17, %v1784_v39  ;;  %v1353_v62 = vld [vmem:[%s1443_s13 + $0x4f8] sm:$0x1]  ;;  %v1355_v4 = vld [vmem:[%s1443_s13 + $0x508] sm:$0x1] }
  0x66   : > { %v812_v24 = vmax.f32 %v806_v57, %v810_v11  ;;  %v852_v25 = vmax.f32 %v847_v13, %v1317_v26  ;;  %v883_v61 = vmax.f32 %v878_v19, %v1328_v15 }
  0x67   : > { %v854_v48 = vrot.slane %v851_v18, 1  ;;  %v858_v12 = vrot.slane %v851_v18, 2  ;;  %v887_v16 = vmax.f32 %v882_v21, %v1329_v56  ;;  %v924_v32 = vmax.f32 %v920_v7, %v1343_v23 }
  0x68   : > { %1299 = vst.msk [vmem:[%s1514_s17 + $0x60] sm:$0x7f] %vm201_vm1, %v812_v24  ;;  %v859_v29 = vrot.slane %v852_v25, 2  ;;  %v927_v33 = vmax.f32 %v923_v6, %v1329_v56  ;;  %v888_v28 = vmax.f32 %v883_v61, %v1330_v1 }
  0x69   : > { %v856_v39 = vmax.f32 %v851_v18, %v854_v48  ;;  %v891_v34 = vmax.f32 %v887_v16, %v1316_v14  ;;  %v928_v8 = vmax.f32 %v924_v32, %v1345_v27 }
  0x6a   : > { %v860_v35 = vsel %vm195_vm0, %v858_v12, %v859_v29  ;;  %v932_v20 = vmax.f32 %v927_v33, %v1346_v2  ;;  %v892_v42 = vmax.f32 %v888_v28, %v1332_v30 }
  0x6b   : > { %v862_v41 = vmax.f32 %v856_v39, %v860_v35  ;;  %v896_v45 = vmax.f32 %v891_v34, %v1333_v31  ;;  %v933_v51 = vmax.f32 %v928_v8, %v1347_v37 }
  0x6c   : > { %v937_v53 = vmax.f32 %v932_v20, %v1348_v38  ;;  %v897_v10 = vmax.f32 %v892_v42, %v1334_v40 }
  0x6d   : > { %1318 = vst.msk [vmem:[%s1514_s17 + $0x68] sm:$0x7f] %vm201_vm1, %v862_v41  ;;  %v901_v36 = vmax.f32 %v896_v45, %v1335_v46  ;;  %v938_v54 = vmax.f32 %v933_v51, %v1349_v47 }
  0x6e   : > { %v941_v55 = vmax.f32 %v937_v53, %v1335_v46  ;;  %v902_v9 = vmax.f32 %v897_v10, %v1336_v50 }
  0x6f   : > { %v904_v59 = vrot.slane %v901_v36, 1  ;;  %v908_v60 = vrot.slane %v901_v36, 2  ;;  %v942_v49 = vmax.f32 %v938_v54, %v1351_v0 }
  0x70   : > { %v946_v3 = vmax.f32 %v941_v55, %v1352_v58  ;;  %v909_v52 = vrot.slane %v902_v9, 2 }
  0x71   : > { %v906_v22 = vmax.f32 %v901_v36, %v904_v59  ;;  %v947_v5 = vmax.f32 %v942_v49, %v1353_v62 }
  0x72   : > { %v951_v26 = vmax.f32 %v946_v3, %v1354_v63  ;;  %v910_v43 = vsel %vm195_vm0, %v908_v60, %v909_v52 }
  0x73   : > { %v912_v44 = vmax.f32 %v906_v22, %v910_v43  ;;  %v952_v57 = vmax.f32 %v947_v5, %v1355_v4 }
  0x74   : > { %v954_v11 = vrot.slane %v951_v26, 1  ;;  %v958_v13 = vrot.slane %v951_v26, 2 }
  0x75   : > { %1337 = vst.msk [vmem:[%s1514_s17 + $0x70] sm:$0x7f] %vm201_vm1, %v912_v44  ;;  %v959_v15 = vrot.slane %v952_v57, 2 }
  0x76   : > { %v956_v14 = vmax.f32 %v951_v26, %v954_v11 }
  0x77   : > { %v960_v17 = vsel %vm195_vm0, %v958_v13, %v959_v15 }
  0x78   : > { %v962_v18 = vmax.f32 %v956_v14, %v960_v17 }
  0x7a   : > { %1356 = vst.msk [vmem:[%s1514_s17 + $0x78] sm:$0x7f] %vm201_vm1, %v962_v18 }
  0x7b PF: > { %s11_s8 = sadd.s32 1, %s1407_s8   ;;  %s1856_s6 = smov %s1403_s7 }
  0x7c   : > { %p8_p5 = scmp.ge.s32.totalorder %s11_s8, 4   ;;  %s1857_s7 = smov %s1859_s9 }
  0x7e   :  { %10 = sbr.rel (!%p8_p5) target bundleno = 2 (0x2), region = 149 }

// kernel: inception_d_forward.7
= control target key start
LH: loop header
LB: loop body
LE: loop exit
PB: predicated region body
PF: predicated region fallthrough
CT: control target
= control target key end

     0   :  { %s2754_s12 = smov 0   ;;  %s2756_s13 = smov 0   ;;  %s3660_s0 = inlined_call_operand.vmem [shape: f32[1458,4], index: 0, kind: input, shape index: {}]   ;;  %s3661_s1 = inlined_call_operand.vmem [shape: bf16[4,192], index: 1, kind: input, shape index: {}]   ;;  %s3662_s2 = inlined_call_operand.vmem [shape: f32[1,192], index: 2, kind: input, shape index: {}]   ;;  %s3663_s3 = inlined_call_operand.vmem [shape: bf16[1458,192], index: 3, kind: output, shape index: {}]  }
   0x1   :  { %s2758_s14 = smov 0  }
   0x2 LB: > { %s2767_s15 = sadd.s32 4294967295, %s2699_s14   ;;  %s2769_s16 = sadd.s32 1, %s2699_s14   ;;  %s2699_s14 = sphi %s2758_s14, %s3674_s14   ;;  %s2695_s13 = sphi %s2756_s13, %s3673_s13   ;;  %s2691_s12 = sphi %s2754_s12, %s3672_s12  }
   0x3   : > { %s85_s17 = ssub.s32 %s2699_s14, %s2769_s16  ;;  %s88_s18 = sadd.s32 1, %s2695_s13 }
   0x4   : > { %p86_p0 = scmp.eq.s32.totalorder %s85_s17, 0  ;;  %p98_p1 = scmp.ne.s32.totalorder %s2695_s13, %s2691_s12 }
   0x5   : > { %p99_p2 = scmp.eq.s32.totalorder %s2767_s15, 1  ;;  %p2296_p3 = scmp.ge.s32.totalorder %s2699_s14, 1 }
   0x6   : > { %s2777_s19 = scalar_select %p86_p0, %s2695_s13, %s88_s18  }
   0x7   : > { %p2779_p4 = por %p99_p2, %p98_p1  ;;  %p146_p5 = scmp.lt.s32.totalorder %s2699_s14, 3 }
   0x9   : > { %p147_p6 = pnand %p2296_p3, %p146_p5 }
   0xa   : > { %v2298_v0 = vld.sshfl [vmem:[%s3661_s1] sm:$0x33 pattern:$0x76325410] (!%p147_p6)  ;;  %vm493_vm0 = vcmask (!%p147_p6), 1041408   ;;  %v2733_v3 = vmov (!%p147_p6), 0  }
   0xb   : > { %150 = sbr.rel (%p147_p6) target bundleno = 496 (0x1f0), region = 32  ;;  %v353_v1 = vcombine.high (!%p147_p6), %v2298_v0, %v2298_v0  ;;  %v495_v2 = vsel (!%p147_p6), %vm493_vm0, %v2298_v0, 0  ;;  %532 = vmatprep.mubr.bf16.mxu0 (!%p147_p6), %v2733_v3  ;;  %762 = vmatprep.mubr.bf16.mxu1 (!%p147_p6), %v2733_v3  ;;  %vm354_vm1 = vcmask (!%p147_p6), 31744   ;;  %s170_s4 = sand.u32 (!%p147_p6), 1, %s2691_s12   ;;  %vm1729_vm2 = vcmask (!%p147_p6), 1043456  }
   0xc   : > { %s2789_s23 = smul.u32 (!%p147_p6), 92, %s2767_s15  ;;  %vm1730_vm3 = vcmask (!%p147_p6), 523268  }
   0xd   : > { %2299 = vmatprep.subr.msk.bf16.mxu0 (!%p147_p6), %vm493_vm0, %v353_v1  ;;  %2553 = vmatprep.subr.msk.bf16.mxu1 (!%p147_p6), %vm493_vm0, %v353_v1  ;;  %s2555_s5 = smul.u32 (!%p147_p6), 736, %s170_s4  ;;  %vm2995_vm4 = vmor (!%p147_p6), %vm1730_vm3, %vm1729_vm2 }
   0xe   : > { %p178_p7 = scmp.lt.s32.totalorder (!%p147_p6), %s2789_s23, 182  ;;  %501 = vmatpush1.bf16.msra.mxu0 (!%p147_p6), %v495_v2  ;;  %2554 = vmatpush1.bf16.msra.mxu1 (!%p147_p6), %v495_v2 }
   0xf   : > { %s3000_s6 = scalar_lea.vmem (!%p147_p6), [#allocation2], %s2555_s5  }
  0x12   : > { %s179_s24 = scalar_select %p178_p7, %s2789_s23, 182 }
  0x13   : > { %s1832_s7 = ssub.s32 (%p2779_p4), 183, %s2789_s23  ;;  %s2552_s8 = smul.u32 (%p2779_p4), 736, %s2767_s15 }
  0x14   : > { %s2297_s25 = sshll.u32 %s179_s24, 3  ;;  %p1833_p8 = scmp.lt.s32.totalorder (%p2779_p4), %s1832_s7, 92 }
  0x15   : > { %s2796_s28 = scalar_lea.vmem %s3660_s0, %s2297_s25  ;;  %s3461_s11 = scalar_lea.vmem (%p2779_p4), %s3663_s3, %s2552_s8  }
  0x16   : > { %v194_v4 = vld [vmem:[%s2796_s28] sm:$0xff]  ;;  %v195_v5 = vld [vmem:[%s2796_s28 + $0x8] sm:$0xff]  ;;  %v240_v6 = vld [vmem:[%s2796_s28 + $0x170] sm:$0xff] }
  0x17   : > { %v286_v7 = vpack.c.bf16 %v195_v5, %v194_v4  ;;  %v241_v8 = vld [vmem:[%s2796_s28 + $0x178] sm:$0xff]  ;;  %v196_v10 = vld [vmem:[%s2796_s28 + $0x10] sm:$0xff]  ;;  %v242_v12 = vld [vmem:[%s2796_s28 + $0x180] sm:$0xff] }
  0x18   : > { %v309_v9 = vpack.c.bf16 %v241_v8, %v240_v6  ;;  %v197_v11 = vld [vmem:[%s2796_s28 + $0x18] sm:$0xff]  ;;  %v243_v13 = vld [vmem:[%s2796_s28 + $0x188] sm:$0xff]  ;;  %v198_v16 = vld [vmem:[%s2796_s28 + $0x20] sm:$0xff] }
  0x19   : > { %2300 = vmatmul.mubr.msk.bf16.vlgmr.msra.gmra.mrb[0].mxu0 %vm354_vm1, %v286_v7  ;;  %v287_v14 = vpack.c.bf16 %v197_v11, %v196_v10  ;;  %v310_v15 = vpack.c.bf16 %v243_v13, %v242_v12  ;;  %v199_v17 = vld [vmem:[%s2796_s28 + $0x28] sm:$0xff]  ;;  %v244_v18 = vld [vmem:[%s2796_s28 + $0x190] sm:$0xff]  ;;  %v245_v19 = vld [vmem:[%s2796_s28 + $0x198] sm:$0xff] }
  0x1a   : > { %2323 = vmatmul.mubr.msk.bf16.vlgmr.msra.gmra.mrb[0].mxu1 %vm354_vm1, %v309_v9  ;;  %542 = vmatprep.mubr.bf16.mxu0 %v2733_v3  ;;  %v288_v20 = vpack.c.bf16 %v199_v17, %v198_v16  ;;  %v311_v21 = vpack.c.bf16 %v245_v19, %v244_v18  ;;  %v200_v22 = vld [vmem:[%s2796_s28 + $0x30] sm:$0xff]  ;;  %v201_v23 = vld [vmem:[%s2796_s28 + $0x38] sm:$0xff]  ;;  %v246_v24 = vld [vmem:[%s2796_s28 + $0x1a0] sm:$0xff] }
  0x1b   : > { %772 = vmatprep.mubr.bf16.mxu1 %v2733_v3  ;;  %v247_v25 = vld [vmem:[%s2796_s28 + $0x1a8] sm:$0xff]  ;;  %v289_v26 = vpack.c.bf16 %v201_v23, %v200_v22  ;;  %v202_v28 = vld [vmem:[%s2796_s28 + $0x40] sm:$0xff]  ;;  %v248_v30 = vld [vmem:[%s2796_s28 + $0x1b0] sm:$0xff] }
  0x1c   : > { %v312_v27 = vpack.c.bf16 %v247_v25, %v246_v24  ;;  %v203_v29 = vld [vmem:[%s2796_s28 + $0x48] sm:$0xff]  ;;  %v249_v31 = vld [vmem:[%s2796_s28 + $0x1b8] sm:$0xff]  ;;  %v204_v34 = vld [vmem:[%s2796_s28 + $0x50] sm:$0xff] }
  0x1d   : > { %v290_v32 = vpack.c.bf16 %v203_v29, %v202_v28  ;;  %v313_v33 = vpack.c.bf16 %v249_v31, %v248_v30  ;;  %v205_v35 = vld [vmem:[%s2796_s28 + $0x58] sm:$0xff]  ;;  %v250_v36 = vld [vmem:[%s2796_s28 + $0x1c0] sm:$0xff]  ;;  %v251_v37 = vld [vmem:[%s2796_s28 + $0x1c8] sm:$0xff] }
  0x1e   : > { %v291_v38 = vpack.c.bf16 %v205_v35, %v204_v34  ;;  %v314_v39 = vpack.c.bf16 %v251_v37, %v250_v36  ;;  %v206_v40 = vld [vmem:[%s2796_s28 + $0x60] sm:$0xff]  ;;  %v207_v41 = vld [vmem:[%s2796_s28 + $0x68] sm:$0xff]  ;;  %v252_v42 = vld [vmem:[%s2796_s28 + $0x1d0] sm:$0xff] }
  0x1f   : > { %v253_v43 = vld [vmem:[%s2796_s28 + $0x1d8] sm:$0xff]  ;;  %v292_v44 = vpack.c.bf16 %v207_v41, %v206_v40  ;;  %v208_v46 = vld [vmem:[%s2796_s28 + $0x70] sm:$0xff]  ;;  %v254_v48 = vld [vmem:[%s2796_s28 + $0x1e0] sm:$0xff] }
  0x20   : > { %v315_v45 = vpack.c.bf16 %v253_v43, %v252_v42  ;;  %v209_v47 = vld [vmem:[%s2796_s28 + $0x78] sm:$0xff]  ;;  %v255_v49 = vld [vmem:[%s2796_s28 + $0x1e8] sm:$0xff]  ;;  %v210_v52 = vld [vmem:[%s2796_s28 + $0x80] sm:$0xff] }
  0x21   : > { %2301 = vmatmul.mubr.msk.bf16.gmra.mrb[4].mxu0 %vm354_vm1, %v287_v14  ;;  %v293_v50 = vpack.c.bf16 %v209_v47, %v208_v46  ;;  %v316_v51 = vpack.c.bf16 %v255_v49, %v254_v48  ;;  %v211_v53 = vld [vmem:[%s2796_s28 + $0x88] sm:$0xff]  ;;  %v256_v54 = vld [vmem:[%s2796_s28 + $0x1f0] sm:$0xff]  ;;  %v257_v55 = vld [vmem:[%s2796_s28 + $0x1f8] sm:$0xff] }
  0x22   : > { %2324 = vmatmul.mubr.msk.bf16.gmra.mrb[4].mxu1 %vm354_vm1, %v310_v15  ;;  %552 = vmatprep.mubr.bf16.mxu0 %v2733_v3  ;;  %v294_v56 = vpack.c.bf16 %v211_v53, %v210_v52  ;;  %v317_v57 = vpack.c.bf16 %v257_v55, %v256_v54  ;;  %v212_v58 = vld [vmem:[%s2796_s28 + $0x90] sm:$0xff]  ;;  %v213_v59 = vld [vmem:[%s2796_s28 + $0x98] sm:$0xff]  ;;  %v258_v60 = vld [vmem:[%s2796_s28 + $0x200] sm:$0xff] }
  0x23   : > { %782 = vmatprep.mubr.bf16.mxu1 %v2733_v3  ;;  %v259_v61 = vld [vmem:[%s2796_s28 + $0x208] sm:$0xff]  ;;  %v295_v62 = vpack.c.bf16 %v213_v59, %v212_v58  ;;  %v214_v0 = vld [vmem:[%s2796_s28 + $0xa0] sm:$0xff]  ;;  %v260_v2 = vld [vmem:[%s2796_s28 + $0x210] sm:$0xff] }
  0x24   : > { %v318_v63 = vpack.c.bf16 %v259_v61, %v258_v60  ;;  %v215_v1 = vld [vmem:[%s2796_s28 + $0xa8] sm:$0xff]  ;;  %v261_v4 = vld [vmem:[%s2796_s28 + $0x218] sm:$0xff]  ;;  %v216_v7 = vld [vmem:[%s2796_s28 + $0xb0] sm:$0xff] }
  0x25   : > { %v296_v5 = vpack.c.bf16 %v215_v1, %v214_v0  ;;  %v319_v6 = vpack.c.bf16 %v261_v4, %v260_v2  ;;  %v217_v8 = vld [vmem:[%s2796_s28 + $0xb8] sm:$0xff]  ;;  %v262_v9 = vld [vmem:[%s2796_s28 + $0x220] sm:$0xff]  ;;  %v263_v10 = vld [vmem:[%s2796_s28 + $0x228] sm:$0xff] }
  0x26   : > { %v297_v11 = vpack.c.bf16 %v217_v8, %v216_v7  ;;  %v320_v12 = vpack.c.bf16 %v263_v10, %v262_v9  ;;  %v218_v13 = vld [vmem:[%s2796_s28 + $0xc0] sm:$0xff]  ;;  %v219_v14 = vld [vmem:[%s2796_s28 + $0xc8] sm:$0xff]  ;;  %v264_v15 = vld [vmem:[%s2796_s28 + $0x230] sm:$0xff] }
  0x27   : > { %v265_v16 = vld [vmem:[%s2796_s28 + $0x238] sm:$0xff]  ;;  %v298_v17 = vpack.c.bf16 %v219_v14, %v218_v13  ;;  %v220_v19 = vld [vmem:[%s2796_s28 + $0xd0] sm:$0xff]  ;;  %v267_v22 = vld [vmem:[%s2796_s28 + $0x248] sm:$0xff] }
  0x28   : > { %v321_v18 = vpack.c.bf16 %v265_v16, %v264_v15  ;;  %v222_v25 = vld [vmem:[%s2796_s28 + $0xe0] sm:$0xff]  ;;  %v269_v28 = vld [vmem:[%s2796_s28 + $0x258] sm:$0xff]  ;;  %v224_v31 = vld [vmem:[%s2796_s28 + $0xf0] sm:$0xff]  ;;  %v335_v16 = vlaneseq }
  0x29   : > { %2302 = vmatmul.mubr.msk.bf16.gmra.mrb[8].mxu0 %vm354_vm1, %v288_v20  ;;  %v221_v20 = vld [vmem:[%s2796_s28 + $0xd8] sm:$0xff]  ;;  %v271_v34 = vld [vmem:[%s2796_s28 + $0x268] sm:$0xff]  ;;  %v226_v37 = vld [vmem:[%s2796_s28 + $0x100] sm:$0xff] }
  0x2a   : > { %2325 = vmatmul.mubr.msk.bf16.gmra.mrb[8].mxu1 %vm354_vm1, %v311_v21  ;;  %562 = vmatprep.mubr.bf16.mxu0 %v2733_v3  ;;  %v266_v21 = vld [vmem:[%s2796_s28 + $0x240] sm:$0xff]  ;;  %v299_v23 = vpack.c.bf16 %v221_v20, %v220_v19  ;;  %v273_v40 = vld [vmem:[%s2796_s28 + $0x278] sm:$0xff]  ;;  %v228_v43 = vld [vmem:[%s2796_s28 + $0x110] sm:$0xff] }
  0x2b   : > { %792 = vmatprep.mubr.bf16.mxu1 %v2733_v3  ;;  %v322_v24 = vpack.c.bf16 %v267_v22, %v266_v21  ;;  %v275_v46 = vld [vmem:[%s2796_s28 + $0x288] sm:$0xff]  ;;  %v230_v49 = vld [vmem:[%s2796_s28 + $0x120] sm:$0xff]  ;;  %v277_v52 = vld [vmem:[%s2796_s28 + $0x298] sm:$0xff] }
  0x2c   : > { %v232_v55 = vld [vmem:[%s2796_s28 + $0x130] sm:$0xff]  ;;  %v279_v58 = vld [vmem:[%s2796_s28 + $0x2a8] sm:$0xff]  ;;  %v234_v61 = vld [vmem:[%s2796_s28 + $0x140] sm:$0xff] }
  0x2d   : > { %v281_v0 = vld [vmem:[%s2796_s28 + $0x2b8] sm:$0xff]  ;;  %v236_v4 = vld [vmem:[%s2796_s28 + $0x150] sm:$0xff]  ;;  %v283_v7 = vld [vmem:[%s2796_s28 + $0x2c8] sm:$0xff] }
  0x2e   : > { %v238_v10 = vld [vmem:[%s2796_s28 + $0x160] sm:$0xff]  ;;  %v285_v13 = vld [vmem:[%s2796_s28 + $0x2d8] sm:$0xff] }
  0x2f   : > { %v333_v19 = vld [vmem:[%s3662_s2] sm:$0x3] }
  0x31   : > { %2303 = vmatmul.mubr.msk.bf16.gmra.mrb[12].mxu0 %vm354_vm1, %v289_v26  ;;  %v223_v26 = vld [vmem:[%s2796_s28 + $0xe8] sm:$0xff] }
  0x32   : > { %2326 = vmatmul.mubr.msk.bf16.gmra.mrb[12].mxu1 %vm354_vm1, %v312_v27  ;;  %572 = vmatprep.mubr.bf16.mxu0 %v2733_v3  ;;  %v268_v27 = vld [vmem:[%s2796_s28 + $0x250] sm:$0xff]  ;;  %v300_v29 = vpack.c.bf16 %v223_v26, %v222_v25 }
  0x33   : > { %802 = vmatprep.mubr.bf16.mxu1 %v2733_v3  ;;  %v323_v30 = vpack.c.bf16 %v269_v28, %v268_v27 }
  0x39   : > { %2304 = vmatmul.mubr.msk.bf16.gmra.mrb[16].mxu0 %vm354_vm1, %v290_v32  ;;  %v225_v32 = vld [vmem:[%s2796_s28 + $0xf8] sm:$0xff] }
  0x3a   : > { %2327 = vmatmul.mubr.msk.bf16.gmra.mrb[16].mxu1 %vm354_vm1, %v313_v33  ;;  %582 = vmatprep.mubr.bf16.mxu0 %v2733_v3  ;;  %v270_v33 = vld [vmem:[%s2796_s28 + $0x260] sm:$0xff]  ;;  %v301_v35 = vpack.c.bf16 %v225_v32, %v224_v31 }
  0x3b   : > { %812 = vmatprep.mubr.bf16.mxu1 %v2733_v3  ;;  %v324_v36 = vpack.c.bf16 %v271_v34, %v270_v33 }
  0x41   : > { %2305 = vmatmul.mubr.msk.bf16.gmra.mrb[20].mxu0 %vm354_vm1, %v291_v38  ;;  %v227_v38 = vld [vmem:[%s2796_s28 + $0x108] sm:$0xff] }
  0x42   : > { %2328 = vmatmul.mubr.msk.bf16.gmra.mrb[20].mxu1 %vm354_vm1, %v314_v39  ;;  %592 = vmatprep.mubr.bf16.mxu0 %v2733_v3  ;;  %v272_v39 = vld [vmem:[%s2796_s28 + $0x270] sm:$0xff]  ;;  %v302_v41 = vpack.c.bf16 %v227_v38, %v226_v37 }
  0x43   : > { %822 = vmatprep.mubr.bf16.mxu1 %v2733_v3  ;;  %v325_v42 = vpack.c.bf16 %v273_v40, %v272_v39 }
  0x49   : > { %2306 = vmatmul.mubr.msk.bf16.gmra.mrb[24].mxu0 %vm354_vm1, %v292_v44  ;;  %v229_v44 = vld [vmem:[%s2796_s28 + $0x118] sm:$0xff] }
  0x4a   : > { %2329 = vmatmul.mubr.msk.bf16.gmra.mrb[24].mxu1 %vm354_vm1, %v315_v45  ;;  %602 = vmatprep.mubr.bf16.mxu0 %v2733_v3  ;;  %v274_v45 = vld [vmem:[%s2796_s28 + $0x280] sm:$0xff]  ;;  %v303_v47 = vpack.c.bf16 %v229_v44, %v228_v43 }
  0x4b   : > { %832 = vmatprep.mubr.bf16.mxu1 %v2733_v3  ;;  %v326_v48 = vpack.c.bf16 %v275_v46, %v274_v45 }
  0x51   : > { %2307 = vmatmul.mubr.msk.bf16.gmra.mrb[28].mxu0 %vm354_vm1, %v293_v50  ;;  %v231_v50 = vld [vmem:[%s2796_s28 + $0x128] sm:$0xff] }
  0x52   : > { %2330 = vmatmul.mubr.msk.bf16.gmra.mrb[28].mxu1 %vm354_vm1, %v316_v51  ;;  %612 = vmatprep.mubr.bf16.mxu0 %v2733_v3  ;;  %v276_v51 = vld [vmem:[%s2796_s28 + $0x290] sm:$0xff]  ;;  %v304_v53 = vpack.c.bf16 %v231_v50, %v230_v49 }
  0x53   : > { %842 = vmatprep.mubr.bf16.mxu1 %v2733_v3  ;;  %v327_v54 = vpack.c.bf16 %v277_v52, %v276_v51 }
  0x59   : > { %2308 = vmatmul.mubr.msk.bf16.gmra.mrb[32].mxu0 %vm354_vm1, %v294_v56  ;;  %v233_v56 = vld [vmem:[%s2796_s28 + $0x138] sm:$0xff] }
  0x5a   : > { %2331 = vmatmul.mubr.msk.bf16.gmra.mrb[32].mxu1 %vm354_vm1, %v317_v57  ;;  %622 = vmatprep.mubr.bf16.mxu0 %v2733_v3  ;;  %v278_v57 = vld [vmem:[%s2796_s28 + $0x2a0] sm:$0xff]  ;;  %v305_v59 = vpack.c.bf16 %v233_v56, %v232_v55 }
  0x5b   : > { %852 = vmatprep.mubr.bf16.mxu1 %v2733_v3  ;;  %v328_v60 = vpack.c.bf16 %v279_v58, %v278_v57 }
  0x61   : > { %2309 = vmatmul.mubr.msk.bf16.gmra.mrb[36].mxu0 %vm354_vm1, %v295_v62  ;;  %v235_v62 = vld [vmem:[%s2796_s28 + $0x148] sm:$0xff] }
  0x62   : > { %2332 = vmatmul.mubr.msk.bf16.gmra.mrb[36].mxu1 %vm354_vm1, %v318_v63  ;;  %632 = vmatprep.mubr.bf16.mxu0 %v2733_v3  ;;  %v280_v63 = vld [vmem:[%s2796_s28 + $0x2b0] sm:$0xff]  ;;  %v306_v1 = vpack.c.bf16 %v235_v62, %v234_v61 }
  0x63   : > { %862 = vmatprep.mubr.bf16.mxu1 %v2733_v3  ;;  %v329_v2 = vpack.c.bf16 %v281_v0, %v280_v63 }
  0x69   : > { %2310 = vmatmul.mubr.msk.bf16.gmra.mrb[40].mxu0 %vm354_vm1, %v296_v5  ;;  %v237_v5 = vld [vmem:[%s2796_s28 + $0x158] sm:$0xff] }
  0x6a   : > { %2333 = vmatmul.mubr.msk.bf16.gmra.mrb[40].mxu1 %vm354_vm1, %v319_v6  ;;  %642 = vmatprep.mubr.bf16.mxu0 %v2733_v3  ;;  %v282_v6 = vld [vmem:[%s2796_s28 + $0x2c0] sm:$0xff]  ;;  %v307_v8 = vpack.c.bf16 %v237_v5, %v236_v4 }
  0x6b   : > { %872 = vmatprep.mubr.bf16.mxu1 %v2733_v3  ;;  %v330_v9 = vpack.c.bf16 %v283_v7, %v282_v6 }
  0x71   : > { %2311 = vmatmul.mubr.msk.bf16.gmra.mrb[44].mxu0 %vm354_vm1, %v297_v11  ;;  %v239_v11 = vld [vmem:[%s2796_s28 + $0x168] sm:$0xff] }
  0x72   : > { %2334 = vmatmul.mubr.msk.bf16.gmra.mrb[44].mxu1 %vm354_vm1, %v320_v12  ;;  %652 = vmatprep.mubr.bf16.mxu0 %v2733_v3  ;;  %v284_v12 = vld [vmem:[%s2796_s28 + $0x2d0] sm:$0xff]  ;;  %v308_v14 = vpack.c.bf16 %v239_v11, %v238_v10 }
  0x73   : > { %882 = vmatprep.mubr.bf16.mxu1 %v2733_v3  ;;  %v331_v15 = vpack.c.bf16 %v285_v13, %v284_v12 }
  0x79   : > { %2312 = vmatmul.mubr.msk.bf16.gmra.mrb[48].mxu0 %vm354_vm1, %v298_v17  ;;  %v336_v17 = vshrl.u32 %v335_v16, 7 }
  0x7a   : > { %2335 = vmatmul.mubr.msk.bf16.gmra.mrb[48].mxu1 %vm354_vm1, %v321_v18  ;;  %662 = vmatprep.mubr.bf16.mxu0 %v2733_v3 }
  0x7b   : > { %892 = vmatprep.mubr.bf16.mxu1 %v2733_v3  ;;  %v337_v18 = vsub.s32 0, %v336_v17  ;;  %v341_v20 = vsub.s32 1, %v336_v17 }
  0x7d   : > { %v2983_v21 = vrot.slane %v333_v19, %v337_v18 }
  0x81   : > { %2313 = vmatmul.mubr.msk.bf16.gmra.mrb[52].mxu0 %vm354_vm1, %v299_v23 }
  0x82   : > { %2336 = vmatmul.mubr.msk.bf16.gmra.mrb[52].mxu1 %vm354_vm1, %v322_v24  ;;  %672 = vmatprep.mubr.bf16.mxu0 %v2733_v3 }
  0x83   : > { %902 = vmatprep.mubr.bf16.mxu1 %v2733_v3 }
  0x89   : > { %2314 = vmatmul.mubr.msk.bf16.gmra.mrb[56].mxu0 %vm354_vm1, %v300_v29 }
  0x8a   : > { %2337 = vmatmul.mubr.msk.bf16.gmra.mrb[56].mxu1 %vm354_vm1, %v323_v30  ;;  %682 = vmatprep.mubr.bf16.mxu0 %v2733_v3 }
  0x8b   : > { %912 = vmatprep.mubr.bf16.mxu1 %v2733_v3 }
  0x91   : > { %2315 = vmatmul.mubr.msk.bf16.gmra.mrb[60].mxu0 %vm354_vm1, %v301_v35 }
  0x92   : > { %2338 = vmatmul.mubr.msk.bf16.gmra.mrb[60].mxu1 %vm354_vm1, %v324_v36  ;;  %692 = vmatprep.mubr.bf16.mxu0 %v2733_v3 }
  0x93   : > { %922 = vmatprep.mubr.bf16.mxu1 %v2733_v3 }
  0x99   : > { %2316 = vmatmul.mubr.msk.bf16.gmra.mrb[64].mxu0 %vm354_vm1, %v302_v41 }
  0x9a   : > { %2339 = vmatmul.mubr.msk.bf16.gmra.mrb[64].mxu1 %vm354_vm1, %v325_v42  ;;  %702 = vmatprep.mubr.bf16.mxu0 %v2733_v3 }
  0x9b   : > { %932 = vmatprep.mubr.bf16.mxu1 %v2733_v3 }
  0xa1   : > { %2317 = vmatmul.mubr.msk.bf16.gmra.mrb[68].mxu0 %vm354_vm1, %v303_v47 }
  0xa2   : > { %2340 = vmatmul.mubr.msk.bf16.gmra.mrb[68].mxu1 %vm354_vm1, %v326_v48  ;;  %712 = vmatprep.mubr.bf16.mxu0 %v2733_v3 }
  0xa3   : > { %942 = vmatprep.mubr.bf16.mxu1 %v2733_v3 }
  0xa9   : > { %2318 = vmatmul.mubr.msk.bf16.gmra.mrb[72].mxu0 %vm354_vm1, %v304_v53 }
  0xaa   : > { %2341 = vmatmul.mubr.msk.bf16.gmra.mrb[72].mxu1 %vm354_vm1, %v327_v54  ;;  %722 = vmatprep.mubr.bf16.mxu0 %v2733_v3 }
  0xab   : > { %952 = vmatprep.mubr.bf16.mxu1 %v2733_v3 }
  0xb1   : > { %2319 = vmatmul.mubr.msk.bf16.gmra.mrb[76].mxu0 %vm354_vm1, %v305_v59 }
  0xb2   : > { %2342 = vmatmul.mubr.msk.bf16.gmra.mrb[76].mxu1 %vm354_vm1, %v328_v60  ;;  %732 = vmatprep.mubr.bf16.mxu0 %v2733_v3 }
  0xb3   : > { %962 = vmatprep.mubr.bf16.mxu1 %v2733_v3 }
  0xb9   : > { %2320 = vmatmul.mubr.msk.bf16.gmra.mrb[80].mxu0 %vm354_vm1, %v306_v1 }
  0xba   : > { %2343 = vmatmul.mubr.msk.bf16.gmra.mrb[80].mxu1 %vm354_vm1, %v329_v2  ;;  %742 = vmatprep.mubr.bf16.mxu0 %v2733_v3 }
  0xbb   : > { %972 = vmatprep.mubr.bf16.mxu1 %v2733_v3 }
  0xc1   : > { %2321 = vmatmul.mubr.msk.bf16.gmra.mrb[84].mxu0 %vm354_vm1, %v307_v8 }
  0xc2   : > { %2344 = vmatmul.mubr.msk.bf16.gmra.mrb[84].mxu1 %vm354_vm1, %v330_v9  ;;  %752 = vmatprep.mubr.bf16.mxu0 %v2733_v3 }
  0xc3   : > { %982 = vmatprep.mubr.bf16.mxu1 %v2733_v3  ;;  %v2986_v3 = vrot.slane %v333_v19, %v341_v20 }
  0xc9   : > { %2322 = vmatmul.mubr.msk.bf16.gmra.mrb[88].mxu0 %vm354_vm1, %v308_v14 }
  0xca   : > { %2345 = vmatmul.mubr.msk.bf16.gmra.mrb[88].mxu1 %vm354_vm1, %v331_v15 }
  0xec   : > { %v534_v22 = vpop.f32.mrb[0].mxu0 }
  0xed   : > { %v535_v23 = vadd.f32 %v534_v22, %v2983_v21  ;;  %v764_v24 = vpop.f32.mrb[0].mxu1  ;;  %v536_v25 = vpop.f32.mrb[1].mxu0 }
  0xee   : > { %v765_v26 = vadd.f32 %v764_v24, %v2983_v21  ;;  %v537_v27 = vadd.f32 %v536_v25, %v2986_v3  ;;  %v766_v28 = vpop.f32.mrb[1].mxu1  ;;  %v538_v29 = vpop.f32.mrb[2].mxu0 }
  0xef   : > { %v993_v30 = vmax.f32 %v535_v23, 0.0  ;;  %v767_v31 = vadd.f32 %v766_v28, %v2986_v3  ;;  %v539_v32 = vadd.f32 %v538_v29, %v2983_v21  ;;  %v768_v33 = vpop.f32.mrb[2].mxu1  ;;  %v540_v34 = vpop.f32.mrb[3].mxu0 }
  0xf0   : > { %v1085_v35 = vmax.f32 %v765_v26, 0.0  ;;  %v994_v36 = vmax.f32 %v537_v27, 0.0  ;;  %v769_v37 = vadd.f32 %v768_v33, %v2983_v21  ;;  %v541_v38 = vadd.f32 %v540_v34, %v2986_v3  ;;  %v770_v39 = vpop.f32.mrb[3].mxu1 }
  0xf1   : > { %v1086_v41 = vmax.f32 %v767_v31, 0.0  ;;  %v995_v42 = vmax.f32 %v539_v32, 0.0  ;;  %v771_v43 = vadd.f32 %v770_v39, %v2986_v3 }
  0xf2   : > { %v2455_v44 = vpack.c.bf16 %v994_v36, %v993_v30  ;;  %v1087_v45 = vmax.f32 %v769_v37, 0.0  ;;  %v996_v46 = vmax.f32 %v541_v38, 0.0 }
  0xf3   : > { %v2501_v47 = vpack.c.bf16 %v1086_v41, %v1085_v35  ;;  %v1088_v48 = vmax.f32 %v771_v43, 0.0 }
  0xf4   : > { %1732 = vst.msk [vmem:[%s3000_s6] sm:$0xff] %vm2995_vm4, %v2455_v44  ;;  %v2456_v49 = vpack.c.bf16 %v996_v46, %v995_v42  ;;  %v544_v50 = vpop.f32.mrb[4].mxu0 }
  0xf5   : > { %1778 = vst.msk [vmem:[%s3000_s6 + $0x170] sm:$0xff] %vm2995_vm4, %v2501_v47  ;;  %v2502_v51 = vpack.c.bf16 %v1088_v48, %v1087_v45  ;;  %v545_v52 = vadd.f32 %v544_v50, %v2983_v21  ;;  %v774_v53 = vpop.f32.mrb[4].mxu1  ;;  %v546_v54 = vpop.f32.mrb[5].mxu0 }
  0xf6   : > { %1733 = vst.msk [vmem:[%s3000_s6 + $0x8] sm:$0xff] %vm2995_vm4, %v2456_v49  ;;  %v775_v55 = vadd.f32 %v774_v53, %v2983_v21  ;;  %v547_v56 = vadd.f32 %v546_v54, %v2986_v3  ;;  %v776_v57 = vpop.f32.mrb[5].mxu1  ;;  %v548_v58 = vpop.f32.mrb[6].mxu0 }
  0xf7   : > { %1779 = vst.msk [vmem:[%s3000_s6 + $0x178] sm:$0xff] %vm2995_vm4, %v2502_v51  ;;  %v997_v59 = vmax.f32 %v545_v52, 0.0  ;;  %v777_v60 = vadd.f32 %v776_v57, %v2986_v3  ;;  %v549_v61 = vadd.f32 %v548_v58, %v2983_v21  ;;  %v778_v62 = vpop.f32.mrb[6].mxu1  ;;  %v550_v63 = vpop.f32.mrb[7].mxu0 }
  0xf8   : > { %v1089_v0 = vmax.f32 %v775_v55, 0.0  ;;  %v998_v1 = vmax.f32 %v547_v56, 0.0  ;;  %v779_v2 = vadd.f32 %v778_v62, %v2983_v21  ;;  %v551_v4 = vadd.f32 %v550_v63, %v2986_v3  ;;  %v780_v5 = vpop.f32.mrb[7].mxu1 }
  0xf9   : > { %v1090_v6 = vmax.f32 %v777_v60, 0.0  ;;  %v999_v7 = vmax.f32 %v549_v61, 0.0  ;;  %v781_v8 = vadd.f32 %v780_v5, %v2986_v3 }
  0xfa   : > { %v2457_v9 = vpack.c.bf16 %v998_v1, %v997_v59  ;;  %v1091_v10 = vmax.f32 %v779_v2, 0.0  ;;  %v1000_v11 = vmax.f32 %v551_v4, 0.0 }
  0xfb   : > { %v2503_v12 = vpack.c.bf16 %v1090_v6, %v1089_v0  ;;  %v1092_v13 = vmax.f32 %v781_v8, 0.0 }
  0xfc   : > { %1734 = vst.msk [vmem:[%s3000_s6 + $0x10] sm:$0xff] %vm2995_vm4, %v2457_v9  ;;  %v2458_v14 = vpack.c.bf16 %v1000_v11, %v999_v7  ;;  %v554_v15 = vpop.f32.mrb[8].mxu0 }
  0xfd   : > { %1780 = vst.msk [vmem:[%s3000_s6 + $0x180] sm:$0xff] %vm2995_vm4, %v2503_v12  ;;  %v2504_v16 = vpack.c.bf16 %v1092_v13, %v1091_v10  ;;  %v555_v17 = vadd.f32 %v554_v15, %v2983_v21  ;;  %v784_v18 = vpop.f32.mrb[8].mxu1  ;;  %v556_v19 = vpop.f32.mrb[9].mxu0 }
  0xfe   : > { %1735 = vst.msk [vmem:[%s3000_s6 + $0x18] sm:$0xff] %vm2995_vm4, %v2458_v14  ;;  %v785_v20 = vadd.f32 %v784_v18, %v2983_v21  ;;  %v557_v22 = vadd.f32 %v556_v19, %v2986_v3  ;;  %v786_v23 = vpop.f32.mrb[9].mxu1  ;;  %v558_v24 = vpop.f32.mrb[10].mxu0 }
  0xff   : > { %1781 = vst.msk [vmem:[%s3000_s6 + $0x188] sm:$0xff] %vm2995_vm4, %v2504_v16  ;;  %v1001_v25 = vmax.f32 %v555_v17, 0.0  ;;  %v787_v26 = vadd.f32 %v786_v23, %v2986_v3  ;;  %v559_v27 = vadd.f32 %v558_v24, %v2983_v21  ;;  %v788_v28 = vpop.f32.mrb[10].mxu1  ;;  %v560_v29 = vpop.f32.mrb[11].mxu0 }
 0x100   : > { %v1093_v30 = vmax.f32 %v785_v20, 0.0  ;;  %v1002_v31 = vmax.f32 %v557_v22, 0.0  ;;  %v789_v32 = vadd.f32 %v788_v28, %v2983_v21  ;;  %v561_v33 = vadd.f32 %v560_v29, %v2986_v3  ;;  %v790_v34 = vpop.f32.mrb[11].mxu1 }
 0x101   : > { %v1094_v35 = vmax.f32 %v787_v26, 0.0  ;;  %v1003_v36 = vmax.f32 %v559_v27, 0.0  ;;  %v791_v37 = vadd.f32 %v790_v34, %v2986_v3 }
 0x102   : > { %v2459_v38 = vpack.c.bf16 %v1002_v31, %v1001_v25  ;;  %v1095_v39 = vmax.f32 %v789_v32, 0.0  ;;  %v1004_v41 = vmax.f32 %v561_v33, 0.0 }
 0x103   : > { %v2505_v42 = vpack.c.bf16 %v1094_v35, %v1093_v30  ;;  %v1096_v43 = vmax.f32 %v791_v37, 0.0 }
 0x104   : > { %1736 = vst.msk [vmem:[%s3000_s6 + $0x20] sm:$0xff] %vm2995_vm4, %v2459_v38  ;;  %v2460_v44 = vpack.c.bf16 %v1004_v41, %v1003_v36  ;;  %v564_v45 = vpop.f32.mrb[12].mxu0 }
 0x105   : > { %1782 = vst.msk [vmem:[%s3000_s6 + $0x190] sm:$0xff] %vm2995_vm4, %v2505_v42  ;;  %v2506_v46 = vpack.c.bf16 %v1096_v43, %v1095_v39  ;;  %v565_v47 = vadd.f32 %v564_v45, %v2983_v21  ;;  %v794_v48 = vpop.f32.mrb[12].mxu1  ;;  %v566_v49 = vpop.f32.mrb[13].mxu0 }
 0x106   : > { %1737 = vst.msk [vmem:[%s3000_s6 + $0x28] sm:$0xff] %vm2995_vm4, %v2460_v44  ;;  %v795_v50 = vadd.f32 %v794_v48, %v2983_v21  ;;  %v567_v51 = vadd.f32 %v566_v49, %v2986_v3  ;;  %v796_v52 = vpop.f32.mrb[13].mxu1  ;;  %v568_v53 = vpop.f32.mrb[14].mxu0 }
 0x107   : > { %1783 = vst.msk [vmem:[%s3000_s6 + $0x198] sm:$0xff] %vm2995_vm4, %v2506_v46  ;;  %v1005_v54 = vmax.f32 %v565_v47, 0.0  ;;  %v797_v55 = vadd.f32 %v796_v52, %v2986_v3  ;;  %v569_v56 = vadd.f32 %v568_v53, %v2983_v21  ;;  %v798_v57 = vpop.f32.mrb[14].mxu1  ;;  %v570_v58 = vpop.f32.mrb[15].mxu0 }
 0x108   : > { %v1097_v59 = vmax.f32 %v795_v50, 0.0  ;;  %v1006_v60 = vmax.f32 %v567_v51, 0.0  ;;  %v799_v61 = vadd.f32 %v798_v57, %v2983_v21  ;;  %v571_v62 = vadd.f32 %v570_v58, %v2986_v3  ;;  %v800_v63 = vpop.f32.mrb[15].mxu1 }
 0x109   : > { %v1098_v0 = vmax.f32 %v797_v55, 0.0  ;;  %v1007_v1 = vmax.f32 %v569_v56, 0.0  ;;  %v801_v2 = vadd.f32 %v800_v63, %v2986_v3 }
 0x10a   : > { %v2461_v4 = vpack.c.bf16 %v1006_v60, %v1005_v54  ;;  %v1099_v5 = vmax.f32 %v799_v61, 0.0  ;;  %v1008_v6 = vmax.f32 %v571_v62, 0.0 }
 0x10b   : > { %v2507_v7 = vpack.c.bf16 %v1098_v0, %v1097_v59  ;;  %v1100_v8 = vmax.f32 %v801_v2, 0.0 }
 0x10c   : > { %1738 = vst.msk [vmem:[%s3000_s6 + $0x30] sm:$0xff] %vm2995_vm4, %v2461_v4  ;;  %v2462_v9 = vpack.c.bf16 %v1008_v6, %v1007_v1  ;;  %v574_v10 = vpop.f32.mrb[16].mxu0 }
 0x10d   : > { %1784 = vst.msk [vmem:[%s3000_s6 + $0x1a0] sm:$0xff] %vm2995_vm4, %v2507_v7  ;;  %v2508_v11 = vpack.c.bf16 %v1100_v8, %v1099_v5  ;;  %v575_v12 = vadd.f32 %v574_v10, %v2983_v21  ;;  %v804_v13 = vpop.f32.mrb[16].mxu1  ;;  %v576_v14 = vpop.f32.mrb[17].mxu0 }
 0x10e   : > { %1739 = vst.msk [vmem:[%s3000_s6 + $0x38] sm:$0xff] %vm2995_vm4, %v2462_v9  ;;  %v805_v15 = vadd.f32 %v804_v13, %v2983_v21  ;;  %v577_v16 = vadd.f32 %v576_v14, %v2986_v3  ;;  %v806_v17 = vpop.f32.mrb[17].mxu1  ;;  %v578_v18 = vpop.f32.mrb[18].mxu0 }
 0x10f   : > { %1785 = vst.msk [vmem:[%s3000_s6 + $0x1a8] sm:$0xff] %vm2995_vm4, %v2508_v11  ;;  %v1009_v19 = vmax.f32 %v575_v12, 0.0  ;;  %v807_v20 = vadd.f32 %v806_v17, %v2986_v3  ;;  %v579_v22 = vadd.f32 %v578_v18, %v2983_v21  ;;  %v808_v23 = vpop.f32.mrb[18].mxu1  ;;  %v580_v24 = vpop.f32.mrb[19].mxu0 }
 0x110   : > { %v1101_v25 = vmax.f32 %v805_v15, 0.0  ;;  %v1010_v26 = vmax.f32 %v577_v16, 0.0  ;;  %v809_v27 = vadd.f32 %v808_v23, %v2983_v21  ;;  %v581_v28 = vadd.f32 %v580_v24, %v2986_v3  ;;  %v810_v29 = vpop.f32.mrb[19].mxu1 }
 0x111   : > { %v1102_v30 = vmax.f32 %v807_v20, 0.0  ;;  %v1011_v31 = vmax.f32 %v579_v22, 0.0  ;;  %v811_v32 = vadd.f32 %v810_v29, %v2986_v3 }
 0x112   : > { %v2463_v33 = vpack.c.bf16 %v1010_v26, %v1009_v19  ;;  %v1103_v34 = vmax.f32 %v809_v27, 0.0  ;;  %v1012_v35 = vmax.f32 %v581_v28, 0.0 }
 0x113   : > { %v2509_v36 = vpack.c.bf16 %v1102_v30, %v1101_v25  ;;  %v1104_v37 = vmax.f32 %v811_v32, 0.0 }
 0x114   : > { %1740 = vst.msk [vmem:[%s3000_s6 + $0x40] sm:$0xff] %vm2995_vm4, %v2463_v33  ;;  %v2464_v38 = vpack.c.bf16 %v1012_v35, %v1011_v31  ;;  %v584_v39 = vpop.f32.mrb[20].mxu0 }
 0x115   : > { %1786 = vst.msk [vmem:[%s3000_s6 + $0x1b0] sm:$0xff] %vm2995_vm4, %v2509_v36  ;;  %v2510_v41 = vpack.c.bf16 %v1104_v37, %v1103_v34  ;;  %v585_v42 = vadd.f32 %v584_v39, %v2983_v21  ;;  %v814_v43 = vpop.f32.mrb[20].mxu1  ;;  %v586_v44 = vpop.f32.mrb[21].mxu0 }
 0x116   : > { %1741 = vst.msk [vmem:[%s3000_s6 + $0x48] sm:$0xff] %vm2995_vm4, %v2464_v38  ;;  %v815_v45 = vadd.f32 %v814_v43, %v2983_v21  ;;  %v587_v46 = vadd.f32 %v586_v44, %v2986_v3  ;;  %v816_v47 = vpop.f32.mrb[21].mxu1  ;;  %v588_v48 = vpop.f32.mrb[22].mxu0 }
 0x117   : > { %1787 = vst.msk [vmem:[%s3000_s6 + $0x1b8] sm:$0xff] %vm2995_vm4, %v2510_v41  ;;  %v1013_v49 = vmax.f32 %v585_v42, 0.0  ;;  %v817_v50 = vadd.f32 %v816_v47, %v2986_v3  ;;  %v589_v51 = vadd.f32 %v588_v48, %v2983_v21  ;;  %v818_v52 = vpop.f32.mrb[22].mxu1  ;;  %v590_v53 = vpop.f32.mrb[23].mxu0 }
 0x118   : > { %v1105_v54 = vmax.f32 %v815_v45, 0.0  ;;  %v1014_v55 = vmax.f32 %v587_v46, 0.0  ;;  %v819_v56 = vadd.f32 %v818_v52, %v2983_v21  ;;  %v591_v57 = vadd.f32 %v590_v53, %v2986_v3  ;;  %v820_v58 = vpop.f32.mrb[23].mxu1 }
 0x119   : > { %v1106_v59 = vmax.f32 %v817_v50, 0.0  ;;  %v1015_v60 = vmax.f32 %v589_v51, 0.0  ;;  %v821_v61 = vadd.f32 %v820_v58, %v2986_v3 }
 0x11a   : > { %v2465_v62 = vpack.c.bf16 %v1014_v55, %v1013_v49  ;;  %v1107_v63 = vmax.f32 %v819_v56, 0.0  ;;  %v1016_v0 = vmax.f32 %v591_v57, 0.0 }
 0x11b   : > { %v2511_v1 = vpack.c.bf16 %v1106_v59, %v1105_v54  ;;  %v1108_v2 = vmax.f32 %v821_v61, 0.0 }
 0x11c   : > { %1742 = vst.msk [vmem:[%s3000_s6 + $0x50] sm:$0xff] %vm2995_vm4, %v2465_v62  ;;  %v2466_v4 = vpack.c.bf16 %v1016_v0, %v1015_v60  ;;  %v594_v5 = vpop.f32.mrb[24].mxu0 }
 0x11d   : > { %1788 = vst.msk [vmem:[%s3000_s6 + $0x1c0] sm:$0xff] %vm2995_vm4, %v2511_v1  ;;  %v2512_v6 = vpack.c.bf16 %v1108_v2, %v1107_v63  ;;  %v595_v7 = vadd.f32 %v594_v5, %v2983_v21  ;;  %v824_v8 = vpop.f32.mrb[24].mxu1  ;;  %v596_v9 = vpop.f32.mrb[25].mxu0 }
 0x11e   : > { %1743 = vst.msk [vmem:[%s3000_s6 + $0x58] sm:$0xff] %vm2995_vm4, %v2466_v4  ;;  %v825_v10 = vadd.f32 %v824_v8, %v2983_v21  ;;  %v597_v11 = vadd.f32 %v596_v9, %v2986_v3  ;;  %v826_v12 = vpop.f32.mrb[25].mxu1  ;;  %v598_v13 = vpop.f32.mrb[26].mxu0 }
 0x11f   : > { %1789 = vst.msk [vmem:[%s3000_s6 + $0x1c8] sm:$0xff] %vm2995_vm4, %v2512_v6  ;;  %v1017_v14 = vmax.f32 %v595_v7, 0.0  ;;  %v827_v15 = vadd.f32 %v826_v12, %v2986_v3  ;;  %v599_v16 = vadd.f32 %v598_v13, %v2983_v21  ;;  %v828_v17 = vpop.f32.mrb[26].mxu1  ;;  %v600_v18 = vpop.f32.mrb[27].mxu0 }
 0x120   : > { %v1109_v19 = vmax.f32 %v825_v10, 0.0  ;;  %v1018_v20 = vmax.f32 %v597_v11, 0.0  ;;  %v829_v22 = vadd.f32 %v828_v17, %v2983_v21  ;;  %v601_v23 = vadd.f32 %v600_v18, %v2986_v3  ;;  %v830_v24 = vpop.f32.mrb[27].mxu1 }
 0x121   : > { %v1110_v25 = vmax.f32 %v827_v15, 0.0  ;;  %v1019_v26 = vmax.f32 %v599_v16, 0.0  ;;  %v831_v27 = vadd.f32 %v830_v24, %v2986_v3 }
 0x122   : > { %v2467_v28 = vpack.c.bf16 %v1018_v20, %v1017_v14  ;;  %v1111_v29 = vmax.f32 %v829_v22, 0.0  ;;  %v1020_v30 = vmax.f32 %v601_v23, 0.0 }
 0x123   : > { %v2513_v31 = vpack.c.bf16 %v1110_v25, %v1109_v19  ;;  %v1112_v32 = vmax.f32 %v831_v27, 0.0 }
 0x124   : > { %1744 = vst.msk [vmem:[%s3000_s6 + $0x60] sm:$0xff] %vm2995_vm4, %v2467_v28  ;;  %v2468_v33 = vpack.c.bf16 %v1020_v30, %v1019_v26  ;;  %v604_v34 = vpop.f32.mrb[28].mxu0 }
 0x125   : > { %1790 = vst.msk [vmem:[%s3000_s6 + $0x1d0] sm:$0xff] %vm2995_vm4, %v2513_v31  ;;  %v2514_v35 = vpack.c.bf16 %v1112_v32, %v1111_v29  ;;  %v605_v36 = vadd.f32 %v604_v34, %v2983_v21  ;;  %v834_v37 = vpop.f32.mrb[28].mxu1  ;;  %v606_v38 = vpop.f32.mrb[29].mxu0 }
 0x126   : > { %1745 = vst.msk [vmem:[%s3000_s6 + $0x68] sm:$0xff] %vm2995_vm4, %v2468_v33  ;;  %v835_v39 = vadd.f32 %v834_v37, %v2983_v21  ;;  %v607_v41 = vadd.f32 %v606_v38, %v2986_v3  ;;  %v836_v42 = vpop.f32.mrb[29].mxu1  ;;  %v608_v43 = vpop.f32.mrb[30].mxu0 }
 0x127   : > { %1791 = vst.msk [vmem:[%s3000_s6 + $0x1d8] sm:$0xff] %vm2995_vm4, %v2514_v35  ;;  %v1021_v44 = vmax.f32 %v605_v36, 0.0  ;;  %v837_v45 = vadd.f32 %v836_v42, %v2986_v3  ;;  %v609_v46 = vadd.f32 %v608_v43, %v2983_v21  ;;  %v838_v47 = vpop.f32.mrb[30].mxu1  ;;  %v610_v48 = vpop.f32.mrb[31].mxu0 }
 0x128   : > { %v1113_v49 = vmax.f32 %v835_v39, 0.0  ;;  %v1022_v50 = vmax.f32 %v607_v41, 0.0  ;;  %v839_v51 = vadd.f32 %v838_v47, %v2983_v21  ;;  %v611_v52 = vadd.f32 %v610_v48, %v2986_v3  ;;  %v840_v53 = vpop.f32.mrb[31].mxu1 }
 0x129   : > { %v1114_v54 = vmax.f32 %v837_v45, 0.0  ;;  %v1023_v55 = vmax.f32 %v609_v46, 0.0  ;;  %v841_v56 = vadd.f32 %v840_v53, %v2986_v3 }
 0x12a   : > { %v2469_v57 = vpack.c.bf16 %v1022_v50, %v1021_v44  ;;  %v1115_v58 = vmax.f32 %v839_v51, 0.0  ;;  %v1024_v59 = vmax.f32 %v611_v52, 0.0 }
 0x12b   : > { %v2515_v60 = vpack.c.bf16 %v1114_v54, %v1113_v49  ;;  %v1116_v61 = vmax.f32 %v841_v56, 0.0 }
 0x12c   : > { %1746 = vst.msk [vmem:[%s3000_s6 + $0x70] sm:$0xff] %vm2995_vm4, %v2469_v57  ;;  %v2470_v62 = vpack.c.bf16 %v1024_v59, %v1023_v55  ;;  %v614_v63 = vpop.f32.mrb[32].mxu0 }
 0x12d   : > { %1792 = vst.msk [vmem:[%s3000_s6 + $0x1e0] sm:$0xff] %vm2995_vm4, %v2515_v60  ;;  %v2516_v0 = vpack.c.bf16 %v1116_v61, %v1115_v58  ;;  %v615_v1 = vadd.f32 %v614_v63, %v2983_v21  ;;  %v844_v2 = vpop.f32.mrb[32].mxu1  ;;  %v616_v4 = vpop.f32.mrb[33].mxu0 }
 0x12e   : > { %1747 = vst.msk [vmem:[%s3000_s6 + $0x78] sm:$0xff] %vm2995_vm4, %v2470_v62  ;;  %v845_v5 = vadd.f32 %v844_v2, %v2983_v21  ;;  %v617_v6 = vadd.f32 %v616_v4, %v2986_v3  ;;  %v846_v7 = vpop.f32.mrb[33].mxu1  ;;  %v618_v8 = vpop.f32.mrb[34].mxu0 }
 0x12f   : > { %1793 = vst.msk [vmem:[%s3000_s6 + $0x1e8] sm:$0xff] %vm2995_vm4, %v2516_v0  ;;  %v1025_v9 = vmax.f32 %v615_v1, 0.0  ;;  %v847_v10 = vadd.f32 %v846_v7, %v2986_v3  ;;  %v619_v11 = vadd.f32 %v618_v8, %v2983_v21  ;;  %v848_v12 = vpop.f32.mrb[34].mxu1  ;;  %v620_v13 = vpop.f32.mrb[35].mxu0 }
 0x130   : > { %v1117_v14 = vmax.f32 %v845_v5, 0.0  ;;  %v1026_v15 = vmax.f32 %v617_v6, 0.0  ;;  %v849_v16 = vadd.f32 %v848_v12, %v2983_v21  ;;  %v621_v17 = vadd.f32 %v620_v13, %v2986_v3  ;;  %v850_v18 = vpop.f32.mrb[35].mxu1 }
 0x131   : > { %v1118_v19 = vmax.f32 %v847_v10, 0.0  ;;  %v1027_v20 = vmax.f32 %v619_v11, 0.0  ;;  %v851_v22 = vadd.f32 %v850_v18, %v2986_v3 }
 0x132   : > { %v2471_v23 = vpack.c.bf16 %v1026_v15, %v1025_v9  ;;  %v1119_v24 = vmax.f32 %v849_v16, 0.0  ;;  %v1028_v25 = vmax.f32 %v621_v17, 0.0 }
 0x133   : > { %v2517_v26 = vpack.c.bf16 %v1118_v19, %v1117_v14  ;;  %v1120_v27 = vmax.f32 %v851_v22, 0.0 }
 0x134   : > { %1748 = vst.msk [vmem:[%s3000_s6 + $0x80] sm:$0xff] %vm2995_vm4, %v2471_v23  ;;  %v2472_v28 = vpack.c.bf16 %v1028_v25, %v1027_v20  ;;  %v624_v29 = vpop.f32.mrb[36].mxu0 }
 0x135   : > { %1794 = vst.msk [vmem:[%s3000_s6 + $0x1f0] sm:$0xff] %vm2995_vm4, %v2517_v26  ;;  %v2518_v30 = vpack.c.bf16 %v1120_v27, %v1119_v24  ;;  %v625_v31 = vadd.f32 %v624_v29, %v2983_v21  ;;  %v854_v32 = vpop.f32.mrb[36].mxu1  ;;  %v626_v33 = vpop.f32.mrb[37].mxu0 }
 0x136   : > { %1749 = vst.msk [vmem:[%s3000_s6 + $0x88] sm:$0xff] %vm2995_vm4, %v2472_v28  ;;  %v855_v34 = vadd.f32 %v854_v32, %v2983_v21  ;;  %v627_v35 = vadd.f32 %v626_v33, %v2986_v3  ;;  %v856_v36 = vpop.f32.mrb[37].mxu1  ;;  %v628_v37 = vpop.f32.mrb[38].mxu0 }
 0x137   : > { %1795 = vst.msk [vmem:[%s3000_s6 + $0x1f8] sm:$0xff] %vm2995_vm4, %v2518_v30  ;;  %v1029_v38 = vmax.f32 %v625_v31, 0.0  ;;  %v857_v39 = vadd.f32 %v856_v36, %v2986_v3  ;;  %v629_v41 = vadd.f32 %v628_v37, %v2983_v21  ;;  %v858_v42 = vpop.f32.mrb[38].mxu1  ;;  %v630_v43 = vpop.f32.mrb[39].mxu0 }
 0x138   : > { %v1121_v44 = vmax.f32 %v855_v34, 0.0  ;;  %v1030_v45 = vmax.f32 %v627_v35, 0.0  ;;  %v859_v46 = vadd.f32 %v858_v42, %v2983_v21  ;;  %v631_v47 = vadd.f32 %v630_v43, %v2986_v3  ;;  %v860_v48 = vpop.f32.mrb[39].mxu1 }
 0x139   : > { %v1122_v49 = vmax.f32 %v857_v39, 0.0  ;;  %v1031_v50 = vmax.f32 %v629_v41, 0.0  ;;  %v861_v51 = vadd.f32 %v860_v48, %v2986_v3 }
 0x13a   : > { %v2473_v52 = vpack.c.bf16 %v1030_v45, %v1029_v38  ;;  %v1123_v53 = vmax.f32 %v859_v46, 0.0  ;;  %v1032_v54 = vmax.f32 %v631_v47, 0.0 }
 0x13b   : > { %v2519_v55 = vpack.c.bf16 %v1122_v49, %v1121_v44  ;;  %v1124_v56 = vmax.f32 %v861_v51, 0.0 }
 0x13c   : > { %1750 = vst.msk [vmem:[%s3000_s6 + $0x90] sm:$0xff] %vm2995_vm4, %v2473_v52  ;;  %v2474_v57 = vpack.c.bf16 %v1032_v54, %v1031_v50  ;;  %v634_v58 = vpop.f32.mrb[40].mxu0 }
 0x13d   : > { %1796 = vst.msk [vmem:[%s3000_s6 + $0x200] sm:$0xff] %vm2995_vm4, %v2519_v55  ;;  %v2520_v59 = vpack.c.bf16 %v1124_v56, %v1123_v53  ;;  %v635_v60 = vadd.f32 %v634_v58, %v2983_v21  ;;  %v864_v61 = vpop.f32.mrb[40].mxu1  ;;  %v636_v62 = vpop.f32.mrb[41].mxu0 }
 0x13e   : > { %1751 = vst.msk [vmem:[%s3000_s6 + $0x98] sm:$0xff] %vm2995_vm4, %v2474_v57  ;;  %v865_v63 = vadd.f32 %v864_v61, %v2983_v21  ;;  %v637_v0 = vadd.f32 %v636_v62, %v2986_v3  ;;  %v866_v1 = vpop.f32.mrb[41].mxu1  ;;  %v638_v2 = vpop.f32.mrb[42].mxu0 }
 0x13f   : > { %1797 = vst.msk [vmem:[%s3000_s6 + $0x208] sm:$0xff] %vm2995_vm4, %v2520_v59  ;;  %v1033_v4 = vmax.f32 %v635_v60, 0.0  ;;  %v867_v5 = vadd.f32 %v866_v1, %v2986_v3  ;;  %v639_v6 = vadd.f32 %v638_v2, %v2983_v21  ;;  %v868_v7 = vpop.f32.mrb[42].mxu1  ;;  %v640_v8 = vpop.f32.mrb[43].mxu0 }
 0x140   : > { %v1125_v9 = vmax.f32 %v865_v63, 0.0  ;;  %v1034_v10 = vmax.f32 %v637_v0, 0.0  ;;  %v869_v11 = vadd.f32 %v868_v7, %v2983_v21  ;;  %v641_v12 = vadd.f32 %v640_v8, %v2986_v3  ;;  %v870_v13 = vpop.f32.mrb[43].mxu1 }
 0x141   : > { %v1126_v14 = vmax.f32 %v867_v5, 0.0  ;;  %v1035_v15 = vmax.f32 %v639_v6, 0.0  ;;  %v871_v16 = vadd.f32 %v870_v13, %v2986_v3 }
 0x142   : > { %v2475_v17 = vpack.c.bf16 %v1034_v10, %v1033_v4  ;;  %v1127_v18 = vmax.f32 %v869_v11, 0.0  ;;  %v1036_v19 = vmax.f32 %v641_v12, 0.0 }
 0x143   : > { %v2521_v20 = vpack.c.bf16 %v1126_v14, %v1125_v9  ;;  %v1128_v22 = vmax.f32 %v871_v16, 0.0 }
 0x144   : > { %1752 = vst.msk [vmem:[%s3000_s6 + $0xa0] sm:$0xff] %vm2995_vm4, %v2475_v17  ;;  %v2476_v23 = vpack.c.bf16 %v1036_v19, %v1035_v15  ;;  %v644_v24 = vpop.f32.mrb[44].mxu0 }
 0x145   : > { %1798 = vst.msk [vmem:[%s3000_s6 + $0x210] sm:$0xff] %vm2995_vm4, %v2521_v20  ;;  %v2522_v25 = vpack.c.bf16 %v1128_v22, %v1127_v18  ;;  %v645_v26 = vadd.f32 %v644_v24, %v2983_v21  ;;  %v874_v27 = vpop.f32.mrb[44].mxu1  ;;  %v646_v28 = vpop.f32.mrb[45].mxu0 }
 0x146   : > { %1753 = vst.msk [vmem:[%s3000_s6 + $0xa8] sm:$0xff] %vm2995_vm4, %v2476_v23  ;;  %v875_v29 = vadd.f32 %v874_v27, %v2983_v21  ;;  %v647_v30 = vadd.f32 %v646_v28, %v2986_v3  ;;  %v876_v31 = vpop.f32.mrb[45].mxu1  ;;  %v648_v32 = vpop.f32.mrb[46].mxu0 }
 0x147   : > { %1799 = vst.msk [vmem:[%s3000_s6 + $0x218] sm:$0xff] %vm2995_vm4, %v2522_v25  ;;  %v1037_v33 = vmax.f32 %v645_v26, 0.0  ;;  %v877_v34 = vadd.f32 %v876_v31, %v2986_v3  ;;  %v649_v35 = vadd.f32 %v648_v32, %v2983_v21  ;;  %v878_v36 = vpop.f32.mrb[46].mxu1  ;;  %v650_v37 = vpop.f32.mrb[47].mxu0 }
 0x148   : > { %v1129_v38 = vmax.f32 %v875_v29, 0.0  ;;  %v1038_v39 = vmax.f32 %v647_v30, 0.0  ;;  %v879_v41 = vadd.f32 %v878_v36, %v2983_v21  ;;  %v651_v42 = vadd.f32 %v650_v37, %v2986_v3  ;;  %v880_v43 = vpop.f32.mrb[47].mxu1 }
 0x149   : > { %v1130_v44 = vmax.f32 %v877_v34, 0.0  ;;  %v1039_v45 = vmax.f32 %v649_v35, 0.0  ;;  %v881_v46 = vadd.f32 %v880_v43, %v2986_v3 }
 0x14a   : > { %v2477_v47 = vpack.c.bf16 %v1038_v39, %v1037_v33  ;;  %v1131_v48 = vmax.f32 %v879_v41, 0.0  ;;  %v1040_v49 = vmax.f32 %v651_v42, 0.0 }
 0x14b   : > { %v2523_v50 = vpack.c.bf16 %v1130_v44, %v1129_v38  ;;  %v1132_v51 = vmax.f32 %v881_v46, 0.0 }
 0x14c   : > { %1754 = vst.msk [vmem:[%s3000_s6 + $0xb0] sm:$0xff] %vm2995_vm4, %v2477_v47  ;;  %v2478_v52 = vpack.c.bf16 %v1040_v49, %v1039_v45  ;;  %v654_v53 = vpop.f32.mrb[48].mxu0 }
 0x14d   : > { %1800 = vst.msk [vmem:[%s3000_s6 + $0x220] sm:$0xff] %vm2995_vm4, %v2523_v50  ;;  %v2524_v54 = vpack.c.bf16 %v1132_v51, %v1131_v48  ;;  %v655_v55 = vadd.f32 %v654_v53, %v2983_v21  ;;  %v884_v56 = vpop.f32.mrb[48].mxu1  ;;  %v656_v57 = vpop.f32.mrb[49].mxu0 }
 0x14e   : > { %1755 = vst.msk [vmem:[%s3000_s6 + $0xb8] sm:$0xff] %vm2995_vm4, %v2478_v52  ;;  %v885_v58 = vadd.f32 %v884_v56, %v2983_v21  ;;  %v657_v59 = vadd.f32 %v656_v57, %v2986_v3  ;;  %v886_v60 = vpop.f32.mrb[49].mxu1  ;;  %v658_v61 = vpop.f32.mrb[50].mxu0 }
 0x14f   : > { %1801 = vst.msk [vmem:[%s3000_s6 + $0x228] sm:$0xff] %vm2995_vm4, %v2524_v54  ;;  %v1041_v62 = vmax.f32 %v655_v55, 0.0  ;;  %v887_v63 = vadd.f32 %v886_v60, %v2986_v3  ;;  %v659_v0 = vadd.f32 %v658_v61, %v2983_v21  ;;  %v888_v1 = vpop.f32.mrb[50].mxu1  ;;  %v660_v2 = vpop.f32.mrb[51].mxu0 }
 0x150   : > { %v1133_v4 = vmax.f32 %v885_v58, 0.0  ;;  %v1042_v5 = vmax.f32 %v657_v59, 0.0  ;;  %v889_v6 = vadd.f32 %v888_v1, %v2983_v21  ;;  %v661_v7 = vadd.f32 %v660_v2, %v2986_v3  ;;  %v890_v8 = vpop.f32.mrb[51].mxu1 }
 0x151   : > { %v1134_v9 = vmax.f32 %v887_v63, 0.0  ;;  %v1043_v10 = vmax.f32 %v659_v0, 0.0  ;;  %v891_v11 = vadd.f32 %v890_v8, %v2986_v3 }
 0x152   : > { %v2479_v12 = vpack.c.bf16 %v1042_v5, %v1041_v62  ;;  %v1135_v13 = vmax.f32 %v889_v6, 0.0  ;;  %v1044_v14 = vmax.f32 %v661_v7, 0.0 }
 0x153   : > { %v2525_v15 = vpack.c.bf16 %v1134_v9, %v1133_v4  ;;  %v1136_v16 = vmax.f32 %v891_v11, 0.0 }
 0x154   : > { %1756 = vst.msk [vmem:[%s3000_s6 + $0xc0] sm:$0xff] %vm2995_vm4, %v2479_v12  ;;  %v2480_v17 = vpack.c.bf16 %v1044_v14, %v1043_v10  ;;  %v664_v18 = vpop.f32.mrb[52].mxu0 }
 0x155   : > { %1802 = vst.msk [vmem:[%s3000_s6 + $0x230] sm:$0xff] %vm2995_vm4, %v2525_v15  ;;  %v2526_v19 = vpack.c.bf16 %v1136_v16, %v1135_v13  ;;  %v665_v20 = vadd.f32 %v664_v18, %v2983_v21  ;;  %v894_v22 = vpop.f32.mrb[52].mxu1  ;;  %v666_v23 = vpop.f32.mrb[53].mxu0 }
 0x156   : > { %1757 = vst.msk [vmem:[%s3000_s6 + $0xc8] sm:$0xff] %vm2995_vm4, %v2480_v17  ;;  %v895_v24 = vadd.f32 %v894_v22, %v2983_v21  ;;  %v667_v25 = vadd.f32 %v666_v23, %v2986_v3  ;;  %v896_v26 = vpop.f32.mrb[53].mxu1  ;;  %v668_v27 = vpop.f32.mrb[54].mxu0 }
 0x157   : > { %1803 = vst.msk [vmem:[%s3000_s6 + $0x238] sm:$0xff] %vm2995_vm4, %v2526_v19  ;;  %v1045_v28 = vmax.f32 %v665_v20, 0.0  ;;  %v897_v29 = vadd.f32 %v896_v26, %v2986_v3  ;;  %v669_v30 = vadd.f32 %v668_v27, %v2983_v21  ;;  %v898_v31 = vpop.f32.mrb[54].mxu1  ;;  %v670_v32 = vpop.f32.mrb[55].mxu0 }
 0x158   : > { %v1137_v33 = vmax.f32 %v895_v24, 0.0  ;;  %v1046_v34 = vmax.f32 %v667_v25, 0.0  ;;  %v899_v35 = vadd.f32 %v898_v31, %v2983_v21  ;;  %v671_v36 = vadd.f32 %v670_v32, %v2986_v3  ;;  %v900_v37 = vpop.f32.mrb[55].mxu1 }
 0x159   : > { %v1138_v38 = vmax.f32 %v897_v29, 0.0  ;;  %v1047_v39 = vmax.f32 %v669_v30, 0.0  ;;  %v901_v41 = vadd.f32 %v900_v37, %v2986_v3 }
 0x15a   : > { %v2481_v42 = vpack.c.bf16 %v1046_v34, %v1045_v28  ;;  %v1139_v43 = vmax.f32 %v899_v35, 0.0  ;;  %v1048_v44 = vmax.f32 %v671_v36, 0.0 }
 0x15b   : > { %v2527_v45 = vpack.c.bf16 %v1138_v38, %v1137_v33  ;;  %v1140_v46 = vmax.f32 %v901_v41, 0.0 }
 0x15c   : > { %1758 = vst.msk [vmem:[%s3000_s6 + $0xd0] sm:$0xff] %vm2995_vm4, %v2481_v42  ;;  %v2482_v47 = vpack.c.bf16 %v1048_v44, %v1047_v39  ;;  %v674_v48 = vpop.f32.mrb[56].mxu0 }
 0x15d   : > { %1804 = vst.msk [vmem:[%s3000_s6 + $0x240] sm:$0xff] %vm2995_vm4, %v2527_v45  ;;  %v2528_v49 = vpack.c.bf16 %v1140_v46, %v1139_v43  ;;  %v675_v50 = vadd.f32 %v674_v48, %v2983_v21  ;;  %v904_v51 = vpop.f32.mrb[56].mxu1  ;;  %v676_v52 = vpop.f32.mrb[57].mxu0 }
 0x15e   : > { %1759 = vst.msk [vmem:[%s3000_s6 + $0xd8] sm:$0xff] %vm2995_vm4, %v2482_v47  ;;  %v905_v53 = vadd.f32 %v904_v51, %v2983_v21  ;;  %v677_v54 = vadd.f32 %v676_v52, %v2986_v3  ;;  %v906_v55 = vpop.f32.mrb[57].mxu1  ;;  %v678_v56 = vpop.f32.mrb[58].mxu0 }
 0x15f   : > { %1805 = vst.msk [vmem:[%s3000_s6 + $0x248] sm:$0xff] %vm2995_vm4, %v2528_v49  ;;  %v1049_v57 = vmax.f32 %v675_v50, 0.0  ;;  %v907_v58 = vadd.f32 %v906_v55, %v2986_v3  ;;  %v679_v59 = vadd.f32 %v678_v56, %v2983_v21  ;;  %v908_v60 = vpop.f32.mrb[58].mxu1  ;;  %v680_v61 = vpop.f32.mrb[59].mxu0 }
 0x160   : > { %v1141_v62 = vmax.f32 %v905_v53, 0.0  ;;  %v1050_v63 = vmax.f32 %v677_v54, 0.0  ;;  %v909_v0 = vadd.f32 %v908_v60, %v2983_v21  ;;  %v681_v1 = vadd.f32 %v680_v61, %v2986_v3  ;;  %v910_v2 = vpop.f32.mrb[59].mxu1 }
 0x161   : > { %v1142_v4 = vmax.f32 %v907_v58, 0.0  ;;  %v1051_v5 = vmax.f32 %v679_v59, 0.0  ;;  %v911_v6 = vadd.f32 %v910_v2, %v2986_v3 }
 0x162   : > { %v2483_v7 = vpack.c.bf16 %v1050_v63, %v1049_v57  ;;  %v1143_v8 = vmax.f32 %v909_v0, 0.0  ;;  %v1052_v9 = vmax.f32 %v681_v1, 0.0 }
 0x163   : > { %v2529_v10 = vpack.c.bf16 %v1142_v4, %v1141_v62  ;;  %v1144_v11 = vmax.f32 %v911_v6, 0.0 }
 0x164   : > { %1760 = vst.msk [vmem:[%s3000_s6 + $0xe0] sm:$0xff] %vm2995_vm4, %v2483_v7  ;;  %v2484_v12 = vpack.c.bf16 %v1052_v9, %v1051_v5  ;;  %v684_v13 = vpop.f32.mrb[60].mxu0 }
 0x165   : > { %1806 = vst.msk [vmem:[%s3000_s6 + $0x250] sm:$0xff] %vm2995_vm4, %v2529_v10  ;;  %v2530_v14 = vpack.c.bf16 %v1144_v11, %v1143_v8  ;;  %v685_v15 = vadd.f32 %v684_v13, %v2983_v21  ;;  %v914_v16 = vpop.f32.mrb[60].mxu1  ;;  %v686_v17 = vpop.f32.mrb[61].mxu0 }
 0x166   : > { %1761 = vst.msk [vmem:[%s3000_s6 + $0xe8] sm:$0xff] %vm2995_vm4, %v2484_v12  ;;  %v915_v18 = vadd.f32 %v914_v16, %v2983_v21  ;;  %v687_v19 = vadd.f32 %v686_v17, %v2986_v3  ;;  %v916_v20 = vpop.f32.mrb[61].mxu1  ;;  %v688_v22 = vpop.f32.mrb[62].mxu0 }
 0x167   : > { %1807 = vst.msk [vmem:[%s3000_s6 + $0x258] sm:$0xff] %vm2995_vm4, %v2530_v14  ;;  %v1053_v23 = vmax.f32 %v685_v15, 0.0  ;;  %v917_v24 = vadd.f32 %v916_v20, %v2986_v3  ;;  %v689_v25 = vadd.f32 %v688_v22, %v2983_v21  ;;  %v918_v26 = vpop.f32.mrb[62].mxu1  ;;  %v690_v27 = vpop.f32.mrb[63].mxu0 }
 0x168   : > { %v1145_v28 = vmax.f32 %v915_v18, 0.0  ;;  %v1054_v29 = vmax.f32 %v687_v19, 0.0  ;;  %v919_v30 = vadd.f32 %v918_v26, %v2983_v21  ;;  %v691_v31 = vadd.f32 %v690_v27, %v2986_v3  ;;  %v920_v32 = vpop.f32.mrb[63].mxu1 }
 0x169   : > { %v1146_v33 = vmax.f32 %v917_v24, 0.0  ;;  %v1055_v34 = vmax.f32 %v689_v25, 0.0  ;;  %v921_v35 = vadd.f32 %v920_v32, %v2986_v3 }
 0x16a   : > { %v2485_v36 = vpack.c.bf16 %v1054_v29, %v1053_v23  ;;  %v1147_v37 = vmax.f32 %v919_v30, 0.0  ;;  %v1056_v38 = vmax.f32 %v691_v31, 0.0 }
 0x16b   : > { %v2531_v39 = vpack.c.bf16 %v1146_v33, %v1145_v28  ;;  %v1148_v41 = vmax.f32 %v921_v35, 0.0 }
 0x16c   : > { %1762 = vst.msk [vmem:[%s3000_s6 + $0xf0] sm:$0xff] %vm2995_vm4, %v2485_v36  ;;  %v2486_v42 = vpack.c.bf16 %v1056_v38, %v1055_v34  ;;  %v694_v43 = vpop.f32.mrb[64].mxu0 }
 0x16d   : > { %1808 = vst.msk [vmem:[%s3000_s6 + $0x260] sm:$0xff] %vm2995_vm4, %v2531_v39  ;;  %v2532_v44 = vpack.c.bf16 %v1148_v41, %v1147_v37  ;;  %v695_v45 = vadd.f32 %v694_v43, %v2983_v21  ;;  %v924_v46 = vpop.f32.mrb[64].mxu1  ;;  %v696_v47 = vpop.f32.mrb[65].mxu0 }
 0x16e   : > { %1763 = vst.msk [vmem:[%s3000_s6 + $0xf8] sm:$0xff] %vm2995_vm4, %v2486_v42  ;;  %v925_v48 = vadd.f32 %v924_v46, %v2983_v21  ;;  %v697_v49 = vadd.f32 %v696_v47, %v2986_v3  ;;  %v926_v50 = vpop.f32.mrb[65].mxu1  ;;  %v698_v51 = vpop.f32.mrb[66].mxu0 }
 0x16f   : > { %1809 = vst.msk [vmem:[%s3000_s6 + $0x268] sm:$0xff] %vm2995_vm4, %v2532_v44  ;;  %v1057_v52 = vmax.f32 %v695_v45, 0.0  ;;  %v927_v53 = vadd.f32 %v926_v50, %v2986_v3  ;;  %v699_v54 = vadd.f32 %v698_v51, %v2983_v21  ;;  %v928_v55 = vpop.f32.mrb[66].mxu1  ;;  %v700_v56 = vpop.f32.mrb[67].mxu0 }
 0x170   : > { %v1149_v57 = vmax.f32 %v925_v48, 0.0  ;;  %v1058_v58 = vmax.f32 %v697_v49, 0.0  ;;  %v929_v59 = vadd.f32 %v928_v55, %v2983_v21  ;;  %v701_v60 = vadd.f32 %v700_v56, %v2986_v3  ;;  %v930_v61 = vpop.f32.mrb[67].mxu1 }
 0x171   : > { %v1150_v62 = vmax.f32 %v927_v53, 0.0  ;;  %v1059_v63 = vmax.f32 %v699_v54, 0.0  ;;  %v931_v0 = vadd.f32 %v930_v61, %v2986_v3 }
 0x172   : > { %v2487_v1 = vpack.c.bf16 %v1058_v58, %v1057_v52  ;;  %v1151_v2 = vmax.f32 %v929_v59, 0.0  ;;  %v1060_v4 = vmax.f32 %v701_v60, 0.0 }
 0x173   : > { %v2533_v5 = vpack.c.bf16 %v1150_v62, %v1149_v57  ;;  %v1152_v6 = vmax.f32 %v931_v0, 0.0 }
 0x174   : > { %1764 = vst.msk [vmem:[%s3000_s6 + $0x100] sm:$0xff] %vm2995_vm4, %v2487_v1  ;;  %v2488_v7 = vpack.c.bf16 %v1060_v4, %v1059_v63  ;;  %v704_v8 = vpop.f32.mrb[68].mxu0 }
 0x175   : > { %1810 = vst.msk [vmem:[%s3000_s6 + $0x270] sm:$0xff] %vm2995_vm4, %v2533_v5  ;;  %v2534_v9 = vpack.c.bf16 %v1152_v6, %v1151_v2  ;;  %v705_v10 = vadd.f32 %v704_v8, %v2983_v21  ;;  %v934_v11 = vpop.f32.mrb[68].mxu1  ;;  %v706_v12 = vpop.f32.mrb[69].mxu0 }
 0x176   : > { %1765 = vst.msk [vmem:[%s3000_s6 + $0x108] sm:$0xff] %vm2995_vm4, %v2488_v7  ;;  %v935_v13 = vadd.f32 %v934_v11, %v2983_v21  ;;  %v707_v14 = vadd.f32 %v706_v12, %v2986_v3  ;;  %v936_v15 = vpop.f32.mrb[69].mxu1  ;;  %v708_v16 = vpop.f32.mrb[70].mxu0 }
 0x177   : > { %1811 = vst.msk [vmem:[%s3000_s6 + $0x278] sm:$0xff] %vm2995_vm4, %v2534_v9  ;;  %v1061_v17 = vmax.f32 %v705_v10, 0.0  ;;  %v937_v18 = vadd.f32 %v936_v15, %v2986_v3  ;;  %v709_v19 = vadd.f32 %v708_v16, %v2983_v21  ;;  %v938_v20 = vpop.f32.mrb[70].mxu1  ;;  %v710_v22 = vpop.f32.mrb[71].mxu0 }
 0x178   : > { %v1153_v23 = vmax.f32 %v935_v13, 0.0  ;;  %v1062_v24 = vmax.f32 %v707_v14, 0.0  ;;  %v939_v25 = vadd.f32 %v938_v20, %v2983_v21  ;;  %v711_v26 = vadd.f32 %v710_v22, %v2986_v3  ;;  %v940_v27 = vpop.f32.mrb[71].mxu1 }
 0x179   : > { %v1154_v28 = vmax.f32 %v937_v18, 0.0  ;;  %v1063_v29 = vmax.f32 %v709_v19, 0.0  ;;  %v941_v30 = vadd.f32 %v940_v27, %v2986_v3 }
 0x17a   : > { %v2489_v31 = vpack.c.bf16 %v1062_v24, %v1061_v17  ;;  %v1155_v32 = vmax.f32 %v939_v25, 0.0  ;;  %v1064_v33 = vmax.f32 %v711_v26, 0.0 }
 0x17b   : > { %v2535_v34 = vpack.c.bf16 %v1154_v28, %v1153_v23  ;;  %v1156_v35 = vmax.f32 %v941_v30, 0.0 }
 0x17c   : > { %1766 = vst.msk [vmem:[%s3000_s6 + $0x110] sm:$0xff] %vm2995_vm4, %v2489_v31  ;;  %v2490_v36 = vpack.c.bf16 %v1064_v33, %v1063_v29  ;;  %v714_v37 = vpop.f32.mrb[72].mxu0 }
 0x17d   : > { %1812 = vst.msk [vmem:[%s3000_s6 + $0x280] sm:$0xff] %vm2995_vm4, %v2535_v34  ;;  %v2536_v38 = vpack.c.bf16 %v1156_v35, %v1155_v32  ;;  %v715_v39 = vadd.f32 %v714_v37, %v2983_v21  ;;  %v944_v41 = vpop.f32.mrb[72].mxu1  ;;  %v716_v42 = vpop.f32.mrb[73].mxu0 }
 0x17e   : > { %1767 = vst.msk [vmem:[%s3000_s6 + $0x118] sm:$0xff] %vm2995_vm4, %v2490_v36  ;;  %v945_v43 = vadd.f32 %v944_v41, %v2983_v21  ;;  %v717_v44 = vadd.f32 %v716_v42, %v2986_v3  ;;  %v946_v45 = vpop.f32.mrb[73].mxu1  ;;  %v718_v46 = vpop.f32.mrb[74].mxu0 }
 0x17f   : > { %1813 = vst.msk [vmem:[%s3000_s6 + $0x288] sm:$0xff] %vm2995_vm4, %v2536_v38  ;;  %v1065_v47 = vmax.f32 %v715_v39, 0.0  ;;  %v947_v48 = vadd.f32 %v946_v45, %v2986_v3  ;;  %v719_v49 = vadd.f32 %v718_v46, %v2983_v21  ;;  %v948_v50 = vpop.f32.mrb[74].mxu1  ;;  %v720_v51 = vpop.f32.mrb[75].mxu0 }
 0x180   : > { %v1157_v52 = vmax.f32 %v945_v43, 0.0  ;;  %v1066_v53 = vmax.f32 %v717_v44, 0.0  ;;  %v949_v54 = vadd.f32 %v948_v50, %v2983_v21  ;;  %v721_v55 = vadd.f32 %v720_v51, %v2986_v3  ;;  %v950_v56 = vpop.f32.mrb[75].mxu1 }
 0x181   : > { %v1158_v57 = vmax.f32 %v947_v48, 0.0  ;;  %v1067_v58 = vmax.f32 %v719_v49, 0.0  ;;  %v951_v59 = vadd.f32 %v950_v56, %v2986_v3 }
 0x182   : > { %v2491_v60 = vpack.c.bf16 %v1066_v53, %v1065_v47  ;;  %v1159_v61 = vmax.f32 %v949_v54, 0.0  ;;  %v1068_v62 = vmax.f32 %v721_v55, 0.0 }
 0x183   : > { %v2537_v63 = vpack.c.bf16 %v1158_v57, %v1157_v52  ;;  %v1160_v0 = vmax.f32 %v951_v59, 0.0 }
 0x184   : > { %1768 = vst.msk [vmem:[%s3000_s6 + $0x120] sm:$0xff] %vm2995_vm4, %v2491_v60  ;;  %v2492_v1 = vpack.c.bf16 %v1068_v62, %v1067_v58  ;;  %v724_v2 = vpop.f32.mrb[76].mxu0 }
 0x185   : > { %1814 = vst.msk [vmem:[%s3000_s6 + $0x290] sm:$0xff] %vm2995_vm4, %v2537_v63  ;;  %v2538_v4 = vpack.c.bf16 %v1160_v0, %v1159_v61  ;;  %v725_v5 = vadd.f32 %v724_v2, %v2983_v21  ;;  %v954_v6 = vpop.f32.mrb[76].mxu1  ;;  %v726_v7 = vpop.f32.mrb[77].mxu0 }
 0x186   : > { %1769 = vst.msk [vmem:[%s3000_s6 + $0x128] sm:$0xff] %vm2995_vm4, %v2492_v1  ;;  %v955_v8 = vadd.f32 %v954_v6, %v2983_v21  ;;  %v727_v9 = vadd.f32 %v726_v7, %v2986_v3  ;;  %v956_v10 = vpop.f32.mrb[77].mxu1  ;;  %v728_v11 = vpop.f32.mrb[78].mxu0 }
 0x187   : > { %1815 = vst.msk [vmem:[%s3000_s6 + $0x298] sm:$0xff] %vm2995_vm4, %v2538_v4  ;;  %v1069_v12 = vmax.f32 %v725_v5, 0.0  ;;  %v957_v13 = vadd.f32 %v956_v10, %v2986_v3  ;;  %v729_v14 = vadd.f32 %v728_v11, %v2983_v21  ;;  %v958_v15 = vpop.f32.mrb[78].mxu1  ;;  %v730_v16 = vpop.f32.mrb[79].mxu0 }
 0x188   : > { %v1161_v17 = vmax.f32 %v955_v8, 0.0  ;;  %v1070_v18 = vmax.f32 %v727_v9, 0.0  ;;  %v959_v19 = vadd.f32 %v958_v15, %v2983_v21  ;;  %v731_v20 = vadd.f32 %v730_v16, %v2986_v3  ;;  %v960_v22 = vpop.f32.mrb[79].mxu1 }
 0x189   : > { %v1162_v23 = vmax.f32 %v957_v13, 0.0  ;;  %v1071_v24 = vmax.f32 %v729_v14, 0.0  ;;  %v961_v25 = vadd.f32 %v960_v22, %v2986_v3 }
 0x18a   : > { %v2493_v26 = vpack.c.bf16 %v1070_v18, %v1069_v12  ;;  %v1163_v27 = vmax.f32 %v959_v19, 0.0  ;;  %v1072_v28 = vmax.f32 %v731_v20, 0.0 }
 0x18b   : > { %v2539_v29 = vpack.c.bf16 %v1162_v23, %v1161_v17  ;;  %v1164_v30 = vmax.f32 %v961_v25, 0.0 }
 0x18c   : > { %1770 = vst.msk [vmem:[%s3000_s6 + $0x130] sm:$0xff] %vm2995_vm4, %v2493_v26  ;;  %v2494_v31 = vpack.c.bf16 %v1072_v28, %v1071_v24  ;;  %v734_v32 = vpop.f32.mrb[80].mxu0 }
 0x18d   : > { %1816 = vst.msk [vmem:[%s3000_s6 + $0x2a0] sm:$0xff] %vm2995_vm4, %v2539_v29  ;;  %v2540_v33 = vpack.c.bf16 %v1164_v30, %v1163_v27  ;;  %v735_v34 = vadd.f32 %v734_v32, %v2983_v21  ;;  %v964_v35 = vpop.f32.mrb[80].mxu1  ;;  %v736_v36 = vpop.f32.mrb[81].mxu0 }
 0x18e   : > { %1771 = vst.msk [vmem:[%s3000_s6 + $0x138] sm:$0xff] %vm2995_vm4, %v2494_v31  ;;  %v965_v37 = vadd.f32 %v964_v35, %v2983_v21  ;;  %v737_v38 = vadd.f32 %v736_v36, %v2986_v3  ;;  %v966_v39 = vpop.f32.mrb[81].mxu1  ;;  %v738_v41 = vpop.f32.mrb[82].mxu0 }
 0x18f   : > { %1817 = vst.msk [vmem:[%s3000_s6 + $0x2a8] sm:$0xff] %vm2995_vm4, %v2540_v33  ;;  %v1073_v42 = vmax.f32 %v735_v34, 0.0  ;;  %v967_v43 = vadd.f32 %v966_v39, %v2986_v3  ;;  %v739_v44 = vadd.f32 %v738_v41, %v2983_v21  ;;  %v968_v45 = vpop.f32.mrb[82].mxu1  ;;  %v740_v46 = vpop.f32.mrb[83].mxu0 }
 0x190   : > { %v1165_v47 = vmax.f32 %v965_v37, 0.0  ;;  %v1074_v48 = vmax.f32 %v737_v38, 0.0  ;;  %v969_v49 = vadd.f32 %v968_v45, %v2983_v21  ;;  %v741_v50 = vadd.f32 %v740_v46, %v2986_v3  ;;  %v970_v51 = vpop.f32.mrb[83].mxu1 }
 0x191   : > { %v1166_v52 = vmax.f32 %v967_v43, 0.0  ;;  %v1075_v53 = vmax.f32 %v739_v44, 0.0  ;;  %v971_v54 = vadd.f32 %v970_v51, %v2986_v3 }
 0x192   : > { %v2495_v55 = vpack.c.bf16 %v1074_v48, %v1073_v42  ;;  %v1167_v56 = vmax.f32 %v969_v49, 0.0  ;;  %v1076_v57 = vmax.f32 %v741_v50, 0.0 }
 0x193   : > { %v2541_v58 = vpack.c.bf16 %v1166_v52, %v1165_v47  ;;  %v1168_v59 = vmax.f32 %v971_v54, 0.0 }
 0x194   : > { %1772 = vst.msk [vmem:[%s3000_s6 + $0x140] sm:$0xff] %vm2995_vm4, %v2495_v55  ;;  %v2496_v60 = vpack.c.bf16 %v1076_v57, %v1075_v53  ;;  %v744_v61 = vpop.f32.mrb[84].mxu0 }
 0x195   : > { %1818 = vst.msk [vmem:[%s3000_s6 + $0x2b0] sm:$0xff] %vm2995_vm4, %v2541_v58  ;;  %v2542_v62 = vpack.c.bf16 %v1168_v59, %v1167_v56  ;;  %v745_v63 = vadd.f32 %v744_v61, %v2983_v21  ;;  %v974_v0 = vpop.f32.mrb[84].mxu1  ;;  %v746_v1 = vpop.f32.mrb[85].mxu0 }
 0x196   : > { %1773 = vst.msk [vmem:[%s3000_s6 + $0x148] sm:$0xff] %vm2995_vm4, %v2496_v60  ;;  %v975_v2 = vadd.f32 %v974_v0, %v2983_v21  ;;  %v747_v4 = vadd.f32 %v746_v1, %v2986_v3  ;;  %v976_v5 = vpop.f32.mrb[85].mxu1  ;;  %v748_v6 = vpop.f32.mrb[86].mxu0 }
 0x197   : > { %1819 = vst.msk [vmem:[%s3000_s6 + $0x2b8] sm:$0xff] %vm2995_vm4, %v2542_v62  ;;  %v1077_v7 = vmax.f32 %v745_v63, 0.0  ;;  %v977_v8 = vadd.f32 %v976_v5, %v2986_v3  ;;  %v749_v9 = vadd.f32 %v748_v6, %v2983_v21  ;;  %v978_v10 = vpop.f32.mrb[86].mxu1  ;;  %v750_v11 = vpop.f32.mrb[87].mxu0 }
 0x198   : > { %v1169_v12 = vmax.f32 %v975_v2, 0.0  ;;  %v1078_v13 = vmax.f32 %v747_v4, 0.0  ;;  %v979_v14 = vadd.f32 %v978_v10, %v2983_v21  ;;  %v751_v15 = vadd.f32 %v750_v11, %v2986_v3  ;;  %v980_v16 = vpop.f32.mrb[87].mxu1 }
 0x199   : > { %v1170_v17 = vmax.f32 %v977_v8, 0.0  ;;  %v1079_v18 = vmax.f32 %v749_v9, 0.0  ;;  %v981_v19 = vadd.f32 %v980_v16, %v2986_v3 }
 0x19a   : > { %v2497_v20 = vpack.c.bf16 %v1078_v13, %v1077_v7  ;;  %v1171_v22 = vmax.f32 %v979_v14, 0.0  ;;  %v1080_v23 = vmax.f32 %v751_v15, 0.0 }
 0x19b   : > { %v2543_v24 = vpack.c.bf16 %v1170_v17, %v1169_v12  ;;  %v1172_v25 = vmax.f32 %v981_v19, 0.0 }
 0x19c   : > { %1774 = vst.msk [vmem:[%s3000_s6 + $0x150] sm:$0xff] %vm2995_vm4, %v2497_v20  ;;  %v2498_v26 = vpack.c.bf16 %v1080_v23, %v1079_v18  ;;  %v754_v27 = vpop.f32.mrb[88].mxu0 }
 0x19d   : > { %1820 = vst.msk [vmem:[%s3000_s6 + $0x2c0] sm:$0xff] %vm2995_vm4, %v2543_v24  ;;  %v2544_v28 = vpack.c.bf16 %v1172_v25, %v1171_v22  ;;  %v755_v29 = vadd.f32 %v754_v27, %v2983_v21  ;;  %v984_v30 = vpop.f32.mrb[88].mxu1  ;;  %v756_v31 = vpop.f32.mrb[89].mxu0 }
 0x19e   : > { %1775 = vst.msk [vmem:[%s3000_s6 + $0x158] sm:$0xff] %vm2995_vm4, %v2498_v26  ;;  %v985_v32 = vadd.f32 %v984_v30, %v2983_v21  ;;  %v757_v33 = vadd.f32 %v756_v31, %v2986_v3  ;;  %v986_v34 = vpop.f32.mrb[89].mxu1  ;;  %v758_v35 = vpop.f32.mrb[90].mxu0 }
 0x19f   : > { %1821 = vst.msk [vmem:[%s3000_s6 + $0x2c8] sm:$0xff] %vm2995_vm4, %v2544_v28  ;;  %v1081_v36 = vmax.f32 %v755_v29, 0.0  ;;  %v987_v37 = vadd.f32 %v986_v34, %v2986_v3  ;;  %v759_v38 = vadd.f32 %v758_v35, %v2983_v21  ;;  %v988_v39 = vpop.f32.mrb[90].mxu1  ;;  %v760_v41 = vpop.f32.mrb[91].mxu0 }
 0x1a0   : > { %v1173_v42 = vmax.f32 %v985_v32, 0.0  ;;  %v1082_v43 = vmax.f32 %v757_v33, 0.0  ;;  %v989_v44 = vadd.f32 %v988_v39, %v2983_v21  ;;  %v761_v45 = vadd.f32 %v760_v41, %v2986_v3  ;;  %v990_v46 = vpop.f32.mrb[91].mxu1 }
 0x1a1   : > { %v1174_v47 = vmax.f32 %v987_v37, 0.0  ;;  %v1083_v48 = vmax.f32 %v759_v38, 0.0  ;;  %v991_v49 = vadd.f32 %v990_v46, %v2986_v3  ;;  %1830 = sbr.rel (!%p2779_p4) target bundleno = 496 (0x1f0), region = 36 }
 0x1a2   : > { %v2499_v50 = vpack.c.bf16 %v1082_v43, %v1081_v36  ;;  %v1175_v51 = vmax.f32 %v989_v44, 0.0  ;;  %v1084_v52 = vmax.f32 %v761_v45, 0.0 }
 0x1a3   : > { %v2545_v53 = vpack.c.bf16 %v1174_v47, %v1173_v42  ;;  %v1176_v54 = vmax.f32 %v991_v49, 0.0 }
 0x1a4   : > { %1776 = vst.msk [vmem:[%s3000_s6 + $0x160] sm:$0xff] %vm2995_vm4, %v2499_v50  ;;  %v2500_v55 = vpack.c.bf16 %v1084_v52, %v1083_v48 }
 0x1a5   : > { %1822 = vst.msk [vmem:[%s3000_s6 + $0x2d0] sm:$0xff] %vm2995_vm4, %v2545_v53  ;;  %v2546_v21 = vpack.c.bf16 %v1176_v54, %v1175_v51 }
 0x1a6   : > { %1777 = vst.msk [vmem:[%s3000_s6 + $0x168] sm:$0xff] %vm2995_vm4, %v2500_v55 }
 0x1a7   : > { %1823 = vst.msk [vmem:[%s3000_s6 + $0x2d8] sm:$0xff] %vm2995_vm4, %v2546_v21 }
 0x1a8   : > { %s3676_s7 = smov (!%p1833_p8, %s1832_s7), 92 }
 0x1a9   : > { %s2547_s12 = sshll.u32 %s3676_s7, 7 }
 0x1aa   : > { %p2443_p9 = scmp.eq.s32.totalorder %s2547_s12, 0 }
 0x1ab   : > { %s3467_s14 = sshrl.u32 (!%p2443_p9), %s3676_s7, 6 }
 0x1ac   : > { %1843 = sbr.rel (%p2443_p9) target bundleno = 496 (0x1f0), region = 40  ;;  %p2444_p10 = scmp.le.s32.totalorder (!%p2443_p9), %s3467_s14, 0 }
 0x1b3   : > { %2249 = sbr.rel (%p2444_p10) target bundleno = 475 (0x1db), region = 116  ;;  %s3667_s15 = smov (!%p2444_p10), %s3461_s11 }
 0x1b4   : > { %s3668_s17 = smov (!%p2444_p10), %s3000_s6  ;;  %s3476_s18 = smov (!%p2444_p10), 0  }
 0x1b5   : > { %s3478_s20 = smov (!%p2444_p10), 0  }
 0x1ba LB: >> { %v2031_v3 = vld [vmem:[%s2707_s17] sm:$0xff]  ;;  %v2033_v40 = vld [vmem:[%s2707_s17 + $0x8] sm:$0xff]  ;;  %v2035_v56 = vld [vmem:[%s2707_s17 + $0x10] sm:$0xff]  ;;  %s2159_s21 = sadd.s32 1, %s2711_s18  ;;  %s2025_s20 = sadd.s32 1, %s2715_s20   ;;  %s2715_s20 = sphi %s3478_s20, %s2025_s20   ;;  %s2711_s18 = sphi %s3476_s18, %s3671_s18   ;;  %s2707_s17 = sphi %s3668_s17, %s3670_s17   ;;  %s2703_s15 = sphi %s3667_s15, %s3669_s15  }
 0x1bb   : >> { %2032 = vst [vmem:[%s2703_s15] sm:$0xff] %v2031_v3  ;;  %2034 = vst [vmem:[%s2703_s15 + $0x8] sm:$0xff] %v2033_v40  ;;  %v2037_v57 = vld [vmem:[%s2707_s17 + $0x18] sm:$0xff]  ;;  %v2039_v58 = vld [vmem:[%s2707_s17 + $0x20] sm:$0xff]  ;;  %p2160_p11 = scmp.ge.s32.totalorder %s2159_s21, %s3467_s14  ;;  %p2024_p12 = scmp.ge.s32.totalorder %s2025_s20, %s3467_s14 }
 0x1bc   : >> { %2036 = vst [vmem:[%s2703_s15 + $0x10] sm:$0xff] %v2035_v56  ;;  %v2041_v59 = vld [vmem:[%s2707_s17 + $0x28] sm:$0xff]  ;;  %2038 = vst [vmem:[%s2703_s15 + $0x18] sm:$0xff] %v2037_v57  ;;  %v2043_v60 = vld [vmem:[%s2707_s17 + $0x30] sm:$0xff] }
 0x1bd   : >> { %2040 = vst [vmem:[%s2703_s15 + $0x20] sm:$0xff] %v2039_v58  ;;  %2042 = vst [vmem:[%s2703_s15 + $0x28] sm:$0xff] %v2041_v59  ;;  %v2045_v61 = vld [vmem:[%s2707_s17 + $0x38] sm:$0xff]  ;;  %v2047_v62 = vld [vmem:[%s2707_s17 + $0x40] sm:$0xff]  ;;  %s3678_s21 = smov (%p2160_p11, %s2159_s21), 0 }
 0x1be   : >> { %2044 = vst [vmem:[%s2703_s15 + $0x30] sm:$0xff] %v2043_v60  ;;  %2046 = vst [vmem:[%s2703_s15 + $0x38] sm:$0xff] %v2045_v61  ;;  %v2049_v63 = vld [vmem:[%s2707_s17 + $0x48] sm:$0xff]  ;;  %v2051_v0 = vld [vmem:[%s2707_s17 + $0x50] sm:$0xff]  ;;  %s2445_s22 = sshll.u32 %s3678_s21, 9  ;;  %s3671_s18 = smov %s3678_s21 }
 0x1bf   : >> { %2048 = vst [vmem:[%s2703_s15 + $0x40] sm:$0xff] %v2047_v62  ;;  %v2053_v1 = vld [vmem:[%s2707_s17 + $0x58] sm:$0xff]  ;;  %2050 = vst [vmem:[%s2703_s15 + $0x48] sm:$0xff] %v2049_v63  ;;  %v2055_v2 = vld [vmem:[%s2707_s17 + $0x60] sm:$0xff]  ;;  %s3534_s23 = scalar_lea.vmem %s3000_s6, %s2445_s22 [#allocation2]   ;;  %s3537_s24 = scalar_lea.vmem %s3461_s11, %s2445_s22  }
 0x1c0   : >> { %2052 = vst [vmem:[%s2703_s15 + $0x50] sm:$0xff] %v2051_v0  ;;  %2054 = vst [vmem:[%s2703_s15 + $0x58] sm:$0xff] %v2053_v1  ;;  %v2057_v4 = vld [vmem:[%s2707_s17 + $0x68] sm:$0xff]  ;;  %v2059_v5 = vld [vmem:[%s2707_s17 + $0x70] sm:$0xff] }
 0x1c1   : >> { %2056 = vst [vmem:[%s2703_s15 + $0x60] sm:$0xff] %v2055_v2  ;;  %2058 = vst [vmem:[%s2703_s15 + $0x68] sm:$0xff] %v2057_v4  ;;  %v2061_v6 = vld [vmem:[%s2707_s17 + $0x78] sm:$0xff]  ;;  %v2063_v7 = vld [vmem:[%s2707_s17 + $0x80] sm:$0xff] }
 0x1c2   : >> { %2060 = vst [vmem:[%s2703_s15 + $0x70] sm:$0xff] %v2059_v5  ;;  %v2065_v8 = vld [vmem:[%s2707_s17 + $0x88] sm:$0xff]  ;;  %2062 = vst [vmem:[%s2703_s15 + $0x78] sm:$0xff] %v2061_v6  ;;  %v2067_v9 = vld [vmem:[%s2707_s17 + $0x90] sm:$0xff] }
 0x1c3   : >> { %2064 = vst [vmem:[%s2703_s15 + $0x80] sm:$0xff] %v2063_v7  ;;  %2066 = vst [vmem:[%s2703_s15 + $0x88] sm:$0xff] %v2065_v8  ;;  %v2069_v10 = vld [vmem:[%s2707_s17 + $0x98] sm:$0xff]  ;;  %v2071_v11 = vld [vmem:[%s2707_s17 + $0xa0] sm:$0xff] }
 0x1c4   : >> { %2068 = vst [vmem:[%s2703_s15 + $0x90] sm:$0xff] %v2067_v9  ;;  %2070 = vst [vmem:[%s2703_s15 + $0x98] sm:$0xff] %v2069_v10  ;;  %v2073_v12 = vld [vmem:[%s2707_s17 + $0xa8] sm:$0xff]  ;;  %v2075_v13 = vld [vmem:[%s2707_s17 + $0xb0] sm:$0xff] }
 0x1c5   : >> { %2072 = vst [vmem:[%s2703_s15 + $0xa0] sm:$0xff] %v2071_v11  ;;  %v2077_v14 = vld [vmem:[%s2707_s17 + $0xb8] sm:$0xff]  ;;  %2074 = vst [vmem:[%s2703_s15 + $0xa8] sm:$0xff] %v2073_v12  ;;  %v2079_v15 = vld [vmem:[%s2707_s17 + $0xc0] sm:$0xff] }
 0x1c6   : >> { %2076 = vst [vmem:[%s2703_s15 + $0xb0] sm:$0xff] %v2075_v13  ;;  %2078 = vst [vmem:[%s2703_s15 + $0xb8] sm:$0xff] %v2077_v14  ;;  %v2081_v16 = vld [vmem:[%s2707_s17 + $0xc8] sm:$0xff]  ;;  %v2083_v17 = vld [vmem:[%s2707_s17 + $0xd0] sm:$0xff] }
 0x1c7   : >> { %2080 = vst [vmem:[%s2703_s15 + $0xc0] sm:$0xff] %v2079_v15  ;;  %2082 = vst [vmem:[%s2703_s15 + $0xc8] sm:$0xff] %v2081_v16  ;;  %v2085_v18 = vld [vmem:[%s2707_s17 + $0xd8] sm:$0xff]  ;;  %v2087_v19 = vld [vmem:[%s2707_s17 + $0xe0] sm:$0xff] }
 0x1c8   : >> { %2084 = vst [vmem:[%s2703_s15 + $0xd0] sm:$0xff] %v2083_v17  ;;  %v2089_v20 = vld [vmem:[%s2707_s17 + $0xe8] sm:$0xff]  ;;  %2086 = vst [vmem:[%s2703_s15 + $0xd8] sm:$0xff] %v2085_v18  ;;  %v2091_v22 = vld [vmem:[%s2707_s17 + $0xf0] sm:$0xff] }
 0x1c9   : >> { %2088 = vst [vmem:[%s2703_s15 + $0xe0] sm:$0xff] %v2087_v19  ;;  %2090 = vst [vmem:[%s2703_s15 + $0xe8] sm:$0xff] %v2089_v20  ;;  %v2093_v23 = vld [vmem:[%s2707_s17 + $0xf8] sm:$0xff]  ;;  %v2095_v24 = vld [vmem:[%s2707_s17 + $0x100] sm:$0xff] }
 0x1ca   : >> { %2092 = vst [vmem:[%s2703_s15 + $0xf0] sm:$0xff] %v2091_v22  ;;  %2094 = vst [vmem:[%s2703_s15 + $0xf8] sm:$0xff] %v2093_v23  ;;  %v2097_v25 = vld [vmem:[%s2707_s17 + $0x108] sm:$0xff]  ;;  %v2099_v26 = vld [vmem:[%s2707_s17 + $0x110] sm:$0xff] }
 0x1cb   : >> { %2096 = vst [vmem:[%s2703_s15 + $0x100] sm:$0xff] %v2095_v24  ;;  %v2101_v27 = vld [vmem:[%s2707_s17 + $0x118] sm:$0xff]  ;;  %2098 = vst [vmem:[%s2703_s15 + $0x108] sm:$0xff] %v2097_v25  ;;  %v2103_v28 = vld [vmem:[%s2707_s17 + $0x120] sm:$0xff] }
 0x1cc   : >> { %2100 = vst [vmem:[%s2703_s15 + $0x110] sm:$0xff] %v2099_v26  ;;  %2102 = vst [vmem:[%s2703_s15 + $0x118] sm:$0xff] %v2101_v27  ;;  %v2105_v29 = vld [vmem:[%s2707_s17 + $0x128] sm:$0xff]  ;;  %v2107_v30 = vld [vmem:[%s2707_s17 + $0x130] sm:$0xff] }
 0x1cd   : >> { %2104 = vst [vmem:[%s2703_s15 + $0x120] sm:$0xff] %v2103_v28  ;;  %2106 = vst [vmem:[%s2703_s15 + $0x128] sm:$0xff] %v2105_v29  ;;  %v2109_v31 = vld [vmem:[%s2707_s17 + $0x138] sm:$0xff]  ;;  %v2111_v32 = vld [vmem:[%s2707_s17 + $0x140] sm:$0xff] }
 0x1ce   : >> { %2108 = vst [vmem:[%s2703_s15 + $0x130] sm:$0xff] %v2107_v30  ;;  %v2113_v33 = vld [vmem:[%s2707_s17 + $0x148] sm:$0xff]  ;;  %2110 = vst [vmem:[%s2703_s15 + $0x138] sm:$0xff] %v2109_v31  ;;  %v2115_v34 = vld [vmem:[%s2707_s17 + $0x150] sm:$0xff] }
 0x1cf   : >> { %2112 = vst [vmem:[%s2703_s15 + $0x140] sm:$0xff] %v2111_v32  ;;  %2114 = vst [vmem:[%s2703_s15 + $0x148] sm:$0xff] %v2113_v33  ;;  %v2117_v35 = vld [vmem:[%s2707_s17 + $0x158] sm:$0xff]  ;;  %v2119_v36 = vld [vmem:[%s2707_s17 + $0x160] sm:$0xff] }
 0x1d0   : >> { %2116 = vst [vmem:[%s2703_s15 + $0x150] sm:$0xff] %v2115_v34  ;;  %2118 = vst [vmem:[%s2703_s15 + $0x158] sm:$0xff] %v2117_v35  ;;  %v2121_v37 = vld [vmem:[%s2707_s17 + $0x168] sm:$0xff]  ;;  %v2123_v38 = vld [vmem:[%s2707_s17 + $0x170] sm:$0xff] }
 0x1d1   : >> { %2120 = vst [vmem:[%s2703_s15 + $0x160] sm:$0xff] %v2119_v36  ;;  %v2125_v39 = vld [vmem:[%s2707_s17 + $0x178] sm:$0xff]  ;;  %2122 = vst [vmem:[%s2703_s15 + $0x168] sm:$0xff] %v2121_v37  ;;  %v2127_v41 = vld [vmem:[%s2707_s17 + $0x180] sm:$0xff] }
 0x1d2   : >> { %2124 = vst [vmem:[%s2703_s15 + $0x170] sm:$0xff] %v2123_v38  ;;  %2126 = vst [vmem:[%s2703_s15 + $0x178] sm:$0xff] %v2125_v39  ;;  %v2129_v42 = vld [vmem:[%s2707_s17 + $0x188] sm:$0xff]  ;;  %v2131_v43 = vld [vmem:[%s2707_s17 + $0x190] sm:$0xff] }
 0x1d3   : >> { %2128 = vst [vmem:[%s2703_s15 + $0x180] sm:$0xff] %v2127_v41  ;;  %2130 = vst [vmem:[%s2703_s15 + $0x188] sm:$0xff] %v2129_v42  ;;  %v2133_v44 = vld [vmem:[%s2707_s17 + $0x198] sm:$0xff]  ;;  %v2135_v45 = vld [vmem:[%s2707_s17 + $0x1a0] sm:$0xff] }
 0x1d4   : >> { %2132 = vst [vmem:[%s2703_s15 + $0x190] sm:$0xff] %v2131_v43  ;;  %v2137_v46 = vld [vmem:[%s2707_s17 + $0x1a8] sm:$0xff]  ;;  %2134 = vst [vmem:[%s2703_s15 + $0x198] sm:$0xff] %v2133_v44  ;;  %v2139_v47 = vld [vmem:[%s2707_s17 + $0x1b0] sm:$0xff]  ;;  %2027 = sbr.rel (!%p2024_p12) target bundleno = 442 (0x1ba), region = 122 }
 0x1d5   : >> { %2136 = vst [vmem:[%s2703_s15 + $0x1a0] sm:$0xff] %v2135_v45  ;;  %2138 = vst [vmem:[%s2703_s15 + $0x1a8] sm:$0xff] %v2137_v46  ;;  %v2141_v48 = vld [vmem:[%s2707_s17 + $0x1b8] sm:$0xff]  ;;  %v2143_v49 = vld [vmem:[%s2707_s17 + $0x1c0] sm:$0xff] }
 0x1d6   : >> { %2140 = vst [vmem:[%s2703_s15 + $0x1b0] sm:$0xff] %v2139_v47  ;;  %2142 = vst [vmem:[%s2703_s15 + $0x1b8] sm:$0xff] %v2141_v48  ;;  %v2145_v50 = vld [vmem:[%s2707_s17 + $0x1c8] sm:$0xff]  ;;  %v2147_v51 = vld [vmem:[%s2707_s17 + $0x1d0] sm:$0xff] }
 0x1d7   : >> { %2144 = vst [vmem:[%s2703_s15 + $0x1c0] sm:$0xff] %v2143_v49  ;;  %v2149_v52 = vld [vmem:[%s2707_s17 + $0x1d8] sm:$0xff]  ;;  %2146 = vst [vmem:[%s2703_s15 + $0x1c8] sm:$0xff] %v2145_v50  ;;  %v2151_v53 = vld [vmem:[%s2707_s17 + $0x1e0] sm:$0xff] }
 0x1d8   : >> { %2148 = vst [vmem:[%s2703_s15 + $0x1d0] sm:$0xff] %v2147_v51  ;;  %2150 = vst [vmem:[%s2703_s15 + $0x1d8] sm:$0xff] %v2149_v52  ;;  %v2153_v54 = vld [vmem:[%s2707_s17 + $0x1e8] sm:$0xff]  ;;  %v2155_v55 = vld [vmem:[%s2707_s17 + $0x1f0] sm:$0xff] }
 0x1d9   : >> { %2152 = vst [vmem:[%s2703_s15 + $0x1e0] sm:$0xff] %v2151_v53  ;;  %2154 = vst [vmem:[%s2703_s15 + $0x1e8] sm:$0xff] %v2153_v54  ;;  %v2157_v21 = vld [vmem:[%s2707_s17 + $0x1f8] sm:$0xff]  ;;  %s3670_s17 = smov %s3534_s23 }
 0x1da   : >> { %2156 = vst [vmem:[%s2703_s15 + $0x1f0] sm:$0xff] %v2155_v55  ;;  %2158 = vst [vmem:[%s2703_s15 + $0x1f8] sm:$0xff] %v2157_v21  ;;  %s3669_s15 = smov %s3537_s24 }
 0x1db PF: > { %s3642_s25 = sand.u32 63, %s3676_s7   ;;  %s2550_s26 = sshll.u32 %s3467_s14, 9 }
 0x1dc   : > { %s2170_s27 = scalar_lea.vmem %s3000_s6, %s2550_s26 [#allocation2]   ;;  %s2172_s28 = scalar_lea.vmem %s3461_s11, %s2550_s26  }
 0x1dd   : > { %p2450_p13 = scmp.le.s32.totalorder %s3642_s25, 0 }
 0x1de   : > { %s2717_s29 = smov (!%p2450_p13), %s2172_s28   ;;  %s2721_s30 = smov (!%p2450_p13), %s2170_s27  }
 0x1df   : > { %2263 = sbr.rel (%p2450_p13) target bundleno = 496 (0x1f0), region = 127  ;;  %s2725_s4 = smov (!%p2450_p13), 0  }
 0x1e0   : > { %s2729_s5 = smov (!%p2450_p13), 0  }
 0x1e6 LB: >> { %v2182_v3 = vld [vmem:[%s2723_s30] sm:$0xff]  ;;  %s2184_s7 = sadd.s32 1, %s2727_s4  ;;  %s2176_s5 = sadd.s32 1, %s2731_s5   ;;  %s2731_s5 = sphi %s2729_s5, %s2176_s5   ;;  %s2727_s4 = sphi %s2725_s4, %s2726_s4   ;;  %s2723_s30 = sphi %s2721_s30, %s2189_s30   ;;  %s2719_s29 = sphi %s2717_s29, %s2190_s29  }
 0x1e7   : >> { %2183 = vst [vmem:[%s2719_s29] sm:$0xff] %v2182_v3  ;;  %p2185_p0 = scmp.ge.s32.totalorder %s2184_s7, %s3642_s25  ;;  %p2175_p1 = scmp.ge.s32.totalorder %s2176_s5, %s3642_s25 }
 0x1e9   : >> { %s3680_s7 = smov (%p2185_p0, %s2184_s7), 0  ;;  %2178 = sbr.rel (!%p2175_p1) target bundleno = 486 (0x1e6), region = 133 }
 0x1ea   : >> { %s2451_s6 = sshll.u32 %s3680_s7, 3  ;;  %s2726_s4 = smov %s3680_s7  }
 0x1eb   : >> { %s2189_s30 = scalar_lea.vmem %s2170_s27, %s2451_s6 [#allocation2]   ;;  %s2190_s29 = scalar_lea.vmem %s2172_s28, %s2451_s6  }
 0x1f0 PF: > { %p10_p2 = scmp.ge.s32.totalorder %s2769_s16, 4   ;;  %s3672_s12 = smov %s2695_s13 }
 0x1f1   : > { %s3673_s13 = smov %s2777_s19  ;;  %s3674_s14 = smov %s2769_s16 }
 0x1f2   :  { %12 = sbr.rel (!%p10_p2) target bundleno = 2 (0x2), region = 144 }

// kernel: inception_d_forward.9
= control target key start
LH: loop header
LB: loop body
LE: loop exit
PB: predicated region body
PF: predicated region fallthrough
CT: control target
= control target key end

     0   :  { %s3667_s12 = smov 0   ;;  %s3669_s13 = smov 0   ;;  %s4347_s0 = inlined_call_operand.vmem [shape: bf16[15,162,96], index: 0, kind: input, shape index: {}]   ;;  %s4348_s1 = inlined_call_operand.vmem [shape: bf16[7,96,96], index: 1, kind: input, shape index: {}]   ;;  %s4349_s2 = inlined_call_operand.vmem [shape: f32[1,96], index: 2, kind: input, shape index: {}]   ;;  %s4350_s3 = inlined_call_operand.vmem [shape: bf16[9,162,96], index: 3, kind: output, shape index: {}]  }
   0x1   :  { %s3671_s14 = smov 0   ;;  %s3673_s15 = smov 0  }
   0x2   :  { %s3675_s16 = smov 0   ;;  %s3677_s17 = smov 0  }
   0x3   :  { %s3679_s18 = smov 0   ;;  %s3681_s19 = smov 0  }
   0x4   :  { %s3683_s20 = smov 0  }
   0x5 LB: > { %s22_s21 = sadd.s32 1, %s3573_s18  ;;  %s25_s22 = sadd.s32 1, %s3577_s19  ;;  %s3581_s20 = sphi %s3683_s20, %s13_s20   ;;  %s3577_s19 = sphi %s3681_s19, %s4369_s19   ;;  %s3573_s18 = sphi %s3679_s18, %s4368_s18   ;;  %s3569_s17 = sphi %s3677_s17, %s4367_s17   ;;  %s3565_s16 = sphi %s3675_s16, %s4366_s16   ;;  %s3561_s15 = sphi %s3673_s15, %s4365_s15   ;;  %s3557_s14 = sphi %s3671_s14, %s4364_s14   ;;  %s3553_s13 = sphi %s3669_s13, %s4363_s13   ;;  %s3549_s12 = sphi %s3667_s12, %s4362_s12  }
   0x6   : > { %p23_p0 = scmp.ge.s32.totalorder %s22_s21, 9  ;;  %p39_p1 = scmp.ne.s32.totalorder %s3561_s15, %s3557_s14 }
   0x7   : > { %s2521_s23 = sadd.s32 4294967295, %s3581_s20   ;;  %p40_p2 = scmp.eq.s32.totalorder %s3581_s20, 0 }
   0x8   : > { %s4371_s21 = smov (%p23_p0, %s22_s21), 0  ;;  %s4373_s22 = smov (!%p23_p0, %s25_s22), %s3577_s19 }
   0x9   : > { %p27_p3 = scmp.ge.s32.totalorder %s4373_s22, 2  ;;  %s97_s24 = ssub.s32 %s3573_s18, %s4371_s21 }
   0xa   : > { %p3723_p4 = por %p40_p2, %p39_p1  ;;  %p112_p5 = scmp.ne.s32.totalorder %s3553_s13, %s3549_s12 }
   0xb   : > { %s4375_s22 = smov (%p27_p3, %s4373_s22), 0  ;;  %s32_s26 = sadd.s32 1, %s3561_s15 }
   0xc   : > { %p113_p6 = scmp.eq.s32.totalorder %s2521_s23, 17  ;;  %s29_s27 = ssub.s32 %s3577_s19, %s4375_s22 }
   0xd   : > { %s102_s28 = sadd.s32 1, %s3553_s13  ;;  %p30_p7 = scmp.eq.s32.totalorder %s29_s27, 0 }
   0xe   : > { %s99_s29 = sor.u32 %s97_s24, %s29_s27  ;;  %p3735_p9 = por %p113_p6, %p112_p5 }
   0xf   : > { %p100_p8 = scmp.eq.s32.totalorder %s99_s29, 0  ;;  %p2524_p10 = scmp.ge.s32.totalorder %s3581_s20, 18 }
  0x10   : > { %s3740_s4 = scalar_select %p30_p7, %s3561_s15, %s32_s26  }
  0x11   : > { %s3743_s5 = scalar_select %p100_p8, %s3553_s13, %s102_s28  }
  0x12   : > { %141 = sbr.rel (%p2524_p10) target bundleno = 153 (0x99), region = 24 }
  0x19   : > { %144 = sbr.rel (!%p3723_p4) target bundleno = 153 (0x99), region = 28  ;;  %s146_s6 = sand.u32 (%p3723_p4), 1, %s3561_s15  }
  0x1a   : > { %s149_s7 = smul.u32 (%p3723_p4), 11, %s3577_s19 }
  0x1b   : > { %s3149_s8 = smul.u32 (%p3723_p4), 660, %s146_s6 }
  0x1c   : > { %s150_s9 = ssub.s32 (%p3723_p4), 21, %s149_s7  ;;  %s2824_s10 = smul.u32 (%p3723_p4), 44, %s3577_s19 }
  0x1d   : > { %p151_p11 = scmp.lt.s32.totalorder (%p3723_p4), %s150_s9, 11  ;;  %s3759_s25 = scalar_lea.vmem (%p3723_p4), [#allocation2], %s3149_s8  }
  0x1e   : > { %s3754_s24 = scalar_lea.vmem (%p3723_p4), %s4347_s0, %s2824_s10  }
  0x20   : > { %s4377_s9 = smov (!%p151_p11, %s150_s9), 11 }
  0x21   : > { %s153_s26 = smul.u32 960, %s4377_s9 }
  0x23   : > { %p2527_p12 = scmp.eq.s32.totalorder %s153_s26, 0 }
  0x24   : > { %3355 = sdivrem.u32 (!%p2527_p12), %s4377_s9, 5 }
  0x25   : > { %159 = sbr.rel (%p2527_p12) target bundleno = 153 (0x99), region = 32 }
  0x2d   : > { %s3762_s27 = spop.drf %3355 }
  0x2e   : > { %p2528_p13 = scmp.le.s32.totalorder %s3762_s27, 0 }
  0x2f   : > { %s4353_s28 = smov (!%p2528_p13), %s3759_s25  ;;  %s4354_s29 = smov (!%p2528_p13), %s3754_s24 }
  0x30   : > { %2438 = sbr.rel (%p2528_p13) target bundleno = 115 (0x73), region = 206  ;;  %s3771_s6 = smov (!%p2528_p13), 0  }
  0x31   : > { %s3773_s7 = smov (!%p2528_p13), 0  }
  0x37 LB: >> { %v176_v0 = vld [vmem:[%s3589_s29] sm:$0xf]  ;;  %v178_v1 = vld [vmem:[%s3589_s29 + $0x4] sm:$0xf]  ;;  %v180_v2 = vld [vmem:[%s3589_s29 + $0x8] sm:$0xf]  ;;  %s3597_s7 = sphi %s3773_s7, %s170_s7   ;;  %s3593_s6 = sphi %s3771_s6, %s4355_s6   ;;  %s3589_s29 = sphi %s4354_s29, %s331_s29   ;;  %s3585_s28 = sphi %s4353_s28, %s332_s28  }
  0x38   : >> { %177 = vst [vmem:[%s3585_s28] sm:$0xf] %v176_v0  ;;  %179 = vst [vmem:[%s3585_s28 + $0x4] sm:$0xf] %v178_v1  ;;  %v182_v3 = vld [vmem:[%s3589_s29 + $0xc] sm:$0xf]  ;;  %s326_s8 = sadd.s32 1, %s3593_s6 }
  0x39   : >> { %181 = vst [vmem:[%s3585_s28 + $0x8] sm:$0xf] %v180_v2  ;;  %v184_v4 = vld [vmem:[%s3589_s29 + $0x10] sm:$0xf]  ;;  %v186_v5 = vld [vmem:[%s3589_s29 + $0x54] sm:$0xf]  ;;  %p327_p0 = scmp.ge.s32.totalorder %s326_s8, %s3762_s27 }
  0x3a   : >> { %183 = vst [vmem:[%s3585_s28 + $0xc] sm:$0xf] %v182_v3  ;;  %185 = vst [vmem:[%s3585_s28 + $0x10] sm:$0xf] %v184_v4  ;;  %v188_v6 = vld [vmem:[%s3589_s29 + $0x58] sm:$0xf] }
  0x3b   : >> { %187 = vst [vmem:[%s3585_s28 + $0x2c] sm:$0xf] %v186_v5  ;;  %v190_v7 = vld [vmem:[%s3589_s29 + $0x5c] sm:$0xf]  ;;  %v192_v8 = vld [vmem:[%s3589_s29 + $0x60] sm:$0xf] }
  0x3c   : >> { %189 = vst [vmem:[%s3585_s28 + $0x30] sm:$0xf] %v188_v6  ;;  %191 = vst [vmem:[%s3585_s28 + $0x34] sm:$0xf] %v190_v7  ;;  %v194_v9 = vld [vmem:[%s3589_s29 + $0x64] sm:$0xf] }
  0x3d   : >> { %193 = vst [vmem:[%s3585_s28 + $0x38] sm:$0xf] %v192_v8  ;;  %v196_v10 = vld [vmem:[%s3589_s29 + $0xa8] sm:$0xf]  ;;  %v198_v11 = vld [vmem:[%s3589_s29 + $0xac] sm:$0xf] }
  0x3e   : >> { %195 = vst [vmem:[%s3585_s28 + $0x3c] sm:$0xf] %v194_v9  ;;  %197 = vst [vmem:[%s3585_s28 + $0x58] sm:$0xf] %v196_v10  ;;  %v200_v12 = vld [vmem:[%s3589_s29 + $0xb0] sm:$0xf] }
  0x3f   : >> { %199 = vst [vmem:[%s3585_s28 + $0x5c] sm:$0xf] %v198_v11  ;;  %v202_v13 = vld [vmem:[%s3589_s29 + $0xb4] sm:$0xf]  ;;  %v204_v14 = vld [vmem:[%s3589_s29 + $0xb8] sm:$0xf] }
  0x40   : >> { %201 = vst [vmem:[%s3585_s28 + $0x60] sm:$0xf] %v200_v12  ;;  %203 = vst [vmem:[%s3585_s28 + $0x64] sm:$0xf] %v202_v13  ;;  %v206_v15 = vld [vmem:[%s3589_s29 + $0xfc] sm:$0xf] }
  0x41   : >> { %205 = vst [vmem:[%s3585_s28 + $0x68] sm:$0xf] %v204_v14  ;;  %v208_v16 = vld [vmem:[%s3589_s29 + $0x100] sm:$0xf]  ;;  %v210_v17 = vld [vmem:[%s3589_s29 + $0x104] sm:$0xf] }
  0x42   : >> { %207 = vst [vmem:[%s3585_s28 + $0x84] sm:$0xf] %v206_v15  ;;  %209 = vst [vmem:[%s3585_s28 + $0x88] sm:$0xf] %v208_v16  ;;  %v212_v18 = vld [vmem:[%s3589_s29 + $0x108] sm:$0xf] }
  0x43   : >> { %211 = vst [vmem:[%s3585_s28 + $0x8c] sm:$0xf] %v210_v17  ;;  %v214_v19 = vld [vmem:[%s3589_s29 + $0x10c] sm:$0xf]  ;;  %v216_v20 = vld [vmem:[%s3589_s29 + $0x150] sm:$0xf] }
  0x44   : >> { %213 = vst [vmem:[%s3585_s28 + $0x90] sm:$0xf] %v212_v18  ;;  %215 = vst [vmem:[%s3585_s28 + $0x94] sm:$0xf] %v214_v19  ;;  %v218_v21 = vld [vmem:[%s3589_s29 + $0x154] sm:$0xf] }
  0x45   : >> { %217 = vst [vmem:[%s3585_s28 + $0xb0] sm:$0xf] %v216_v20  ;;  %v220_v22 = vld [vmem:[%s3589_s29 + $0x158] sm:$0xf]  ;;  %v222_v23 = vld [vmem:[%s3589_s29 + $0x15c] sm:$0xf] }
  0x46   : >> { %219 = vst [vmem:[%s3585_s28 + $0xb4] sm:$0xf] %v218_v21  ;;  %221 = vst [vmem:[%s3585_s28 + $0xb8] sm:$0xf] %v220_v22  ;;  %v224_v24 = vld [vmem:[%s3589_s29 + $0x160] sm:$0xf] }
  0x47   : >> { %223 = vst [vmem:[%s3585_s28 + $0xbc] sm:$0xf] %v222_v23  ;;  %v226_v25 = vld [vmem:[%s3589_s29 + $0x1a4] sm:$0xf]  ;;  %v228_v26 = vld [vmem:[%s3589_s29 + $0x1a8] sm:$0xf] }
  0x48   : >> { %225 = vst [vmem:[%s3585_s28 + $0xc0] sm:$0xf] %v224_v24  ;;  %227 = vst [vmem:[%s3585_s28 + $0xdc] sm:$0xf] %v226_v25  ;;  %v230_v27 = vld [vmem:[%s3589_s29 + $0x1ac] sm:$0xf] }
  0x49   : >> { %229 = vst [vmem:[%s3585_s28 + $0xe0] sm:$0xf] %v228_v26  ;;  %v232_v28 = vld [vmem:[%s3589_s29 + $0x1b0] sm:$0xf]  ;;  %v234_v29 = vld [vmem:[%s3589_s29 + $0x1b4] sm:$0xf] }
  0x4a   : >> { %231 = vst [vmem:[%s3585_s28 + $0xe4] sm:$0xf] %v230_v27  ;;  %233 = vst [vmem:[%s3585_s28 + $0xe8] sm:$0xf] %v232_v28  ;;  %v236_v30 = vld [vmem:[%s3589_s29 + $0x1f8] sm:$0xf] }
  0x4b   : >> { %235 = vst [vmem:[%s3585_s28 + $0xec] sm:$0xf] %v234_v29  ;;  %v238_v31 = vld [vmem:[%s3589_s29 + $0x1fc] sm:$0xf]  ;;  %v240_v32 = vld [vmem:[%s3589_s29 + $0x200] sm:$0xf] }
  0x4c   : >> { %237 = vst [vmem:[%s3585_s28 + $0x108] sm:$0xf] %v236_v30  ;;  %239 = vst [vmem:[%s3585_s28 + $0x10c] sm:$0xf] %v238_v31  ;;  %v242_v33 = vld [vmem:[%s3589_s29 + $0x204] sm:$0xf] }
  0x4d   : >> { %241 = vst [vmem:[%s3585_s28 + $0x110] sm:$0xf] %v240_v32  ;;  %v244_v34 = vld [vmem:[%s3589_s29 + $0x208] sm:$0xf]  ;;  %v246_v35 = vld [vmem:[%s3589_s29 + $0x24c] sm:$0xf] }
  0x4e   : >> { %243 = vst [vmem:[%s3585_s28 + $0x114] sm:$0xf] %v242_v33  ;;  %245 = vst [vmem:[%s3585_s28 + $0x118] sm:$0xf] %v244_v34  ;;  %v248_v36 = vld [vmem:[%s3589_s29 + $0x250] sm:$0xf] }
  0x4f   : >> { %247 = vst [vmem:[%s3585_s28 + $0x134] sm:$0xf] %v246_v35  ;;  %v250_v37 = vld [vmem:[%s3589_s29 + $0x254] sm:$0xf]  ;;  %v252_v38 = vld [vmem:[%s3589_s29 + $0x258] sm:$0xf] }
  0x50   : >> { %249 = vst [vmem:[%s3585_s28 + $0x138] sm:$0xf] %v248_v36  ;;  %251 = vst [vmem:[%s3585_s28 + $0x13c] sm:$0xf] %v250_v37  ;;  %v254_v39 = vld [vmem:[%s3589_s29 + $0x25c] sm:$0xf] }
  0x51   : >> { %253 = vst [vmem:[%s3585_s28 + $0x140] sm:$0xf] %v252_v38  ;;  %v256_v40 = vld [vmem:[%s3589_s29 + $0x2a0] sm:$0xf]  ;;  %v258_v41 = vld [vmem:[%s3589_s29 + $0x2a4] sm:$0xf] }
  0x52   : >> { %255 = vst [vmem:[%s3585_s28 + $0x144] sm:$0xf] %v254_v39  ;;  %257 = vst [vmem:[%s3585_s28 + $0x160] sm:$0xf] %v256_v40  ;;  %v260_v42 = vld [vmem:[%s3589_s29 + $0x2a8] sm:$0xf] }
  0x53   : >> { %259 = vst [vmem:[%s3585_s28 + $0x164] sm:$0xf] %v258_v41  ;;  %v262_v43 = vld [vmem:[%s3589_s29 + $0x2ac] sm:$0xf]  ;;  %v264_v44 = vld [vmem:[%s3589_s29 + $0x2b0] sm:$0xf] }
  0x54   : >> { %261 = vst [vmem:[%s3585_s28 + $0x168] sm:$0xf] %v260_v42  ;;  %263 = vst [vmem:[%s3585_s28 + $0x16c] sm:$0xf] %v262_v43  ;;  %v266_v45 = vld [vmem:[%s3589_s29 + $0x2f4] sm:$0xf] }
  0x55   : >> { %265 = vst [vmem:[%s3585_s28 + $0x170] sm:$0xf] %v264_v44  ;;  %v268_v46 = vld [vmem:[%s3589_s29 + $0x2f8] sm:$0xf]  ;;  %v270_v47 = vld [vmem:[%s3589_s29 + $0x2fc] sm:$0xf] }
  0x56   : >> { %267 = vst [vmem:[%s3585_s28 + $0x18c] sm:$0xf] %v266_v45  ;;  %269 = vst [vmem:[%s3585_s28 + $0x190] sm:$0xf] %v268_v46  ;;  %v272_v48 = vld [vmem:[%s3589_s29 + $0x300] sm:$0xf] }
  0x57   : >> { %271 = vst [vmem:[%s3585_s28 + $0x194] sm:$0xf] %v270_v47  ;;  %v274_v49 = vld [vmem:[%s3589_s29 + $0x304] sm:$0xf]  ;;  %v276_v50 = vld [vmem:[%s3589_s29 + $0x348] sm:$0xf] }
  0x58   : >> { %273 = vst [vmem:[%s3585_s28 + $0x198] sm:$0xf] %v272_v48  ;;  %275 = vst [vmem:[%s3585_s28 + $0x19c] sm:$0xf] %v274_v49  ;;  %v278_v51 = vld [vmem:[%s3589_s29 + $0x34c] sm:$0xf] }
  0x59   : >> { %277 = vst [vmem:[%s3585_s28 + $0x1b8] sm:$0xf] %v276_v50  ;;  %v280_v52 = vld [vmem:[%s3589_s29 + $0x350] sm:$0xf]  ;;  %v282_v53 = vld [vmem:[%s3589_s29 + $0x354] sm:$0xf] }
  0x5a   : >> { %279 = vst [vmem:[%s3585_s28 + $0x1bc] sm:$0xf] %v278_v51  ;;  %281 = vst [vmem:[%s3585_s28 + $0x1c0] sm:$0xf] %v280_v52  ;;  %v284_v54 = vld [vmem:[%s3589_s29 + $0x358] sm:$0xf] }
  0x5b   : >> { %283 = vst [vmem:[%s3585_s28 + $0x1c4] sm:$0xf] %v282_v53  ;;  %v286_v55 = vld [vmem:[%s3589_s29 + $0x39c] sm:$0xf]  ;;  %v288_v56 = vld [vmem:[%s3589_s29 + $0x3a0] sm:$0xf] }
  0x5c   : >> { %285 = vst [vmem:[%s3585_s28 + $0x1c8] sm:$0xf] %v284_v54  ;;  %287 = vst [vmem:[%s3585_s28 + $0x1e4] sm:$0xf] %v286_v55  ;;  %v290_v57 = vld [vmem:[%s3589_s29 + $0x3a4] sm:$0xf] }
  0x5d   : >> { %289 = vst [vmem:[%s3585_s28 + $0x1e8] sm:$0xf] %v288_v56  ;;  %v292_v58 = vld [vmem:[%s3589_s29 + $0x3a8] sm:$0xf]  ;;  %v294_v59 = vld [vmem:[%s3589_s29 + $0x3ac] sm:$0xf] }
  0x5e   : >> { %291 = vst [vmem:[%s3585_s28 + $0x1ec] sm:$0xf] %v290_v57  ;;  %293 = vst [vmem:[%s3585_s28 + $0x1f0] sm:$0xf] %v292_v58  ;;  %v296_v60 = vld [vmem:[%s3589_s29 + $0x3f0] sm:$0xf] }
  0x5f   : >> { %295 = vst [vmem:[%s3585_s28 + $0x1f4] sm:$0xf] %v294_v59  ;;  %v298_v61 = vld [vmem:[%s3589_s29 + $0x3f4] sm:$0xf]  ;;  %v300_v62 = vld [vmem:[%s3589_s29 + $0x3f8] sm:$0xf] }
  0x60   : >> { %297 = vst [vmem:[%s3585_s28 + $0x210] sm:$0xf] %v296_v60  ;;  %299 = vst [vmem:[%s3585_s28 + $0x214] sm:$0xf] %v298_v61  ;;  %v302_v63 = vld [vmem:[%s3589_s29 + $0x3fc] sm:$0xf] }
  0x61   : >> { %301 = vst [vmem:[%s3585_s28 + $0x218] sm:$0xf] %v300_v62  ;;  %v304_v0 = vld [vmem:[%s3589_s29 + $0x400] sm:$0xf]  ;;  %v306_v1 = vld [vmem:[%s3589_s29 + $0x444] sm:$0xf] }
  0x62   : >> { %303 = vst [vmem:[%s3585_s28 + $0x21c] sm:$0xf] %v302_v63  ;;  %305 = vst [vmem:[%s3585_s28 + $0x220] sm:$0xf] %v304_v0  ;;  %v308_v2 = vld [vmem:[%s3589_s29 + $0x448] sm:$0xf] }
  0x63   : >> { %307 = vst [vmem:[%s3585_s28 + $0x23c] sm:$0xf] %v306_v1  ;;  %v310_v3 = vld [vmem:[%s3589_s29 + $0x44c] sm:$0xf]  ;;  %v312_v4 = vld [vmem:[%s3589_s29 + $0x450] sm:$0xf] }
  0x64   : >> { %309 = vst [vmem:[%s3585_s28 + $0x240] sm:$0xf] %v308_v2  ;;  %311 = vst [vmem:[%s3585_s28 + $0x244] sm:$0xf] %v310_v3  ;;  %v314_v5 = vld [vmem:[%s3589_s29 + $0x454] sm:$0xf] }
  0x65   : >> { %313 = vst [vmem:[%s3585_s28 + $0x248] sm:$0xf] %v312_v4  ;;  %v316_v6 = vld [vmem:[%s3589_s29 + $0x498] sm:$0xf]  ;;  %v318_v7 = vld [vmem:[%s3589_s29 + $0x49c] sm:$0xf] }
  0x66   : >> { %315 = vst [vmem:[%s3585_s28 + $0x24c] sm:$0xf] %v314_v5  ;;  %317 = vst [vmem:[%s3585_s28 + $0x268] sm:$0xf] %v316_v6  ;;  %v320_v8 = vld [vmem:[%s3589_s29 + $0x4a0] sm:$0xf] }
  0x67   : >> { %319 = vst [vmem:[%s3585_s28 + $0x26c] sm:$0xf] %v318_v7  ;;  %v322_v9 = vld [vmem:[%s3589_s29 + $0x4a4] sm:$0xf]  ;;  %v324_v10 = vld [vmem:[%s3589_s29 + $0x4a8] sm:$0xf] }
  0x68   : >> { %321 = vst [vmem:[%s3585_s28 + $0x270] sm:$0xf] %v320_v8  ;;  %323 = vst [vmem:[%s3585_s28 + $0x274] sm:$0xf] %v322_v9  ;;  %s4379_s8 = smov (%p327_p0, %s326_s8), 0  ;;  %s170_s7 = sadd.s32 1, %s3597_s7  }
  0x69   : >> { %325 = vst [vmem:[%s3585_s28 + $0x278] sm:$0xf] %v324_v10  ;;  %s329_s10 = smul.u32 20, %s4379_s8  ;;  %p169_p1 = scmp.ge.s32.totalorder %s170_s7, %s3762_s27 }
  0x6a   : >> { %s4355_s6 = smov %s4379_s8 }
  0x6b   : >> { %s331_s29 = scalar_lea.vmem %s3754_s24, %s329_s10   ;;  %s332_s28 = scalar_lea.vmem %s3759_s25, %s329_s10 [#allocation2]  }
  0x6c   : > { %172 = sbr.rel (!%p169_p1) target bundleno = 55 (0x37), region = 212 }
  0x73 PF: > { %3357 = sdivrem.u32 %s4377_s9, 5 }
  0x74   : > { %s2529_s11 = smul.u32 20, %s3762_s27 }
  0x76   : > { %s3954_s23 = scalar_lea.vmem %s3754_s24, %s2529_s11   ;;  %s3957_s26 = scalar_lea.vmem %s3759_s25, %s2529_s11 [#allocation2]  }
  0x7c   : > { %s3959_s10 = spop.drf %3357 }
  0x7d   : > { %p2531_p2 = scmp.le.s32.totalorder %s3959_s10, 0 }
  0x7e   : > { %s4356_s7 = smov (!%p2531_p2), %s3957_s26  ;;  %s4357_s28 = smov (!%p2531_p2), %s3954_s23 }
  0x7f   : > { %2452 = sbr.rel (%p2531_p2) target bundleno = 153 (0x99), region = 217  ;;  %s3968_s29 = smov (!%p2531_p2), 0  }
  0x80   : > { %s3970_s6 = smov (!%p2531_p2), 0  }
  0x86 LB: >> { %v349_v11 = vld [vmem:[%s3605_s28] sm:$0xf]  ;;  %v351_v12 = vld [vmem:[%s3605_s28 + $0x54] sm:$0xf]  ;;  %v353_v13 = vld [vmem:[%s3605_s28 + $0xa8] sm:$0xf]  ;;  %s3613_s6 = sphi %s3970_s6, %s343_s6   ;;  %s3609_s29 = sphi %s3968_s29, %s4358_s29   ;;  %s3605_s28 = sphi %s4357_s28, %s384_s28   ;;  %s3601_s7 = sphi %s4356_s7, %s385_s7  }
  0x87   : >> { %350 = vst [vmem:[%s3601_s7] sm:$0xf] %v349_v11  ;;  %352 = vst [vmem:[%s3601_s7 + $0x2c] sm:$0xf] %v351_v12  ;;  %v355_v14 = vld [vmem:[%s3605_s28 + $0xfc] sm:$0xf]  ;;  %s379_s9 = sadd.s32 1, %s3609_s29 }
  0x88   : >> { %354 = vst [vmem:[%s3601_s7 + $0x58] sm:$0xf] %v353_v13  ;;  %v357_v15 = vld [vmem:[%s3605_s28 + $0x150] sm:$0xf]  ;;  %v359_v16 = vld [vmem:[%s3605_s28 + $0x1a4] sm:$0xf]  ;;  %p380_p3 = scmp.ge.s32.totalorder %s379_s9, %s3959_s10 }
  0x89   : >> { %356 = vst [vmem:[%s3601_s7 + $0x84] sm:$0xf] %v355_v14  ;;  %358 = vst [vmem:[%s3601_s7 + $0xb0] sm:$0xf] %v357_v15  ;;  %v361_v17 = vld [vmem:[%s3605_s28 + $0x1f8] sm:$0xf] }
  0x8a   : >> { %360 = vst [vmem:[%s3601_s7 + $0xdc] sm:$0xf] %v359_v16  ;;  %v363_v18 = vld [vmem:[%s3605_s28 + $0x24c] sm:$0xf]  ;;  %v365_v19 = vld [vmem:[%s3605_s28 + $0x2a0] sm:$0xf] }
  0x8b   : >> { %362 = vst [vmem:[%s3601_s7 + $0x108] sm:$0xf] %v361_v17  ;;  %364 = vst [vmem:[%s3601_s7 + $0x134] sm:$0xf] %v363_v18  ;;  %v367_v20 = vld [vmem:[%s3605_s28 + $0x2f4] sm:$0xf] }
  0x8c   : >> { %366 = vst [vmem:[%s3601_s7 + $0x160] sm:$0xf] %v365_v19  ;;  %v369_v21 = vld [vmem:[%s3605_s28 + $0x348] sm:$0xf]  ;;  %v371_v22 = vld [vmem:[%s3605_s28 + $0x39c] sm:$0xf] }
  0x8d   : >> { %368 = vst [vmem:[%s3601_s7 + $0x18c] sm:$0xf] %v367_v20  ;;  %370 = vst [vmem:[%s3601_s7 + $0x1b8] sm:$0xf] %v369_v21  ;;  %v373_v23 = vld [vmem:[%s3605_s28 + $0x3f0] sm:$0xf] }
  0x8e   : >> { %372 = vst [vmem:[%s3601_s7 + $0x1e4] sm:$0xf] %v371_v22  ;;  %v375_v24 = vld [vmem:[%s3605_s28 + $0x444] sm:$0xf]  ;;  %v377_v25 = vld [vmem:[%s3605_s28 + $0x498] sm:$0xf] }
  0x8f   : >> { %374 = vst [vmem:[%s3601_s7 + $0x210] sm:$0xf] %v373_v23  ;;  %376 = vst [vmem:[%s3601_s7 + $0x23c] sm:$0xf] %v375_v24  ;;  %s4381_s9 = smov (%p380_p3, %s379_s9), 0  ;;  %s343_s6 = sadd.s32 1, %s3613_s6  }
  0x90   : >> { %378 = vst [vmem:[%s3601_s7 + $0x268] sm:$0xf] %v377_v25  ;;  %s2532_s24 = sshll.u32 %s4381_s9, 2  ;;  %p342_p4 = scmp.ge.s32.totalorder %s343_s6, %s3959_s10 }
  0x91   : >> { %s384_s28 = scalar_lea.vmem %s3954_s23, %s2532_s24   ;;  %s385_s7 = scalar_lea.vmem %s3957_s26, %s2532_s24 [#allocation2]  }
  0x92   : >> { %s4358_s29 = smov %s4381_s9  ;;  %345 = sbr.rel (!%p342_p4) target bundleno = 134 (0x86), region = 223 }
  0x99 PF: > { %p2534_p5 = scmp.ge.s32.totalorder %s3581_s20, 1  ;;  %p653_p6 = scmp.lt.s32.totalorder %s3581_s20, 19 }
  0x9b   : > { %p654_p7 = pnand %p2534_p5, %p653_p6 }
  0x9c   : > { %v3359_v26 = vld [vmem:[%s4348_s1 + $0x30] sm:$0xff] (!%p654_p7)   ;;  %s660_s8 = sand.u32 (!%p654_p7), 1, %s3557_s14   ;;  %v3361_v28 = vld [vmem:[%s4348_s1 + $0x38] sm:$0xff] (!%p654_p7)   ;;  %v3363_v30 = vld [vmem:[%s4348_s1 + $0x40] sm:$0xff] (!%p654_p7)   ;;  %s2825_s25 = smul.u32 (!%p654_p7), 44, %s3565_s16  ;;  %vm811_vm0 = vcmask (!%p654_p7), 785408  }
  0x9d   : > { %657 = sbr.rel (%p654_p7) target bundleno = 554 (0x22a), region = 90  ;;  %v3360_v27 = vld [vmem:[%s4348_s1 + $0x90] sm:$0xff] (!%p654_p7)   ;;  %2921 = vmatprep.subr.bf16.mxu1 (!%p654_p7), %v3359_v26  ;;  %v3362_v29 = vld [vmem:[%s4348_s1 + $0x98] sm:$0xff] (!%p654_p7)   ;;  %v3364_v31 = vld [vmem:[%s4348_s1 + $0xa0] sm:$0xff] (!%p654_p7)   ;;  %vm2151_vm1 = vcmask (!%p654_p7), 781312  }
  0x9e   : > { %s3150_s10 = smul.u32 (!%p654_p7), 660, %s660_s8  ;;  %2993 = vmatprep.subr.bf16.mxu0 (!%p654_p7), %v3360_v27  ;;  %2922 = vmatpush3.bf16.msra.mxu1 (!%p654_p7), %v3359_v26  ;;  %v3365_v32 = vld [vmem:[%s4348_s1 + $0x48] sm:$0xff] (!%p654_p7)   ;;  %v3367_v34 = vld [vmem:[%s4348_s1 + $0x50] sm:$0xff] (!%p654_p7)   ;;  %v3369_v38 = vld [vmem:[%s4348_s1 + $0x58] sm:$0xff] (!%p654_p7)  }
  0x9f   : > { %2994 = vmatpush3.bf16.msra.mxu0 (!%p654_p7), %v3360_v27  ;;  %2923 = vmatprep.subr.bf16.mxu1 (!%p654_p7), %v3361_v28  ;;  %v3366_v33 = vld [vmem:[%s4348_s1 + $0xa8] sm:$0xff] (!%p654_p7)   ;;  %v3368_v35 = vld [vmem:[%s4348_s1 + $0xb0] sm:$0xff] (!%p654_p7)   ;;  %v3370_v39 = vld [vmem:[%s4348_s1 + $0xb8] sm:$0xff] (!%p654_p7)  }
  0xa0   : > { %2995 = vmatprep.subr.bf16.mxu0 (!%p654_p7), %v3362_v29  ;;  %s662_s23 = scalar_lea.vmem (!%p654_p7), [#allocation2], %s3150_s10  ;;  %v3374_v41 = vld [vmem:[%s4348_s1] sm:$0xff] (!%p654_p7)   ;;  %v3377_v44 = vld [vmem:[%s4348_s1 + $0x8] sm:$0xff] (!%p654_p7)   ;;  %v3382_v49 = vld [vmem:[%s4348_s1 + $0x10] sm:$0xff] (!%p654_p7)  }
  0xa1   : > { %s4039_s26 = scalar_lea.vmem (!%p654_p7), %s662_s23, %s2825_s25 [#allocation2]  ;;  %v3376_v42 = vld [vmem:[%s4348_s1 + $0xc0] sm:$0xff] (!%p654_p7)   ;;  %v3378_v45 = vld [vmem:[%s4348_s1 + $0xc8] sm:$0xff] (!%p654_p7)   ;;  %v3384_v50 = vld [vmem:[%s4348_s1 + $0xd0] sm:$0xff] (!%p654_p7)  }
  0xa2   : > { %2924 = vmatpush3.bf16.msra.mxu1 (!%p654_p7), %v3361_v28  ;;  %v3371_v36 = vld [vmem:[%s4039_s26 + $0x2c] sm:$0xff] (!%p654_p7)   ;;  %v3372_v37 = vld [vmem:[%s4039_s26 + $0x84] sm:$0xff] (!%p654_p7)   ;;  %v3373_v40 = vld [vmem:[%s4039_s26 + $0x34] sm:$0xff] (!%p654_p7)  }
  0xa3   : > { %2996 = vmatpush3.bf16.msra.mxu0 (!%p654_p7), %v3362_v29  ;;  %2925 = vmatprep.subr.bf16.mxu1 (!%p654_p7), %v3363_v30  ;;  %v3375_v43 = vld [vmem:[%s4039_s26 + $0x8c] sm:$0xff] (!%p654_p7)   ;;  %v3379_v46 = vld [vmem:[%s4039_s26 + $0x3c] sm:$0xff] (!%p654_p7)   ;;  %v3380_v47 = vld [vmem:[%s4039_s26 + $0x94] sm:$0xff] (!%p654_p7)  }
  0xa4   : > { %2997 = vmatprep.subr.bf16.mxu0 %v3364_v31  ;;  %2933 = vmatprep.mubr.msk.bf16.mxu1 %vm811_vm0, %v3371_v36  ;;  %v3381_v48 = vld [vmem:[%s4039_s26 + $0x44] sm:$0xff]   ;;  %v3383_v51 = vld [vmem:[%s4039_s26 + $0x9c] sm:$0xff]   ;;  %v3387_v54 = vld [vmem:[%s4039_s26 + $0x4c] sm:$0xff]   ;;  %s2170_s24 = smul.u32 (%p3735_p9), 11, %s3569_s17 }
  0xa5   : > { %3005 = vmatprep.mubr.msk.bf16.mxu0 %vm811_vm0, %v3372_v37  ;;  %v3385_v52 = vld [vmem:[%s4348_s1 + $0x18] sm:$0xff]   ;;  %v3388_v55 = vld [vmem:[%s4039_s26 + $0xa4] sm:$0xff]   ;;  %v3389_v56 = vld [vmem:[%s4039_s26 + $0x54] ss:$0 sps:$4 sm:$0xff]   ;;  %s3152_s25 = smul.u32 (%p3735_p9), 21, %s3565_s16 }
  0xa6   : > { %2926 = vmatpush3.bf16.msra.mxu1 %v3363_v30  ;;  %v3386_v53 = vld [vmem:[%s4348_s1 + $0xd8] sm:$0xff]   ;;  %v3390_v57 = vld [vmem:[%s4348_s1 + $0x20] sm:$0xff]   ;;  %v3391_v59 = vld [vmem:[%s4039_s26 + $0xac] ss:$0 sps:$4 sm:$0xff]   ;;  %s2171_s27 = ssub.s32 (%p3735_p9), 21, %s2170_s24 }
  0xa7   : > { %2998 = vmatpush3.bf16.msra.mxu0 %v3364_v31  ;;  %2927 = vmatprep.subr.bf16.mxu1 %v3365_v32  ;;  %v3392_v58 = vld [vmem:[%s4348_s1 + $0xe0] sm:$0xff]   ;;  %v3393_v60 = vld [vmem:[%s4348_s1 + $0x28] sm:$0xff]   ;;  %v3396_v63 = vld [vmem:[%s4039_s26 + $0xb0] sm:$0xff]   ;;  %p2172_p8 = scmp.lt.s32.totalorder (%p3735_p9), %s2171_s27, 11  ;;  %s2177_s8 = sadd.s32 (%p3735_p9), %s3152_s25, %s2170_s24 }
  0xa8   : > { %2999 = vmatprep.subr.bf16.mxu0 %v3366_v33  ;;  %v3394_v61 = vld [vmem:[%s4348_s1 + $0xe8] sm:$0xff]   ;;  %v3395_v62 = vld [vmem:[%s4039_s26] sm:$0xff]   ;;  %v3400_v2 = vld [vmem:[%s4348_s1 + $0xf0] sm:$0xff]   ;;  %s2814_s11 = sshll.u32 (%p3735_p9), %s2177_s8, 2 }
  0xa9   : > { %v3397_v0 = vld [vmem:[%s4039_s26 + $0x8] sm:$0xff]   ;;  %v3398_v1 = vld [vmem:[%s4348_s1 + $0x60] sm:$0xff]   ;;  %v3399_v3 = vld [vmem:[%s4039_s26 + $0xb8] sm:$0xff]   ;;  %s4280_s7 = scalar_lea.vmem (%p3735_p9), %s4350_s3, %s2814_s11  }
  0xaa   : > { %2928 = vmatpush3.bf16.msra.mxu1 %v3365_v32  ;;  %v3401_v4 = vld [vmem:[%s4348_s1 + $0x68] sm:$0xff]   ;;  %v3402_v5 = vld [vmem:[%s4348_s1 + $0xf8] sm:$0xff]   ;;  %v3403_v6 = vld [vmem:[%s4039_s26 + $0x10] sm:$0xff]  }
  0xab   : > { %3000 = vmatpush3.bf16.msra.mxu0 %v3366_v33  ;;  %2929 = vmatprep.subr.bf16.mxu1 %v3367_v34  ;;  %v3404_v7 = vld [vmem:[%s4039_s26 + $0xc0] sm:$0xff]   ;;  %v3406_v8 = vld [vmem:[%s4348_s1 + $0x70] sm:$0xff]   ;;  %v3405_v9 = vld [vmem:[%s4039_s26 + $0x18] sm:$0xff]  }
  0xac   : > { %3001 = vmatprep.subr.bf16.mxu0 %v3368_v35  ;;  %v3408_v10 = vld [vmem:[%s4348_s1 + $0x100] sm:$0xff]   ;;  %v3407_v11 = vld [vmem:[%s4039_s26 + $0xc8] sm:$0xff]   ;;  %v3409_v12 = vld [vmem:[%s4348_s1 + $0x78] sm:$0xff]  }
  0xad   : > { %v3410_v13 = vld [vmem:[%s4348_s1 + $0x108] sm:$0xff]   ;;  %v3411_v14 = vld [vmem:[%s4039_s26 + $0x20] sm:$0xff]   ;;  %v3412_v15 = vld [vmem:[%s4039_s26 + $0xd0] sm:$0xff]  }
  0xae   : > { %2930 = vmatpush3.bf16.msra.mxu1 %v3367_v34  ;;  %v3413_v16 = vld [vmem:[%s4039_s26 + $0x28] ss:$0 sps:$4 sm:$0xff]   ;;  %v3414_v17 = vld [vmem:[%s4348_s1 + $0x80] sm:$0xff]   ;;  %v3416_v18 = vld [vmem:[%s4348_s1 + $0x110] sm:$0xff]  }
  0xaf   : > { %3002 = vmatpush3.bf16.msra.mxu0 %v3368_v35  ;;  %2931 = vmatprep.subr.bf16.mxu1 %v3369_v38  ;;  %v3415_v19 = vld [vmem:[%s4039_s26 + $0xd8] ss:$0 sps:$4 sm:$0xff]   ;;  %v3417_v20 = vld [vmem:[%s4348_s1 + $0x88] sm:$0xff]   ;;  %v3420_v23 = vld [vmem:[%s4039_s26 + $0xdc] sm:$0xff]  }
  0xb0   : > { %3003 = vmatprep.subr.bf16.mxu0 %v3370_v39  ;;  %v3418_v21 = vld [vmem:[%s4348_s1 + $0x118] sm:$0xff]   ;;  %v3423_v24 = vld [vmem:[%s4348_s1 + $0x120] sm:$0xff]   ;;  %v3424_v27 = vld [vmem:[%s4348_s1 + $0x128] sm:$0xff]  }
  0xb1   : > { %v3419_v22 = vld [vmem:[%s4039_s26 + $0x58] sm:$0xff]   ;;  %v3421_v25 = vld [vmem:[%s4039_s26 + $0x60] sm:$0xff]   ;;  %v3425_v28 = vld [vmem:[%s4039_s26 + $0x68] sm:$0xff]  }
  0xb2   : > { %2932 = vmatpush3.bf16.msra.mxu1 %v3369_v38  ;;  %v3422_v26 = vld [vmem:[%s4039_s26 + $0xe4] sm:$0xff]   ;;  %v3426_v29 = vld [vmem:[%s4039_s26 + $0xec] sm:$0xff]   ;;  %v3428_v32 = vld [vmem:[%s4039_s26 + $0xf4] sm:$0xff]  }
  0xb3   : > { %3004 = vmatpush3.bf16.msra.mxu0 %v3370_v39  ;;  %2945 = vmatprep.subr.bf16.mxu1 %v3374_v41  ;;  %v3429_v30 = vld [vmem:[%s4348_s1 + $0x130] sm:$0xff]   ;;  %v3430_v33 = vld [vmem:[%s4348_s1 + $0x138] sm:$0xff]   ;;  %v3435_v36 = vld [vmem:[%s4348_s1 + $0x140] sm:$0xff]  }
  0xb4   : > { %3017 = vmatprep.subr.bf16.mxu0 %v3376_v42  ;;  %v3427_v31 = vld [vmem:[%s4039_s26 + $0x70] sm:$0xff]   ;;  %v3431_v34 = vld [vmem:[%s4039_s26 + $0x78] sm:$0xff]   ;;  %v3433_v37 = vld [vmem:[%s4039_s26 + $0x80] ss:$0 sps:$4 sm:$0xff]  }
  0xb5   : > { %2934 = vmatmul.mubr.msk.bf16.vlgmr.msra.gmra.mrb[0].mxu1 %vm811_vm0, %v3373_v40  ;;  %v3432_v35 = vld [vmem:[%s4039_s26 + $0xfc] sm:$0xff]   ;;  %v3434_v38 = vld [vmem:[%s4039_s26 + $0x104] ss:$0 sps:$4 sm:$0xff]   ;;  %v3436_v39 = vld [vmem:[%s4348_s1 + $0x148] sm:$0xff]  }
  0xb6   : > { %3006 = vmatmul.mubr.msk.bf16.vlgmr.msra.gmra.mrb[0].mxu0 %vm811_vm0, %v3375_v43  ;;  %2946 = vmatpush3.bf16.msra.mxu1 %v3374_v41  ;;  %v3437_v40 = vld [vmem:[%s4039_s26 + $0x108] sm:$0xff]   ;;  %v3438_v41 = vld [vmem:[%s4039_s26 + $0x118] sm:$0xff]   ;;  %v3439_v43 = vld [vmem:[%s4039_s26 + $0x110] sm:$0xff]  }
  0xb7   : > { %3018 = vmatpush3.bf16.msra.mxu0 %v3376_v42  ;;  %2947 = vmatprep.subr.bf16.mxu1 %v3377_v44  ;;  %v3440_v42 = vld [vmem:[%s4039_s26 + $0x120] sm:$0xff]  }
  0xb8   : > { %3019 = vmatprep.subr.bf16.mxu0 %v3378_v45  ;;  %2937 = vmatprep.mubr.msk.bf16.mxu1 %vm811_vm0, %v3379_v46 }
  0xb9   : > { %3009 = vmatprep.mubr.msk.bf16.mxu0 %vm811_vm0, %v3380_v47 }
  0xba   : > { %2948 = vmatpush3.bf16.msra.mxu1 %v3377_v44  ;;  %v3441_v44 = vld [vmem:[%s4039_s26 + $0x128] sm:$0xff]  }
  0xbb   : > { %3020 = vmatpush3.bf16.msra.mxu0 %v3378_v45  ;;  %2949 = vmatprep.subr.bf16.mxu1 %v3382_v49  ;;  %v3442_v45 = vld [vmem:[%s4039_s26 + $0x130] ss:$0 sps:$4 sm:$0xff]   ;;  %s679_s26 = sand.u32 1, %s3549_s12  }
  0xbc   : > { %3021 = vmatprep.subr.bf16.mxu0 %v3384_v50  ;;  %s4233_s9 = smul.u32 44, %s679_s26 }
  0xbd   : > { %2938 = vmatmul.mubr.msk.bf16.gmra.mrb[4].mxu1 %vm811_vm0, %v3381_v48 }
  0xbe   : > { %3010 = vmatmul.mubr.msk.bf16.gmra.mrb[4].mxu0 %vm811_vm0, %v3383_v51  ;;  %2950 = vmatpush3.bf16.msra.mxu1 %v3382_v49  ;;  %s4244_s12 = scalar_lea.vmem [#allocation3], %s4233_s9  }
  0xbf   : > { %3022 = vmatpush3.bf16.msra.mxu0 %v3384_v50  ;;  %2951 = vmatprep.subr.bf16.mxu1 %v3385_v52 }
  0xc0   : > { %3023 = vmatprep.subr.bf16.mxu0 %v3386_v53  ;;  %2941 = vmatprep.mubr.msk.bf16.mxu1 %vm811_vm0, %v3387_v54 }
  0xc1   : > { %3013 = vmatprep.mubr.msk.bf16.mxu0 %vm811_vm0, %v3388_v55 }
  0xc2   : > { %2952 = vmatpush3.bf16.msra.mxu1 %v3385_v52 }
  0xc3   : > { %3024 = vmatpush3.bf16.msra.mxu0 %v3386_v53  ;;  %2953 = vmatprep.subr.bf16.mxu1 %v3390_v57 }
  0xc4   : > { %3025 = vmatprep.subr.bf16.mxu0 %v3392_v58 }
  0xc5   : > { %2942 = vmatmul.mubr.msk.bf16.gmra.mrb[8].mxu1 %vm811_vm0, %v3389_v56 }
  0xc6   : > { %3014 = vmatmul.mubr.msk.bf16.gmra.mrb[8].mxu0 %vm811_vm0, %v3391_v59  ;;  %2954 = vmatpush3.bf16.msra.mxu1 %v3390_v57 }
  0xc7   : > { %3026 = vmatpush3.bf16.msra.mxu0 %v3392_v58  ;;  %2955 = vmatprep.subr.bf16.mxu1 %v3393_v60 }
  0xc8   : > { %3027 = vmatprep.subr.bf16.mxu0 %v3394_v61  ;;  %2957 = vmatprep.mubr.msk.bf16.mxu1 %vm811_vm0, %v3395_v62 }
  0xc9   : > { %3029 = vmatprep.mubr.msk.bf16.mxu0 %vm811_vm0, %v3396_v63 }
  0xca   : > { %2956 = vmatpush3.bf16.msra.mxu1 %v3393_v60 }
  0xcb   : > { %3028 = vmatpush3.bf16.msra.mxu0 %v3394_v61  ;;  %2969 = vmatprep.subr.bf16.mxu1 %v3398_v1 }
  0xcc   : > { %3041 = vmatprep.subr.bf16.mxu0 %v3400_v2 }
  0xcd   : > { %2958 = vmatmul.mubr.msk.bf16.vlgmr.msra.gmra.mrb[0].mxu1 %vm811_vm0, %v3397_v0 }
  0xce   : > { %3030 = vmatmul.mubr.msk.bf16.vlgmr.msra.gmra.mrb[0].mxu0 %vm811_vm0, %v3399_v3  ;;  %2970 = vmatpush3.bf16.msra.mxu1 %v3398_v1 }
  0xcf   : > { %3042 = vmatpush3.bf16.msra.mxu0 %v3400_v2  ;;  %2971 = vmatprep.subr.bf16.mxu1 %v3401_v4 }
  0xd0   : > { %3043 = vmatprep.subr.bf16.mxu0 %v3402_v5  ;;  %2961 = vmatprep.mubr.msk.bf16.mxu1 %vm811_vm0, %v3403_v6 }
  0xd1   : > { %3033 = vmatprep.mubr.msk.bf16.mxu0 %vm811_vm0, %v3404_v7 }
  0xd2   : > { %2972 = vmatpush3.bf16.msra.mxu1 %v3401_v4 }
  0xd3   : > { %3044 = vmatpush3.bf16.msra.mxu0 %v3402_v5  ;;  %2973 = vmatprep.subr.bf16.mxu1 %v3406_v8 }
  0xd4   : > { %3045 = vmatprep.subr.bf16.mxu0 %v3408_v10 }
  0xd5   : > { %2962 = vmatmul.mubr.msk.bf16.gmra.mrb[4].mxu1 %vm811_vm0, %v3405_v9 }
  0xd6   : > { %3034 = vmatmul.mubr.msk.bf16.gmra.mrb[4].mxu0 %vm811_vm0, %v3407_v11  ;;  %2974 = vmatpush3.bf16.msra.mxu1 %v3406_v8 }
  0xd7   : > { %3046 = vmatpush3.bf16.msra.mxu0 %v3408_v10  ;;  %2975 = vmatprep.subr.bf16.mxu1 %v3409_v12 }
  0xd8   : > { %3047 = vmatprep.subr.bf16.mxu0 %v3410_v13  ;;  %2965 = vmatprep.mubr.msk.bf16.mxu1 %vm811_vm0, %v3411_v14 }
  0xd9   : > { %3037 = vmatprep.mubr.msk.bf16.mxu0 %vm811_vm0, %v3412_v15 }
  0xda   : > { %2976 = vmatpush3.bf16.msra.mxu1 %v3409_v12 }
  0xdb   : > { %3048 = vmatpush3.bf16.msra.mxu0 %v3410_v13  ;;  %2977 = vmatprep.subr.bf16.mxu1 %v3414_v17 }
  0xdc   : > { %3049 = vmatprep.subr.bf16.mxu0 %v3416_v18 }
  0xdd   : > { %2966 = vmatmul.mubr.msk.bf16.gmra.mrb[12].mxu1 %vm811_vm0, %v3413_v16 }
  0xde   : > { %3038 = vmatmul.mubr.msk.bf16.gmra.mrb[12].mxu0 %vm811_vm0, %v3415_v19  ;;  %2978 = vmatpush3.bf16.msra.mxu1 %v3414_v17 }
  0xdf   : > { %3050 = vmatpush3.bf16.msra.mxu0 %v3416_v18  ;;  %2979 = vmatprep.subr.bf16.mxu1 %v3417_v20 }
  0xe0   : > { %3051 = vmatprep.subr.bf16.mxu0 %v3418_v21  ;;  %2981 = vmatprep.mubr.msk.bf16.mxu1 %vm811_vm0, %v3419_v22 }
  0xe1   : > { %3053 = vmatprep.mubr.msk.bf16.mxu0 %vm811_vm0, %v3420_v23 }
  0xe2   : > { %2980 = vmatpush3.bf16.msra.mxu1 %v3417_v20 }
  0xe3   : > { %3052 = vmatpush3.bf16.msra.mxu0 %v3418_v21  ;;  %3089 = vmatprep.subr.bf16.mxu1 %v3423_v24 }
  0xe4   : > { %3065 = vmatprep.subr.bf16.mxu0 %v3423_v24 }
  0xe5   : > { %2982 = vmatmul.mubr.msk.bf16.vlgmr.msra.gmra.mrb[0].mxu1 %vm811_vm0, %v3421_v25 }
  0xe6   : > { %3054 = vmatmul.mubr.msk.bf16.vlgmr.msra.gmra.mrb[0].mxu0 %vm811_vm0, %v3422_v26  ;;  %3095 = vmatpush3.bf16.msra.mxu1 %v3423_v24 }
  0xe7   : > { %3066 = vmatpush3.bf16.msra.mxu0 %v3423_v24  ;;  %3090 = vmatprep.subr.bf16.mxu1 %v3424_v27 }
  0xe8   : > { %3067 = vmatprep.subr.bf16.mxu0 %v3424_v27  ;;  %2985 = vmatprep.mubr.msk.bf16.mxu1 %vm811_vm0, %v3425_v28 }
  0xe9   : > { %3057 = vmatprep.mubr.msk.bf16.mxu0 %vm811_vm0, %v3426_v29 }
  0xea   : > { %3096 = vmatpush3.bf16.msra.mxu1 %v3424_v27 }
  0xeb   : > { %3068 = vmatpush3.bf16.msra.mxu0 %v3424_v27  ;;  %3091 = vmatprep.subr.bf16.mxu1 %v3429_v30 }
  0xec   : > { %3069 = vmatprep.subr.bf16.mxu0 %v3429_v30 }
  0xed   : > { %2986 = vmatmul.mubr.msk.bf16.gmra.mrb[4].mxu1 %vm811_vm0, %v3427_v31 }
  0xee   : > { %3058 = vmatmul.mubr.msk.bf16.gmra.mrb[4].mxu0 %vm811_vm0, %v3428_v32  ;;  %3097 = vmatpush3.bf16.msra.mxu1 %v3429_v30 }
  0xef   : > { %3070 = vmatpush3.bf16.msra.mxu0 %v3429_v30  ;;  %3092 = vmatprep.subr.bf16.mxu1 %v3430_v33 }
  0xf0   : > { %3071 = vmatprep.subr.bf16.mxu0 %v3430_v33  ;;  %2989 = vmatprep.mubr.msk.bf16.mxu1 %vm811_vm0, %v3431_v34 }
  0xf1   : > { %3061 = vmatprep.mubr.msk.bf16.mxu0 %vm811_vm0, %v3432_v35 }
  0xf2   : > { %3098 = vmatpush3.bf16.msra.mxu1 %v3430_v33 }
  0xf3   : > { %3072 = vmatpush3.bf16.msra.mxu0 %v3430_v33  ;;  %3093 = vmatprep.subr.bf16.mxu1 %v3435_v36 }
  0xf4   : > { %3073 = vmatprep.subr.bf16.mxu0 %v3435_v36 }
  0xf5   : > { %2990 = vmatmul.mubr.msk.bf16.gmra.mrb[16].mxu1 %vm811_vm0, %v3433_v37 }
  0xf6   : > { %3062 = vmatmul.mubr.msk.bf16.gmra.mrb[16].mxu0 %vm811_vm0, %v3434_v38  ;;  %3099 = vmatpush3.bf16.msra.mxu1 %v3435_v36 }
  0xf7   : > { %3074 = vmatpush3.bf16.msra.mxu0 %v3435_v36  ;;  %3094 = vmatprep.subr.bf16.mxu1 %v3436_v39  ;;  %v4231_v36 = vld [vmem:[%s4349_s2] ss:$0 sm:$0xff] }
  0xf8   : > { %3075 = vmatprep.subr.bf16.mxu0 %v3436_v39  ;;  %3077 = vmatprep.mubr.msk.bf16.mxu0 %vm811_vm0, %v3437_v40 }
  0xf9   : > { %3081 = vmatprep.mubr.msk.bf16.mxu1 %vm811_vm0, %v3438_v41 }
  0xfa   : > { %3100 = vmatpush3.bf16.msra.mxu1 %v3436_v39 }
  0xfb   : > { %3076 = vmatpush3.bf16.msra.mxu0 %v3436_v39 }
  0xfd   : > { %3082 = vmatmul.mubr.msk.bf16.vlgmr.msra.gmra.mrb[20].mxu1 %vm811_vm0, %v3440_v42 }
  0xfe   : > { %3078 = vmatmul.mubr.msk.bf16.vlgmr.msra.gmra.mrb[0].mxu0 %vm811_vm0, %v3439_v43  ;;  %3085 = vmatprep.mubr.msk.bf16.mxu1 %vm811_vm0, %v3441_v44 }
 0x105   : > { %3086 = vmatmul.mubr.msk.bf16.gmra.mrb[24].mxu1 %vm811_vm0, %v3442_v45 }
 0x198   : > { %v2943_v46 = vpop.f32.mrb[8].mxu1 }
 0x199   : > { %v896_v47 = vpop.f32.mrb[9].mxu1  ;;  %v3015_v48 = vpop.f32.mrb[8].mxu0 }
 0x19a   : > { %v2944_v49 = vpop.f32.mrb[10].mxu1  ;;  %v1449_v50 = vpop.f32.mrb[9].mxu0 }
 0x19b   : > { %v899_v51 = vpop.f32.mrb[11].mxu1  ;;  %v3016_v52 = vpop.f32.mrb[10].mxu0 }
 0x19c   : > { %v1452_v53 = vpop.f32.mrb[11].mxu0 }
 0x1b0   : > { %v2967_v54 = vpop.f32.mrb[12].mxu1 }
 0x1b1   : > { %v1067_v55 = vadd.f32 %v2967_v54, %v2943_v46  ;;  %v1058_v56 = vpop.f32.mrb[13].mxu1  ;;  %v3039_v57 = vpop.f32.mrb[12].mxu0 }
 0x1b2   : > { %v1059_v58 = vadd.f32 %v1058_v56, %v896_v47  ;;  %v2968_v59 = vpop.f32.mrb[14].mxu1  ;;  %v1650_v60 = vpop.f32.mrb[13].mxu0 }
 0x1b3   : > { %v1061_v61 = vpop.f32.mrb[15].mxu1  ;;  %v3040_v62 = vpop.f32.mrb[14].mxu0 }
 0x1b4   : > { %v1062_v63 = vadd.f32 %v1061_v61, %v899_v51  ;;  %v1653_v0 = vpop.f32.mrb[15].mxu0 }
 0x1b8   : > { %v2983_v1 = vpop.f32.mrb[0].mxu1 }
 0x1b9   : > { %v1216_v2 = vpop.f32.mrb[1].mxu1 }
 0x1ba   : > { %v2984_v3 = vpop.f32.mrb[2].mxu1 }
 0x1bb   : > { %v1219_v4 = vpop.f32.mrb[3].mxu1 }
 0x1c0   : > { %v2987_v5 = vpop.f32.mrb[4].mxu1 }
 0x1c1   : > { %v3059_v6 = vpop.f32.mrb[4].mxu0  ;;  %v1232_v7 = vpop.f32.mrb[5].mxu1 }
 0x1c2   : > { %v3105_v8 = vadd.f32 %v3059_v6, %v2987_v5  ;;  %v1835_v9 = vpop.f32.mrb[5].mxu0  ;;  %v2988_v10 = vpop.f32.mrb[6].mxu1 }
 0x1c3   : > { %v3107_v11 = vadd.f32 %v1835_v9, %v1232_v7  ;;  %v3060_v12 = vpop.f32.mrb[6].mxu0  ;;  %v1235_v13 = vpop.f32.mrb[7].mxu1 }
 0x1c4   : > { %v3109_v14 = vadd.f32 %v3060_v12, %v2988_v10  ;;  %v1838_v15 = vpop.f32.mrb[7].mxu0 }
 0x1c5   : > { %v3111_v16 = vadd.f32 %v1838_v15, %v1235_v13 }
 0x1c8   : > { %v2991_v17 = vpop.f32.mrb[16].mxu1 }
 0x1c9   : > { %v1272_v18 = vadd.f32 %v2991_v17, %v1067_v55  ;;  %v1248_v19 = vpop.f32.mrb[17].mxu1  ;;  %v3063_v20 = vpop.f32.mrb[16].mxu0 }
 0x1ca   : > { %v1270_v21 = vadd.f32 %v1248_v19, %v1059_v58  ;;  %v2992_v22 = vpop.f32.mrb[18].mxu1  ;;  %v1851_v23 = vpop.f32.mrb[17].mxu0 }
 0x1cb   : > { %v1473_v24 = vadd.f32 %v3015_v48, %v1272_v18  ;;  %v1251_v25 = vpop.f32.mrb[19].mxu1  ;;  %v3064_v26 = vpop.f32.mrb[18].mxu0 }
 0x1cc   : > { %v1471_v27 = vadd.f32 %v1449_v50, %v1270_v21  ;;  %v1271_v28 = vadd.f32 %v1251_v25, %v1062_v63  ;;  %v1854_v29 = vpop.f32.mrb[19].mxu0 }
 0x1cd   : > { %v1674_v30 = vadd.f32 %v3039_v57, %v1473_v24 }
 0x1ce   : > { %v1472_v31 = vadd.f32 %v1452_v53, %v1271_v28  ;;  %v1672_v32 = vadd.f32 %v1650_v60, %v1471_v27 }
 0x1cf   : > { %v1875_v33 = vadd.f32 %v3063_v20, %v1674_v30 }
 0x1d0   : > { %v1873_v34 = vadd.f32 %v1851_v23, %v1672_v32  ;;  %v1673_v35 = vadd.f32 %v1653_v0, %v1472_v31  ;;  %v3083_v37 = vpop.f32.mrb[20].mxu1 }
 0x1d1   : > { %v3079_v38 = vpop.f32.mrb[0].mxu0  ;;  %v3106_v39 = vadd.f32 %v3105_v8, %v3083_v37  ;;  %v2036_v40 = vpop.f32.mrb[21].mxu1 }
 0x1d2   : > { %v1874_v41 = vadd.f32 %v1854_v29, %v1673_v35  ;;  %v3101_v42 = vadd.f32 %v3079_v38, %v2983_v1  ;;  %v2020_v43 = vpop.f32.mrb[1].mxu0  ;;  %v3108_v44 = vadd.f32 %v3107_v11, %v2036_v40  ;;  %v3084_v45 = vpop.f32.mrb[22].mxu1 }
 0x1d3   : > { %v2090_v46 = vadd.f32 %v3106_v39, %v4231_v36  ;;  %v3102_v47 = vadd.f32 %v2020_v43, %v1216_v2  ;;  %v3080_v48 = vpop.f32.mrb[2].mxu0  ;;  %v3110_v49 = vadd.f32 %v3109_v14, %v3084_v45  ;;  %v2039_v50 = vpop.f32.mrb[23].mxu1 }
 0x1d4   : > { %v2086_v51 = vadd.f32 %v3101_v42, %v4231_v36  ;;  %v2088_v52 = vadd.f32 %v3108_v44, %v4231_v36  ;;  %v3103_v53 = vadd.f32 %v3080_v48, %v2984_v3  ;;  %v2023_v54 = vpop.f32.mrb[3].mxu0  ;;  %v3112_v55 = vadd.f32 %v3111_v16, %v2039_v50 }
 0x1d5   : > { %v2101_v56 = vmax.f32 %v2090_v46, 0.0  ;;  %v2084_v57 = vadd.f32 %v3102_v47, %v4231_v36  ;;  %v2091_v58 = vadd.f32 %v3110_v49, %v4231_v36  ;;  %v3104_v59 = vadd.f32 %v2023_v54, %v1219_v4 }
 0x1d6   : > { %v2097_v60 = vmax.f32 %v2086_v51, 0.0  ;;  %v2099_v61 = vmax.f32 %v2088_v52, 0.0  ;;  %v2087_v62 = vadd.f32 %v3103_v53, %v4231_v36  ;;  %v2089_v63 = vadd.f32 %v3112_v55, %v4231_v36 }
 0x1d7   : > { %v2832_v0 = vpack.c.bf16 %v2101_v56, %v2101_v56  ;;  %v2095_v1 = vmax.f32 %v2084_v57, 0.0  ;;  %v2102_v2 = vmax.f32 %v2091_v58, 0.0  ;;  %v2085_v3 = vadd.f32 %v3104_v59, %v4231_v36 }
 0x1d8   : > { %v2828_v5 = vpack.c.bf16 %v2097_v60, %v2097_v60  ;;  %v2830_v6 = vpack.c.bf16 %v2099_v61, %v2099_v61  ;;  %v2098_v7 = vmax.f32 %v2087_v62, 0.0  ;;  %v2100_v8 = vmax.f32 %v2089_v63, 0.0  ;;  %v3087_v9 = vpop.f32.mrb[24].mxu1 }
 0x1d9   : > { %2158 = vst.msk [vmem:[%s4244_s12 + $0x18] sm:$0xf] %vm2151_vm1, %v2832_v0  ;;  %v2826_v4 = vpack.c.bf16 %v2095_v1, %v2095_v1  ;;  %v2833_v10 = vpack.c.bf16 %v2102_v2, %v2102_v2  ;;  %v2096_v11 = vmax.f32 %v2085_v3, 0.0  ;;  %v2076_v12 = vadd.f32 %v3087_v9, %v1875_v33  ;;  %v2052_v13 = vpop.f32.mrb[25].mxu1 }
 0x1da   : > { %2154 = vst.msk [vmem:[%s4244_s12 + $0x8] sm:$0xf] %vm2151_vm1, %v2828_v5  ;;  %2156 = vst.msk [vmem:[%s4244_s12 + $0x10] sm:$0xf] %vm2151_vm1, %v2830_v6  ;;  %v2829_v14 = vpack.c.bf16 %v2098_v7, %v2098_v7  ;;  %v2831_v15 = vpack.c.bf16 %v2100_v8, %v2100_v8  ;;  %v2074_v16 = vadd.f32 %v2052_v13, %v1873_v34  ;;  %v3088_v17 = vpop.f32.mrb[26].mxu1 }
 0x1db   : > { %2152 = vst.msk [vmem:[%s4244_s12] sm:$0xf] %vm2151_vm1, %v2826_v4  ;;  %2159 = vst.msk [vmem:[%s4244_s12 + $0x1c] sm:$0xf] %vm2151_vm1, %v2833_v10  ;;  %v2827_v18 = vpack.c.bf16 %v2096_v11, %v2096_v11  ;;  %v2094_v19 = vadd.f32 %v4231_v36, %v2076_v12  ;;  %v2055_v20 = vpop.f32.mrb[27].mxu1 }
 0x1dc   : > { %2155 = vst.msk [vmem:[%s4244_s12 + $0xc] sm:$0xf] %vm2151_vm1, %v2829_v14  ;;  %2157 = vst.msk [vmem:[%s4244_s12 + $0x14] sm:$0xf] %vm2151_vm1, %v2831_v15  ;;  %v2092_v21 = vadd.f32 %v4231_v36, %v2074_v16  ;;  %v2075_v22 = vadd.f32 %v2055_v20, %v1874_v41 }
 0x1dd   : > { %2153 = vst.msk [vmem:[%s4244_s12 + $0x4] sm:$0xf] %vm2151_vm1, %v2827_v18  ;;  %v2105_v23 = vmax.f32 %v2094_v19, 0.0 }
 0x1de   : > { %v2103_v24 = vmax.f32 %v2092_v21, 0.0  ;;  %v2093_v25 = vadd.f32 %v4231_v36, %v2075_v22  ;;  %2169 = sbr.rel (!%p3735_p9) target bundleno = 554 (0x22a), region = 98 }
 0x1df   : > { %v2836_v26 = vpack.c.bf16 %v2105_v23, %v2105_v23 }
 0x1e0   : > { %v2834_v27 = vpack.c.bf16 %v2103_v24, %v2103_v24  ;;  %v2104_v28 = vmax.f32 %v2093_v25, 0.0 }
 0x1e1   : > { %2162 = vst.msk [vmem:[%s4244_s12 + $0x28] sm:$0xf] %vm2151_vm1, %v2836_v26 }
 0x1e2   : > { %2160 = vst.msk [vmem:[%s4244_s12 + $0x20] sm:$0xf] %vm2151_vm1, %v2834_v27  ;;  %v2835_v29 = vpack.c.bf16 %v2104_v28, %v2104_v28 }
 0x1e4   : > { %2161 = vst.msk [vmem:[%s4244_s12 + $0x24] sm:$0xf] %vm2151_vm1, %v2835_v29 }
 0x1e5   : > { %s4383_s27 = smov (!%p2172_p8, %s2171_s27), 11 }
 0x1e6   : > { %s2812_s28 = sshll.u32 %s4383_s27, 6 }
 0x1e7   : > { %p2815_p10 = scmp.eq.s32.totalorder %s2812_s28, 0 }
 0x1e8   : > { %3443 = sdivrem.u32 (!%p2815_p10), %s4383_s27, 11 }
 0x1e9   : > { %2182 = sbr.rel (%p2815_p10) target bundleno = 554 (0x22a), region = 102 }
 0x1f1   : > { %s4284_s30 = spop.drf %3443 }
 0x1f2   : > { %p2816_p9 = scmp.le.s32.totalorder %s4284_s30, 0 }
 0x1f3   : > { %s4359_s16 = smov (!%p2816_p9), %s4280_s7  ;;  %s4360_s17 = smov (!%p2816_p9), %s4244_s12 }
 0x1f4   : > { %2466 = sbr.rel (%p2816_p9) target bundleno = 525 (0x20d), region = 228  ;;  %s4293_s29 = smov (!%p2816_p9), 0  }
 0x1f5   : > { %s4295_s26 = smov (!%p2816_p9), 0  }
 0x1fb LB: >> { %v2199_v30 = vld [vmem:[%s3621_s17] sm:$0xf]  ;;  %v2201_v31 = vld [vmem:[%s3621_s17 + $0x4] sm:$0xf]  ;;  %v2203_v32 = vld [vmem:[%s3621_s17 + $0x8] sm:$0xf]  ;;  %s3629_s26 = sphi %s4295_s26, %s2193_s26   ;;  %s3625_s29 = sphi %s4293_s29, %s4361_s29   ;;  %s3621_s17 = sphi %s4360_s17, %s2226_s17   ;;  %s3617_s16 = sphi %s4359_s16, %s2227_s16  }
 0x1fc   : >> { %2200 = vst [vmem:[%s3617_s16] sm:$0xf] %v2199_v30  ;;  %2202 = vst [vmem:[%s3617_s16 + $0x4] sm:$0xf] %v2201_v31  ;;  %v2205_v33 = vld [vmem:[%s3621_s17 + $0xc] sm:$0xf]  ;;  %s2221_s14 = sadd.s32 1, %s3625_s29 }
 0x1fd   : >> { %2204 = vst [vmem:[%s3617_s16 + $0x8] sm:$0xf] %v2203_v32  ;;  %v2207_v34 = vld [vmem:[%s3621_s17 + $0x10] sm:$0xf]  ;;  %v2209_v35 = vld [vmem:[%s3621_s17 + $0x14] sm:$0xf]  ;;  %p2222_p11 = scmp.ge.s32.totalorder %s2221_s14, %s4284_s30 }
 0x1fe   : >> { %2206 = vst [vmem:[%s3617_s16 + $0xc] sm:$0xf] %v2205_v33  ;;  %2208 = vst [vmem:[%s3617_s16 + $0x10] sm:$0xf] %v2207_v34  ;;  %v2211_v36 = vld [vmem:[%s3621_s17 + $0x18] sm:$0xf] }
 0x1ff   : >> { %2210 = vst [vmem:[%s3617_s16 + $0x14] sm:$0xf] %v2209_v35  ;;  %v2213_v37 = vld [vmem:[%s3621_s17 + $0x1c] sm:$0xf]  ;;  %v2215_v38 = vld [vmem:[%s3621_s17 + $0x20] sm:$0xf] }
 0x200   : >> { %2212 = vst [vmem:[%s3617_s16 + $0x18] sm:$0xf] %v2211_v36  ;;  %2214 = vst [vmem:[%s3617_s16 + $0x1c] sm:$0xf] %v2213_v37  ;;  %v2217_v39 = vld [vmem:[%s3621_s17 + $0x24] sm:$0xf] }
 0x201   : >> { %2216 = vst [vmem:[%s3617_s16 + $0x20] sm:$0xf] %v2215_v38  ;;  %v2219_v40 = vld [vmem:[%s3621_s17 + $0x28] sm:$0xf]  ;;  %2218 = vst [vmem:[%s3617_s16 + $0x24] sm:$0xf] %v2217_v39 }
 0x202   : >> { %2220 = vst [vmem:[%s3617_s16 + $0x28] sm:$0xf] %v2219_v40  ;;  %s4385_s14 = smov (%p2222_p11, %s2221_s14), 0  ;;  %s2193_s26 = sadd.s32 1, %s3629_s26  }
 0x203   : >> { %s2224_s10 = smul.u32 44, %s4385_s14  ;;  %p2192_p12 = scmp.ge.s32.totalorder %s2193_s26, %s4284_s30 }
 0x204   : >> { %s4361_s29 = smov %s4385_s14 }
 0x205   : >> { %s2226_s17 = scalar_lea.vmem %s4244_s12, %s2224_s10 [#allocation3]   ;;  %s2227_s16 = scalar_lea.vmem %s4280_s7, %s2224_s10  }
 0x206   : > { %2195 = sbr.rel (!%p2192_p12) target bundleno = 507 (0x1fb), region = 234 }
 0x20d PF: > { %3445 = sdivrem.u32 %s4383_s27, 11 }
 0x20e   : > { %s2817_s9 = smul.u32 44, %s4284_s30 }
 0x210   : > { %s2232_s24 = scalar_lea.vmem %s4244_s12, %s2817_s9 [#allocation3]   ;;  %s2234_s25 = scalar_lea.vmem %s4280_s7, %s2817_s9  }
 0x216   : > { %s3446_s8 = spop.drf %3445 }
 0x217   : > { %p2819_p13 = scmp.le.s32.totalorder %s3446_s8, 0 }
 0x218   : > { %s3631_s11 = smov (!%p2819_p13), %s2234_s25   ;;  %s3635_s6 = smov (!%p2819_p13), %s2232_s24  }
 0x219   : > { %2480 = sbr.rel (%p2819_p13) target bundleno = 554 (0x22a), region = 239  ;;  %s3639_s23 = smov (!%p2819_p13), 0  }
 0x21a   : > { %s3643_s28 = smov (!%p2819_p13), 0  }
 0x220 LB: >> { %v2244_v41 = vld [vmem:[%s3637_s6] sm:$0xf]  ;;  %s2246_s16 = sadd.s32 1, %s3641_s23  ;;  %s2238_s28 = sadd.s32 1, %s3645_s28   ;;  %s3645_s28 = sphi %s3643_s28, %s2238_s28   ;;  %s3641_s23 = sphi %s3639_s23, %s3640_s23   ;;  %s3637_s6 = sphi %s3635_s6, %s2251_s6   ;;  %s3633_s11 = sphi %s3631_s11, %s2252_s11  }
 0x221   : >> { %2245 = vst [vmem:[%s3633_s11] sm:$0xf] %v2244_v41  ;;  %p2247_p0 = scmp.ge.s32.totalorder %s2246_s16, %s3446_s8  ;;  %p2237_p1 = scmp.ge.s32.totalorder %s2238_s28, %s3446_s8 }
 0x223   : >> { %s4387_s16 = smov (%p2247_p0, %s2246_s16), 0  ;;  %2240 = sbr.rel (!%p2237_p1) target bundleno = 544 (0x220), region = 245 }
 0x224   : >> { %s2820_s12 = sshll.u32 %s4387_s16, 2  ;;  %s3640_s23 = smov %s4387_s16  }
 0x225   : >> { %s2251_s6 = scalar_lea.vmem %s2232_s24, %s2820_s12 [#allocation3]   ;;  %s2252_s11 = scalar_lea.vmem %s2234_s25, %s2820_s12  }
 0x22a PF: > { %s13_s20 = sadd.s32 1, %s3581_s20   ;;  %s4362_s12 = smov %s3553_s13 }
 0x22b   : > { %p10_p2 = scmp.ge.s32.totalorder %s13_s20, 20   ;;  %s4363_s13 = smov %s3743_s5 }
 0x22c   : > { %s4364_s14 = smov %s3561_s15  ;;  %s4365_s15 = smov %s3740_s4 }
 0x22d   : > { %s4366_s16 = smov %s3573_s18  ;;  %s4367_s17 = smov %s3577_s19 }
 0x22e   : > { %s4368_s18 = smov %s4371_s21  ;;  %s4369_s19 = smov %s4375_s22 }
 0x22f   :  { %12 = sbr.rel (!%p10_p2) target bundleno = 5 (0x5), region = 256 }

// kernel: inception_d_forward.12
= control target key start
LH: loop header
LB: loop body
LE: loop exit
PB: predicated region body
PF: predicated region fallthrough
CT: control target
= control target key end

     0   :  { %s3797_s12 = smov 0   ;;  %s4439_s0 = inlined_call_operand.vmem [shape: bf16[128,2592], index: 0, kind: input, shape index: {}]   ;;  %s4440_s1 = inlined_call_operand.vmem [shape: bf16[2592,96], index: 1, kind: input, shape index: {}]   ;;  %s4441_s2 = inlined_call_operand.vmem [shape: f32[1,96], index: 2, kind: input, shape index: {}]   ;;  %s4442_s3 = inlined_call_operand.vmem [shape: f32[128,96], index: 3, kind: output, shape index: {}]  }
   0x1 LB: > { %s2790_s13 = sadd.s32 4294967295, %s3775_s12   ;;  %p2794_p0 = scmp.ge.s32.totalorder %s3775_s12, 1  ;;  %s3775_s12 = sphi %s3797_s12, %s13_s12  }
   0x2   : > { %p139_p1 = scmp.lt.s32.totalorder %s3775_s12, 3 }
   0x4   : > { %p140_p2 = pnand %p2794_p0, %p139_p1 }
   0x5   : > { %v3483_v0 = vld [vmem:[%s4440_s1 + $0x40] sm:$0xff] (!%p140_p2)   ;;  %v3487_v4 = vld [vmem:[%s4440_s1 + $0x48] sm:$0xff] (!%p140_p2)   ;;  %v3491_v8 = vld [vmem:[%s4440_s1 + $0x50] sm:$0xff] (!%p140_p2)   ;;  %s2795_s19 = sshll.u32 (!%p140_p2), %s2790_s13, 3  ;;  %vm1989_vm0 = vcmask (!%p140_p2), 261120   ;;  %vm2725_vm1 = vcmask (!%p140_p2), 785408  }
   0x6   : > { %143 = sbr.rel (%p140_p2) target bundleno = 420 (0x1a4), region = 32  ;;  %v3484_v1 = vld [vmem:[%s4440_s1 + $0xc0] sm:$0xff] (!%p140_p2)   ;;  %3052 = vmatprep.subr.bf16.mxu0 (!%p140_p2), %v3483_v0  ;;  %v3488_v5 = vld [vmem:[%s4440_s1 + $0xc8] sm:$0xff] (!%p140_p2)   ;;  %v3492_v9 = vld [vmem:[%s4440_s1 + $0xd0] sm:$0xff] (!%p140_p2)   ;;  %p165_p3 = scmp.lt.s32.totalorder (!%p140_p2), %s2795_s19, 15 }
   0x7   : > { %v3485_v2 = vld [vmem:[%s4440_s1] sm:$0xff] (!%p140_p2)   ;;  %3092 = vmatprep.subr.bf16.mxu1 (!%p140_p2), %v3484_v1  ;;  %v3489_v6 = vld [vmem:[%s4440_s1 + $0x8] sm:$0xff] (!%p140_p2)   ;;  %v3493_v10 = vld [vmem:[%s4440_s1 + $0x10] sm:$0xff] (!%p140_p2)  }
   0x8   : > { %v3486_v3 = vld [vmem:[%s4440_s1 + $0x80] sm:$0xff] (!%p140_p2)   ;;  %3053 = vmatpush3.bf16.msra.mxu0 (!%p140_p2), %v3485_v2  ;;  %v3490_v7 = vld [vmem:[%s4440_s1 + $0x88] sm:$0xff] (!%p140_p2)   ;;  %v3494_v11 = vld [vmem:[%s4440_s1 + $0x90] sm:$0xff] (!%p140_p2)  }
   0x9   : > { %3093 = vmatpush3.bf16.msra.mxu1 (!%p140_p2), %v3486_v3  ;;  %3054 = vmatprep.subr.bf16.mxu0 (!%p140_p2), %v3487_v4  ;;  %v3495_v12 = vld [vmem:[%s4440_s1 + $0x58] sm:$0xff] (!%p140_p2)   ;;  %v3499_v16 = vld [vmem:[%s4440_s1 + $0x60] sm:$0xff] (!%p140_p2)   ;;  %v3503_v20 = vld [vmem:[%s4440_s1 + $0x68] sm:$0xff] (!%p140_p2)  }
   0xa   : > { %3094 = vmatprep.subr.bf16.mxu1 (!%p140_p2), %v3488_v5  ;;  %v3496_v13 = vld [vmem:[%s4440_s1 + $0xd8] sm:$0xff] (!%p140_p2)   ;;  %v3500_v17 = vld [vmem:[%s4440_s1 + $0xe0] sm:$0xff] (!%p140_p2)   ;;  %v3504_v21 = vld [vmem:[%s4440_s1 + $0xe8] sm:$0xff] (!%p140_p2)  }
   0xb   : > { %v3497_v14 = vld [vmem:[%s4440_s1 + $0x18] sm:$0xff] (!%p140_p2)   ;;  %v3501_v18 = vld [vmem:[%s4440_s1 + $0x20] sm:$0xff] (!%p140_p2)   ;;  %v3505_v22 = vld [vmem:[%s4440_s1 + $0x28] sm:$0xff] (!%p140_p2)  }
   0xc   : > { %3055 = vmatpush3.bf16.msra.mxu0 (!%p140_p2), %v3489_v6  ;;  %v3498_v15 = vld [vmem:[%s4440_s1 + $0x98] sm:$0xff] (!%p140_p2)   ;;  %v3502_v19 = vld [vmem:[%s4440_s1 + $0xa0] sm:$0xff] (!%p140_p2)   ;;  %v3506_v23 = vld [vmem:[%s4440_s1 + $0xa8] sm:$0xff] (!%p140_p2)  }
   0xd   : > { %3095 = vmatpush3.bf16.msra.mxu1 %v3490_v7  ;;  %3056 = vmatprep.subr.bf16.mxu0 %v3491_v8  ;;  %s4444_s19 = smov (!%p165_p3, %s2795_s19), 15  ;;  %v3507_v24 = vld [vmem:[%s4440_s1 + $0x70] sm:$0xff]   ;;  %v3511_v28 = vld [vmem:[%s4440_s1 + $0x78] sm:$0xff]   ;;  %v3521_v36 = vld [vmem:[%s4440_s1 + $0x140] sm:$0xff]  }
   0xe   : > { %3096 = vmatprep.subr.bf16.mxu1 %v3492_v9  ;;  %v3508_v25 = vld [vmem:[%s4440_s1 + $0xf0] sm:$0xff]   ;;  %s3474_s16 = smul.u32 84, %s4444_s19  ;;  %v3512_v29 = vld [vmem:[%s4440_s1 + $0xf8] sm:$0xff]   ;;  %v3522_v37 = vld [vmem:[%s4440_s1 + $0x1c0] sm:$0xff]  }
   0xf   : > { %v3509_v26 = vld [vmem:[%s4440_s1 + $0x30] sm:$0xff]   ;;  %v3513_v30 = vld [vmem:[%s4440_s1 + $0x38] sm:$0xff]   ;;  %v3523_v38 = vld [vmem:[%s4440_s1 + $0x100] sm:$0xff]  }
  0x10   : > { %3057 = vmatpush3.bf16.msra.mxu0 %v3493_v10  ;;  %v3510_v27 = vld [vmem:[%s4440_s1 + $0xb0] sm:$0xff]   ;;  %s3903_s13 = scalar_lea.vmem %s4439_s0, %s3474_s16  ;;  %v3514_v31 = vld [vmem:[%s4440_s1 + $0xb8] sm:$0xff]   ;;  %v3524_v39 = vld [vmem:[%s4440_s1 + $0x180] sm:$0xff]  }
  0x11   : > { %3097 = vmatpush3.bf16.msra.mxu1 %v3494_v11  ;;  %3058 = vmatprep.subr.bf16.mxu0 %v3495_v12  ;;  %v3515_v32 = vld [vmem:[%s3903_s13] ss:$84 sps:$4 sm:$0xff]   ;;  %v3517_v33 = vld [vmem:[%s3903_s13 + $0x4] ss:$84 sps:$4 sm:$0xff]   ;;  %v3518_v34 = vld [vmem:[%s3903_s13 + $0x8] ss:$84 sps:$4 sm:$0xff]  }
  0x12   : > { %3098 = vmatprep.subr.bf16.mxu1 %v3496_v13  ;;  %v3520_v35 = vld [vmem:[%s3903_s13 + $0xc] ss:$84 sps:$4 sm:$0xff]   ;;  %2034 = vmatprep.mubr.bf16.mxu0 %v3517_v33  ;;  %v3531_v45 = vld [vmem:[%s3903_s13 + $0xb4] ss:$84 sps:$4 sm:$0xff]   ;;  %v3534_v47 = vld [vmem:[%s3903_s13 + $0xb0] ss:$84 sps:$4 sm:$0xff]  }
  0x13   : > { %2099 = vmatprep.mubr.bf16.mxu1 %v3520_v35  ;;  %v3525_v40 = vld [vmem:[%s4440_s1 + $0x148] sm:$0xff]   ;;  %v3535_v48 = vld [vmem:[%s4440_s1 + $0x150] sm:$0xff]   ;;  %v3539_v52 = vld [vmem:[%s4440_s1 + $0x158] sm:$0xff]  }
  0x14   : > { %3059 = vmatpush3.bf16.msra.mxu0 %v3497_v14  ;;  %v3526_v41 = vld [vmem:[%s4440_s1 + $0x1c8] sm:$0xff]   ;;  %v3536_v49 = vld [vmem:[%s4440_s1 + $0x1d0] sm:$0xff]   ;;  %v3540_v53 = vld [vmem:[%s4440_s1 + $0x1d8] sm:$0xff]  }
  0x15   : > { %3099 = vmatpush3.bf16.msra.mxu1 %v3498_v15  ;;  %3060 = vmatprep.subr.bf16.mxu0 %v3499_v16  ;;  %v3527_v42 = vld [vmem:[%s4440_s1 + $0x108] sm:$0xff]   ;;  %v3537_v50 = vld [vmem:[%s4440_s1 + $0x110] sm:$0xff]   ;;  %v3541_v54 = vld [vmem:[%s4440_s1 + $0x118] sm:$0xff]  }
  0x16   : > { %3100 = vmatprep.subr.bf16.mxu1 %v3500_v17  ;;  %v3528_v43 = vld [vmem:[%s4440_s1 + $0x188] sm:$0xff]   ;;  %v3538_v51 = vld [vmem:[%s4440_s1 + $0x190] sm:$0xff]   ;;  %v3542_v55 = vld [vmem:[%s4440_s1 + $0x198] sm:$0xff]  }
  0x17   : > { %v3529_v44 = vld [vmem:[%s3903_s13 + $0xac] ss:$84 sps:$4 sm:$0xff]   ;;  %v3533_v46 = vld [vmem:[%s3903_s13 + $0xa8] ss:$84 sps:$4 sm:$0xff]   ;;  %v3547_v58 = vld [vmem:[%s3903_s13 + $0x150] ss:$84 sps:$4 sm:$0xff]  }
  0x18   : > { %3061 = vmatpush3.bf16.msra.mxu0 %v3501_v18  ;;  %v3543_v56 = vld [vmem:[%s3903_s13 + $0x154] ss:$84 sps:$4 sm:$0xff]   ;;  %v3545_v57 = vld [vmem:[%s3903_s13 + $0x15c] ss:$84 sps:$4 sm:$0xff]   ;;  %v3548_v59 = vld [vmem:[%s3903_s13 + $0x158] ss:$84 sps:$4 sm:$0xff]  }
  0x19   : > { %3101 = vmatpush3.bf16.msra.mxu1 %v3502_v19  ;;  %3062 = vmatprep.subr.bf16.mxu0 %v3503_v20  ;;  %v3549_v60 = vld [vmem:[%s4440_s1 + $0x160] sm:$0xff]   ;;  %v3553_v0 = vld [vmem:[%s4440_s1 + $0x168] sm:$0xff]   ;;  %v3557_v4 = vld [vmem:[%s3903_s13 + $0x1fc] ss:$84 sps:$4 sm:$0xff]  }
  0x1a   : > { %3102 = vmatprep.subr.bf16.mxu1 %v3504_v21  ;;  %v3550_v61 = vld [vmem:[%s4440_s1 + $0x1e0] sm:$0xff]   ;;  %v3554_v1 = vld [vmem:[%s4440_s1 + $0x1e8] sm:$0xff]   ;;  %v3563_v8 = vld [vmem:[%s4440_s1 + $0x170] sm:$0xff]  }
  0x1b   : > { %v3551_v62 = vld [vmem:[%s4440_s1 + $0x120] sm:$0xff]   ;;  %v3555_v2 = vld [vmem:[%s4440_s1 + $0x128] sm:$0xff]   ;;  %v3564_v9 = vld [vmem:[%s4440_s1 + $0x1f0] sm:$0xff]  }
  0x1c   : > { %3063 = vmatpush3.bf16.msra.mxu0 %v3505_v22  ;;  %v3552_v63 = vld [vmem:[%s4440_s1 + $0x1a0] sm:$0xff]   ;;  %v3556_v3 = vld [vmem:[%s4440_s1 + $0x1a8] sm:$0xff]   ;;  %v3565_v10 = vld [vmem:[%s4440_s1 + $0x130] sm:$0xff]  }
  0x1d   : > { %3103 = vmatpush3.bf16.msra.mxu1 %v3506_v23  ;;  %3064 = vmatprep.subr.bf16.mxu0 %v3507_v24  ;;  %v3559_v5 = vld [vmem:[%s3903_s13 + $0x204] ss:$84 sps:$4 sm:$0xff]   ;;  %v3562_v7 = vld [vmem:[%s3903_s13 + $0x200] ss:$84 sps:$4 sm:$0xff]   ;;  %v3576_v19 = vld [vmem:[%s3903_s13 + $0x1c] ss:$84 sps:$4 sm:$0xff]  }
  0x1e   : > { %3104 = vmatprep.subr.bf16.mxu1 %v3508_v25  ;;  %v3561_v6 = vld [vmem:[%s3903_s13 + $0x1f8] ss:$84 sps:$4 sm:$0xff]   ;;  %v3566_v11 = vld [vmem:[%s4440_s1 + $0x1b0] sm:$0xff]   ;;  %v3577_v20 = vld [vmem:[%s4440_s1 + $0x240] sm:$0xff]  }
  0x1f   : > { %v3567_v12 = vld [vmem:[%s4440_s1 + $0x178] sm:$0xff]   ;;  %v3571_v16 = vld [vmem:[%s3903_s13 + $0x10] ss:$84 sps:$4 sm:$0xff]   ;;  %v3573_v17 = vld [vmem:[%s3903_s13 + $0x14] ss:$84 sps:$4 sm:$0xff]  }
  0x20   : > { %3065 = vmatpush3.bf16.msra.mxu0 %v3509_v26  ;;  %v3568_v13 = vld [vmem:[%s4440_s1 + $0x1f8] sm:$0xff]   ;;  %v3578_v21 = vld [vmem:[%s4440_s1 + $0x2c0] sm:$0xff]   ;;  %v3581_v24 = vld [vmem:[%s4440_s1 + $0x248] sm:$0xff]  }
  0x21   : > { %3105 = vmatpush3.bf16.msra.mxu1 %v3510_v27  ;;  %3066 = vmatprep.subr.bf16.mxu0 %v3511_v28  ;;  %v3569_v14 = vld [vmem:[%s4440_s1 + $0x138] sm:$0xff]   ;;  %v3579_v22 = vld [vmem:[%s4440_s1 + $0x200] sm:$0xff]   ;;  %v3582_v25 = vld [vmem:[%s4440_s1 + $0x2c8] sm:$0xff]  }
  0x22   : > { %3106 = vmatprep.subr.bf16.mxu1 %v3512_v29  ;;  %v3570_v15 = vld [vmem:[%s4440_s1 + $0x1b8] sm:$0xff]   ;;  %v3580_v23 = vld [vmem:[%s4440_s1 + $0x280] sm:$0xff]   ;;  %v3583_v26 = vld [vmem:[%s4440_s1 + $0x208] sm:$0xff]  }
  0x23   : > { %v3574_v18 = vld [vmem:[%s3903_s13 + $0x18] ss:$84 sps:$4 sm:$0xff]   ;;  %v3585_v28 = vld [vmem:[%s3903_s13 + $0xbc] ss:$84 sps:$4 sm:$0xff]  }
  0x24   : > { %3067 = vmatpush3.bf16.msra.mxu0 %v3513_v30  ;;  %v3584_v27 = vld [vmem:[%s4440_s1 + $0x288] sm:$0xff]   ;;  %v3587_v29 = vld [vmem:[%s3903_s13 + $0xc4] ss:$84 sps:$4 sm:$0xff]   ;;  %v3592_v33 = vld [vmem:[%s4440_s1 + $0x2d0] sm:$0xff]  }
  0x25   : > { %3107 = vmatpush3.bf16.msra.mxu1 %v3514_v31  ;;  %3132 = vmatprep.subr.bf16.mxu0 %v3521_v36  ;;  %v3589_v30 = vld [vmem:[%s3903_s13 + $0xb8] ss:$84 sps:$4 sm:$0xff]   ;;  %v3590_v31 = vld [vmem:[%s3903_s13 + $0xc0] ss:$84 sps:$4 sm:$0xff]  }
  0x26   : > { %3172 = vmatprep.subr.bf16.mxu1 %v3522_v37  ;;  %v3594_v35 = vld [vmem:[%s4440_s1 + $0x290] sm:$0xff]   ;;  %v3595_v36 = vld [vmem:[%s4440_s1 + $0x258] sm:$0xff]  }
  0x27   : > { %2035 = vmatmul.mubr.bf16.vlgmr.msra.gmra.mrb[0].mxu0 %v3515_v32  ;;  %v3591_v32 = vld [vmem:[%s4440_s1 + $0x250] sm:$0xff]   ;;  %v3596_v37 = vld [vmem:[%s4440_s1 + $0x2d8] sm:$0xff]  }
  0x28   : > { %2100 = vmatmul.mubr.bf16.vlgmr.msra.gmra.mrb[0].mxu1 %v3518_v34  ;;  %3133 = vmatpush3.bf16.msra.mxu0 %v3523_v38  ;;  %v3593_v34 = vld [vmem:[%s4440_s1 + $0x210] sm:$0xff]   ;;  %v3597_v38 = vld [vmem:[%s4440_s1 + $0x218] sm:$0xff]  }
  0x29   : > { %3173 = vmatpush3.bf16.msra.mxu1 %v3524_v39  ;;  %3134 = vmatprep.subr.bf16.mxu0 %v3525_v40  ;;  %v3598_v39 = vld [vmem:[%s4440_s1 + $0x298] sm:$0xff]  }
  0x2a   : > { %3174 = vmatprep.subr.bf16.mxu1 %v3526_v41  ;;  %2042 = vmatprep.mubr.bf16.mxu0 %v3529_v44  ;;  %v3599_v40 = vld [vmem:[%s3903_s13 + $0x164] ss:$84 sps:$4 sm:$0xff]   ;;  %v3601_v41 = vld [vmem:[%s3903_s13 + $0x16c] ss:$84 sps:$4 sm:$0xff]  }
  0x2b   : > { %2107 = vmatprep.mubr.bf16.mxu1 %v3531_v45  ;;  %v3605_v44 = vld [vmem:[%s4440_s1 + $0x260] sm:$0xff]  }
  0x2c   : > { %3135 = vmatpush3.bf16.msra.mxu0 %v3527_v42  ;;  %v3603_v42 = vld [vmem:[%s3903_s13 + $0x160] ss:$84 sps:$4 sm:$0xff]  }
  0x2d   : > { %3175 = vmatpush3.bf16.msra.mxu1 %v3528_v43  ;;  %3136 = vmatprep.subr.bf16.mxu0 %v3535_v48  ;;  %v3604_v43 = vld [vmem:[%s3903_s13 + $0x168] ss:$84 sps:$4 sm:$0xff]   ;;  %v3606_v45 = vld [vmem:[%s4440_s1 + $0x2e0] sm:$0xff]  }
  0x2e   : > { %3176 = vmatprep.subr.bf16.mxu1 %v3536_v49  ;;  %v3609_v48 = vld [vmem:[%s4440_s1 + $0x268] sm:$0xff]  }
  0x2f   : > { %2043 = vmatmul.mubr.bf16.gmra.mrb[4].mxu0 %v3533_v46  ;;  %v3607_v46 = vld [vmem:[%s4440_s1 + $0x220] sm:$0xff]   ;;  %v3610_v49 = vld [vmem:[%s4440_s1 + $0x2e8] sm:$0xff]  }
  0x30   : > { %2108 = vmatmul.mubr.bf16.gmra.mrb[4].mxu1 %v3534_v47  ;;  %3137 = vmatpush3.bf16.msra.mxu0 %v3537_v50  ;;  %v3608_v47 = vld [vmem:[%s4440_s1 + $0x2a0] sm:$0xff]   ;;  %v3611_v50 = vld [vmem:[%s4440_s1 + $0x228] sm:$0xff]  }
  0x31   : > { %3177 = vmatpush3.bf16.msra.mxu1 %v3538_v51  ;;  %3138 = vmatprep.subr.bf16.mxu0 %v3539_v52  ;;  %v3612_v51 = vld [vmem:[%s4440_s1 + $0x2a8] sm:$0xff]  }
  0x32   : > { %3178 = vmatprep.subr.bf16.mxu1 %v3540_v53  ;;  %2050 = vmatprep.mubr.bf16.mxu0 %v3543_v56  ;;  %v3613_v52 = vld [vmem:[%s3903_s13 + $0x20c] ss:$84 sps:$4 sm:$0xff]   ;;  %v3615_v53 = vld [vmem:[%s3903_s13 + $0x214] ss:$84 sps:$4 sm:$0xff]  }
  0x33   : > { %2115 = vmatprep.mubr.bf16.mxu1 %v3545_v57  ;;  %v3619_v56 = vld [vmem:[%s4440_s1 + $0x270] sm:$0xff]  }
  0x34   : > { %3139 = vmatpush3.bf16.msra.mxu0 %v3541_v54  ;;  %v3617_v54 = vld [vmem:[%s3903_s13 + $0x208] ss:$84 sps:$4 sm:$0xff]   ;;  %v3620_v57 = vld [vmem:[%s4440_s1 + $0x2f0] sm:$0xff]  }
  0x35   : > { %3179 = vmatpush3.bf16.msra.mxu1 %v3542_v55  ;;  %3140 = vmatprep.subr.bf16.mxu0 %v3549_v60  ;;  %v3618_v55 = vld [vmem:[%s3903_s13 + $0x210] ss:$84 sps:$4 sm:$0xff]   ;;  %v3623_v60 = vld [vmem:[%s4440_s1 + $0x278] sm:$0xff]  }
  0x36   : > { %3180 = vmatprep.subr.bf16.mxu1 %v3550_v61  ;;  %v3624_v61 = vld [vmem:[%s4440_s1 + $0x2f8] sm:$0xff]  }
  0x37   : > { %2051 = vmatmul.mubr.bf16.gmra.mrb[8].mxu0 %v3547_v58  ;;  %v3621_v58 = vld [vmem:[%s4440_s1 + $0x230] sm:$0xff]  }
  0x38   : > { %2116 = vmatmul.mubr.bf16.gmra.mrb[8].mxu1 %v3548_v59  ;;  %3141 = vmatpush3.bf16.msra.mxu0 %v3551_v62  ;;  %v3622_v59 = vld [vmem:[%s4440_s1 + $0x2b0] sm:$0xff]   ;;  %v3625_v62 = vld [vmem:[%s4440_s1 + $0x238] sm:$0xff]  }
  0x39   : > { %3181 = vmatpush3.bf16.msra.mxu1 %v3552_v63  ;;  %3142 = vmatprep.subr.bf16.mxu0 %v3553_v0  ;;  %v3626_v63 = vld [vmem:[%s4440_s1 + $0x2b8] sm:$0xff]   ;;  %v3627_v0 = vld [vmem:[%s3903_s13 + $0x20] ss:$84 sps:$4 sm:$0xff]  }
  0x3a   : > { %3182 = vmatprep.subr.bf16.mxu1 %v3554_v1  ;;  %2058 = vmatprep.mubr.bf16.mxu0 %v3557_v4  ;;  %v3629_v1 = vld [vmem:[%s3903_s13 + $0x24] ss:$84 sps:$4 sm:$0xff]  }
  0x3b   : > { %2123 = vmatprep.mubr.bf16.mxu1 %v3559_v5  ;;  %v3633_v4 = vld [vmem:[%s4440_s1 + $0x340] sm:$0xff]  }
  0x3c   : > { %3143 = vmatpush3.bf16.msra.mxu0 %v3555_v2  ;;  %v3630_v2 = vld [vmem:[%s3903_s13 + $0x28] ss:$84 sps:$4 sm:$0xff]   ;;  %v3634_v5 = vld [vmem:[%s4440_s1 + $0x3c0] sm:$0xff]  }
  0x3d   : > { %3183 = vmatpush3.bf16.msra.mxu1 %v3556_v3  ;;  %3144 = vmatprep.subr.bf16.mxu0 %v3563_v8  ;;  %v3632_v3 = vld [vmem:[%s3903_s13 + $0x2c] ss:$84 sps:$4 sm:$0xff]  }
  0x3e   : > { %3184 = vmatprep.subr.bf16.mxu1 %v3564_v9  ;;  %v3637_v8 = vld [vmem:[%s4440_s1 + $0x348] sm:$0xff]  }
  0x3f   : > { %2059 = vmatmul.mubr.bf16.gmra.mrb[12].mxu0 %v3561_v6  ;;  %v3635_v6 = vld [vmem:[%s4440_s1 + $0x300] sm:$0xff]   ;;  %v3638_v9 = vld [vmem:[%s4440_s1 + $0x3c8] sm:$0xff]  }
  0x40   : > { %2124 = vmatmul.mubr.bf16.gmra.mrb[12].mxu1 %v3562_v7  ;;  %3145 = vmatpush3.bf16.msra.mxu0 %v3565_v10  ;;  %v3636_v7 = vld [vmem:[%s4440_s1 + $0x380] sm:$0xff]   ;;  %v3639_v10 = vld [vmem:[%s4440_s1 + $0x308] sm:$0xff]  }
  0x41   : > { %3185 = vmatpush3.bf16.msra.mxu1 %v3566_v11  ;;  %3146 = vmatprep.subr.bf16.mxu0 %v3567_v12  ;;  %v3640_v11 = vld [vmem:[%s4440_s1 + $0x388] sm:$0xff]  }
  0x42   : > { %3186 = vmatprep.subr.bf16.mxu1 %v3568_v13  ;;  %2164 = vmatprep.mubr.bf16.mxu0 %v3573_v17  ;;  %v3641_v12 = vld [vmem:[%s3903_s13 + $0xcc] ss:$84 sps:$4 sm:$0xff]   ;;  %v3643_v13 = vld [vmem:[%s3903_s13 + $0xd4] ss:$84 sps:$4 sm:$0xff]  }
  0x43   : > { %2229 = vmatprep.mubr.bf16.mxu1 %v3576_v19  ;;  %v3648_v17 = vld [vmem:[%s4440_s1 + $0x3d0] sm:$0xff]  }
  0x44   : > { %3147 = vmatpush3.bf16.msra.mxu0 %v3569_v14  ;;  %v3645_v14 = vld [vmem:[%s3903_s13 + $0xc8] ss:$84 sps:$4 sm:$0xff]   ;;  %v3650_v19 = vld [vmem:[%s4440_s1 + $0x390] sm:$0xff]  }
  0x45   : > { %3187 = vmatpush3.bf16.msra.mxu1 %v3570_v15  ;;  %3212 = vmatprep.subr.bf16.mxu0 %v3577_v20  ;;  %v3646_v15 = vld [vmem:[%s3903_s13 + $0xd0] ss:$84 sps:$4 sm:$0xff]   ;;  %v3651_v20 = vld [vmem:[%s4440_s1 + $0x358] sm:$0xff]  }
  0x46   : > { %3252 = vmatprep.subr.bf16.mxu1 %v3578_v21  ;;  %v3652_v21 = vld [vmem:[%s4440_s1 + $0x3d8] sm:$0xff]  }
  0x47   : > { %2165 = vmatmul.mubr.bf16.vlgmr.msra.gmra.mrb[16].mxu0 %v3571_v16  ;;  %v3647_v16 = vld [vmem:[%s4440_s1 + $0x350] sm:$0xff]  }
  0x48   : > { %2230 = vmatmul.mubr.bf16.vlgmr.msra.gmra.mrb[16].mxu1 %v3574_v18  ;;  %3213 = vmatpush3.bf16.msra.mxu0 %v3579_v22  ;;  %v3649_v18 = vld [vmem:[%s4440_s1 + $0x310] sm:$0xff]   ;;  %v3653_v22 = vld [vmem:[%s4440_s1 + $0x318] sm:$0xff]  }
  0x49   : > { %3253 = vmatpush3.bf16.msra.mxu1 %v3580_v23  ;;  %3214 = vmatprep.subr.bf16.mxu0 %v3581_v24  ;;  %v3654_v23 = vld [vmem:[%s4440_s1 + $0x398] sm:$0xff]   ;;  %v3655_v24 = vld [vmem:[%s3903_s13 + $0x174] ss:$84 sps:$4 sm:$0xff]  }
  0x4a   : > { %3254 = vmatprep.subr.bf16.mxu1 %v3582_v25  ;;  %2172 = vmatprep.mubr.bf16.mxu0 %v3585_v28  ;;  %v3657_v25 = vld [vmem:[%s3903_s13 + $0x17c] ss:$84 sps:$4 sm:$0xff]   ;;  %v3661_v28 = vld [vmem:[%s4440_s1 + $0x360] sm:$0xff]  }
  0x4b   : > { %2237 = vmatprep.mubr.bf16.mxu1 %v3587_v29  ;;  %v3662_v29 = vld [vmem:[%s4440_s1 + $0x3e0] sm:$0xff]  }
  0x4c   : > { %3215 = vmatpush3.bf16.msra.mxu0 %v3583_v26  ;;  %v3659_v26 = vld [vmem:[%s3903_s13 + $0x170] ss:$84 sps:$4 sm:$0xff]  }
  0x4d   : > { %3255 = vmatpush3.bf16.msra.mxu1 %v3584_v27  ;;  %3216 = vmatprep.subr.bf16.mxu0 %v3591_v32  ;;  %v3660_v27 = vld [vmem:[%s3903_s13 + $0x178] ss:$84 sps:$4 sm:$0xff]  }
  0x4e   : > { %3256 = vmatprep.subr.bf16.mxu1 %v3592_v33  ;;  %v3665_v32 = vld [vmem:[%s4440_s1 + $0x368] sm:$0xff]  }
  0x4f   : > { %2173 = vmatmul.mubr.bf16.gmra.mrb[20].mxu0 %v3589_v30  ;;  %v3663_v30 = vld [vmem:[%s4440_s1 + $0x320] sm:$0xff]   ;;  %v3666_v33 = vld [vmem:[%s4440_s1 + $0x3e8] sm:$0xff]  }
  0x50   : > { %2238 = vmatmul.mubr.bf16.gmra.mrb[20].mxu1 %v3590_v31  ;;  %3217 = vmatpush3.bf16.msra.mxu0 %v3593_v34  ;;  %v3664_v31 = vld [vmem:[%s4440_s1 + $0x3a0] sm:$0xff]   ;;  %v3667_v34 = vld [vmem:[%s4440_s1 + $0x328] sm:$0xff]  }
  0x51   : > { %3257 = vmatpush3.bf16.msra.mxu1 %v3594_v35  ;;  %3218 = vmatprep.subr.bf16.mxu0 %v3595_v36  ;;  %v3668_v35 = vld [vmem:[%s4440_s1 + $0x3a8] sm:$0xff]   ;;  %v3669_v36 = vld [vmem:[%s3903_s13 + $0x21c] ss:$84 sps:$4 sm:$0xff]  }
  0x52   : > { %3258 = vmatprep.subr.bf16.mxu1 %v3596_v37  ;;  %2180 = vmatprep.mubr.bf16.mxu0 %v3599_v40  ;;  %v3671_v37 = vld [vmem:[%s3903_s13 + $0x224] ss:$84 sps:$4 sm:$0xff]   ;;  %v3675_v40 = vld [vmem:[%s4440_s1 + $0x370] sm:$0xff]  }
  0x53   : > { %2245 = vmatprep.mubr.bf16.mxu1 %v3601_v41  ;;  %v3676_v41 = vld [vmem:[%s4440_s1 + $0x3f0] sm:$0xff]  }
  0x54   : > { %3219 = vmatpush3.bf16.msra.mxu0 %v3597_v38  ;;  %v3673_v38 = vld [vmem:[%s3903_s13 + $0x218] ss:$84 sps:$4 sm:$0xff]  }
  0x55   : > { %3259 = vmatpush3.bf16.msra.mxu1 %v3598_v39  ;;  %3220 = vmatprep.subr.bf16.mxu0 %v3605_v44  ;;  %v3674_v39 = vld [vmem:[%s3903_s13 + $0x220] ss:$84 sps:$4 sm:$0xff]   ;;  %v3679_v44 = vld [vmem:[%s4440_s1 + $0x378] sm:$0xff]  }
  0x56   : > { %3260 = vmatprep.subr.bf16.mxu1 %v3606_v45  ;;  %v3680_v45 = vld [vmem:[%s4440_s1 + $0x3f8] sm:$0xff]  }
  0x57   : > { %2181 = vmatmul.mubr.bf16.gmra.mrb[24].mxu0 %v3603_v42  ;;  %v3677_v42 = vld [vmem:[%s4440_s1 + $0x330] sm:$0xff]  }
  0x58   : > { %2246 = vmatmul.mubr.bf16.gmra.mrb[24].mxu1 %v3604_v43  ;;  %3221 = vmatpush3.bf16.msra.mxu0 %v3607_v46  ;;  %v3678_v43 = vld [vmem:[%s4440_s1 + $0x3b0] sm:$0xff]   ;;  %v3681_v46 = vld [vmem:[%s4440_s1 + $0x338] sm:$0xff]  }
  0x59   : > { %3261 = vmatpush3.bf16.msra.mxu1 %v3608_v47  ;;  %3222 = vmatprep.subr.bf16.mxu0 %v3609_v48  ;;  %v3682_v47 = vld [vmem:[%s4440_s1 + $0x3b8] sm:$0xff]   ;;  %v3683_v48 = vld [vmem:[%s3903_s13 + $0x30] ss:$84 sps:$4 sm:$0xff]  }
  0x5a   : > { %3262 = vmatprep.subr.bf16.mxu1 %v3610_v49  ;;  %2188 = vmatprep.mubr.bf16.mxu0 %v3613_v52  ;;  %v3685_v49 = vld [vmem:[%s3903_s13 + $0x34] ss:$84 sps:$4 sm:$0xff]   ;;  %v3689_v52 = vld [vmem:[%s4440_s1 + $0x440] sm:$0xff]  }
  0x5b   : > { %2253 = vmatprep.mubr.bf16.mxu1 %v3615_v53  ;;  %v3690_v53 = vld [vmem:[%s4440_s1 + $0x4c0] sm:$0xff]  }
  0x5c   : > { %3223 = vmatpush3.bf16.msra.mxu0 %v3611_v50  ;;  %v3686_v50 = vld [vmem:[%s3903_s13 + $0x38] ss:$84 sps:$4 sm:$0xff]  }
  0x5d   : > { %3263 = vmatpush3.bf16.msra.mxu1 %v3612_v51  ;;  %3224 = vmatprep.subr.bf16.mxu0 %v3619_v56  ;;  %v3688_v51 = vld [vmem:[%s3903_s13 + $0x3c] ss:$84 sps:$4 sm:$0xff]   ;;  %v3693_v56 = vld [vmem:[%s4440_s1 + $0x448] sm:$0xff]  }
  0x5e   : > { %3264 = vmatprep.subr.bf16.mxu1 %v3620_v57  ;;  %v3694_v57 = vld [vmem:[%s4440_s1 + $0x4c8] sm:$0xff]  }
  0x5f   : > { %2189 = vmatmul.mubr.bf16.gmra.mrb[28].mxu0 %v3617_v54  ;;  %v3691_v54 = vld [vmem:[%s4440_s1 + $0x400] sm:$0xff]  }
  0x60   : > { %2254 = vmatmul.mubr.bf16.gmra.mrb[28].mxu1 %v3618_v55  ;;  %3225 = vmatpush3.bf16.msra.mxu0 %v3621_v58  ;;  %v3692_v55 = vld [vmem:[%s4440_s1 + $0x480] sm:$0xff]   ;;  %v3695_v58 = vld [vmem:[%s4440_s1 + $0x408] sm:$0xff]  }
  0x61   : > { %3265 = vmatpush3.bf16.msra.mxu1 %v3622_v59  ;;  %3226 = vmatprep.subr.bf16.mxu0 %v3623_v60  ;;  %v3696_v59 = vld [vmem:[%s4440_s1 + $0x488] sm:$0xff]   ;;  %v3697_v60 = vld [vmem:[%s3903_s13 + $0xdc] ss:$84 sps:$4 sm:$0xff]  }
  0x62   : > { %3266 = vmatprep.subr.bf16.mxu1 %v3624_v61  ;;  %2294 = vmatprep.mubr.bf16.mxu0 %v3629_v1  ;;  %v3699_v61 = vld [vmem:[%s3903_s13 + $0xe4] ss:$84 sps:$4 sm:$0xff]   ;;  %v3704_v1 = vld [vmem:[%s4440_s1 + $0x4d0] sm:$0xff]  }
  0x63   : > { %2359 = vmatprep.mubr.bf16.mxu1 %v3632_v3  ;;  %v3706_v3 = vld [vmem:[%s4440_s1 + $0x490] sm:$0xff]  }
  0x64   : > { %3227 = vmatpush3.bf16.msra.mxu0 %v3625_v62  ;;  %v3701_v62 = vld [vmem:[%s3903_s13 + $0xd8] ss:$84 sps:$4 sm:$0xff]  }
  0x65   : > { %3267 = vmatpush3.bf16.msra.mxu1 %v3626_v63  ;;  %3292 = vmatprep.subr.bf16.mxu0 %v3633_v4  ;;  %v3702_v63 = vld [vmem:[%s3903_s13 + $0xe0] ss:$84 sps:$4 sm:$0xff]   ;;  %v3707_v4 = vld [vmem:[%s4440_s1 + $0x458] sm:$0xff]  }
  0x66   : > { %3332 = vmatprep.subr.bf16.mxu1 %v3634_v5  ;;  %v3708_v5 = vld [vmem:[%s4440_s1 + $0x4d8] sm:$0xff]  }
  0x67   : > { %2295 = vmatmul.mubr.bf16.vlgmr.msra.gmra.mrb[32].mxu0 %v3627_v0  ;;  %v3703_v0 = vld [vmem:[%s4440_s1 + $0x450] sm:$0xff]  }
  0x68   : > { %2360 = vmatmul.mubr.bf16.vlgmr.msra.gmra.mrb[32].mxu1 %v3630_v2  ;;  %3293 = vmatpush3.bf16.msra.mxu0 %v3635_v6  ;;  %v3705_v2 = vld [vmem:[%s4440_s1 + $0x410] sm:$0xff]   ;;  %v3709_v6 = vld [vmem:[%s4440_s1 + $0x418] sm:$0xff]  }
  0x69   : > { %3333 = vmatpush3.bf16.msra.mxu1 %v3636_v7  ;;  %3294 = vmatprep.subr.bf16.mxu0 %v3637_v8  ;;  %v3710_v7 = vld [vmem:[%s4440_s1 + $0x498] sm:$0xff]  }
  0x6a   : > { %3334 = vmatprep.subr.bf16.mxu1 %v3638_v9  ;;  %2302 = vmatprep.mubr.bf16.mxu0 %v3641_v12  ;;  %v3711_v8 = vld [vmem:[%s3903_s13 + $0x184] ss:$84 sps:$4 sm:$0xff]   ;;  %v3713_v9 = vld [vmem:[%s3903_s13 + $0x18c] ss:$84 sps:$4 sm:$0xff]  }
  0x6b   : > { %2367 = vmatprep.mubr.bf16.mxu1 %v3643_v13  ;;  %v3717_v12 = vld [vmem:[%s4440_s1 + $0x460] sm:$0xff]  }
  0x6c   : > { %3295 = vmatpush3.bf16.msra.mxu0 %v3639_v10  ;;  %v3715_v10 = vld [vmem:[%s3903_s13 + $0x180] ss:$84 sps:$4 sm:$0xff]  }
  0x6d   : > { %3335 = vmatpush3.bf16.msra.mxu1 %v3640_v11  ;;  %3296 = vmatprep.subr.bf16.mxu0 %v3647_v16  ;;  %v3716_v11 = vld [vmem:[%s3903_s13 + $0x188] ss:$84 sps:$4 sm:$0xff]   ;;  %v3718_v13 = vld [vmem:[%s4440_s1 + $0x4e0] sm:$0xff]  }
  0x6e   : > { %3336 = vmatprep.subr.bf16.mxu1 %v3648_v17  ;;  %v3721_v16 = vld [vmem:[%s4440_s1 + $0x468] sm:$0xff]  }
  0x6f   : > { %2303 = vmatmul.mubr.bf16.gmra.mrb[36].mxu0 %v3645_v14  ;;  %v3719_v14 = vld [vmem:[%s4440_s1 + $0x420] sm:$0xff]   ;;  %v3722_v17 = vld [vmem:[%s4440_s1 + $0x4e8] sm:$0xff]  }
  0x70   : > { %2368 = vmatmul.mubr.bf16.gmra.mrb[36].mxu1 %v3646_v15  ;;  %3297 = vmatpush3.bf16.msra.mxu0 %v3649_v18  ;;  %v3720_v15 = vld [vmem:[%s4440_s1 + $0x4a0] sm:$0xff]   ;;  %v3723_v18 = vld [vmem:[%s4440_s1 + $0x428] sm:$0xff]  }
  0x71   : > { %3337 = vmatpush3.bf16.msra.mxu1 %v3650_v19  ;;  %3298 = vmatprep.subr.bf16.mxu0 %v3651_v20  ;;  %v3724_v19 = vld [vmem:[%s4440_s1 + $0x4a8] sm:$0xff]  }
  0x72   : > { %3338 = vmatprep.subr.bf16.mxu1 %v3652_v21  ;;  %2310 = vmatprep.mubr.bf16.mxu0 %v3655_v24  ;;  %v3725_v20 = vld [vmem:[%s3903_s13 + $0x22c] ss:$84 sps:$4 sm:$0xff]   ;;  %v3727_v21 = vld [vmem:[%s3903_s13 + $0x234] ss:$84 sps:$4 sm:$0xff]  }
  0x73   : > { %2375 = vmatprep.mubr.bf16.mxu1 %v3657_v25  ;;  %v3731_v24 = vld [vmem:[%s4440_s1 + $0x470] sm:$0xff]  }
  0x74   : > { %3299 = vmatpush3.bf16.msra.mxu0 %v3653_v22  ;;  %v3729_v22 = vld [vmem:[%s3903_s13 + $0x228] ss:$84 sps:$4 sm:$0xff]   ;;  %v3732_v25 = vld [vmem:[%s4440_s1 + $0x4f0] sm:$0xff]  }
  0x75   : > { %3339 = vmatpush3.bf16.msra.mxu1 %v3654_v23  ;;  %3300 = vmatprep.subr.bf16.mxu0 %v3661_v28  ;;  %v3730_v23 = vld [vmem:[%s3903_s13 + $0x230] ss:$84 sps:$4 sm:$0xff]   ;;  %v3735_v28 = vld [vmem:[%s4440_s1 + $0x478] sm:$0xff]  }
  0x76   : > { %3340 = vmatprep.subr.bf16.mxu1 %v3662_v29  ;;  %v3736_v29 = vld [vmem:[%s4440_s1 + $0x4f8] sm:$0xff]  }
  0x77   : > { %2311 = vmatmul.mubr.bf16.gmra.mrb[40].mxu0 %v3659_v26  ;;  %v3733_v26 = vld [vmem:[%s4440_s1 + $0x430] sm:$0xff]  }
  0x78   : > { %2376 = vmatmul.mubr.bf16.gmra.mrb[40].mxu1 %v3660_v27  ;;  %3301 = vmatpush3.bf16.msra.mxu0 %v3663_v30  ;;  %v3734_v27 = vld [vmem:[%s4440_s1 + $0x4b0] sm:$0xff]   ;;  %v3737_v30 = vld [vmem:[%s4440_s1 + $0x438] sm:$0xff]  }
  0x79   : > { %3341 = vmatpush3.bf16.msra.mxu1 %v3664_v31  ;;  %3302 = vmatprep.subr.bf16.mxu0 %v3665_v32  ;;  %v3738_v31 = vld [vmem:[%s4440_s1 + $0x4b8] sm:$0xff]   ;;  %v3739_v32 = vld [vmem:[%s3903_s13 + $0x40] ss:$84 sps:$4 sm:$0xff]  }
  0x7a   : > { %3342 = vmatprep.subr.bf16.mxu1 %v3666_v33  ;;  %2318 = vmatprep.mubr.bf16.mxu0 %v3669_v36  ;;  %v3741_v33 = vld [vmem:[%s3903_s13 + $0x44] ss:$84 sps:$4 sm:$0xff]  }
  0x7b   : > { %2383 = vmatprep.mubr.bf16.mxu1 %v3671_v37  ;;  %v3745_v36 = vld [vmem:[%s4440_s1 + $0x500] sm:$0xff]  }
  0x7c   : > { %3303 = vmatpush3.bf16.msra.mxu0 %v3667_v34  ;;  %v3742_v34 = vld [vmem:[%s3903_s13 + $0x48] ss:$84 sps:$4 sm:$0xff]   ;;  %v3746_v37 = vld [vmem:[%s3903_s13 + $0xec] ss:$84 sps:$4 sm:$0xff]  }
  0x7d   : > { %3343 = vmatpush3.bf16.msra.mxu1 %v3668_v35  ;;  %3304 = vmatprep.subr.bf16.mxu0 %v3675_v40  ;;  %v3744_v35 = vld [vmem:[%s3903_s13 + $0x4c] ss:$84 sps:$4 sm:$0xff]   ;;  %v3751_v40 = vld [vmem:[%s3903_s13 + $0xf0] ss:$84 sps:$4 sm:$0xff]  }
  0x7e   : > { %3344 = vmatprep.subr.bf16.mxu1 %v3676_v41  ;;  %v3752_v41 = vld [vmem:[%s3903_s13 + $0x194] ss:$84 sps:$4 sm:$0xff]  }
  0x7f   : > { %2319 = vmatmul.mubr.bf16.gmra.mrb[44].mxu0 %v3673_v38  ;;  %v3748_v38 = vld [vmem:[%s3903_s13 + $0xf4] ss:$84 sps:$4 sm:$0xff]  }
  0x80   : > { %2384 = vmatmul.mubr.bf16.gmra.mrb[44].mxu1 %v3674_v39  ;;  %3305 = vmatpush3.bf16.msra.mxu0 %v3677_v42  ;;  %v3750_v39 = vld [vmem:[%s3903_s13 + $0xe8] ss:$84 sps:$4 sm:$0xff]  }
  0x81   : > { %3345 = vmatpush3.bf16.msra.mxu1 %v3678_v43  ;;  %3306 = vmatprep.subr.bf16.mxu0 %v3679_v44  ;;  %v3758_v42 = vld [vmem:[%s4440_s1 + $0x508] sm:$0xff]   ;;  %v3754_v43 = vld [vmem:[%s3903_s13 + $0x19c] ss:$84 sps:$4 sm:$0xff]  }
  0x82   : > { %3346 = vmatprep.subr.bf16.mxu1 %v3680_v45  ;;  %2424 = vmatprep.mubr.bf16.mxu0 %v3685_v49  ;;  %v3756_v44 = vld [vmem:[%s3903_s13 + $0x190] ss:$84 sps:$4 sm:$0xff]  }
  0x83   : > { %2489 = vmatprep.mubr.bf16.mxu1 %v3688_v51  ;;  %v3759_v45 = vld [vmem:[%s3903_s13 + $0x23c] ss:$84 sps:$4 sm:$0xff]   ;;  %v3766_v51 = vld [vmem:[%s3903_s13 + $0x1a0] ss:$84 sps:$4 sm:$0xff]  }
  0x84   : > { %3307 = vmatpush3.bf16.msra.mxu0 %v3681_v46  ;;  %v3757_v46 = vld [vmem:[%s3903_s13 + $0x198] ss:$84 sps:$4 sm:$0xff]   ;;  %v3765_v49 = vld [vmem:[%s3903_s13 + $0x50] ss:$84 sps:$4 sm:$0xff]  }
  0x85   : > { %3347 = vmatpush3.bf16.msra.mxu1 %v3682_v47  ;;  %3372 = vmatprep.subr.bf16.mxu0 %v3689_v52  ;;  %v3761_v47 = vld [vmem:[%s3903_s13 + $0x244] ss:$84 sps:$4 sm:$0xff]  }
  0x86   : > { %3412 = vmatprep.subr.bf16.mxu1 %v3690_v53  ;;  %v3767_v52 = vld [vmem:[%s3903_s13 + $0xf8] ss:$84 sps:$4 sm:$0xff]   ;;  %v3768_v53 = vld [vmem:[%s3903_s13 + $0x248] ss:$84 sps:$4 sm:$0xff]  }
  0x87   : > { %2425 = vmatmul.mubr.bf16.vlgmr.msra.gmra.mrb[48].mxu0 %v3683_v48  ;;  %v3763_v48 = vld [vmem:[%s3903_s13 + $0x238] ss:$84 sps:$4 sm:$0xff]  }
  0x88   : > { %2490 = vmatmul.mubr.bf16.vlgmr.msra.gmra.mrb[48].mxu1 %v3686_v50  ;;  %3373 = vmatpush3.bf16.msra.mxu0 %v3691_v54  ;;  %v3764_v50 = vld [vmem:[%s3903_s13 + $0x240] ss:$84 sps:$4 sm:$0xff]   ;;  %s2798_s13 = sshll.u32 %s4444_s19, 3 }
  0x89   : > { %3413 = vmatpush3.bf16.msra.mxu1 %v3692_v55  ;;  %3374 = vmatprep.subr.bf16.mxu0 %v3693_v56  ;;  %v2799_v56 = vld [vmem:[%s4441_s2] ss:$0 sm:$0xff]  ;;  %s175_s5 = scalar_lea.vmem %s4442_s3, %s2798_s13 }
  0x8a   : > { %3414 = vmatprep.subr.bf16.mxu1 %v3694_v57  ;;  %2432 = vmatprep.mubr.bf16.mxu0 %v3697_v60 }
  0x8b   : > { %2497 = vmatprep.mubr.bf16.mxu1 %v3699_v61 }
  0x8c   : > { %3375 = vmatpush3.bf16.msra.mxu0 %v3695_v58 }
  0x8d   : > { %3415 = vmatpush3.bf16.msra.mxu1 %v3696_v59  ;;  %3376 = vmatprep.subr.bf16.mxu0 %v3703_v0 }
  0x8e   : > { %3416 = vmatprep.subr.bf16.mxu1 %v3704_v1 }
  0x8f   : > { %2433 = vmatmul.mubr.bf16.gmra.mrb[52].mxu0 %v3701_v62 }
  0x90   : > { %2498 = vmatmul.mubr.bf16.gmra.mrb[52].mxu1 %v3702_v63  ;;  %3377 = vmatpush3.bf16.msra.mxu0 %v3705_v2 }
  0x91   : > { %3417 = vmatpush3.bf16.msra.mxu1 %v3706_v3  ;;  %3378 = vmatprep.subr.bf16.mxu0 %v3707_v4 }
  0x92   : > { %3418 = vmatprep.subr.bf16.mxu1 %v3708_v5  ;;  %2440 = vmatprep.mubr.bf16.mxu0 %v3711_v8 }
  0x93   : > { %2505 = vmatprep.mubr.bf16.mxu1 %v3713_v9 }
  0x94   : > { %3379 = vmatpush3.bf16.msra.mxu0 %v3709_v6 }
  0x95   : > { %3419 = vmatpush3.bf16.msra.mxu1 %v3710_v7  ;;  %3380 = vmatprep.subr.bf16.mxu0 %v3717_v12 }
  0x96   : > { %3420 = vmatprep.subr.bf16.mxu1 %v3718_v13 }
  0x97   : > { %2441 = vmatmul.mubr.bf16.gmra.mrb[56].mxu0 %v3715_v10 }
  0x98   : > { %2506 = vmatmul.mubr.bf16.gmra.mrb[56].mxu1 %v3716_v11  ;;  %3381 = vmatpush3.bf16.msra.mxu0 %v3719_v14 }
  0x99   : > { %3421 = vmatpush3.bf16.msra.mxu1 %v3720_v15  ;;  %3382 = vmatprep.subr.bf16.mxu0 %v3721_v16 }
  0x9a   : > { %3422 = vmatprep.subr.bf16.mxu1 %v3722_v17  ;;  %2448 = vmatprep.mubr.bf16.mxu0 %v3725_v20 }
  0x9b   : > { %2513 = vmatprep.mubr.bf16.mxu1 %v3727_v21 }
  0x9c   : > { %3383 = vmatpush3.bf16.msra.mxu0 %v3723_v18 }
  0x9d   : > { %3423 = vmatpush3.bf16.msra.mxu1 %v3724_v19  ;;  %3384 = vmatprep.subr.bf16.mxu0 %v3731_v24 }
  0x9e   : > { %3424 = vmatprep.subr.bf16.mxu1 %v3732_v25 }
  0x9f   : > { %2449 = vmatmul.mubr.bf16.gmra.mrb[60].mxu0 %v3729_v22 }
  0xa0   : > { %2514 = vmatmul.mubr.bf16.gmra.mrb[60].mxu1 %v3730_v23  ;;  %3385 = vmatpush3.bf16.msra.mxu0 %v3733_v26 }
  0xa1   : > { %3425 = vmatpush3.bf16.msra.mxu1 %v3734_v27  ;;  %3386 = vmatprep.subr.bf16.mxu0 %v3735_v28 }
  0xa2   : > { %3426 = vmatprep.subr.bf16.mxu1 %v3736_v29  ;;  %2554 = vmatprep.mubr.bf16.mxu0 %v3741_v33 }
  0xa3   : > { %2619 = vmatprep.mubr.bf16.mxu1 %v3744_v35 }
  0xa4   : > { %3387 = vmatpush3.bf16.msra.mxu0 %v3737_v30 }
  0xa5   : > { %3427 = vmatpush3.bf16.msra.mxu1 %v3738_v31  ;;  %3458 = vmatprep.subr.bf16.mxu0 %v3745_v36 }
  0xa6   : > { %3470 = vmatprep.subr.bf16.mxu1 %v3745_v36 }
  0xa7   : > { %2555 = vmatmul.mubr.bf16.vlgmr.msra.gmra.mrb[64].mxu0 %v3739_v32 }
  0xa8   : > { %2620 = vmatmul.mubr.bf16.vlgmr.msra.gmra.mrb[64].mxu1 %v3742_v34  ;;  %3459 = vmatpush3.bf16.msra.mxu0 %v3745_v36 }
  0xa9   : > { %3472 = vmatpush3.bf16.msra.mxu1 %v3745_v36  ;;  %2562 = vmatprep.mubr.bf16.mxu0 %v3746_v37 }
  0xaa   : > { %2627 = vmatprep.mubr.bf16.mxu1 %v3748_v38  ;;  %3460 = vmatprep.subr.bf16.mxu0 %v3758_v42 }
  0xab   : > { %3471 = vmatprep.subr.bf16.mxu1 %v3758_v42 }
  0xac   : > { %3461 = vmatpush3.bf16.msra.mxu0 %v3758_v42 }
  0xad   : > { %3473 = vmatpush3.bf16.msra.mxu1 %v3758_v42 }
  0xaf   : > { %2563 = vmatmul.mubr.bf16.gmra.mrb[68].mxu0 %v3750_v39 }
  0xb0   : > { %2570 = vmatprep.mubr.bf16.mxu0 %v3752_v41  ;;  %2628 = vmatmul.mubr.bf16.gmra.mrb[68].mxu1 %v3751_v40 }
  0xb1   : > { %2635 = vmatprep.mubr.bf16.mxu1 %v3754_v43 }
  0xb7   : > { %2571 = vmatmul.mubr.bf16.gmra.mrb[72].mxu0 %v3756_v44 }
  0xb8   : > { %2578 = vmatprep.mubr.bf16.mxu0 %v3759_v45  ;;  %2636 = vmatmul.mubr.bf16.gmra.mrb[72].mxu1 %v3757_v46 }
  0xb9   : > { %2643 = vmatprep.mubr.bf16.mxu1 %v3761_v47 }
  0xbf   : > { %2579 = vmatmul.mubr.bf16.gmra.mrb[76].mxu0 %v3763_v48 }
  0xc0   : > { %3462 = vmatprep.mubr.msk.bf16.mxu0 %vm1989_vm0, %v3765_v49  ;;  %2644 = vmatmul.mubr.bf16.gmra.mrb[76].mxu1 %v3764_v50 }
  0xc1   : > { %3466 = vmatprep.mubr.msk.bf16.mxu1 %vm1989_vm0, %v3766_v51 }
  0xc7   : > { %3463 = vmatmul.mubr.msk.bf16.vlgmr.msra.gmra.mrb[80].mxu0 %vm1989_vm0, %v3767_v52 }
  0xc8   : > { %3467 = vmatmul.mubr.msk.bf16.vlgmr.msra.gmra.mrb[80].mxu1 %vm1989_vm0, %v3768_v53 }
  0xfa   : > { %v3068_v54 = vpop.f32.mrb[0].mxu0 }
  0xfb   : > { %v3108_v55 = vpop.f32.mrb[0].mxu1  ;;  %v3069_v57 = vpop.f32.mrb[1].mxu0 }
  0xfc   : > { %v3070_v58 = vadd.f32 %v3069_v57, %v3068_v54  ;;  %v3109_v59 = vpop.f32.mrb[1].mxu1  ;;  %v3071_v60 = vpop.f32.mrb[2].mxu0 }
  0xfd   : > { %v3110_v61 = vadd.f32 %v3109_v59, %v3108_v55  ;;  %v3111_v62 = vpop.f32.mrb[2].mxu1  ;;  %v3072_v63 = vpop.f32.mrb[3].mxu0 }
  0xfe   : > { %v2037_v0 = vadd.f32 %v3070_v58, %v2799_v56  ;;  %v3073_v1 = vadd.f32 %v3072_v63, %v3071_v60  ;;  %v3112_v2 = vpop.f32.mrb[3].mxu1 }
  0xff   : > { %v3113_v3 = vadd.f32 %v3112_v2, %v3111_v62 }
 0x100   : > { %v2102_v4 = vadd.f32 %v3110_v61, %v2037_v0  ;;  %v2040_v5 = vadd.f32 %v3073_v1, %v2799_v56 }
 0x102   : > { %v2105_v6 = vadd.f32 %v3113_v3, %v2040_v5  ;;  %v3074_v7 = vpop.f32.mrb[4].mxu0 }
 0x103   : > { %v3114_v8 = vpop.f32.mrb[4].mxu1  ;;  %v3075_v9 = vpop.f32.mrb[5].mxu0 }
 0x104   : > { %v3076_v10 = vadd.f32 %v3075_v9, %v3074_v7  ;;  %v3115_v11 = vpop.f32.mrb[5].mxu1  ;;  %v3077_v12 = vpop.f32.mrb[6].mxu0 }
 0x105   : > { %v3116_v13 = vadd.f32 %v3115_v11, %v3114_v8  ;;  %v3117_v14 = vpop.f32.mrb[6].mxu1  ;;  %v3078_v15 = vpop.f32.mrb[7].mxu0 }
 0x106   : > { %v2045_v16 = vadd.f32 %v3076_v10, %v2799_v56  ;;  %v3079_v17 = vadd.f32 %v3078_v15, %v3077_v12  ;;  %v3118_v18 = vpop.f32.mrb[7].mxu1 }
 0x107   : > { %v3119_v19 = vadd.f32 %v3118_v18, %v3117_v14 }
 0x108   : > { %v2110_v20 = vadd.f32 %v3116_v13, %v2045_v16  ;;  %v2048_v21 = vadd.f32 %v3079_v17, %v2799_v56 }
 0x10a   : > { %v4388_v22 = vadd.f32 %v3119_v19, %v2048_v21  ;;  %v3080_v23 = vpop.f32.mrb[8].mxu0 }
 0x10b   : > { %v3120_v24 = vpop.f32.mrb[8].mxu1  ;;  %v3081_v25 = vpop.f32.mrb[9].mxu0 }
 0x10c   : > { %v3082_v26 = vadd.f32 %v3081_v25, %v3080_v23  ;;  %v3121_v27 = vpop.f32.mrb[9].mxu1  ;;  %v3083_v28 = vpop.f32.mrb[10].mxu0 }
 0x10d   : > { %v3122_v29 = vadd.f32 %v3121_v27, %v3120_v24  ;;  %v3123_v30 = vpop.f32.mrb[10].mxu1  ;;  %v3084_v31 = vpop.f32.mrb[11].mxu0 }
 0x10e   : > { %v2053_v32 = vadd.f32 %v3082_v26, %v2799_v56  ;;  %v3085_v33 = vadd.f32 %v3084_v31, %v3083_v28  ;;  %v3124_v34 = vpop.f32.mrb[11].mxu1 }
 0x10f   : > { %v3125_v35 = vadd.f32 %v3124_v34, %v3123_v30 }
 0x110   : > { %v2118_v36 = vadd.f32 %v3122_v29, %v2053_v32  ;;  %v2056_v37 = vadd.f32 %v3085_v33, %v2799_v56 }
 0x112   : > { %v4390_v38 = vadd.f32 %v3125_v35, %v2056_v37  ;;  %v3086_v39 = vpop.f32.mrb[12].mxu0 }
 0x113   : > { %v3126_v40 = vpop.f32.mrb[12].mxu1  ;;  %v3087_v41 = vpop.f32.mrb[13].mxu0 }
 0x114   : > { %v3127_v42 = vpop.f32.mrb[13].mxu1  ;;  %v3088_v43 = vadd.f32 %v3087_v41, %v3086_v39  ;;  %v3089_v45 = vpop.f32.mrb[14].mxu0 }
 0x115   : > { %v3128_v44 = vadd.f32 %v3127_v42, %v3126_v40  ;;  %v3129_v46 = vpop.f32.mrb[14].mxu1  ;;  %v3090_v47 = vpop.f32.mrb[15].mxu0 }
 0x116   : > { %v3130_v48 = vpop.f32.mrb[15].mxu1  ;;  %v2061_v49 = vadd.f32 %v3088_v43, %v2799_v56  ;;  %v3091_v50 = vadd.f32 %v3090_v47, %v3089_v45 }
 0x117   : > { %v3131_v51 = vadd.f32 %v3130_v48, %v3129_v46 }
 0x118   : > { %v2126_v52 = vadd.f32 %v3128_v44, %v2061_v49  ;;  %v2064_v53 = vadd.f32 %v3091_v50, %v2799_v56 }
 0x11a   : > { %v4392_v54 = vadd.f32 %v3131_v51, %v2064_v53  ;;  %v3148_v55 = vpop.f32.mrb[16].mxu0 }
 0x11b   : > { %v3149_v57 = vpop.f32.mrb[17].mxu0  ;;  %v3188_v58 = vpop.f32.mrb[16].mxu1 }
 0x11c   : > { %v3150_v59 = vadd.f32 %v3149_v57, %v3148_v55  ;;  %v3151_v60 = vpop.f32.mrb[18].mxu0  ;;  %v3189_v61 = vpop.f32.mrb[17].mxu1 }
 0x11d   : > { %v3152_v62 = vpop.f32.mrb[19].mxu0  ;;  %v3190_v0 = vadd.f32 %v3189_v61, %v3188_v58  ;;  %v3191_v1 = vpop.f32.mrb[18].mxu1 }
 0x11e   : > { %v2167_v63 = vadd.f32 %v3150_v59, %v2102_v4  ;;  %v3153_v2 = vadd.f32 %v3152_v62, %v3151_v60  ;;  %v3192_v3 = vpop.f32.mrb[19].mxu1 }
 0x11f   : > { %v3193_v8 = vadd.f32 %v3192_v3, %v3191_v1 }
 0x120   : > { %v2232_v5 = vadd.f32 %v3190_v0, %v2167_v63  ;;  %v2170_v7 = vadd.f32 %v3153_v2, %v2105_v6 }
 0x122   : > { %v4394_v9 = vadd.f32 %v3193_v8, %v2170_v7  ;;  %v3154_v56 = vpop.f32.mrb[20].mxu0 }
 0x123   : > { %v3194_v10 = vpop.f32.mrb[20].mxu1  ;;  %v3155_v11 = vpop.f32.mrb[21].mxu0 }
 0x124   : > { %v3156_v12 = vadd.f32 %v3155_v11, %v3154_v56  ;;  %v3195_v13 = vpop.f32.mrb[21].mxu1  ;;  %v3157_v14 = vpop.f32.mrb[22].mxu0 }
 0x125   : > { %v3196_v15 = vadd.f32 %v3195_v13, %v3194_v10  ;;  %v3197_v16 = vpop.f32.mrb[22].mxu1  ;;  %v3158_v17 = vpop.f32.mrb[23].mxu0 }
 0x126   : > { %v2175_v18 = vadd.f32 %v3156_v12, %v2110_v20  ;;  %v3159_v4 = vadd.f32 %v3158_v17, %v3157_v14  ;;  %v3198_v19 = vpop.f32.mrb[23].mxu1 }
 0x127   : > { %v3199_v21 = vadd.f32 %v3198_v19, %v3197_v16 }
 0x128   : > { %v2240_v23 = vadd.f32 %v3196_v15, %v2175_v18  ;;  %v2178_v24 = vadd.f32 %v3159_v4, %v4388_v22 }
 0x12a   : > { %v4397_v6 = vadd.f32 %v3199_v21, %v2178_v24  ;;  %v3160_v25 = vpop.f32.mrb[24].mxu0 }
 0x12b   : > { %v3200_v26 = vpop.f32.mrb[24].mxu1  ;;  %v3161_v27 = vpop.f32.mrb[25].mxu0 }
 0x12c   : > { %v3201_v28 = vpop.f32.mrb[25].mxu1  ;;  %v3162_v29 = vadd.f32 %v3161_v27, %v3160_v25  ;;  %v3163_v31 = vpop.f32.mrb[26].mxu0 }
 0x12d   : > { %v3202_v30 = vadd.f32 %v3201_v28, %v3200_v26  ;;  %v3203_v32 = vpop.f32.mrb[26].mxu1  ;;  %v3164_v33 = vpop.f32.mrb[27].mxu0 }
 0x12e   : > { %v3204_v34 = vpop.f32.mrb[27].mxu1  ;;  %v2183_v35 = vadd.f32 %v3162_v29, %v2118_v36  ;;  %v3165_v20 = vadd.f32 %v3164_v33, %v3163_v31 }
 0x12f   : > { %v3205_v37 = vadd.f32 %v3204_v34, %v3203_v32 }
 0x130   : > { %v2248_v39 = vadd.f32 %v3202_v30, %v2183_v35  ;;  %v2186_v40 = vadd.f32 %v3165_v20, %v4390_v38 }
 0x132   : > { %v4400_v41 = vadd.f32 %v3205_v37, %v2186_v40  ;;  %v3166_v22 = vpop.f32.mrb[28].mxu0 }
 0x133   : > { %v3206_v42 = vpop.f32.mrb[28].mxu1  ;;  %v3167_v43 = vpop.f32.mrb[29].mxu0 }
 0x134   : > { %v3168_v44 = vadd.f32 %v3167_v43, %v3166_v22  ;;  %v3207_v45 = vpop.f32.mrb[29].mxu1  ;;  %v3169_v46 = vpop.f32.mrb[30].mxu0 }
 0x135   : > { %v3208_v47 = vadd.f32 %v3207_v45, %v3206_v42  ;;  %v3209_v48 = vpop.f32.mrb[30].mxu1  ;;  %v3170_v49 = vpop.f32.mrb[31].mxu0 }
 0x136   : > { %v2191_v50 = vadd.f32 %v3168_v44, %v2126_v52  ;;  %v3171_v51 = vadd.f32 %v3170_v49, %v3169_v46  ;;  %v3210_v53 = vpop.f32.mrb[31].mxu1 }
 0x137   : > { %v3211_v36 = vadd.f32 %v3210_v53, %v3209_v48 }
 0x138   : > { %v2256_v55 = vadd.f32 %v3208_v47, %v2191_v50  ;;  %v2194_v57 = vadd.f32 %v3171_v51, %v4392_v54 }
 0x13a   : > { %v4403_v58 = vadd.f32 %v3211_v36, %v2194_v57  ;;  %v3228_v38 = vpop.f32.mrb[32].mxu0 }
 0x13b   : > { %v3268_v59 = vpop.f32.mrb[32].mxu1  ;;  %v3229_v60 = vpop.f32.mrb[33].mxu0 }
 0x13c   : > { %v3230_v61 = vadd.f32 %v3229_v60, %v3228_v38  ;;  %v3269_v62 = vpop.f32.mrb[33].mxu1  ;;  %v3231_v63 = vpop.f32.mrb[34].mxu0 }
 0x13d   : > { %v3270_v0 = vadd.f32 %v3269_v62, %v3268_v59  ;;  %v3271_v1 = vpop.f32.mrb[34].mxu1  ;;  %v3232_v2 = vpop.f32.mrb[35].mxu0 }
 0x13e   : > { %v2297_v3 = vadd.f32 %v3230_v61, %v2232_v5  ;;  %v3233_v7 = vadd.f32 %v3232_v2, %v3231_v63  ;;  %v3272_v52 = vpop.f32.mrb[35].mxu1 }
 0x13f   : > { %v3273_v8 = vadd.f32 %v3272_v52, %v3271_v1 }
 0x140   : > { %v2362_v56 = vadd.f32 %v3270_v0, %v2297_v3  ;;  %v2300_v10 = vadd.f32 %v3233_v7, %v4394_v9 }
 0x142   : > { %v4406_v11 = vadd.f32 %v3273_v8, %v2300_v10  ;;  %v3234_v54 = vpop.f32.mrb[36].mxu0 }
 0x143   : > { %v3274_v12 = vpop.f32.mrb[36].mxu1  ;;  %v3235_v13 = vpop.f32.mrb[37].mxu0 }
 0x144   : > { %v3275_v14 = vpop.f32.mrb[37].mxu1  ;;  %v3236_v15 = vadd.f32 %v3235_v13, %v3234_v54  ;;  %v3237_v17 = vpop.f32.mrb[38].mxu0 }
 0x145   : > { %v3276_v16 = vadd.f32 %v3275_v14, %v3274_v12  ;;  %v3277_v18 = vpop.f32.mrb[38].mxu1  ;;  %v3238_v4 = vpop.f32.mrb[39].mxu0 }
 0x146   : > { %v3278_v19 = vpop.f32.mrb[39].mxu1  ;;  %v2305_v21 = vadd.f32 %v3236_v15, %v2240_v23  ;;  %v3239_v5 = vadd.f32 %v3238_v4, %v3237_v17 }
 0x147   : > { %v3279_v24 = vadd.f32 %v3278_v19, %v3277_v18 }
 0x148   : > { %v2370_v25 = vadd.f32 %v3276_v16, %v2305_v21  ;;  %v2308_v26 = vadd.f32 %v3239_v5, %v4397_v6 }
 0x14a   : > { %v4409_v27 = vadd.f32 %v3279_v24, %v2308_v26  ;;  %v3240_v9 = vpop.f32.mrb[40].mxu0 }
 0x14b   : > { %v3280_v28 = vpop.f32.mrb[40].mxu1  ;;  %v3241_v29 = vpop.f32.mrb[41].mxu0 }
 0x14c   : > { %v3242_v30 = vadd.f32 %v3241_v29, %v3240_v9  ;;  %v3281_v31 = vpop.f32.mrb[41].mxu1  ;;  %v3243_v32 = vpop.f32.mrb[42].mxu0 }
 0x14d   : > { %v3282_v33 = vadd.f32 %v3281_v31, %v3280_v28  ;;  %v3283_v34 = vpop.f32.mrb[42].mxu1  ;;  %v3244_v35 = vpop.f32.mrb[43].mxu0 }
 0x14e   : > { %v2313_v20 = vadd.f32 %v3242_v30, %v2248_v39  ;;  %v3245_v37 = vadd.f32 %v3244_v35, %v3243_v32  ;;  %v3284_v40 = vpop.f32.mrb[43].mxu1 }
 0x14f   : > { %v3285_v23 = vadd.f32 %v3284_v40, %v3283_v34 }
 0x150   : > { %v2378_v22 = vadd.f32 %v3282_v33, %v2313_v20  ;;  %v2316_v42 = vadd.f32 %v3245_v37, %v4400_v41 }
 0x152   : > { %v4412_v43 = vadd.f32 %v3285_v23, %v2316_v42  ;;  %v3246_v6 = vpop.f32.mrb[44].mxu0 }
 0x153   : > { %v3286_v44 = vpop.f32.mrb[44].mxu1  ;;  %v3247_v45 = vpop.f32.mrb[45].mxu0 }
 0x154   : > { %v3248_v46 = vadd.f32 %v3247_v45, %v3246_v6  ;;  %v3287_v47 = vpop.f32.mrb[45].mxu1  ;;  %v3249_v48 = vpop.f32.mrb[46].mxu0 }
 0x155   : > { %v3288_v49 = vadd.f32 %v3287_v47, %v3286_v44  ;;  %v3289_v50 = vpop.f32.mrb[46].mxu1  ;;  %v3250_v51 = vpop.f32.mrb[47].mxu0 }
 0x156   : > { %v2321_v53 = vadd.f32 %v3248_v46, %v2256_v55  ;;  %v3251_v36 = vadd.f32 %v3250_v51, %v3249_v48  ;;  %v3290_v39 = vpop.f32.mrb[47].mxu1 }
 0x157   : > { %v3291_v57 = vadd.f32 %v3290_v39, %v3289_v50 }
 0x158   : > { %v2386_v38 = vadd.f32 %v3288_v49, %v2321_v53  ;;  %v2324_v59 = vadd.f32 %v3251_v36, %v4403_v58 }
 0x15a   : > { %v4415_v60 = vadd.f32 %v3291_v57, %v2324_v59  ;;  %v3308_v41 = vpop.f32.mrb[48].mxu0 }
 0x15b   : > { %v3348_v61 = vpop.f32.mrb[48].mxu1  ;;  %v3309_v62 = vpop.f32.mrb[49].mxu0 }
 0x15c   : > { %v3310_v63 = vadd.f32 %v3309_v62, %v3308_v41  ;;  %v3349_v0 = vpop.f32.mrb[49].mxu1  ;;  %v3311_v1 = vpop.f32.mrb[50].mxu0 }
 0x15d   : > { %v3350_v2 = vadd.f32 %v3349_v0, %v3348_v61  ;;  %v3351_v3 = vpop.f32.mrb[50].mxu1  ;;  %v3312_v7 = vpop.f32.mrb[51].mxu0 }
 0x15e   : > { %v2427_v52 = vadd.f32 %v3310_v63, %v2362_v56  ;;  %v3313_v8 = vadd.f32 %v3312_v7, %v3311_v1  ;;  %v3352_v55 = vpop.f32.mrb[51].mxu1 }
 0x15f   : > { %v3353_v10 = vadd.f32 %v3352_v55, %v3351_v3 }
 0x160   : > { %v2492_v54 = vadd.f32 %v3350_v2, %v2427_v52  ;;  %v2430_v12 = vadd.f32 %v3313_v8, %v4406_v11 }
 0x162   : > { %v2495_v13 = vadd.f32 %v3353_v10, %v2430_v12  ;;  %v3314_v58 = vpop.f32.mrb[52].mxu0 }
 0x163   : > { %v3354_v14 = vpop.f32.mrb[52].mxu1  ;;  %v3315_v15 = vpop.f32.mrb[53].mxu0 }
 0x164   : > { %v3316_v16 = vadd.f32 %v3315_v15, %v3314_v58  ;;  %v3355_v17 = vpop.f32.mrb[53].mxu1  ;;  %v3317_v18 = vpop.f32.mrb[54].mxu0 }
 0x165   : > { %v3356_v4 = vadd.f32 %v3355_v17, %v3354_v14  ;;  %v3357_v19 = vpop.f32.mrb[54].mxu1  ;;  %v3318_v21 = vpop.f32.mrb[55].mxu0 }
 0x166   : > { %v2435_v5 = vadd.f32 %v3316_v16, %v2370_v25  ;;  %v3319_v24 = vadd.f32 %v3318_v21, %v3317_v18  ;;  %v3358_v26 = vpop.f32.mrb[55].mxu1 }
 0x167   : > { %v3359_v56 = vadd.f32 %v3358_v26, %v3357_v19 }
 0x168   : > { %v2500_v9 = vadd.f32 %v3356_v4, %v2435_v5  ;;  %v2438_v28 = vadd.f32 %v3319_v24, %v4409_v27 }
 0x16a   : > { %v2503_v29 = vadd.f32 %v3359_v56, %v2438_v28  ;;  %v3320_v30 = vpop.f32.mrb[56].mxu0 }
 0x16b   : > { %v3360_v11 = vpop.f32.mrb[56].mxu1  ;;  %v3321_v31 = vpop.f32.mrb[57].mxu0 }
 0x16c   : > { %v3322_v32 = vadd.f32 %v3321_v31, %v3320_v30  ;;  %v3361_v33 = vpop.f32.mrb[57].mxu1  ;;  %v3323_v34 = vpop.f32.mrb[58].mxu0 }
 0x16d   : > { %v3362_v35 = vadd.f32 %v3361_v33, %v3360_v11  ;;  %v3363_v20 = vpop.f32.mrb[58].mxu1  ;;  %v3324_v37 = vpop.f32.mrb[59].mxu0 }
 0x16e   : > { %v2443_v40 = vadd.f32 %v3322_v32, %v2378_v22  ;;  %v3325_v23 = vadd.f32 %v3324_v37, %v3323_v34  ;;  %v3364_v42 = vpop.f32.mrb[59].mxu1 }
 0x16f   : > { %v3365_v25 = vadd.f32 %v3364_v42, %v3363_v20 }
 0x170   : > { %v2508_v6 = vadd.f32 %v3362_v35, %v2443_v40  ;;  %v2446_v44 = vadd.f32 %v3325_v23, %v4412_v43 }
 0x172   : > { %v2511_v45 = vadd.f32 %v3365_v25, %v2446_v44  ;;  %v3326_v46 = vpop.f32.mrb[60].mxu0 }
 0x173   : > { %v3366_v27 = vpop.f32.mrb[60].mxu1  ;;  %v3327_v47 = vpop.f32.mrb[61].mxu0 }
 0x174   : > { %v3367_v48 = vpop.f32.mrb[61].mxu1  ;;  %v3328_v49 = vadd.f32 %v3327_v47, %v3326_v46  ;;  %v3329_v51 = vpop.f32.mrb[62].mxu0 }
 0x175   : > { %v3368_v50 = vadd.f32 %v3367_v48, %v3366_v27  ;;  %v3369_v53 = vpop.f32.mrb[62].mxu1  ;;  %v3330_v36 = vpop.f32.mrb[63].mxu0 }
 0x176   : > { %v3370_v39 = vpop.f32.mrb[63].mxu1  ;;  %v2451_v57 = vadd.f32 %v3328_v49, %v2386_v38  ;;  %v3331_v59 = vadd.f32 %v3330_v36, %v3329_v51 }
 0x177   : > { %v3371_v22 = vadd.f32 %v3370_v39, %v3369_v53 }
 0x178   : > { %v2516_v41 = vadd.f32 %v3368_v50, %v2451_v57  ;;  %v2454_v61 = vadd.f32 %v3331_v59, %v4415_v60 }
 0x17a   : > { %v2519_v62 = vadd.f32 %v3371_v22, %v2454_v61  ;;  %v3388_v63 = vpop.f32.mrb[64].mxu0 }
 0x17b   : > { %v3389_v43 = vpop.f32.mrb[65].mxu0  ;;  %v3428_v0 = vpop.f32.mrb[64].mxu1 }
 0x17c   : > { %v3390_v1 = vadd.f32 %v3389_v43, %v3388_v63  ;;  %v3391_v2 = vpop.f32.mrb[66].mxu0  ;;  %v3429_v3 = vpop.f32.mrb[65].mxu1 }
 0x17d   : > { %v3392_v7 = vpop.f32.mrb[67].mxu0  ;;  %v3430_v8 = vadd.f32 %v3429_v3, %v3428_v0  ;;  %v3431_v55 = vpop.f32.mrb[66].mxu1 }
 0x17e   : > { %v2557_v52 = vadd.f32 %v3390_v1, %v2492_v54  ;;  %v3393_v10 = vadd.f32 %v3392_v7, %v3391_v2  ;;  %v3432_v12 = vpop.f32.mrb[67].mxu1 }
 0x17f   : > { %v3433_v38 = vadd.f32 %v3432_v12, %v3431_v55 }
 0x180   : > { %v2560_v58 = vadd.f32 %v3393_v10, %v2495_v13  ;;  %v2622_v14 = vadd.f32 %v3430_v8, %v2557_v52 }
 0x182   : > { %v3394_v15 = vpop.f32.mrb[68].mxu0  ;;  %v4421_v16 = vadd.f32 %v3433_v38, %v2560_v58 }
 0x183   : > { %v3395_v60 = vpop.f32.mrb[69].mxu0  ;;  %v3434_v17 = vpop.f32.mrb[68].mxu1 }
 0x184   : > { %v3396_v18 = vadd.f32 %v3395_v60, %v3394_v15  ;;  %v3397_v4 = vpop.f32.mrb[70].mxu0  ;;  %v3435_v19 = vpop.f32.mrb[69].mxu1 }
 0x185   : > { %v3398_v21 = vpop.f32.mrb[71].mxu0  ;;  %v3436_v24 = vadd.f32 %v3435_v19, %v3434_v17  ;;  %v3437_v26 = vpop.f32.mrb[70].mxu1 }
 0x186   : > { %v2565_v5 = vadd.f32 %v3396_v18, %v2500_v9  ;;  %v3399_v54 = vadd.f32 %v3398_v21, %v3397_v4  ;;  %v3438_v56 = vpop.f32.mrb[71].mxu1 }
 0x187   : > { %v3439_v30 = vadd.f32 %v3438_v56, %v3437_v26 }
 0x188   : > { %v2568_v28 = vadd.f32 %v3399_v54, %v2503_v29  ;;  %v2630_v11 = vadd.f32 %v3436_v24, %v2565_v5 }
 0x18a   : > { %v3400_v13 = vpop.f32.mrb[72].mxu0  ;;  %v2633_v31 = vadd.f32 %v3439_v30, %v2568_v28 }
 0x18b   : > { %v3401_v32 = vpop.f32.mrb[73].mxu0  ;;  %v3440_v33 = vpop.f32.mrb[72].mxu1 }
 0x18c   : > { %v3402_v34 = vadd.f32 %v3401_v32, %v3400_v13  ;;  %v3403_v35 = vpop.f32.mrb[74].mxu0  ;;  %v3441_v20 = vpop.f32.mrb[73].mxu1 }
 0x18d   : > { %v3404_v37 = vpop.f32.mrb[75].mxu0  ;;  %v3442_v23 = vadd.f32 %v3441_v20, %v3440_v33  ;;  %v3443_v42 = vpop.f32.mrb[74].mxu1 }
 0x18e   : > { %v2573_v40 = vadd.f32 %v3402_v34, %v2508_v6  ;;  %v3405_v25 = vadd.f32 %v3404_v37, %v3403_v35  ;;  %v3444_v9 = vpop.f32.mrb[75].mxu1 }
 0x18f   : > { %v3445_v46 = vadd.f32 %v3444_v9, %v3443_v42 }
 0x190   : > { %v2576_v44 = vadd.f32 %v3405_v25, %v2511_v45  ;;  %v2638_v27 = vadd.f32 %v3442_v23, %v2573_v40 }
 0x192   : > { %v3406_v47 = vpop.f32.mrb[76].mxu0  ;;  %v2641_v29 = vadd.f32 %v3445_v46, %v2576_v44 }
 0x193   : > { %v3407_v48 = vpop.f32.mrb[77].mxu0  ;;  %v3446_v49 = vpop.f32.mrb[76].mxu1 }
 0x194   : > { %v3408_v50 = vadd.f32 %v3407_v48, %v3406_v47  ;;  %v3409_v51 = vpop.f32.mrb[78].mxu0  ;;  %v3447_v53 = vpop.f32.mrb[77].mxu1 }
 0x195   : > { %v3410_v36 = vpop.f32.mrb[79].mxu0  ;;  %v3448_v57 = vadd.f32 %v3447_v53, %v3446_v49  ;;  %v3449_v59 = vpop.f32.mrb[78].mxu1 }
 0x196   : > { %v2581_v39 = vadd.f32 %v3408_v50, %v2516_v41  ;;  %v3411_v6 = vadd.f32 %v3410_v36, %v3409_v51  ;;  %v3450_v22 = vpop.f32.mrb[79].mxu1 }
 0x197   : > { %v3451_v63 = vadd.f32 %v3450_v22, %v3449_v59 }
 0x198   : > { %v2584_v61 = vadd.f32 %v3411_v6, %v2519_v62  ;;  %v2646_v43 = vadd.f32 %v3448_v57, %v2581_v39 }
 0x19a   : > { %v3464_v45 = vpop.f32.mrb[80].mxu0  ;;  %v2649_v0 = vadd.f32 %v3451_v63, %v2584_v61 }
 0x19b   : > { %v2695_v1 = vadd.f32 %v3464_v45, %v2630_v11  ;;  %v2686_v2 = vpop.f32.mrb[81].mxu0  ;;  %v3468_v3 = vpop.f32.mrb[80].mxu1 }
 0x19c   : > { %v2687_v7 = vadd.f32 %v2686_v2, %v2622_v14  ;;  %v3465_v41 = vpop.f32.mrb[82].mxu0  ;;  %v2711_v8 = vadd.f32 %v3468_v3, %v2646_v43  ;;  %v2702_v55 = vpop.f32.mrb[81].mxu1 }
 0x19d   : > { %v2719_v52 = vmax.f32 %v2695_v1, 0.0  ;;  %v2698_v10 = vadd.f32 %v3465_v41, %v2633_v31  ;;  %v2689_v62 = vpop.f32.mrb[83].mxu0  ;;  %v2703_v58 = vadd.f32 %v2702_v55, %v2638_v27  ;;  %v3469_v38 = vpop.f32.mrb[82].mxu1 }
 0x19e   : > { %v2717_v12 = vmax.f32 %v2687_v7, 0.0  ;;  %v2690_v15 = vadd.f32 %v2689_v62, %v4421_v16  ;;  %v2723_v60 = vmax.f32 %v2711_v8, 0.0  ;;  %v2714_v18 = vadd.f32 %v3469_v38, %v2649_v0  ;;  %v2705_v4 = vpop.f32.mrb[83].mxu1 }
 0x19f   : > { %2728 = vst.msk [vmem:[%s175_s5 + $0x10] sm:$0xff] %vm2725_vm1, %v2719_v52  ;;  %v2720_v17 = vmax.f32 %v2698_v10, 0.0  ;;  %v2721_v14 = vmax.f32 %v2703_v58, 0.0  ;;  %v2706_v21 = vadd.f32 %v2705_v4, %v2641_v29 }
 0x1a0   : > { %2726 = vst.msk [vmem:[%s175_s5] sm:$0xff] %vm2725_vm1, %v2717_v12  ;;  %v2718_v19 = vmax.f32 %v2690_v15, 0.0  ;;  %2732 = vst.msk [vmem:[%s175_s5 + $0x30] sm:$0xff] %vm2725_vm1, %v2723_v60  ;;  %v2724_v5 = vmax.f32 %v2714_v18, 0.0 }
 0x1a1   : > { %2729 = vst.msk [vmem:[%s175_s5 + $0x18] sm:$0xff] %vm2725_vm1, %v2720_v17  ;;  %2730 = vst.msk [vmem:[%s175_s5 + $0x20] sm:$0xff] %vm2725_vm1, %v2721_v14  ;;  %v2722_v16 = vmax.f32 %v2706_v21, 0.0 }
 0x1a2   : > { %2727 = vst.msk [vmem:[%s175_s5 + $0x8] sm:$0xff] %vm2725_vm1, %v2718_v19  ;;  %2733 = vst.msk [vmem:[%s175_s5 + $0x38] sm:$0xff] %vm2725_vm1, %v2724_v5 }
 0x1a3   : > { %2731 = vst.msk [vmem:[%s175_s5 + $0x28] sm:$0xff] %vm2725_vm1, %v2722_v16 }
 0x1a4 PF: > { %s13_s12 = sadd.s32 1, %s3775_s12  }
 0x1a5   : > { %p10_p4 = scmp.ge.s32.totalorder %s13_s12, 4  }
 0x1a7   :  { %12 = sbr.rel (!%p10_p4) target bundleno = 1 (0x1), region = 62 }

// kernel: inception_d_forward.8
= control target key start
LH: loop header
LB: loop body
LE: loop exit
PB: predicated region body
PF: predicated region fallthrough
CT: control target
= control target key end

     0   :  { %s4804_s12 = smov 0   ;;  %s5950_s0 = inlined_call_operand.vmem [shape: bf16[128,2592], index: 0, kind: input, shape index: {}]   ;;  %s5951_s1 = inlined_call_operand.vmem [shape: bf16[2592,160], index: 1, kind: input, shape index: {}]   ;;  %s5952_s2 = inlined_call_operand.vmem [shape: f32[1,160], index: 2, kind: input, shape index: {}]   ;;  %s5953_s3 = inlined_call_operand.vmem [shape: f32[128,160], index: 3, kind: output, shape index: {}]  }
   0x1 LB: > { %s3550_s13 = sadd.s32 4294967295, %s4781_s12   ;;  %p3554_p0 = scmp.ge.s32.totalorder %s4781_s12, 1  ;;  %s4781_s12 = sphi %s4804_s12, %s13_s12  }
   0x2   : > { %p139_p1 = scmp.lt.s32.totalorder %s4781_s12, 3 }
   0x4   : > { %p140_p2 = pnand %p3554_p0, %p139_p1 }
   0x5   : > { %v4165_v0 = vld [vmem:[%s5951_s1 + $0x4] ss:$8 sps:$4 sm:$0xff] (!%p140_p2)   ;;  %v4169_v2 = vld [vmem:[%s5951_s1] ss:$8 sps:$4 sm:$0xff] (!%p140_p2)   ;;  %v4171_v4 = vld [vmem:[%s5951_s1 + $0x14] ss:$8 sps:$4 sm:$0xff] (!%p140_p2)  }
   0x6   : > { %143 = sbr.rel (%p140_p2) target bundleno = 587 (0x24b), region = 32  ;;  %v4167_v1 = vld [vmem:[%s5951_s1 + $0x504] ss:$8 sps:$4 sm:$0xff] (!%p140_p2)   ;;  %2657 = vmatprep.subr.bf16.mxu1 (!%p140_p2), %v4165_v0  ;;  %v4170_v3 = vld [vmem:[%s5951_s1 + $0x500] ss:$8 sps:$4 sm:$0xff] (!%p140_p2)   ;;  %s3555_s24 = sshll.u32 (!%p140_p2), %s3550_s13, 3 }
   0x7   : > { %3022 = vmatprep.subr.bf16.mxu0 (!%p140_p2), %v4167_v1  ;;  %2658 = vmatpush1.bf16.msra.mxu1 (!%p140_p2), %v4169_v2  ;;  %v4173_v5 = vld [vmem:[%s5951_s1 + $0x514] ss:$8 sps:$4 sm:$0xff] (!%p140_p2)   ;;  %v4175_v6 = vld [vmem:[%s5951_s1 + $0x10] ss:$8 sps:$4 sm:$0xff] (!%p140_p2)   ;;  %v4177_v8 = vld [vmem:[%s5951_s1 + $0x24] ss:$8 sps:$4 sm:$0xff] (!%p140_p2)  }
   0x8   : > { %3023 = vmatpush1.bf16.msra.mxu0 (!%p140_p2), %v4170_v3  ;;  %2659 = vmatprep.subr.bf16.mxu1 (!%p140_p2), %v4171_v4  ;;  %v4176_v7 = vld [vmem:[%s5951_s1 + $0x510] ss:$8 sps:$4 sm:$0xff] (!%p140_p2)   ;;  %v4179_v9 = vld [vmem:[%s5951_s1 + $0x524] ss:$8 sps:$4 sm:$0xff] (!%p140_p2)   ;;  %v4181_v10 = vld [vmem:[%s5951_s1 + $0x20] ss:$8 sps:$4 sm:$0xff] (!%p140_p2)  }
   0x9   : > { %3024 = vmatprep.subr.bf16.mxu0 (!%p140_p2), %v4173_v5  ;;  %v4182_v11 = vld [vmem:[%s5951_s1 + $0x520] ss:$8 sps:$4 sm:$0xff] (!%p140_p2)   ;;  %v4183_v12 = vld [vmem:[%s5951_s1 + $0x34] ss:$8 sps:$4 sm:$0xff] (!%p140_p2)   ;;  %v4187_v14 = vld [vmem:[%s5951_s1 + $0x30] ss:$8 sps:$4 sm:$0xff] (!%p140_p2)  }
   0xa   : > { %v4185_v13 = vld [vmem:[%s5951_s1 + $0x534] ss:$8 sps:$4 sm:$0xff] (!%p140_p2)   ;;  %v4188_v15 = vld [vmem:[%s5951_s1 + $0x530] ss:$8 sps:$4 sm:$0xff] (!%p140_p2)   ;;  %v4189_v16 = vld [vmem:[%s5951_s1 + $0x44] ss:$8 sps:$4 sm:$0xff] (!%p140_p2)  }
   0xb   : > { %2660 = vmatpush1.bf16.msra.mxu1 (!%p140_p2), %v4175_v6  ;;  %v4191_v17 = vld [vmem:[%s5951_s1 + $0x544] ss:$8 sps:$4 sm:$0xff] (!%p140_p2)   ;;  %v4193_v18 = vld [vmem:[%s5951_s1 + $0x40] ss:$8 sps:$4 sm:$0xff] (!%p140_p2)   ;;  %v4195_v20 = vld [vmem:[%s5951_s1 + $0x54] ss:$8 sps:$4 sm:$0xff] (!%p140_p2)  }
   0xc   : > { %3025 = vmatpush1.bf16.msra.mxu0 (!%p140_p2), %v4176_v7  ;;  %2661 = vmatprep.subr.bf16.mxu1 (!%p140_p2), %v4177_v8  ;;  %v4194_v19 = vld [vmem:[%s5951_s1 + $0x540] ss:$8 sps:$4 sm:$0xff] (!%p140_p2)   ;;  %v4197_v21 = vld [vmem:[%s5951_s1 + $0x554] ss:$8 sps:$4 sm:$0xff] (!%p140_p2)   ;;  %v4199_v22 = vld [vmem:[%s5951_s1 + $0x50] ss:$8 sps:$4 sm:$0xff] (!%p140_p2)  }
   0xd   : > { %3026 = vmatprep.subr.bf16.mxu0 %v4179_v9  ;;  %v4200_v23 = vld [vmem:[%s5951_s1 + $0x550] ss:$8 sps:$4 sm:$0xff]   ;;  %v4201_v24 = vld [vmem:[%s5951_s1 + $0x64] ss:$8 sps:$4 sm:$0xff]   ;;  %v4205_v26 = vld [vmem:[%s5951_s1 + $0x60] ss:$8 sps:$4 sm:$0xff]  }
   0xe   : > { %v4203_v25 = vld [vmem:[%s5951_s1 + $0x564] ss:$8 sps:$4 sm:$0xff]   ;;  %v4206_v27 = vld [vmem:[%s5951_s1 + $0x560] ss:$8 sps:$4 sm:$0xff]   ;;  %v4207_v28 = vld [vmem:[%s5951_s1 + $0x74] ss:$8 sps:$4 sm:$0xff]  }
   0xf   : > { %2662 = vmatpush1.bf16.msra.mxu1 %v4181_v10  ;;  %v4209_v29 = vld [vmem:[%s5951_s1 + $0x574] ss:$8 sps:$4 sm:$0xff]   ;;  %v4211_v30 = vld [vmem:[%s5951_s1 + $0x70] ss:$8 sps:$4 sm:$0xff]   ;;  %v4213_v32 = vld [vmem:[%s5951_s1 + $0x84] ss:$8 sps:$4 sm:$0xff]  }
  0x10   : > { %3027 = vmatpush1.bf16.msra.mxu0 %v4182_v11  ;;  %2663 = vmatprep.subr.bf16.mxu1 %v4183_v12  ;;  %v4212_v31 = vld [vmem:[%s5951_s1 + $0x570] ss:$8 sps:$4 sm:$0xff]   ;;  %p166_p3 = scmp.lt.s32.totalorder %s3555_s24, 15  ;;  %v4215_v33 = vld [vmem:[%s5951_s1 + $0x584] ss:$8 sps:$4 sm:$0xff]   ;;  %vm2644_vm0 = vcmask 261120  }
  0x11   : > { %3028 = vmatprep.subr.bf16.mxu0 %v4185_v13  ;;  %v4217_v34 = vld [vmem:[%s5951_s1 + $0x80] ss:$8 sps:$4 sm:$0xff]   ;;  %v4219_v36 = vld [vmem:[%s5951_s1 + $0x94] ss:$8 sps:$4 sm:$0xff]   ;;  %v4223_v38 = vld [vmem:[%s5951_s1 + $0x90] ss:$8 sps:$4 sm:$0xff]  }
  0x12   : > { %v4218_v35 = vld [vmem:[%s5951_s1 + $0x580] ss:$8 sps:$4 sm:$0xff]   ;;  %s5955_s24 = smov (!%p166_p3, %s3555_s24), 15  ;;  %v4221_v37 = vld [vmem:[%s5951_s1 + $0x594] ss:$8 sps:$4 sm:$0xff]  }
  0x13   : > { %2664 = vmatpush1.bf16.msra.mxu1 %v4187_v14  ;;  %v4224_v39 = vld [vmem:[%s5951_s1 + $0x590] ss:$8 sps:$4 sm:$0xff]   ;;  %v4225_v40 = vld [vmem:[%s5951_s1 + $0xa4] ss:$8 sps:$4 sm:$0xff]   ;;  %s4155_s21 = smul.u32 84, %s5955_s24  ;;  %s3974_s15 = sshll.u32 %s5955_s24, 4 }
  0x14   : > { %3029 = vmatpush1.bf16.msra.mxu0 %v4188_v15  ;;  %2665 = vmatprep.subr.bf16.mxu1 %v4189_v16  ;;  %v4227_v41 = vld [vmem:[%s5951_s1 + $0x5a4] ss:$8 sps:$4 sm:$0xff]   ;;  %v4229_v42 = vld [vmem:[%s5951_s1 + $0xa0] ss:$8 sps:$4 sm:$0xff]   ;;  %v4231_v44 = vld [vmem:[%s5951_s1 + $0xb4] ss:$8 sps:$4 sm:$0xff]   ;;  %s5913_s18 = scalar_lea.vmem %s5953_s3, %s3974_s15 }
  0x15   : > { %3030 = vmatprep.subr.bf16.mxu0 %v4191_v17  ;;  %v4230_v43 = vld [vmem:[%s5951_s1 + $0x5a0] ss:$8 sps:$4 sm:$0xff]   ;;  %s4955_s13 = scalar_lea.vmem %s5950_s0, %s4155_s21  ;;  %v4233_v45 = vld [vmem:[%s5951_s1 + $0x5b4] ss:$8 sps:$4 sm:$0xff]   ;;  %v4235_v46 = vld [vmem:[%s5951_s1 + $0xb0] ss:$8 sps:$4 sm:$0xff]  }
  0x16   : > { %v4236_v47 = vld [vmem:[%s5951_s1 + $0x5b0] ss:$8 sps:$4 sm:$0xff]   ;;  %v4237_v49 = vld [vmem:[%s5951_s1 + $0xc4] ss:$8 sps:$4 sm:$0xff]   ;;  %v4241_v52 = vld [vmem:[%s5951_s1 + $0xc0] ss:$8 sps:$4 sm:$0xff]  }
  0x17   : > { %2666 = vmatpush1.bf16.msra.mxu1 %v4193_v18  ;;  %v4263_v48 = vld [vmem:[%s4955_s13 + $0x4] ss:$84 sps:$4 sm:$0xff]   ;;  %v4269_v51 = vld [vmem:[%s4955_s13 + $0x2c] ss:$84 sps:$4 sm:$0xff]   ;;  %v4243_v54 = vld [vmem:[%s5951_s1 + $0xd4] ss:$8 sps:$4 sm:$0xff]  }
  0x18   : > { %3031 = vmatpush1.bf16.msra.mxu0 %v4194_v19  ;;  %2667 = vmatprep.subr.bf16.mxu1 %v4195_v20  ;;  %v4239_v50 = vld [vmem:[%s5951_s1 + $0x5c4] ss:$8 sps:$4 sm:$0xff]   ;;  %v4242_v53 = vld [vmem:[%s5951_s1 + $0x5c0] ss:$8 sps:$4 sm:$0xff]   ;;  %v4245_v55 = vld [vmem:[%s5951_s1 + $0x5d4] ss:$8 sps:$4 sm:$0xff]  }
  0x19   : > { %3032 = vmatprep.subr.bf16.mxu0 %v4197_v21  ;;  %2689 = vmatprep.mubr.bf16.mxu1 %v4263_v48  ;;  %v4247_v56 = vld [vmem:[%s5951_s1 + $0xd0] ss:$8 sps:$4 sm:$0xff]   ;;  %v4249_v58 = vld [vmem:[%s5951_s1 + $0xe4] ss:$8 sps:$4 sm:$0xff]   ;;  %v4253_v60 = vld [vmem:[%s5951_s1 + $0xe0] ss:$8 sps:$4 sm:$0xff]  }
  0x1a   : > { %3054 = vmatprep.mubr.bf16.mxu0 %v4269_v51  ;;  %v4248_v57 = vld [vmem:[%s5951_s1 + $0x5d0] ss:$8 sps:$4 sm:$0xff]   ;;  %v4251_v59 = vld [vmem:[%s5951_s1 + $0x5e4] ss:$8 sps:$4 sm:$0xff]   ;;  %v4254_v61 = vld [vmem:[%s5951_s1 + $0x5e0] ss:$8 sps:$4 sm:$0xff]  }
  0x1b   : > { %2668 = vmatpush1.bf16.msra.mxu1 %v4199_v22  ;;  %v4255_v62 = vld [vmem:[%s5951_s1 + $0xf4] ss:$8 sps:$4 sm:$0xff]   ;;  %v4259_v0 = vld [vmem:[%s5951_s1 + $0xf0] ss:$8 sps:$4 sm:$0xff]   ;;  %v4266_v2 = vld [vmem:[%s5951_s1 + $0x104] ss:$8 sps:$4 sm:$0xff]  }
  0x1c   : > { %3033 = vmatpush1.bf16.msra.mxu0 %v4200_v23  ;;  %2669 = vmatprep.subr.bf16.mxu1 %v4201_v24  ;;  %v4257_v63 = vld [vmem:[%s5951_s1 + $0x5f4] ss:$8 sps:$4 sm:$0xff]   ;;  %v4260_v1 = vld [vmem:[%s5951_s1 + $0x5f0] ss:$8 sps:$4 sm:$0xff]   ;;  %v4272_v3 = vld [vmem:[%s5951_s1 + $0x604] ss:$8 sps:$4 sm:$0xff]  }
  0x1d   : > { %3034 = vmatprep.subr.bf16.mxu0 %v4203_v25  ;;  %v4261_v4 = vld [vmem:[%s4955_s13] ss:$84 sps:$4 sm:$0xff]   ;;  %v4267_v6 = vld [vmem:[%s4955_s13 + $0x28] ss:$84 sps:$4 sm:$0xff]   ;;  %v4273_v10 = vld [vmem:[%s5951_s1 + $0x110] ss:$8 sps:$4 sm:$0xff]  }
  0x1e   : > { %v4264_v5 = vld [vmem:[%s5951_s1 + $0x100] ss:$8 sps:$4 sm:$0xff]   ;;  %v4275_v8 = vld [vmem:[%s5951_s1 + $0x114] ss:$8 sps:$4 sm:$0xff]   ;;  %v4276_v11 = vld [vmem:[%s5951_s1 + $0x610] ss:$8 sps:$4 sm:$0xff]  }
  0x1f   : > { %2670 = vmatpush1.bf16.msra.mxu1 %v4205_v26  ;;  %v4270_v7 = vld [vmem:[%s5951_s1 + $0x600] ss:$8 sps:$4 sm:$0xff]   ;;  %v4278_v9 = vld [vmem:[%s5951_s1 + $0x614] ss:$8 sps:$4 sm:$0xff]   ;;  %v4281_v12 = vld [vmem:[%s5951_s1 + $0x124] ss:$8 sps:$4 sm:$0xff]  }
  0x20   : > { %3035 = vmatpush1.bf16.msra.mxu0 %v4206_v27  ;;  %2671 = vmatprep.subr.bf16.mxu1 %v4207_v28  ;;  %v4284_v13 = vld [vmem:[%s5951_s1 + $0x624] ss:$8 sps:$4 sm:$0xff]   ;;  %v4279_v14 = vld [vmem:[%s5951_s1 + $0x120] ss:$8 sps:$4 sm:$0xff]   ;;  %v4287_v16 = vld [vmem:[%s5951_s1 + $0x134] ss:$8 sps:$4 sm:$0xff]  }
  0x21   : > { %3036 = vmatprep.subr.bf16.mxu0 %v4209_v29  ;;  %v4282_v15 = vld [vmem:[%s5951_s1 + $0x620] ss:$8 sps:$4 sm:$0xff]   ;;  %v4290_v18 = vld [vmem:[%s5951_s1 + $0x634] ss:$8 sps:$4 sm:$0xff]   ;;  %v4285_v19 = vld [vmem:[%s5951_s1 + $0x130] ss:$8 sps:$4 sm:$0xff]  }
  0x22   : > { %v4327_v17 = vld [vmem:[%s4955_s13 + $0xac] ss:$84 sps:$4 sm:$0xff]   ;;  %v4288_v20 = vld [vmem:[%s5951_s1 + $0x630] ss:$8 sps:$4 sm:$0xff]   ;;  %v4332_v21 = vld [vmem:[%s4955_s13 + $0xd4] ss:$84 sps:$4 sm:$0xff]  }
  0x23   : > { %2672 = vmatpush1.bf16.msra.mxu1 %v4211_v30  ;;  %v4293_v22 = vld [vmem:[%s5951_s1 + $0x144] ss:$8 sps:$4 sm:$0xff]   ;;  %v4337_v24 = vld [vmem:[%s4955_s13 + $0xa8] ss:$84 sps:$4 sm:$0xff]  }
  0x24   : > { %3037 = vmatpush1.bf16.msra.mxu0 %v4212_v31  ;;  %2673 = vmatprep.subr.bf16.mxu1 %v4213_v32  ;;  %v4296_v23 = vld [vmem:[%s5951_s1 + $0x644] ss:$8 sps:$4 sm:$0xff]   ;;  %v4291_v26 = vld [vmem:[%s5951_s1 + $0x140] ss:$8 sps:$4 sm:$0xff]   ;;  %v4299_v28 = vld [vmem:[%s5951_s1 + $0x154] ss:$8 sps:$4 sm:$0xff]  }
  0x25   : > { %3038 = vmatprep.subr.bf16.mxu0 %v4215_v33  ;;  %v4338_v25 = vld [vmem:[%s4955_s13 + $0xd0] ss:$84 sps:$4 sm:$0xff]   ;;  %v4294_v27 = vld [vmem:[%s5951_s1 + $0x640] ss:$8 sps:$4 sm:$0xff]   ;;  %v4302_v30 = vld [vmem:[%s5951_s1 + $0x654] ss:$8 sps:$4 sm:$0xff]  }
  0x26   : > { %v4345_v29 = vld [vmem:[%s4955_s13 + $0x154] ss:$84 sps:$4 sm:$0xff]   ;;  %v4297_v31 = vld [vmem:[%s5951_s1 + $0x150] ss:$8 sps:$4 sm:$0xff]  }
  0x27   : > { %2674 = vmatpush1.bf16.msra.mxu1 %v4217_v34  ;;  %v4300_v32 = vld [vmem:[%s5951_s1 + $0x650] ss:$8 sps:$4 sm:$0xff]   ;;  %v4305_v34 = vld [vmem:[%s5951_s1 + $0x164] ss:$8 sps:$4 sm:$0xff]   ;;  %v4318_v51 = vld [vmem:[%s5951_s1 + $0x680] ss:$8 sps:$4 sm:$0xff]  }
  0x28   : > { %3039 = vmatpush1.bf16.msra.mxu0 %v4218_v35  ;;  %2675 = vmatprep.subr.bf16.mxu1 %v4219_v36  ;;  %v4350_v33 = vld [vmem:[%s4955_s13 + $0x17c] ss:$84 sps:$4 sm:$0xff]   ;;  %v4308_v35 = vld [vmem:[%s5951_s1 + $0x664] ss:$8 sps:$4 sm:$0xff]  }
  0x29   : > { %3040 = vmatprep.subr.bf16.mxu0 %v4221_v37  ;;  %v4355_v36 = vld [vmem:[%s4955_s13 + $0x150] ss:$84 sps:$4 sm:$0xff]   ;;  %v4356_v37 = vld [vmem:[%s4955_s13 + $0x178] ss:$84 sps:$4 sm:$0xff]  }
  0x2a   : > { %v4373_v48 = vld [vmem:[%s4955_s13 + $0x1f8] ss:$84 sps:$4 sm:$0xff]  }
  0x2b   : > { %2676 = vmatpush1.bf16.msra.mxu1 %v4223_v38  ;;  %v4303_v38 = vld [vmem:[%s5951_s1 + $0x160] ss:$8 sps:$4 sm:$0xff]  }
  0x2c   : > { %3041 = vmatpush1.bf16.msra.mxu0 %v4224_v39  ;;  %2677 = vmatprep.subr.bf16.mxu1 %v4225_v40  ;;  %v4306_v39 = vld [vmem:[%s5951_s1 + $0x660] ss:$8 sps:$4 sm:$0xff]   ;;  %v4311_v40 = vld [vmem:[%s5951_s1 + $0x174] ss:$8 sps:$4 sm:$0xff]  }
  0x2d   : > { %3042 = vmatprep.subr.bf16.mxu0 %v4227_v41  ;;  %v4363_v41 = vld [vmem:[%s4955_s13 + $0x1fc] ss:$84 sps:$4 sm:$0xff]  }
  0x2f   : > { %2678 = vmatpush1.bf16.msra.mxu1 %v4229_v42  ;;  %v4314_v42 = vld [vmem:[%s5951_s1 + $0x674] ss:$8 sps:$4 sm:$0xff]  }
  0x30   : > { %3043 = vmatpush1.bf16.msra.mxu0 %v4230_v43  ;;  %2679 = vmatprep.subr.bf16.mxu1 %v4231_v44  ;;  %v4309_v43 = vld [vmem:[%s5951_s1 + $0x170] ss:$8 sps:$4 sm:$0xff]  }
  0x31   : > { %3044 = vmatprep.subr.bf16.mxu0 %v4233_v45  ;;  %v4312_v44 = vld [vmem:[%s5951_s1 + $0x670] ss:$8 sps:$4 sm:$0xff]  }
  0x32   : > { %v4368_v45 = vld [vmem:[%s4955_s13 + $0x224] ss:$84 sps:$4 sm:$0xff]  }
  0x33   : > { %2680 = vmatpush1.bf16.msra.mxu1 %v4235_v46  ;;  %v4317_v46 = vld [vmem:[%s5951_s1 + $0x184] ss:$8 sps:$4 sm:$0xff]  }
  0x34   : > { %3045 = vmatpush1.bf16.msra.mxu0 %v4236_v47  ;;  %2681 = vmatprep.subr.bf16.mxu1 %v4237_v49  ;;  %v4320_v47 = vld [vmem:[%s5951_s1 + $0x684] ss:$8 sps:$4 sm:$0xff]   ;;  %v4374_v49 = vld [vmem:[%s4955_s13 + $0x220] ss:$84 sps:$4 sm:$0xff]  }
  0x35   : > { %3046 = vmatprep.subr.bf16.mxu0 %v4239_v50  ;;  %v4315_v50 = vld [vmem:[%s5951_s1 + $0x180] ss:$8 sps:$4 sm:$0xff]  }
  0x37   : > { %2682 = vmatpush1.bf16.msra.mxu1 %v4241_v52  ;;  %v4323_v52 = vld [vmem:[%s5951_s1 + $0x194] ss:$8 sps:$4 sm:$0xff]  }
  0x38   : > { %3047 = vmatpush1.bf16.msra.mxu0 %v4242_v53  ;;  %2683 = vmatprep.subr.bf16.mxu1 %v4243_v54  ;;  %v4326_v53 = vld [vmem:[%s5951_s1 + $0x694] ss:$8 sps:$4 sm:$0xff]   ;;  %v4383_v54 = vld [vmem:[%s4955_s13 + $0xc] ss:$84 sps:$4 sm:$0xff]  }
  0x39   : > { %3048 = vmatprep.subr.bf16.mxu0 %v4245_v55  ;;  %v4321_v55 = vld [vmem:[%s5951_s1 + $0x190] ss:$8 sps:$4 sm:$0xff]  }
  0x3b   : > { %2684 = vmatpush1.bf16.msra.mxu1 %v4247_v56  ;;  %v4324_v56 = vld [vmem:[%s5951_s1 + $0x690] ss:$8 sps:$4 sm:$0xff]  }
  0x3c   : > { %3049 = vmatpush1.bf16.msra.mxu0 %v4248_v57  ;;  %2685 = vmatprep.subr.bf16.mxu1 %v4249_v58  ;;  %v4389_v57 = vld [vmem:[%s4955_s13 + $0x34] ss:$84 sps:$4 sm:$0xff]   ;;  %v4331_v58 = vld [vmem:[%s5951_s1 + $0x1a4] ss:$8 sps:$4 sm:$0xff]  }
  0x3d   : > { %3050 = vmatprep.subr.bf16.mxu0 %v4251_v59  ;;  %v4336_v59 = vld [vmem:[%s5951_s1 + $0x6a4] ss:$8 sps:$4 sm:$0xff]  }
  0x3f   : > { %2686 = vmatpush1.bf16.msra.mxu1 %v4253_v60  ;;  %v4329_v60 = vld [vmem:[%s5951_s1 + $0x1a0] ss:$8 sps:$4 sm:$0xff]  }
  0x40   : > { %3051 = vmatpush1.bf16.msra.mxu0 %v4254_v61  ;;  %2687 = vmatprep.subr.bf16.mxu1 %v4255_v62  ;;  %v4334_v61 = vld [vmem:[%s5951_s1 + $0x6a0] ss:$8 sps:$4 sm:$0xff]   ;;  %v4341_v62 = vld [vmem:[%s5951_s1 + $0x1b4] ss:$8 sps:$4 sm:$0xff]  }
  0x41   : > { %3052 = vmatprep.subr.bf16.mxu0 %v4257_v63  ;;  %v4344_v63 = vld [vmem:[%s5951_s1 + $0x6b4] ss:$8 sps:$4 sm:$0xff]  }
  0x43   : > { %2688 = vmatpush1.bf16.msra.mxu1 %v4259_v0  ;;  %v4339_v0 = vld [vmem:[%s5951_s1 + $0x1b0] ss:$8 sps:$4 sm:$0xff]  }
  0x44   : > { %3053 = vmatpush1.bf16.msra.mxu0 %v4260_v1  ;;  %2730 = vmatprep.subr.bf16.mxu1 %v4266_v2  ;;  %v4342_v1 = vld [vmem:[%s5951_s1 + $0x6b0] ss:$8 sps:$4 sm:$0xff]   ;;  %v4349_v2 = vld [vmem:[%s5951_s1 + $0x1c4] ss:$8 sps:$4 sm:$0xff]  }
  0x45   : > { %3095 = vmatprep.subr.bf16.mxu0 %v4272_v3  ;;  %v4354_v3 = vld [vmem:[%s5951_s1 + $0x6c4] ss:$8 sps:$4 sm:$0xff]  }
  0x46   : > { %2690 = vmatmul.mubr.bf16.vlgmr.msra.gmra.mrb[0].mxu1 %v4261_v4  ;;  %v4347_v4 = vld [vmem:[%s5951_s1 + $0x1c0] ss:$8 sps:$4 sm:$0xff]  }
  0x47   : > { %3055 = vmatmul.mubr.bf16.vlgmr.msra.gmra.mrb[0].mxu0 %v4267_v6  ;;  %2731 = vmatpush1.bf16.msra.mxu1 %v4264_v5  ;;  %v4352_v5 = vld [vmem:[%s5951_s1 + $0x6c0] ss:$8 sps:$4 sm:$0xff]   ;;  %v4359_v6 = vld [vmem:[%s5951_s1 + $0x1d4] ss:$8 sps:$4 sm:$0xff]  }
  0x48   : > { %3096 = vmatpush1.bf16.msra.mxu0 %v4270_v7  ;;  %2732 = vmatprep.subr.bf16.mxu1 %v4275_v8  ;;  %v4362_v7 = vld [vmem:[%s5951_s1 + $0x6d4] ss:$8 sps:$4 sm:$0xff]   ;;  %v4357_v8 = vld [vmem:[%s5951_s1 + $0x1d0] ss:$8 sps:$4 sm:$0xff]  }
  0x49   : > { %3097 = vmatprep.subr.bf16.mxu0 %v4278_v9  ;;  %2699 = vmatprep.mubr.bf16.mxu1 %v4327_v17  ;;  %v4360_v9 = vld [vmem:[%s5951_s1 + $0x6d0] ss:$8 sps:$4 sm:$0xff]  }
  0x4a   : > { %3064 = vmatprep.mubr.bf16.mxu0 %v4332_v21  ;;  %v4378_v17 = vld [vmem:[%s5951_s1 + $0x6f0] ss:$8 sps:$4 sm:$0xff]   ;;  %v4384_v21 = vld [vmem:[%s5951_s1 + $0x200] ss:$8 sps:$4 sm:$0xff]  }
  0x4b   : > { %2733 = vmatpush1.bf16.msra.mxu1 %v4273_v10  ;;  %v4367_v10 = vld [vmem:[%s5951_s1 + $0x1e4] ss:$8 sps:$4 sm:$0xff]  }
  0x4c   : > { %3098 = vmatpush1.bf16.msra.mxu0 %v4276_v11  ;;  %2734 = vmatprep.subr.bf16.mxu1 %v4281_v12  ;;  %v4372_v11 = vld [vmem:[%s5951_s1 + $0x6e4] ss:$8 sps:$4 sm:$0xff]   ;;  %v4365_v12 = vld [vmem:[%s5951_s1 + $0x1e0] ss:$8 sps:$4 sm:$0xff]  }
  0x4d   : > { %3099 = vmatprep.subr.bf16.mxu0 %v4284_v13  ;;  %v4370_v13 = vld [vmem:[%s5951_s1 + $0x6e0] ss:$8 sps:$4 sm:$0xff]  }
  0x4e   : > { %2700 = vmatmul.mubr.bf16.gmra.mrb[4].mxu1 %v4337_v24  ;;  %v4395_v24 = vld [vmem:[%s5951_s1 + $0x214] ss:$8 sps:$4 sm:$0xff]  }
  0x4f   : > { %2735 = vmatpush1.bf16.msra.mxu1 %v4279_v14  ;;  %3065 = vmatmul.mubr.bf16.gmra.mrb[4].mxu0 %v4338_v25  ;;  %v4377_v14 = vld [vmem:[%s5951_s1 + $0x1f4] ss:$8 sps:$4 sm:$0xff]  }
  0x50   : > { %3100 = vmatpush1.bf16.msra.mxu0 %v4282_v15  ;;  %2736 = vmatprep.subr.bf16.mxu1 %v4287_v16  ;;  %v4380_v15 = vld [vmem:[%s5951_s1 + $0x6f4] ss:$8 sps:$4 sm:$0xff]   ;;  %v4375_v16 = vld [vmem:[%s5951_s1 + $0x1f0] ss:$8 sps:$4 sm:$0xff]  }
  0x51   : > { %3101 = vmatprep.subr.bf16.mxu0 %v4290_v18  ;;  %2709 = vmatprep.mubr.bf16.mxu1 %v4345_v29  ;;  %v4386_v18 = vld [vmem:[%s5951_s1 + $0x204] ss:$8 sps:$4 sm:$0xff]   ;;  %v4398_v25 = vld [vmem:[%s5951_s1 + $0x714] ss:$8 sps:$4 sm:$0xff]   ;;  %v4396_v29 = vld [vmem:[%s5951_s1 + $0x710] ss:$8 sps:$4 sm:$0xff]  }
  0x52   : > { %3074 = vmatprep.mubr.bf16.mxu0 %v4350_v33  ;;  %v4457_v33 = vld [vmem:[%s4955_s13 + $0xb0] ss:$84 sps:$4 sm:$0xff]  }
  0x53   : > { %2737 = vmatpush1.bf16.msra.mxu1 %v4285_v19  ;;  %v4392_v19 = vld [vmem:[%s5951_s1 + $0x704] ss:$8 sps:$4 sm:$0xff]  }
  0x54   : > { %3102 = vmatpush1.bf16.msra.mxu0 %v4288_v20  ;;  %2738 = vmatprep.subr.bf16.mxu1 %v4293_v22  ;;  %v4381_v20 = vld [vmem:[%s4955_s13 + $0x8] ss:$84 sps:$4 sm:$0xff]   ;;  %v4387_v22 = vld [vmem:[%s4955_s13 + $0x30] ss:$84 sps:$4 sm:$0xff]  }
  0x55   : > { %3103 = vmatprep.subr.bf16.mxu0 %v4296_v23  ;;  %v4390_v23 = vld [vmem:[%s5951_s1 + $0x700] ss:$8 sps:$4 sm:$0xff]  }
  0x56   : > { %2710 = vmatmul.mubr.bf16.gmra.mrb[8].mxu1 %v4355_v36  ;;  %v4407_v36 = vld [vmem:[%s5951_s1 + $0x234] ss:$8 sps:$4 sm:$0xff]  }
  0x57   : > { %2739 = vmatpush1.bf16.msra.mxu1 %v4291_v26  ;;  %3075 = vmatmul.mubr.bf16.gmra.mrb[8].mxu0 %v4356_v37  ;;  %v4447_v26 = vld [vmem:[%s4955_s13 + $0xb4] ss:$84 sps:$4 sm:$0xff]  }
  0x58   : > { %3104 = vmatpush1.bf16.msra.mxu0 %v4294_v27  ;;  %2740 = vmatprep.subr.bf16.mxu1 %v4299_v28  ;;  %v4452_v27 = vld [vmem:[%s4955_s13 + $0xdc] ss:$84 sps:$4 sm:$0xff]  }
  0x59   : > { %3105 = vmatprep.subr.bf16.mxu0 %v4302_v30  ;;  %2719 = vmatprep.mubr.bf16.mxu1 %v4363_v41  ;;  %v4393_v28 = vld [vmem:[%s5951_s1 + $0x210] ss:$8 sps:$4 sm:$0xff]   ;;  %v4401_v30 = vld [vmem:[%s5951_s1 + $0x224] ss:$8 sps:$4 sm:$0xff]   ;;  %v4410_v37 = vld [vmem:[%s5951_s1 + $0x734] ss:$8 sps:$4 sm:$0xff]  }
  0x5a   : > { %3084 = vmatprep.mubr.bf16.mxu0 %v4368_v45  ;;  %v4408_v41 = vld [vmem:[%s5951_s1 + $0x730] ss:$8 sps:$4 sm:$0xff]  }
  0x5b   : > { %2741 = vmatpush1.bf16.msra.mxu1 %v4297_v31  ;;  %v4404_v31 = vld [vmem:[%s5951_s1 + $0x724] ss:$8 sps:$4 sm:$0xff]  }
  0x5c   : > { %3106 = vmatpush1.bf16.msra.mxu0 %v4300_v32  ;;  %2742 = vmatprep.subr.bf16.mxu1 %v4305_v34  ;;  %v4399_v32 = vld [vmem:[%s5951_s1 + $0x220] ss:$8 sps:$4 sm:$0xff]   ;;  %v4458_v34 = vld [vmem:[%s4955_s13 + $0xd8] ss:$84 sps:$4 sm:$0xff]  }
  0x5d   : > { %3107 = vmatprep.subr.bf16.mxu0 %v4308_v35  ;;  %v4402_v35 = vld [vmem:[%s5951_s1 + $0x720] ss:$8 sps:$4 sm:$0xff]   ;;  %v4475_v45 = vld [vmem:[%s4955_s13 + $0x158] ss:$84 sps:$4 sm:$0xff]  }
  0x5e   : > { %2720 = vmatmul.mubr.bf16.gmra.mrb[12].mxu1 %v4373_v48  ;;  %v4419_v48 = vld [vmem:[%s5951_s1 + $0x254] ss:$8 sps:$4 sm:$0xff]  }
  0x5f   : > { %2743 = vmatpush1.bf16.msra.mxu1 %v4303_v38  ;;  %3085 = vmatmul.mubr.bf16.gmra.mrb[12].mxu0 %v4374_v49  ;;  %v4465_v38 = vld [vmem:[%s4955_s13 + $0x15c] ss:$84 sps:$4 sm:$0xff]  }
  0x60   : > { %3108 = vmatpush1.bf16.msra.mxu0 %v4306_v39  ;;  %2744 = vmatprep.subr.bf16.mxu1 %v4311_v40  ;;  %v4470_v39 = vld [vmem:[%s4955_s13 + $0x184] ss:$84 sps:$4 sm:$0xff]   ;;  %v4422_v49 = vld [vmem:[%s5951_s1 + $0x754] ss:$8 sps:$4 sm:$0xff]  }
  0x61   : > { %3109 = vmatprep.subr.bf16.mxu0 %v4314_v42  ;;  %2762 = vmatprep.mubr.bf16.mxu1 %v4383_v54  ;;  %v4405_v40 = vld [vmem:[%s5951_s1 + $0x230] ss:$8 sps:$4 sm:$0xff]   ;;  %v4413_v42 = vld [vmem:[%s5951_s1 + $0x244] ss:$8 sps:$4 sm:$0xff]  }
  0x62   : > { %3127 = vmatprep.mubr.bf16.mxu0 %v4389_v57  ;;  %v4425_v54 = vld [vmem:[%s5951_s1 + $0x264] ss:$8 sps:$4 sm:$0xff]   ;;  %v4426_v57 = vld [vmem:[%s5951_s1 + $0x760] ss:$8 sps:$4 sm:$0xff]  }
  0x63   : > { %2745 = vmatpush1.bf16.msra.mxu1 %v4309_v43  ;;  %v4416_v43 = vld [vmem:[%s5951_s1 + $0x744] ss:$8 sps:$4 sm:$0xff]  }
  0x64   : > { %3110 = vmatpush1.bf16.msra.mxu0 %v4312_v44  ;;  %2746 = vmatprep.subr.bf16.mxu1 %v4317_v46  ;;  %v4411_v44 = vld [vmem:[%s5951_s1 + $0x240] ss:$8 sps:$4 sm:$0xff]  }
  0x65   : > { %3111 = vmatprep.subr.bf16.mxu0 %v4320_v47  ;;  %v4476_v46 = vld [vmem:[%s4955_s13 + $0x180] ss:$84 sps:$4 sm:$0xff]  }
  0x66   : > { %v4414_v47 = vld [vmem:[%s5951_s1 + $0x740] ss:$8 sps:$4 sm:$0xff]  }
  0x67   : > { %2747 = vmatpush1.bf16.msra.mxu1 %v4315_v50  ;;  %v4483_v50 = vld [vmem:[%s4955_s13 + $0x204] ss:$84 sps:$4 sm:$0xff]  }
  0x68   : > { %3112 = vmatpush1.bf16.msra.mxu0 %v4318_v51  ;;  %2748 = vmatprep.subr.bf16.mxu1 %v4323_v52  ;;  %v4488_v51 = vld [vmem:[%s4955_s13 + $0x22c] ss:$84 sps:$4 sm:$0xff]   ;;  %v4417_v52 = vld [vmem:[%s5951_s1 + $0x250] ss:$8 sps:$4 sm:$0xff]  }
  0x69   : > { %3113 = vmatprep.subr.bf16.mxu0 %v4326_v53  ;;  %v4420_v53 = vld [vmem:[%s5951_s1 + $0x750] ss:$8 sps:$4 sm:$0xff]  }
  0x6b   : > { %2749 = vmatpush1.bf16.msra.mxu1 %v4321_v55  ;;  %v4428_v55 = vld [vmem:[%s5951_s1 + $0x764] ss:$8 sps:$4 sm:$0xff]  }
  0x6c   : > { %3114 = vmatpush1.bf16.msra.mxu0 %v4324_v56  ;;  %2750 = vmatprep.subr.bf16.mxu1 %v4331_v58  ;;  %v4423_v56 = vld [vmem:[%s5951_s1 + $0x260] ss:$8 sps:$4 sm:$0xff]  }
  0x6d   : > { %3115 = vmatprep.subr.bf16.mxu0 %v4336_v59  ;;  %v4493_v58 = vld [vmem:[%s4955_s13 + $0x200] ss:$84 sps:$4 sm:$0xff]   ;;  %v4494_v59 = vld [vmem:[%s4955_s13 + $0x228] ss:$84 sps:$4 sm:$0xff]  }
  0x6f   : > { %2751 = vmatpush1.bf16.msra.mxu1 %v4329_v60  ;;  %v4431_v60 = vld [vmem:[%s5951_s1 + $0x274] ss:$8 sps:$4 sm:$0xff]  }
  0x70   : > { %3116 = vmatpush1.bf16.msra.mxu0 %v4334_v61  ;;  %2752 = vmatprep.subr.bf16.mxu1 %v4341_v62  ;;  %v4434_v61 = vld [vmem:[%s5951_s1 + $0x774] ss:$8 sps:$4 sm:$0xff]  }
  0x71   : > { %3117 = vmatprep.subr.bf16.mxu0 %v4344_v63  ;;  %v4503_v62 = vld [vmem:[%s4955_s13 + $0x14] ss:$84 sps:$4 sm:$0xff]   ;;  %v4509_v63 = vld [vmem:[%s4955_s13 + $0x3c] ss:$84 sps:$4 sm:$0xff]  }
  0x73   : > { %2753 = vmatpush1.bf16.msra.mxu1 %v4339_v0  ;;  %v4429_v0 = vld [vmem:[%s5951_s1 + $0x270] ss:$8 sps:$4 sm:$0xff]  }
  0x74   : > { %3118 = vmatpush1.bf16.msra.mxu0 %v4342_v1  ;;  %2754 = vmatprep.subr.bf16.mxu1 %v4349_v2  ;;  %v4432_v1 = vld [vmem:[%s5951_s1 + $0x770] ss:$8 sps:$4 sm:$0xff]   ;;  %v4437_v2 = vld [vmem:[%s5951_s1 + $0x284] ss:$8 sps:$4 sm:$0xff]  }
  0x75   : > { %3119 = vmatprep.subr.bf16.mxu0 %v4354_v3  ;;  %v4440_v3 = vld [vmem:[%s5951_s1 + $0x784] ss:$8 sps:$4 sm:$0xff]  }
  0x77   : > { %2755 = vmatpush1.bf16.msra.mxu1 %v4347_v4  ;;  %v4435_v4 = vld [vmem:[%s5951_s1 + $0x280] ss:$8 sps:$4 sm:$0xff]  }
  0x78   : > { %3120 = vmatpush1.bf16.msra.mxu0 %v4352_v5  ;;  %2756 = vmatprep.subr.bf16.mxu1 %v4359_v6  ;;  %v4438_v5 = vld [vmem:[%s5951_s1 + $0x780] ss:$8 sps:$4 sm:$0xff]   ;;  %v4443_v6 = vld [vmem:[%s5951_s1 + $0x294] ss:$8 sps:$4 sm:$0xff]  }
  0x79   : > { %3121 = vmatprep.subr.bf16.mxu0 %v4362_v7  ;;  %v4446_v7 = vld [vmem:[%s5951_s1 + $0x794] ss:$8 sps:$4 sm:$0xff]  }
  0x7b   : > { %2757 = vmatpush1.bf16.msra.mxu1 %v4357_v8  ;;  %v4441_v8 = vld [vmem:[%s5951_s1 + $0x290] ss:$8 sps:$4 sm:$0xff]  }
  0x7c   : > { %3122 = vmatpush1.bf16.msra.mxu0 %v4360_v9  ;;  %2758 = vmatprep.subr.bf16.mxu1 %v4367_v10  ;;  %v4444_v9 = vld [vmem:[%s5951_s1 + $0x790] ss:$8 sps:$4 sm:$0xff]   ;;  %v4451_v10 = vld [vmem:[%s5951_s1 + $0x2a4] ss:$8 sps:$4 sm:$0xff]  }
  0x7d   : > { %3123 = vmatprep.subr.bf16.mxu0 %v4372_v11  ;;  %v4456_v11 = vld [vmem:[%s5951_s1 + $0x7a4] ss:$8 sps:$4 sm:$0xff]  }
  0x7f   : > { %2759 = vmatpush1.bf16.msra.mxu1 %v4365_v12  ;;  %v4449_v12 = vld [vmem:[%s5951_s1 + $0x2a0] ss:$8 sps:$4 sm:$0xff]  }
  0x80   : > { %3124 = vmatpush1.bf16.msra.mxu0 %v4370_v13  ;;  %2760 = vmatprep.subr.bf16.mxu1 %v4377_v14  ;;  %v4454_v13 = vld [vmem:[%s5951_s1 + $0x7a0] ss:$8 sps:$4 sm:$0xff]   ;;  %v4461_v14 = vld [vmem:[%s5951_s1 + $0x2b4] ss:$8 sps:$4 sm:$0xff]  }
  0x81   : > { %3125 = vmatprep.subr.bf16.mxu0 %v4380_v15  ;;  %v4464_v15 = vld [vmem:[%s5951_s1 + $0x7b4] ss:$8 sps:$4 sm:$0xff]  }
  0x83   : > { %2761 = vmatpush1.bf16.msra.mxu1 %v4375_v16  ;;  %v4459_v16 = vld [vmem:[%s5951_s1 + $0x2b0] ss:$8 sps:$4 sm:$0xff]  }
  0x84   : > { %3126 = vmatpush1.bf16.msra.mxu0 %v4378_v17  ;;  %2803 = vmatprep.subr.bf16.mxu1 %v4386_v18  ;;  %v4462_v17 = vld [vmem:[%s5951_s1 + $0x7b0] ss:$8 sps:$4 sm:$0xff]   ;;  %v4469_v18 = vld [vmem:[%s5951_s1 + $0x2c4] ss:$8 sps:$4 sm:$0xff]  }
  0x85   : > { %3168 = vmatprep.subr.bf16.mxu0 %v4392_v19  ;;  %v4474_v19 = vld [vmem:[%s5951_s1 + $0x7c4] ss:$8 sps:$4 sm:$0xff]  }
  0x86   : > { %2763 = vmatmul.mubr.bf16.vlgmr.msra.gmra.mrb[0].mxu1 %v4381_v20  ;;  %v4467_v20 = vld [vmem:[%s5951_s1 + $0x2c0] ss:$8 sps:$4 sm:$0xff]  }
  0x87   : > { %3128 = vmatmul.mubr.bf16.vlgmr.msra.gmra.mrb[0].mxu0 %v4387_v22  ;;  %2804 = vmatpush1.bf16.msra.mxu1 %v4384_v21  ;;  %v4472_v21 = vld [vmem:[%s5951_s1 + $0x7c0] ss:$8 sps:$4 sm:$0xff]   ;;  %v4479_v22 = vld [vmem:[%s5951_s1 + $0x2d4] ss:$8 sps:$4 sm:$0xff]  }
  0x88   : > { %3169 = vmatpush1.bf16.msra.mxu0 %v4390_v23  ;;  %2805 = vmatprep.subr.bf16.mxu1 %v4395_v24  ;;  %v4482_v23 = vld [vmem:[%s5951_s1 + $0x7d4] ss:$8 sps:$4 sm:$0xff]   ;;  %v4477_v24 = vld [vmem:[%s5951_s1 + $0x2d0] ss:$8 sps:$4 sm:$0xff]  }
  0x89   : > { %3170 = vmatprep.subr.bf16.mxu0 %v4398_v25  ;;  %2772 = vmatprep.mubr.bf16.mxu1 %v4447_v26  ;;  %v4480_v25 = vld [vmem:[%s5951_s1 + $0x7d0] ss:$8 sps:$4 sm:$0xff]   ;;  %v4487_v26 = vld [vmem:[%s5951_s1 + $0x2e4] ss:$8 sps:$4 sm:$0xff]  }
  0x8a   : > { %3137 = vmatprep.mubr.bf16.mxu0 %v4452_v27  ;;  %v4492_v27 = vld [vmem:[%s5951_s1 + $0x7e4] ss:$8 sps:$4 sm:$0xff]  }
  0x8b   : > { %2806 = vmatpush1.bf16.msra.mxu1 %v4393_v28  ;;  %v4485_v28 = vld [vmem:[%s5951_s1 + $0x2e0] ss:$8 sps:$4 sm:$0xff]  }
  0x8c   : > { %3171 = vmatpush1.bf16.msra.mxu0 %v4396_v29  ;;  %2807 = vmatprep.subr.bf16.mxu1 %v4401_v30  ;;  %v4490_v29 = vld [vmem:[%s5951_s1 + $0x7e0] ss:$8 sps:$4 sm:$0xff]   ;;  %v4497_v30 = vld [vmem:[%s5951_s1 + $0x2f4] ss:$8 sps:$4 sm:$0xff]  }
  0x8d   : > { %3172 = vmatprep.subr.bf16.mxu0 %v4404_v31  ;;  %v4500_v31 = vld [vmem:[%s5951_s1 + $0x7f4] ss:$8 sps:$4 sm:$0xff]  }
  0x8e   : > { %2773 = vmatmul.mubr.bf16.gmra.mrb[4].mxu1 %v4457_v33  ;;  %v4498_v33 = vld [vmem:[%s5951_s1 + $0x7f0] ss:$8 sps:$4 sm:$0xff]  }
  0x8f   : > { %3138 = vmatmul.mubr.bf16.gmra.mrb[4].mxu0 %v4458_v34  ;;  %2808 = vmatpush1.bf16.msra.mxu1 %v4399_v32  ;;  %v4495_v32 = vld [vmem:[%s5951_s1 + $0x2f0] ss:$8 sps:$4 sm:$0xff]   ;;  %v4506_v34 = vld [vmem:[%s5951_s1 + $0x304] ss:$8 sps:$4 sm:$0xff]  }
  0x90   : > { %3173 = vmatpush1.bf16.msra.mxu0 %v4402_v35  ;;  %2809 = vmatprep.subr.bf16.mxu1 %v4407_v36  ;;  %v4512_v35 = vld [vmem:[%s5951_s1 + $0x804] ss:$8 sps:$4 sm:$0xff]  }
  0x91   : > { %3174 = vmatprep.subr.bf16.mxu0 %v4410_v37  ;;  %2782 = vmatprep.mubr.bf16.mxu1 %v4465_v38  ;;  %v4501_v36 = vld [vmem:[%s4955_s13 + $0x10] ss:$84 sps:$4 sm:$0xff]   ;;  %v4504_v37 = vld [vmem:[%s5951_s1 + $0x300] ss:$8 sps:$4 sm:$0xff]   ;;  %v4507_v38 = vld [vmem:[%s4955_s13 + $0x38] ss:$84 sps:$4 sm:$0xff]  }
  0x92   : > { %3147 = vmatprep.mubr.bf16.mxu0 %v4470_v39  ;;  %v4510_v39 = vld [vmem:[%s5951_s1 + $0x800] ss:$8 sps:$4 sm:$0xff]  }
  0x93   : > { %2810 = vmatpush1.bf16.msra.mxu1 %v4405_v40  ;;  %v4515_v40 = vld [vmem:[%s5951_s1 + $0x314] ss:$8 sps:$4 sm:$0xff]  }
  0x94   : > { %3175 = vmatpush1.bf16.msra.mxu0 %v4408_v41  ;;  %2811 = vmatprep.subr.bf16.mxu1 %v4413_v42  ;;  %v4518_v41 = vld [vmem:[%s5951_s1 + $0x814] ss:$8 sps:$4 sm:$0xff]  }
  0x95   : > { %3176 = vmatprep.subr.bf16.mxu0 %v4416_v43  ;;  %v4567_v42 = vld [vmem:[%s4955_s13 + $0xbc] ss:$84 sps:$4 sm:$0xff]   ;;  %v4572_v43 = vld [vmem:[%s4955_s13 + $0xe4] ss:$84 sps:$4 sm:$0xff]  }
  0x96   : > { %2783 = vmatmul.mubr.bf16.gmra.mrb[8].mxu1 %v4475_v45  ;;  %v4516_v45 = vld [vmem:[%s5951_s1 + $0x810] ss:$8 sps:$4 sm:$0xff]  }
  0x97   : > { %3148 = vmatmul.mubr.bf16.gmra.mrb[8].mxu0 %v4476_v46  ;;  %2812 = vmatpush1.bf16.msra.mxu1 %v4411_v44  ;;  %v4513_v44 = vld [vmem:[%s5951_s1 + $0x310] ss:$8 sps:$4 sm:$0xff]   ;;  %v4521_v46 = vld [vmem:[%s5951_s1 + $0x324] ss:$8 sps:$4 sm:$0xff]  }
  0x98   : > { %3177 = vmatpush1.bf16.msra.mxu0 %v4414_v47  ;;  %2813 = vmatprep.subr.bf16.mxu1 %v4419_v48  ;;  %v4524_v47 = vld [vmem:[%s5951_s1 + $0x824] ss:$8 sps:$4 sm:$0xff]   ;;  %v4519_v48 = vld [vmem:[%s5951_s1 + $0x320] ss:$8 sps:$4 sm:$0xff]  }
  0x99   : > { %3178 = vmatprep.subr.bf16.mxu0 %v4422_v49  ;;  %2792 = vmatprep.mubr.bf16.mxu1 %v4483_v50  ;;  %v4522_v49 = vld [vmem:[%s5951_s1 + $0x820] ss:$8 sps:$4 sm:$0xff]   ;;  %v4577_v50 = vld [vmem:[%s4955_s13 + $0xb8] ss:$84 sps:$4 sm:$0xff]  }
  0x9a   : > { %3157 = vmatprep.mubr.bf16.mxu0 %v4488_v51  ;;  %v4578_v51 = vld [vmem:[%s4955_s13 + $0xe0] ss:$84 sps:$4 sm:$0xff]  }
  0x9b   : > { %2814 = vmatpush1.bf16.msra.mxu1 %v4417_v52  ;;  %v4527_v52 = vld [vmem:[%s5951_s1 + $0x334] ss:$8 sps:$4 sm:$0xff]  }
  0x9c   : > { %3179 = vmatpush1.bf16.msra.mxu0 %v4420_v53  ;;  %2815 = vmatprep.subr.bf16.mxu1 %v4425_v54  ;;  %v4530_v53 = vld [vmem:[%s5951_s1 + $0x834] ss:$8 sps:$4 sm:$0xff]   ;;  %v4585_v54 = vld [vmem:[%s4955_s13 + $0x164] ss:$84 sps:$4 sm:$0xff]  }
  0x9d   : > { %3180 = vmatprep.subr.bf16.mxu0 %v4428_v55  ;;  %v4590_v55 = vld [vmem:[%s4955_s13 + $0x18c] ss:$84 sps:$4 sm:$0xff]  }
  0x9e   : > { %2793 = vmatmul.mubr.bf16.gmra.mrb[12].mxu1 %v4493_v58  ;;  %v4533_v58 = vld [vmem:[%s5951_s1 + $0x344] ss:$8 sps:$4 sm:$0xff]  }
  0x9f   : > { %3158 = vmatmul.mubr.bf16.gmra.mrb[12].mxu0 %v4494_v59  ;;  %2816 = vmatpush1.bf16.msra.mxu1 %v4423_v56  ;;  %v4525_v56 = vld [vmem:[%s5951_s1 + $0x330] ss:$8 sps:$4 sm:$0xff]   ;;  %v4536_v59 = vld [vmem:[%s5951_s1 + $0x844] ss:$8 sps:$4 sm:$0xff]  }
  0xa0   : > { %3181 = vmatpush1.bf16.msra.mxu0 %v4426_v57  ;;  %2817 = vmatprep.subr.bf16.mxu1 %v4431_v60  ;;  %v4528_v57 = vld [vmem:[%s5951_s1 + $0x830] ss:$8 sps:$4 sm:$0xff]   ;;  %v4531_v60 = vld [vmem:[%s5951_s1 + $0x340] ss:$8 sps:$4 sm:$0xff]  }
  0xa1   : > { %3182 = vmatprep.subr.bf16.mxu0 %v4434_v61  ;;  %2835 = vmatprep.mubr.bf16.mxu1 %v4503_v62  ;;  %v4534_v61 = vld [vmem:[%s5951_s1 + $0x840] ss:$8 sps:$4 sm:$0xff]  }
  0xa2   : > { %3200 = vmatprep.mubr.bf16.mxu0 %v4509_v63  ;;  %v4595_v62 = vld [vmem:[%s4955_s13 + $0x160] ss:$84 sps:$4 sm:$0xff]   ;;  %v4596_v63 = vld [vmem:[%s4955_s13 + $0x188] ss:$84 sps:$4 sm:$0xff]  }
  0xa3   : > { %2818 = vmatpush1.bf16.msra.mxu1 %v4429_v0  ;;  %v4539_v0 = vld [vmem:[%s5951_s1 + $0x354] ss:$8 sps:$4 sm:$0xff]  }
  0xa4   : > { %3183 = vmatpush1.bf16.msra.mxu0 %v4432_v1  ;;  %2819 = vmatprep.subr.bf16.mxu1 %v4437_v2  ;;  %v4542_v1 = vld [vmem:[%s5951_s1 + $0x854] ss:$8 sps:$4 sm:$0xff]   ;;  %v4603_v2 = vld [vmem:[%s4955_s13 + $0x20c] ss:$84 sps:$4 sm:$0xff]  }
  0xa5   : > { %3184 = vmatprep.subr.bf16.mxu0 %v4440_v3  ;;  %v4608_v3 = vld [vmem:[%s4955_s13 + $0x234] ss:$84 sps:$4 sm:$0xff]  }
  0xa7   : > { %2820 = vmatpush1.bf16.msra.mxu1 %v4435_v4  ;;  %v4537_v4 = vld [vmem:[%s5951_s1 + $0x350] ss:$8 sps:$4 sm:$0xff]  }
  0xa8   : > { %3185 = vmatpush1.bf16.msra.mxu0 %v4438_v5  ;;  %2821 = vmatprep.subr.bf16.mxu1 %v4443_v6  ;;  %v4540_v5 = vld [vmem:[%s5951_s1 + $0x850] ss:$8 sps:$4 sm:$0xff]   ;;  %v4545_v6 = vld [vmem:[%s5951_s1 + $0x364] ss:$8 sps:$4 sm:$0xff]  }
  0xa9   : > { %3186 = vmatprep.subr.bf16.mxu0 %v4446_v7  ;;  %v4548_v7 = vld [vmem:[%s5951_s1 + $0x864] ss:$8 sps:$4 sm:$0xff]  }
  0xab   : > { %2822 = vmatpush1.bf16.msra.mxu1 %v4441_v8  ;;  %v4543_v8 = vld [vmem:[%s5951_s1 + $0x360] ss:$8 sps:$4 sm:$0xff]  }
  0xac   : > { %3187 = vmatpush1.bf16.msra.mxu0 %v4444_v9  ;;  %2823 = vmatprep.subr.bf16.mxu1 %v4451_v10  ;;  %v4546_v9 = vld [vmem:[%s5951_s1 + $0x860] ss:$8 sps:$4 sm:$0xff]  }
  0xad   : > { %3188 = vmatprep.subr.bf16.mxu0 %v4456_v11  ;;  %v4613_v10 = vld [vmem:[%s4955_s13 + $0x208] ss:$84 sps:$4 sm:$0xff]   ;;  %v4614_v11 = vld [vmem:[%s4955_s13 + $0x230] ss:$84 sps:$4 sm:$0xff]  }
  0xaf   : > { %2824 = vmatpush1.bf16.msra.mxu1 %v4449_v12  ;;  %v4551_v12 = vld [vmem:[%s5951_s1 + $0x374] ss:$8 sps:$4 sm:$0xff]  }
  0xb0   : > { %3189 = vmatpush1.bf16.msra.mxu0 %v4454_v13  ;;  %2825 = vmatprep.subr.bf16.mxu1 %v4461_v14  ;;  %v4554_v13 = vld [vmem:[%s5951_s1 + $0x874] ss:$8 sps:$4 sm:$0xff]  }
  0xb1   : > { %3190 = vmatprep.subr.bf16.mxu0 %v4464_v15  ;;  %v4623_v14 = vld [vmem:[%s4955_s13 + $0x1c] ss:$84 sps:$4 sm:$0xff]   ;;  %v4629_v15 = vld [vmem:[%s4955_s13 + $0x44] ss:$84 sps:$4 sm:$0xff]  }
  0xb3   : > { %2826 = vmatpush1.bf16.msra.mxu1 %v4459_v16  ;;  %v4549_v16 = vld [vmem:[%s5951_s1 + $0x370] ss:$8 sps:$4 sm:$0xff]  }
  0xb4   : > { %3191 = vmatpush1.bf16.msra.mxu0 %v4462_v17  ;;  %2827 = vmatprep.subr.bf16.mxu1 %v4469_v18  ;;  %v4552_v17 = vld [vmem:[%s5951_s1 + $0x870] ss:$8 sps:$4 sm:$0xff]   ;;  %v4557_v18 = vld [vmem:[%s5951_s1 + $0x384] ss:$8 sps:$4 sm:$0xff]  }
  0xb5   : > { %3192 = vmatprep.subr.bf16.mxu0 %v4474_v19  ;;  %v4560_v19 = vld [vmem:[%s5951_s1 + $0x884] ss:$8 sps:$4 sm:$0xff]  }
  0xb7   : > { %2828 = vmatpush1.bf16.msra.mxu1 %v4467_v20  ;;  %v4555_v20 = vld [vmem:[%s5951_s1 + $0x380] ss:$8 sps:$4 sm:$0xff]  }
  0xb8   : > { %3193 = vmatpush1.bf16.msra.mxu0 %v4472_v21  ;;  %2829 = vmatprep.subr.bf16.mxu1 %v4479_v22  ;;  %v4558_v21 = vld [vmem:[%s5951_s1 + $0x880] ss:$8 sps:$4 sm:$0xff]   ;;  %v4563_v22 = vld [vmem:[%s5951_s1 + $0x394] ss:$8 sps:$4 sm:$0xff]  }
  0xb9   : > { %3194 = vmatprep.subr.bf16.mxu0 %v4482_v23  ;;  %v4566_v23 = vld [vmem:[%s5951_s1 + $0x894] ss:$8 sps:$4 sm:$0xff]  }
  0xbb   : > { %2830 = vmatpush1.bf16.msra.mxu1 %v4477_v24  ;;  %v4561_v24 = vld [vmem:[%s5951_s1 + $0x390] ss:$8 sps:$4 sm:$0xff]  }
  0xbc   : > { %3195 = vmatpush1.bf16.msra.mxu0 %v4480_v25  ;;  %2831 = vmatprep.subr.bf16.mxu1 %v4487_v26  ;;  %v4564_v25 = vld [vmem:[%s5951_s1 + $0x890] ss:$8 sps:$4 sm:$0xff]   ;;  %v4571_v26 = vld [vmem:[%s5951_s1 + $0x3a4] ss:$8 sps:$4 sm:$0xff]  }
  0xbd   : > { %3196 = vmatprep.subr.bf16.mxu0 %v4492_v27  ;;  %v4576_v27 = vld [vmem:[%s5951_s1 + $0x8a4] ss:$8 sps:$4 sm:$0xff]  }
  0xbf   : > { %2832 = vmatpush1.bf16.msra.mxu1 %v4485_v28  ;;  %v4569_v28 = vld [vmem:[%s5951_s1 + $0x3a0] ss:$8 sps:$4 sm:$0xff]  }
  0xc0   : > { %3197 = vmatpush1.bf16.msra.mxu0 %v4490_v29  ;;  %2833 = vmatprep.subr.bf16.mxu1 %v4497_v30  ;;  %v4574_v29 = vld [vmem:[%s5951_s1 + $0x8a0] ss:$8 sps:$4 sm:$0xff]   ;;  %v4581_v30 = vld [vmem:[%s5951_s1 + $0x3b4] ss:$8 sps:$4 sm:$0xff]  }
  0xc1   : > { %3198 = vmatprep.subr.bf16.mxu0 %v4500_v31  ;;  %v4584_v31 = vld [vmem:[%s5951_s1 + $0x8b4] ss:$8 sps:$4 sm:$0xff]  }
  0xc3   : > { %2834 = vmatpush1.bf16.msra.mxu1 %v4495_v32  ;;  %v4579_v32 = vld [vmem:[%s5951_s1 + $0x3b0] ss:$8 sps:$4 sm:$0xff]  }
  0xc4   : > { %3199 = vmatpush1.bf16.msra.mxu0 %v4498_v33  ;;  %2876 = vmatprep.subr.bf16.mxu1 %v4506_v34  ;;  %v4582_v33 = vld [vmem:[%s5951_s1 + $0x8b0] ss:$8 sps:$4 sm:$0xff]   ;;  %v4589_v34 = vld [vmem:[%s5951_s1 + $0x3c4] ss:$8 sps:$4 sm:$0xff]  }
  0xc5   : > { %3241 = vmatprep.subr.bf16.mxu0 %v4512_v35  ;;  %v4594_v35 = vld [vmem:[%s5951_s1 + $0x8c4] ss:$8 sps:$4 sm:$0xff]  }
  0xc6   : > { %2836 = vmatmul.mubr.bf16.vlgmr.msra.gmra.mrb[0].mxu1 %v4501_v36  ;;  %v4587_v36 = vld [vmem:[%s5951_s1 + $0x3c0] ss:$8 sps:$4 sm:$0xff]  }
  0xc7   : > { %3201 = vmatmul.mubr.bf16.vlgmr.msra.gmra.mrb[0].mxu0 %v4507_v38  ;;  %2877 = vmatpush1.bf16.msra.mxu1 %v4504_v37  ;;  %v4592_v37 = vld [vmem:[%s5951_s1 + $0x8c0] ss:$8 sps:$4 sm:$0xff]   ;;  %v4599_v38 = vld [vmem:[%s5951_s1 + $0x3d4] ss:$8 sps:$4 sm:$0xff]  }
  0xc8   : > { %3242 = vmatpush1.bf16.msra.mxu0 %v4510_v39  ;;  %2878 = vmatprep.subr.bf16.mxu1 %v4515_v40  ;;  %v4602_v39 = vld [vmem:[%s5951_s1 + $0x8d4] ss:$8 sps:$4 sm:$0xff]   ;;  %v4597_v40 = vld [vmem:[%s5951_s1 + $0x3d0] ss:$8 sps:$4 sm:$0xff]  }
  0xc9   : > { %3243 = vmatprep.subr.bf16.mxu0 %v4518_v41  ;;  %2845 = vmatprep.mubr.bf16.mxu1 %v4567_v42  ;;  %v4600_v41 = vld [vmem:[%s5951_s1 + $0x8d0] ss:$8 sps:$4 sm:$0xff]   ;;  %v4607_v42 = vld [vmem:[%s5951_s1 + $0x3e4] ss:$8 sps:$4 sm:$0xff]  }
  0xca   : > { %3210 = vmatprep.mubr.bf16.mxu0 %v4572_v43  ;;  %v4612_v43 = vld [vmem:[%s5951_s1 + $0x8e4] ss:$8 sps:$4 sm:$0xff]  }
  0xcb   : > { %2879 = vmatpush1.bf16.msra.mxu1 %v4513_v44  ;;  %v4605_v44 = vld [vmem:[%s5951_s1 + $0x3e0] ss:$8 sps:$4 sm:$0xff]  }
  0xcc   : > { %3244 = vmatpush1.bf16.msra.mxu0 %v4516_v45  ;;  %2880 = vmatprep.subr.bf16.mxu1 %v4521_v46  ;;  %v4610_v45 = vld [vmem:[%s5951_s1 + $0x8e0] ss:$8 sps:$4 sm:$0xff]   ;;  %v4617_v46 = vld [vmem:[%s5951_s1 + $0x3f4] ss:$8 sps:$4 sm:$0xff]  }
  0xcd   : > { %3245 = vmatprep.subr.bf16.mxu0 %v4524_v47  ;;  %v4620_v47 = vld [vmem:[%s5951_s1 + $0x8f4] ss:$8 sps:$4 sm:$0xff]  }
  0xce   : > { %2846 = vmatmul.mubr.bf16.gmra.mrb[4].mxu1 %v4577_v50  ;;  %v4626_v50 = vld [vmem:[%s5951_s1 + $0x404] ss:$8 sps:$4 sm:$0xff]  }
  0xcf   : > { %3211 = vmatmul.mubr.bf16.gmra.mrb[4].mxu0 %v4578_v51  ;;  %2881 = vmatpush1.bf16.msra.mxu1 %v4519_v48  ;;  %v4615_v48 = vld [vmem:[%s5951_s1 + $0x3f0] ss:$8 sps:$4 sm:$0xff]   ;;  %v4632_v51 = vld [vmem:[%s5951_s1 + $0x904] ss:$8 sps:$4 sm:$0xff]  }
  0xd0   : > { %3246 = vmatpush1.bf16.msra.mxu0 %v4522_v49  ;;  %2882 = vmatprep.subr.bf16.mxu1 %v4527_v52  ;;  %v4618_v49 = vld [vmem:[%s5951_s1 + $0x8f0] ss:$8 sps:$4 sm:$0xff]  }
  0xd1   : > { %3247 = vmatprep.subr.bf16.mxu0 %v4530_v53  ;;  %2855 = vmatprep.mubr.bf16.mxu1 %v4585_v54  ;;  %v4621_v52 = vld [vmem:[%s4955_s13 + $0x18] ss:$84 sps:$4 sm:$0xff]   ;;  %v4624_v53 = vld [vmem:[%s5951_s1 + $0x400] ss:$8 sps:$4 sm:$0xff]  }
  0xd2   : > { %3220 = vmatprep.mubr.bf16.mxu0 %v4590_v55  ;;  %v4627_v54 = vld [vmem:[%s4955_s13 + $0x40] ss:$84 sps:$4 sm:$0xff]  }
  0xd3   : > { %2883 = vmatpush1.bf16.msra.mxu1 %v4525_v56  ;;  %v4630_v55 = vld [vmem:[%s5951_s1 + $0x900] ss:$8 sps:$4 sm:$0xff]   ;;  %v4635_v56 = vld [vmem:[%s5951_s1 + $0x414] ss:$8 sps:$4 sm:$0xff]  }
  0xd4   : > { %3248 = vmatpush1.bf16.msra.mxu0 %v4528_v57  ;;  %2884 = vmatprep.subr.bf16.mxu1 %v4533_v58  ;;  %v4638_v57 = vld [vmem:[%s5951_s1 + $0x914] ss:$8 sps:$4 sm:$0xff]   ;;  %v4687_v58 = vld [vmem:[%s4955_s13 + $0xc4] ss:$84 sps:$4 sm:$0xff]  }
  0xd5   : > { %3249 = vmatprep.subr.bf16.mxu0 %v4536_v59  ;;  %v4689_v59 = vld [vmem:[%s4955_s13 + $0xec] ss:$84 sps:$4 sm:$0xff]  }
  0xd6   : > { %2856 = vmatmul.mubr.bf16.gmra.mrb[8].mxu1 %v4595_v62  ;;  %v4641_v62 = vld [vmem:[%s5951_s1 + $0x424] ss:$8 sps:$4 sm:$0xff]  }
  0xd7   : > { %3221 = vmatmul.mubr.bf16.gmra.mrb[8].mxu0 %v4596_v63  ;;  %2885 = vmatpush1.bf16.msra.mxu1 %v4531_v60  ;;  %v4633_v60 = vld [vmem:[%s5951_s1 + $0x410] ss:$8 sps:$4 sm:$0xff]   ;;  %v4644_v63 = vld [vmem:[%s5951_s1 + $0x924] ss:$8 sps:$4 sm:$0xff]  }
  0xd8   : > { %3250 = vmatpush1.bf16.msra.mxu0 %v4534_v61  ;;  %2886 = vmatprep.subr.bf16.mxu1 %v4539_v0  ;;  %v4636_v61 = vld [vmem:[%s5951_s1 + $0x910] ss:$8 sps:$4 sm:$0xff]   ;;  %v4639_v0 = vld [vmem:[%s5951_s1 + $0x420] ss:$8 sps:$4 sm:$0xff]  }
  0xd9   : > { %3251 = vmatprep.subr.bf16.mxu0 %v4542_v1  ;;  %2865 = vmatprep.mubr.bf16.mxu1 %v4603_v2  ;;  %v4691_v1 = vld [vmem:[%s4955_s13 + $0xc0] ss:$84 sps:$4 sm:$0xff]   ;;  %v4695_v2 = vld [vmem:[%s4955_s13 + $0xe8] ss:$84 sps:$4 sm:$0xff]  }
  0xda   : > { %3230 = vmatprep.mubr.bf16.mxu0 %v4608_v3  ;;  %v4642_v3 = vld [vmem:[%s5951_s1 + $0x920] ss:$8 sps:$4 sm:$0xff]  }
  0xdb   : > { %2887 = vmatpush1.bf16.msra.mxu1 %v4537_v4  ;;  %v4647_v4 = vld [vmem:[%s5951_s1 + $0x434] ss:$8 sps:$4 sm:$0xff]  }
  0xdc   : > { %3252 = vmatpush1.bf16.msra.mxu0 %v4540_v5  ;;  %2888 = vmatprep.subr.bf16.mxu1 %v4545_v6  ;;  %v4650_v5 = vld [vmem:[%s5951_s1 + $0x934] ss:$8 sps:$4 sm:$0xff]   ;;  %v4705_v6 = vld [vmem:[%s4955_s13 + $0x16c] ss:$84 sps:$4 sm:$0xff]  }
  0xdd   : > { %3253 = vmatprep.subr.bf16.mxu0 %v4548_v7  ;;  %v4707_v7 = vld [vmem:[%s4955_s13 + $0x194] ss:$84 sps:$4 sm:$0xff]  }
  0xde   : > { %2866 = vmatmul.mubr.bf16.gmra.mrb[12].mxu1 %v4613_v10  ;;  %v4653_v10 = vld [vmem:[%s5951_s1 + $0x444] ss:$8 sps:$4 sm:$0xff]  }
  0xdf   : > { %3231 = vmatmul.mubr.bf16.gmra.mrb[12].mxu0 %v4614_v11  ;;  %2889 = vmatpush1.bf16.msra.mxu1 %v4543_v8  ;;  %v4645_v8 = vld [vmem:[%s5951_s1 + $0x430] ss:$8 sps:$4 sm:$0xff]   ;;  %v4656_v11 = vld [vmem:[%s5951_s1 + $0x944] ss:$8 sps:$4 sm:$0xff]  }
  0xe0   : > { %3254 = vmatpush1.bf16.msra.mxu0 %v4546_v9  ;;  %2890 = vmatprep.subr.bf16.mxu1 %v4551_v12  ;;  %v4648_v9 = vld [vmem:[%s5951_s1 + $0x930] ss:$8 sps:$4 sm:$0xff]   ;;  %v4651_v12 = vld [vmem:[%s5951_s1 + $0x440] ss:$8 sps:$4 sm:$0xff]  }
  0xe1   : > { %3255 = vmatprep.subr.bf16.mxu0 %v4554_v13  ;;  %2908 = vmatprep.mubr.bf16.mxu1 %v4623_v14  ;;  %v4709_v13 = vld [vmem:[%s4955_s13 + $0x168] ss:$84 sps:$4 sm:$0xff]   ;;  %v4713_v14 = vld [vmem:[%s4955_s13 + $0x190] ss:$84 sps:$4 sm:$0xff]  }
  0xe2   : > { %3273 = vmatprep.mubr.bf16.mxu0 %v4629_v15  ;;  %v4654_v15 = vld [vmem:[%s5951_s1 + $0x940] ss:$8 sps:$4 sm:$0xff]  }
  0xe3   : > { %2891 = vmatpush1.bf16.msra.mxu1 %v4549_v16  ;;  %v4659_v16 = vld [vmem:[%s5951_s1 + $0x454] ss:$8 sps:$4 sm:$0xff]  }
  0xe4   : > { %3256 = vmatpush1.bf16.msra.mxu0 %v4552_v17  ;;  %2892 = vmatprep.subr.bf16.mxu1 %v4557_v18  ;;  %v4662_v17 = vld [vmem:[%s5951_s1 + $0x954] ss:$8 sps:$4 sm:$0xff]  }
  0xe5   : > { %3257 = vmatprep.subr.bf16.mxu0 %v4560_v19  ;;  %v4723_v18 = vld [vmem:[%s4955_s13 + $0x214] ss:$84 sps:$4 sm:$0xff]   ;;  %v4725_v19 = vld [vmem:[%s4955_s13 + $0x23c] ss:$84 sps:$4 sm:$0xff]  }
  0xe7   : > { %2893 = vmatpush1.bf16.msra.mxu1 %v4555_v20  ;;  %v4657_v20 = vld [vmem:[%s5951_s1 + $0x450] ss:$8 sps:$4 sm:$0xff]  }
  0xe8   : > { %3258 = vmatpush1.bf16.msra.mxu0 %v4558_v21  ;;  %2894 = vmatprep.subr.bf16.mxu1 %v4563_v22  ;;  %v4660_v21 = vld [vmem:[%s5951_s1 + $0x950] ss:$8 sps:$4 sm:$0xff]   ;;  %v4665_v22 = vld [vmem:[%s5951_s1 + $0x464] ss:$8 sps:$4 sm:$0xff]  }
  0xe9   : > { %3259 = vmatprep.subr.bf16.mxu0 %v4566_v23  ;;  %v4668_v23 = vld [vmem:[%s5951_s1 + $0x964] ss:$8 sps:$4 sm:$0xff]  }
  0xeb   : > { %2895 = vmatpush1.bf16.msra.mxu1 %v4561_v24  ;;  %v4727_v24 = vld [vmem:[%s4955_s13 + $0x210] ss:$84 sps:$4 sm:$0xff]  }
  0xec   : > { %3260 = vmatpush1.bf16.msra.mxu0 %v4564_v25  ;;  %2896 = vmatprep.subr.bf16.mxu1 %v4571_v26  ;;  %v4731_v25 = vld [vmem:[%s4955_s13 + $0x238] ss:$84 sps:$4 sm:$0xff]   ;;  %v4663_v26 = vld [vmem:[%s5951_s1 + $0x460] ss:$8 sps:$4 sm:$0xff]  }
  0xed   : > { %3261 = vmatprep.subr.bf16.mxu0 %v4576_v27  ;;  %v4666_v27 = vld [vmem:[%s5951_s1 + $0x960] ss:$8 sps:$4 sm:$0xff]  }
  0xef   : > { %2897 = vmatpush1.bf16.msra.mxu1 %v4569_v28  ;;  %v4671_v28 = vld [vmem:[%s5951_s1 + $0x474] ss:$8 sps:$4 sm:$0xff]  }
  0xf0   : > { %3262 = vmatpush1.bf16.msra.mxu0 %v4574_v29  ;;  %2898 = vmatprep.subr.bf16.mxu1 %v4581_v30  ;;  %v4674_v29 = vld [vmem:[%s5951_s1 + $0x974] ss:$8 sps:$4 sm:$0xff]   ;;  %v4743_v30 = vld [vmem:[%s4955_s13 + $0x24] ss:$84 sps:$4 sm:$0xff]  }
  0xf1   : > { %3263 = vmatprep.subr.bf16.mxu0 %v4584_v31  ;;  %v4746_v31 = vld [vmem:[%s4955_s13 + $0x4c] ss:$84 sps:$4 sm:$0xff]  }
  0xf3   : > { %2899 = vmatpush1.bf16.msra.mxu1 %v4579_v32  ;;  %v4669_v32 = vld [vmem:[%s5951_s1 + $0x470] ss:$8 sps:$4 sm:$0xff]  }
  0xf4   : > { %3264 = vmatpush1.bf16.msra.mxu0 %v4582_v33  ;;  %2900 = vmatprep.subr.bf16.mxu1 %v4589_v34  ;;  %v4672_v33 = vld [vmem:[%s5951_s1 + $0x970] ss:$8 sps:$4 sm:$0xff]   ;;  %v4677_v34 = vld [vmem:[%s5951_s1 + $0x484] ss:$8 sps:$4 sm:$0xff]  }
  0xf5   : > { %3265 = vmatprep.subr.bf16.mxu0 %v4594_v35  ;;  %v4680_v35 = vld [vmem:[%s5951_s1 + $0x984] ss:$8 sps:$4 sm:$0xff]  }
  0xf7   : > { %2901 = vmatpush1.bf16.msra.mxu1 %v4587_v36  ;;  %v4675_v36 = vld [vmem:[%s5951_s1 + $0x480] ss:$8 sps:$4 sm:$0xff]  }
  0xf8   : > { %3266 = vmatpush1.bf16.msra.mxu0 %v4592_v37  ;;  %2902 = vmatprep.subr.bf16.mxu1 %v4599_v38  ;;  %v4678_v37 = vld [vmem:[%s5951_s1 + $0x980] ss:$8 sps:$4 sm:$0xff]   ;;  %v4683_v38 = vld [vmem:[%s5951_s1 + $0x494] ss:$8 sps:$4 sm:$0xff]  }
  0xf9   : > { %3267 = vmatprep.subr.bf16.mxu0 %v4602_v39  ;;  %v4686_v39 = vld [vmem:[%s5951_s1 + $0x994] ss:$8 sps:$4 sm:$0xff]  }
  0xfb   : > { %2903 = vmatpush1.bf16.msra.mxu1 %v4597_v40  ;;  %v4681_v40 = vld [vmem:[%s5951_s1 + $0x490] ss:$8 sps:$4 sm:$0xff]  }
  0xfc   : > { %3268 = vmatpush1.bf16.msra.mxu0 %v4600_v41  ;;  %2904 = vmatprep.subr.bf16.mxu1 %v4607_v42  ;;  %v4684_v41 = vld [vmem:[%s5951_s1 + $0x990] ss:$8 sps:$4 sm:$0xff]   ;;  %v4694_v42 = vld [vmem:[%s5951_s1 + $0x4a4] ss:$8 sps:$4 sm:$0xff]  }
  0xfd   : > { %3269 = vmatprep.subr.bf16.mxu0 %v4612_v43  ;;  %v4698_v43 = vld [vmem:[%s5951_s1 + $0x9a4] ss:$8 sps:$4 sm:$0xff]  }
  0xff   : > { %2905 = vmatpush1.bf16.msra.mxu1 %v4605_v44  ;;  %v4692_v44 = vld [vmem:[%s5951_s1 + $0x4a0] ss:$8 sps:$4 sm:$0xff]  }
 0x100   : > { %3270 = vmatpush1.bf16.msra.mxu0 %v4610_v45  ;;  %2906 = vmatprep.subr.bf16.mxu1 %v4617_v46  ;;  %v4696_v45 = vld [vmem:[%s5951_s1 + $0x9a0] ss:$8 sps:$4 sm:$0xff]   ;;  %v4701_v46 = vld [vmem:[%s5951_s1 + $0x4b4] ss:$8 sps:$4 sm:$0xff]  }
 0x101   : > { %3271 = vmatprep.subr.bf16.mxu0 %v4620_v47  ;;  %v4704_v47 = vld [vmem:[%s5951_s1 + $0x9b4] ss:$8 sps:$4 sm:$0xff]  }
 0x103   : > { %2907 = vmatpush1.bf16.msra.mxu1 %v4615_v48  ;;  %v4699_v48 = vld [vmem:[%s5951_s1 + $0x4b0] ss:$8 sps:$4 sm:$0xff]  }
 0x104   : > { %3272 = vmatpush1.bf16.msra.mxu0 %v4618_v49  ;;  %2949 = vmatprep.subr.bf16.mxu1 %v4626_v50  ;;  %v4702_v49 = vld [vmem:[%s5951_s1 + $0x9b0] ss:$8 sps:$4 sm:$0xff]   ;;  %v4712_v50 = vld [vmem:[%s5951_s1 + $0x4c4] ss:$8 sps:$4 sm:$0xff]  }
 0x105   : > { %3314 = vmatprep.subr.bf16.mxu0 %v4632_v51  ;;  %v4716_v51 = vld [vmem:[%s5951_s1 + $0x9c4] ss:$8 sps:$4 sm:$0xff]  }
 0x106   : > { %2909 = vmatmul.mubr.bf16.vlgmr.msra.gmra.mrb[0].mxu1 %v4621_v52  ;;  %v4710_v52 = vld [vmem:[%s5951_s1 + $0x4c0] ss:$8 sps:$4 sm:$0xff]  }
 0x107   : > { %3274 = vmatmul.mubr.bf16.vlgmr.msra.gmra.mrb[0].mxu0 %v4627_v54  ;;  %2950 = vmatpush1.bf16.msra.mxu1 %v4624_v53  ;;  %v4714_v53 = vld [vmem:[%s5951_s1 + $0x9c0] ss:$8 sps:$4 sm:$0xff]   ;;  %v4719_v54 = vld [vmem:[%s5951_s1 + $0x4d4] ss:$8 sps:$4 sm:$0xff]  }
 0x108   : > { %3315 = vmatpush1.bf16.msra.mxu0 %v4630_v55  ;;  %2951 = vmatprep.subr.bf16.mxu1 %v4635_v56  ;;  %v4722_v55 = vld [vmem:[%s5951_s1 + $0x9d4] ss:$8 sps:$4 sm:$0xff]   ;;  %v4717_v56 = vld [vmem:[%s5951_s1 + $0x4d0] ss:$8 sps:$4 sm:$0xff]  }
 0x109   : > { %3316 = vmatprep.subr.bf16.mxu0 %v4638_v57  ;;  %2918 = vmatprep.mubr.bf16.mxu1 %v4687_v58  ;;  %v4720_v57 = vld [vmem:[%s5951_s1 + $0x9d0] ss:$8 sps:$4 sm:$0xff]   ;;  %v4730_v58 = vld [vmem:[%s5951_s1 + $0x4e4] ss:$8 sps:$4 sm:$0xff]  }
 0x10a   : > { %3283 = vmatprep.mubr.bf16.mxu0 %v4689_v59  ;;  %v4734_v59 = vld [vmem:[%s5951_s1 + $0x9e4] ss:$8 sps:$4 sm:$0xff]  }
 0x10b   : > { %2952 = vmatpush1.bf16.msra.mxu1 %v4633_v60  ;;  %v4728_v60 = vld [vmem:[%s5951_s1 + $0x4e0] ss:$8 sps:$4 sm:$0xff]  }
 0x10c   : > { %3317 = vmatpush1.bf16.msra.mxu0 %v4636_v61  ;;  %2953 = vmatprep.subr.bf16.mxu1 %v4641_v62  ;;  %v4732_v61 = vld [vmem:[%s5951_s1 + $0x9e0] ss:$8 sps:$4 sm:$0xff]   ;;  %v4737_v62 = vld [vmem:[%s5951_s1 + $0x4f4] ss:$8 sps:$4 sm:$0xff]  }
 0x10d   : > { %3318 = vmatprep.subr.bf16.mxu0 %v4644_v63  ;;  %v4740_v63 = vld [vmem:[%s5951_s1 + $0x9f4] ss:$8 sps:$4 sm:$0xff]  }
 0x10e   : > { %2919 = vmatmul.mubr.bf16.gmra.mrb[4].mxu1 %v4691_v1  ;;  %v4738_v1 = vld [vmem:[%s5951_s1 + $0x9f0] ss:$8 sps:$4 sm:$0xff]  }
 0x10f   : > { %3284 = vmatmul.mubr.bf16.gmra.mrb[4].mxu0 %v4695_v2  ;;  %2954 = vmatpush1.bf16.msra.mxu1 %v4639_v0  ;;  %v4735_v0 = vld [vmem:[%s5951_s1 + $0x4f0] ss:$8 sps:$4 sm:$0xff]   ;;  %v4749_v2 = vld [vmem:[%s5951_s1 + $0xa04] ss:$8 sps:$4 sm:$0xff]  }
 0x110   : > { %3319 = vmatpush1.bf16.msra.mxu0 %v4642_v3  ;;  %2955 = vmatprep.subr.bf16.mxu1 %v4647_v4  ;;  %v4741_v3 = vld [vmem:[%s4955_s13 + $0x20] ss:$84 sps:$4 sm:$0xff]   ;;  %v4744_v4 = vld [vmem:[%s4955_s13 + $0x48] ss:$84 sps:$4 sm:$0xff]  }
 0x111   : > { %3320 = vmatprep.subr.bf16.mxu0 %v4650_v5  ;;  %2928 = vmatprep.mubr.bf16.mxu1 %v4705_v6  ;;  %v4747_v5 = vld [vmem:[%s5951_s1 + $0xa00] ss:$8 sps:$4 sm:$0xff]  }
 0x112   : > { %3293 = vmatprep.mubr.bf16.mxu0 %v4707_v7  ;;  %v4750_v6 = vld [vmem:[%s4955_s13 + $0xcc] ss:$84 sps:$4 sm:$0xff]   ;;  %v4752_v7 = vld [vmem:[%s4955_s13 + $0xf4] ss:$84 sps:$4 sm:$0xff]  }
 0x113   : > { %2956 = vmatpush1.bf16.msra.mxu1 %v4645_v8  ;;  %v4764_v8 = vld [vmem:[%s5951_s1 + $0xa14] ss:$8 sps:$4 sm:$0xff]  }
 0x114   : > { %3321 = vmatpush1.bf16.msra.mxu0 %v4648_v9  ;;  %2957 = vmatprep.subr.bf16.mxu1 %v4653_v10  ;;  %v4762_v9 = vld [vmem:[%s5951_s1 + $0xa10] ss:$8 sps:$4 sm:$0xff]   ;;  %v4754_v10 = vld [vmem:[%s4955_s13 + $0xc8] ss:$84 sps:$4 sm:$0xff]  }
 0x115   : > { %3322 = vmatprep.subr.bf16.mxu0 %v4656_v11  ;;  %v4755_v11 = vld [vmem:[%s4955_s13 + $0xf0] ss:$84 sps:$4 sm:$0xff]  }
 0x116   : > { %2929 = vmatmul.mubr.bf16.gmra.mrb[8].mxu1 %v4709_v13  ;;  %v4758_v13 = vld [vmem:[%s4955_s13 + $0x19c] ss:$84 sps:$4 sm:$0xff]  }
 0x117   : > { %3294 = vmatmul.mubr.bf16.gmra.mrb[8].mxu0 %v4713_v14  ;;  %2958 = vmatpush1.bf16.msra.mxu1 %v4651_v12  ;;  %v4756_v12 = vld [vmem:[%s4955_s13 + $0x174] ss:$84 sps:$4 sm:$0xff]   ;;  %v4760_v14 = vld [vmem:[%s4955_s13 + $0x170] ss:$84 sps:$4 sm:$0xff]  }
 0x118   : > { %3323 = vmatpush1.bf16.msra.mxu0 %v4654_v15  ;;  %2959 = vmatprep.subr.bf16.mxu1 %v4659_v16  ;;  %v4761_v15 = vld [vmem:[%s4955_s13 + $0x198] ss:$84 sps:$4 sm:$0xff]   ;;  %v4765_v16 = vld [vmem:[%s4955_s13 + $0x21c] ss:$84 sps:$4 sm:$0xff]  }
 0x119   : > { %3324 = vmatprep.subr.bf16.mxu0 %v4662_v17  ;;  %2938 = vmatprep.mubr.bf16.mxu1 %v4723_v18  ;;  %v4767_v17 = vld [vmem:[%s4955_s13 + $0x244] ss:$84 sps:$4 sm:$0xff]  }
 0x11a   : > { %3303 = vmatprep.mubr.bf16.mxu0 %v4725_v19  ;;  %v4769_v18 = vld [vmem:[%s4955_s13 + $0x218] ss:$84 sps:$4 sm:$0xff]   ;;  %v4770_v19 = vld [vmem:[%s4955_s13 + $0x240] ss:$84 sps:$4 sm:$0xff]  }
 0x11b   : > { %2960 = vmatpush1.bf16.msra.mxu1 %v4657_v20  ;;  %v4783_v20 = vmov 0  }
 0x11c   : > { %3325 = vmatpush1.bf16.msra.mxu0 %v4660_v21  ;;  %2961 = vmatprep.subr.bf16.mxu1 %v4665_v22  ;;  %v4771_v21 = vld [vmem:[%s4955_s13 + $0x50] ss:$84 sps:$4 sm:$0xff]   ;;  %v4772_v22 = vld [vmem:[%s4955_s13 + $0x1a0] ss:$84 sps:$4 sm:$0xff]  }
 0x11d   : > { %3326 = vmatprep.subr.bf16.mxu0 %v4668_v23  ;;  %v4773_v23 = vld [vmem:[%s4955_s13 + $0xf8] ss:$84 sps:$4 sm:$0xff]  }
 0x11e   : > { %2939 = vmatmul.mubr.bf16.gmra.mrb[12].mxu1 %v4727_v24  ;;  %v4774_v24 = vld [vmem:[%s4955_s13 + $0x248] ss:$84 sps:$4 sm:$0xff]  }
 0x11f   : > { %3304 = vmatmul.mubr.bf16.gmra.mrb[12].mxu0 %v4731_v25  ;;  %2962 = vmatpush1.bf16.msra.mxu1 %v4663_v26 }
 0x120   : > { %3327 = vmatpush1.bf16.msra.mxu0 %v4666_v27  ;;  %2963 = vmatprep.subr.bf16.mxu1 %v4671_v28  ;;  %v594_v28 = vlaneseq }
 0x121   : > { %3328 = vmatprep.subr.bf16.mxu0 %v4674_v29  ;;  %2981 = vmatprep.mubr.bf16.mxu1 %v4743_v30 }
 0x122   : > { %3346 = vmatprep.mubr.bf16.mxu0 %v4746_v31  ;;  %v595_v30 = vshrl.u32 %v594_v28, 7 }
 0x123   : > { %2964 = vmatpush1.bf16.msra.mxu1 %v4669_v32 }
 0x124   : > { %3329 = vmatpush1.bf16.msra.mxu0 %v4672_v33  ;;  %2965 = vmatprep.subr.bf16.mxu1 %v4677_v34  ;;  %v596_v34 = vsub.s32 0, %v595_v30 }
 0x125   : > { %3330 = vmatprep.subr.bf16.mxu0 %v4680_v35 }
 0x127   : > { %2966 = vmatpush1.bf16.msra.mxu1 %v4675_v36  ;;  %v592_v36 = vld [vmem:[%s5952_s2] sm:$0x3] }
 0x128   : > { %3331 = vmatpush1.bf16.msra.mxu0 %v4678_v37  ;;  %2967 = vmatprep.subr.bf16.mxu1 %v4683_v38  ;;  %v600_v37 = vsub.s32 1, %v595_v30  ;;  %v5893_v38 = vrot.slane %v592_v36, %v596_v34 }
 0x129   : > { %3332 = vmatprep.subr.bf16.mxu0 %v4686_v39 }
 0x12a   : > { %v5895_v39 = vrot.slane %v592_v36, %v600_v37 }
 0x12b   : > { %2968 = vmatpush1.bf16.msra.mxu1 %v4681_v40 }
 0x12c   : > { %3333 = vmatpush1.bf16.msra.mxu0 %v4684_v41  ;;  %2969 = vmatprep.subr.bf16.mxu1 %v4694_v42 }
 0x12d   : > { %3334 = vmatprep.subr.bf16.mxu0 %v4698_v43 }
 0x12f   : > { %2970 = vmatpush1.bf16.msra.mxu1 %v4692_v44 }
 0x130   : > { %3335 = vmatpush1.bf16.msra.mxu0 %v4696_v45  ;;  %2971 = vmatprep.subr.bf16.mxu1 %v4701_v46 }
 0x131   : > { %3336 = vmatprep.subr.bf16.mxu0 %v4704_v47 }
 0x133   : > { %2972 = vmatpush1.bf16.msra.mxu1 %v4699_v48 }
 0x134   : > { %3337 = vmatpush1.bf16.msra.mxu0 %v4702_v49  ;;  %2973 = vmatprep.subr.bf16.mxu1 %v4712_v50 }
 0x135   : > { %3338 = vmatprep.subr.bf16.mxu0 %v4716_v51 }
 0x137   : > { %2974 = vmatpush1.bf16.msra.mxu1 %v4710_v52 }
 0x138   : > { %3339 = vmatpush1.bf16.msra.mxu0 %v4714_v53  ;;  %2975 = vmatprep.subr.bf16.mxu1 %v4719_v54 }
 0x139   : > { %3340 = vmatprep.subr.bf16.mxu0 %v4722_v55 }
 0x13b   : > { %2976 = vmatpush1.bf16.msra.mxu1 %v4717_v56 }
 0x13c   : > { %3341 = vmatpush1.bf16.msra.mxu0 %v4720_v57  ;;  %2977 = vmatprep.subr.bf16.mxu1 %v4730_v58 }
 0x13d   : > { %3342 = vmatprep.subr.bf16.mxu0 %v4734_v59 }
 0x13f   : > { %2978 = vmatpush1.bf16.msra.mxu1 %v4728_v60 }
 0x140   : > { %3343 = vmatpush1.bf16.msra.mxu0 %v4732_v61  ;;  %2979 = vmatprep.subr.bf16.mxu1 %v4737_v62 }
 0x141   : > { %3344 = vmatprep.subr.bf16.mxu0 %v4740_v63 }
 0x143   : > { %2980 = vmatpush1.bf16.msra.mxu1 %v4735_v0 }
 0x144   : > { %3345 = vmatpush1.bf16.msra.mxu0 %v4738_v1  ;;  %3975 = vmatprep.subr.bf16.mxu1 %v4749_v2 }
 0x145   : > { %3387 = vmatprep.subr.bf16.mxu0 %v4749_v2 }
 0x146   : > { %2982 = vmatmul.mubr.bf16.vlgmr.msra.gmra.mrb[0].mxu1 %v4741_v3 }
 0x147   : > { %3347 = vmatmul.mubr.bf16.vlgmr.msra.gmra.mrb[0].mxu0 %v4744_v4  ;;  %3977 = vmatpush1.bf16.msra.mxu1 %v4747_v5 }
 0x148   : > { %3388 = vmatpush1.bf16.msra.mxu0 %v4747_v5  ;;  %2991 = vmatprep.mubr.bf16.mxu1 %v4750_v6 }
 0x149   : > { %3356 = vmatprep.mubr.bf16.mxu0 %v4752_v7  ;;  %3389 = vmatprep.subr.bf16.mxu0 %v4764_v8 }
 0x14a   : > { %3976 = vmatprep.subr.bf16.mxu1 %v4764_v8 }
 0x14b   : > { %3978 = vmatpush1.bf16.msra.mxu1 %v4762_v9 }
 0x14c   : > { %3390 = vmatpush1.bf16.msra.mxu0 %v4762_v9 }
 0x14e   : > { %2992 = vmatmul.mubr.bf16.gmra.mrb[4].mxu1 %v4754_v10 }
 0x14f   : > { %3357 = vmatmul.mubr.bf16.gmra.mrb[4].mxu0 %v4755_v11  ;;  %3001 = vmatprep.mubr.bf16.mxu1 %v4756_v12 }
 0x150   : > { %3366 = vmatprep.mubr.bf16.mxu0 %v4758_v13 }
 0x156   : > { %3002 = vmatmul.mubr.bf16.gmra.mrb[8].mxu1 %v4760_v14 }
 0x157   : > { %3367 = vmatmul.mubr.bf16.gmra.mrb[8].mxu0 %v4761_v15  ;;  %3011 = vmatprep.mubr.bf16.mxu1 %v4765_v16 }
 0x158   : > { %3376 = vmatprep.mubr.bf16.mxu0 %v4767_v17 }
 0x15e   : > { %3012 = vmatmul.mubr.bf16.gmra.mrb[12].mxu1 %v4769_v18 }
 0x15f   : > { %3377 = vmatmul.mubr.bf16.gmra.mrb[12].mxu0 %v4770_v19  ;;  %3439 = vmatprep.mubr.bf16.mxu1 %v4783_v20 }
 0x160   : > { %3419 = vmatprep.mubr.bf16.mxu0 %v4783_v20 }
 0x166   : > { %3970 = vmatmul.mubr.msk.bf16.vlgmr.msra.gmra.mrb[16].mxu1 %vm2644_vm0, %v4772_v22 }
 0x167   : > { %3968 = vmatmul.mubr.msk.bf16.vlgmr.msra.gmra.mrb[0].mxu0 %vm2644_vm0, %v4771_v21  ;;  %3449 = vmatprep.mubr.bf16.mxu1 %v4783_v20 }
 0x168   : > { %3429 = vmatprep.mubr.bf16.mxu0 %v4783_v20 }
 0x16e   : > { %3971 = vmatmul.mubr.msk.bf16.gmra.mrb[20].mxu1 %vm2644_vm0, %v4774_v24 }
 0x16f   : > { %3969 = vmatmul.mubr.msk.bf16.gmra.mrb[4].mxu0 %vm2644_vm0, %v4773_v23 }
 0x219   : > { %v2983_v25 = vpop.f32.mrb[0].mxu1 }
 0x21a   : > { %v2985_v26 = vpop.f32.mrb[1].mxu1  ;;  %v3979_v8 = vadd.f32 %v2983_v25, %v5893_v38 }
 0x21b   : > { %v2987_v27 = vpop.f32.mrb[2].mxu1  ;;  %v3981_v9 = vadd.f32 %v2985_v26, %v5895_v39 }
 0x21c   : > { %v2989_v29 = vpop.f32.mrb[3].mxu1  ;;  %v3983_v12 = vadd.f32 %v2987_v27, %v5893_v38 }
 0x21d   : > { %v3985_v17 = vadd.f32 %v2989_v29, %v5895_v39 }
 0x221   : > { %v5882_v31 = vpop.f32.mrb[4].mxu1 }
 0x222   : > { %v5884_v32 = vpop.f32.mrb[5].mxu1 }
 0x223   : > { %v5886_v33 = vpop.f32.mrb[6].mxu1 }
 0x224   : > { %v5888_v35 = vpop.f32.mrb[7].mxu1 }
 0x229   : > { %v3003_v40 = vpop.f32.mrb[8].mxu1 }
 0x22a   : > { %v3368_v41 = vpop.f32.mrb[8].mxu0  ;;  %v3995_v42 = vadd.f32 %v3003_v40, %v5893_v38  ;;  %v3005_v43 = vpop.f32.mrb[9].mxu1 }
 0x22b   : > { %v3370_v44 = vpop.f32.mrb[9].mxu0  ;;  %v3998_v45 = vadd.f32 %v3005_v43, %v5895_v39  ;;  %v3007_v46 = vpop.f32.mrb[10].mxu1  ;;  %v3989_v43 = vadd.f32 %v5884_v32, %v5895_v39 }
 0x22c   : > { %v3372_v47 = vpop.f32.mrb[10].mxu0  ;;  %v3996_v48 = vadd.f32 %v3995_v42, %v3368_v41  ;;  %v4001_v49 = vadd.f32 %v3007_v46, %v5893_v38  ;;  %v3009_v50 = vpop.f32.mrb[11].mxu1  ;;  %v3987_v42 = vadd.f32 %v5882_v31, %v5893_v38  ;;  %v3991_v46 = vadd.f32 %v5886_v33, %v5893_v38 }
 0x22d   : > { %v3374_v51 = vpop.f32.mrb[11].mxu0  ;;  %v3999_v52 = vadd.f32 %v3998_v45, %v3370_v44  ;;  %v4004_v53 = vadd.f32 %v3009_v50, %v5895_v39  ;;  %v3993_v31 = vadd.f32 %v5888_v35, %v5895_v39 }
 0x22e   : > { %v4002_v54 = vadd.f32 %v4001_v49, %v3372_v47 }
 0x22f   : > { %v4005_v55 = vadd.f32 %v4004_v53, %v3374_v51 }
 0x231   : > { %v3013_v56 = vpop.f32.mrb[12].mxu1 }
 0x232   : > { %v3378_v57 = vpop.f32.mrb[12].mxu0  ;;  %v4007_v58 = vadd.f32 %v3013_v56, %v5893_v38  ;;  %v3015_v59 = vpop.f32.mrb[13].mxu1 }
 0x233   : > { %v3380_v60 = vpop.f32.mrb[13].mxu0  ;;  %v4010_v61 = vadd.f32 %v3015_v59, %v5895_v39  ;;  %v3017_v62 = vpop.f32.mrb[14].mxu1 }
 0x234   : > { %v3382_v63 = vpop.f32.mrb[14].mxu0  ;;  %v4008_v0 = vadd.f32 %v4007_v58, %v3378_v57  ;;  %v4013_v1 = vadd.f32 %v3017_v62, %v5893_v38  ;;  %v3019_v2 = vpop.f32.mrb[15].mxu1 }
 0x235   : > { %v3384_v3 = vpop.f32.mrb[15].mxu0  ;;  %v4011_v4 = vadd.f32 %v4010_v61, %v3380_v60  ;;  %v4016_v5 = vadd.f32 %v3019_v2, %v5895_v39 }
 0x236   : > { %v4014_v6 = vadd.f32 %v4013_v1, %v3382_v63 }
 0x237   : > { %v4017_v7 = vadd.f32 %v4016_v5, %v3384_v3 }
 0x239   : > { %v3441_v11 = vpop.f32.mrb[16].mxu1 }
 0x23a   : > { %v3421_v10 = vpop.f32.mrb[0].mxu0  ;;  %v3997_v14 = vadd.f32 %v3996_v48, %v3441_v11  ;;  %v3443_v16 = vpop.f32.mrb[17].mxu1 }
 0x23b   : > { %v3980_v13 = vadd.f32 %v3979_v8, %v3421_v10  ;;  %v3423_v15 = vpop.f32.mrb[1].mxu0  ;;  %v4000_v19 = vadd.f32 %v3999_v52, %v3443_v16  ;;  %v3445_v21 = vpop.f32.mrb[18].mxu1 }
 0x23c   : > { %v3982_v18 = vadd.f32 %v3981_v9, %v3423_v15  ;;  %v3425_v20 = vpop.f32.mrb[2].mxu0  ;;  %v3468_v23 = vmax.f32 %v3997_v14, 0.0  ;;  %v4003_v25 = vadd.f32 %v4002_v54, %v3445_v21  ;;  %v3447_v27 = vpop.f32.mrb[19].mxu1 }
 0x23d   : > { %v3460_v22 = vmax.f32 %v3980_v13, 0.0  ;;  %v3984_v24 = vadd.f32 %v3983_v12, %v3425_v20  ;;  %v3427_v26 = vpop.f32.mrb[3].mxu0  ;;  %v3469_v29 = vmax.f32 %v4000_v19, 0.0  ;;  %v4006_v34 = vadd.f32 %v4005_v55, %v3447_v27 }
 0x23e   : > { %v3461_v28 = vmax.f32 %v3982_v18, 0.0  ;;  %v3986_v30 = vadd.f32 %v3985_v17, %v3427_v26  ;;  %3484 = vst [vmem:[%s5913_s18 + $0x40] sm:$0xff] %v3468_v23  ;;  %v3470_v37 = vmax.f32 %v4003_v25, 0.0 }
 0x23f   : > { %3476 = vst [vmem:[%s5913_s18] sm:$0xff] %v3460_v22  ;;  %v3462_v36 = vmax.f32 %v3984_v24, 0.0  ;;  %3485 = vst.msk [vmem:[%s5913_s18 + $0x48] sm:$0xff] %vm2644_vm0, %v3469_v29  ;;  %v3471_v41 = vmax.f32 %v4006_v34, 0.0 }
 0x240   : > { %3477 = vst.msk [vmem:[%s5913_s18 + $0x8] sm:$0xff] %vm2644_vm0, %v3461_v28  ;;  %v3463_v40 = vmax.f32 %v3986_v30, 0.0  ;;  %3486 = vst [vmem:[%s5913_s18 + $0x50] sm:$0xff] %v3470_v37 }
 0x241   : > { %3478 = vst [vmem:[%s5913_s18 + $0x10] sm:$0xff] %v3462_v36  ;;  %3487 = vst.msk [vmem:[%s5913_s18 + $0x58] sm:$0xff] %vm2644_vm0, %v3471_v41  ;;  %v3451_v45 = vpop.f32.mrb[20].mxu1 }
 0x242   : > { %3479 = vst.msk [vmem:[%s5913_s18 + $0x18] sm:$0xff] %vm2644_vm0, %v3463_v40  ;;  %v3431_v44 = vpop.f32.mrb[4].mxu0  ;;  %v4009_v48 = vadd.f32 %v4008_v0, %v3451_v45  ;;  %v3453_v50 = vpop.f32.mrb[21].mxu1 }
 0x243   : > { %v3988_v47 = vadd.f32 %v3987_v42, %v3431_v44  ;;  %v3433_v49 = vpop.f32.mrb[5].mxu0  ;;  %v4012_v32 = vadd.f32 %v4011_v4, %v3453_v50  ;;  %v3455_v53 = vpop.f32.mrb[22].mxu1 }
 0x244   : > { %v3990_v51 = vadd.f32 %v3989_v43, %v3433_v49  ;;  %v3435_v52 = vpop.f32.mrb[6].mxu0  ;;  %v3472_v55 = vmax.f32 %v4009_v48, 0.0  ;;  %v4015_v33 = vadd.f32 %v4014_v6, %v3455_v53  ;;  %v3457_v57 = vpop.f32.mrb[23].mxu1 }
 0x245   : > { %v3464_v54 = vmax.f32 %v3988_v47, 0.0  ;;  %v3992_v56 = vadd.f32 %v3991_v46, %v3435_v52  ;;  %v3437_v38 = vpop.f32.mrb[7].mxu0  ;;  %v3473_v59 = vmax.f32 %v4012_v32, 0.0  ;;  %v4018_v39 = vadd.f32 %v4017_v7, %v3457_v57 }
 0x246   : > { %v3465_v58 = vmax.f32 %v3990_v51, 0.0  ;;  %v3994_v35 = vadd.f32 %v3993_v31, %v3437_v38  ;;  %3488 = vst [vmem:[%s5913_s18 + $0x60] sm:$0xff] %v3472_v55  ;;  %v3474_v61 = vmax.f32 %v4015_v33, 0.0 }
 0x247   : > { %3480 = vst [vmem:[%s5913_s18 + $0x20] sm:$0xff] %v3464_v54  ;;  %v3466_v60 = vmax.f32 %v3992_v56, 0.0  ;;  %3489 = vst.msk [vmem:[%s5913_s18 + $0x68] sm:$0xff] %vm2644_vm0, %v3473_v59  ;;  %v3475_v63 = vmax.f32 %v4018_v39, 0.0 }
 0x248   : > { %3481 = vst.msk [vmem:[%s5913_s18 + $0x28] sm:$0xff] %vm2644_vm0, %v3465_v58  ;;  %v3467_v62 = vmax.f32 %v3994_v35, 0.0  ;;  %3490 = vst [vmem:[%s5913_s18 + $0x70] sm:$0xff] %v3474_v61 }
 0x249   : > { %3482 = vst [vmem:[%s5913_s18 + $0x30] sm:$0xff] %v3466_v60  ;;  %3491 = vst.msk [vmem:[%s5913_s18 + $0x78] sm:$0xff] %vm2644_vm0, %v3475_v63 }
 0x24a   : > { %3483 = vst.msk [vmem:[%s5913_s18 + $0x38] sm:$0xff] %vm2644_vm0, %v3467_v62 }
 0x24b PF: > { %s13_s12 = sadd.s32 1, %s4781_s12  }
 0x24c   : > { %p10_p4 = scmp.ge.s32.totalorder %s13_s12, 4  }
 0x24e   :  { %12 = sbr.rel (!%p10_p4) target bundleno = 1 (0x1), region = 62 }

</bundles_post_ra>
